<compile_context>
chip_gen: v5e
topology: v5e:2x2
jax: 0.10.0
libtpu: 0.0.40
codegen_flags: <defaults>
</compile_context>

<pallas_src>
import numpy as np
import jax
import jax.numpy as jnp
from jax.experimental import pallas as pl
from jax.experimental.pallas import tpu as pltpu


# ----------------- deterministic parameter construction (host, float64) -----------------

def _round_up(v, m):
    return -(-v // m) * m


def grouped_conv_dense(rng, in_ch, out_ch, groups):
    """Dense (in_ch, out_ch) block-diagonal matrix equivalent to Conv1d(k=1, groups)."""
    ipg, opg = in_ch // groups, out_ch // groups
    Wd = np.zeros((in_ch, out_ch), np.float64)
    bound = 1.0 / np.sqrt(ipg)
    for g in range(groups):
        w = rng.uniform(-bound, bound, size=(opg, ipg))
        Wd[g * ipg:(g + 1) * ipg, g * opg:(g + 1) * opg] = w.T
    bias = rng.uniform(-bound, bound, size=(1, out_ch))
    return Wd, bias


def spectral_params(rng, seq_len, in_ch, out_ch, modes1=1064):
    """Replicates SpectralConv1d.__init__ (1000 < modes1 <= 10000 branch)."""
    modes2 = modes1 - 1000
    index = list(range(seq_len // 2))
    rng.shuffle(index)
    index = index[:modes2]
    scale = 1.0 / (in_ch * out_ch)
    w = scale * (rng.rand(1, 256, 1, len(index)) + 1j * rng.rand(1, 256, 1, len(index)))
    # einsum('bhi,hio->bho') with input i-dim == 1 broadcasts -> multiply by sum over dim 1.
    w_sum = w.sum(axis=1)[0, 0, :]
    return index, w_sum


def spectral_matrix(L, index, w_sum):
    """(L, L) real matrix M with  spectral_conv(x) == x @ M  (rfft -> select/scale -> irfft)."""
    Mh = L // 2 + 1
    assert max(index) < Mh, "SpectralConv1d index out of range (would raise in torch too)"
    eye = np.eye(L)
    X = np.fft.rfft(eye, axis=-1)
    out_ft = np.zeros((L, Mh), np.complex128)
    for wi, i in enumerate(index):
        out_ft[:, wi] = X[:, i] * w_sum[wi]
    return np.fft.irfft(out_ft, n=L, axis=-1)


def build_params(D, inner, dup, depth, stacks, blocks_per_stack, seed=0):
    rng = np.random.RandomState(seed)
    cs = dup
    heads = dup
    L = D * dup
    H = inner * cs

    # Parallel_Controler: `depth` grouped convs (+ReLU) then one final grouped conv.
    dims = [(D * cs, H)] + [(H, H)] * (depth - 1) + [(H, D * cs)]
    ctrl_W64, ctrl_b64 = [], []
    for cin, cout in dims:
        W, b = grouped_conv_dense(rng, cin, cout, cs)
        ctrl_W64.append(W)
        ctrl_b64.append(b)

    # Parallel_NBeatsNet: stacks*blocks_per_stack blocks, each with 3 SpectralConv1d.
    n_blocks = stacks * blocks_per_stack
    idx_basic, w_basic, idx_f, w_f, idx_b, w_b = [], [], [], [], [], []
    M_basic, M_f, M_b = [], [], []
    for _ in range(n_blocks):
        # __init__ order in Parallel_Block: basic_block, theta_b_fc, theta_f_fc
        i1, s1 = spectral_params(rng, inner * heads, D * heads, inner * heads)
        i2, s2 = spectral_params(rng, D * heads, inner * heads, D * heads)
        i3, s3 = spectral_params(rng, D * heads, inner * heads, D * heads)
        idx_basic.append(i1); w_basic.append(s1)
        idx_b.append(i2);     w_b.append(s2)
        idx_f.append(i3);     w_f.append(s3)
        M_basic.append(spectral_matrix(L, i1, s1))
        M_b.append(spectral_matrix(L, i2, s2))
        M_f.append(spectral_matrix(L, i3, s3))

    # 0/1 grouping matrix for view(B, -1, dup): flat channel l -> group l // dup.
    G = np.zeros((L, D), np.float64)
    for l in range(L):
        G[l, l // dup] = 1.0
    GGT = G @ G.T                                          # (L, L) group-sum broadcaster

    # fold x.repeat(1, dup) into the first controller weight: xr = x @ R
    R = np.zeros((D, L), np.float64)
    for l in range(L):
        R[l % D, l] = 1.0
    W0_folded = R @ ctrl_W64[0]                            # (D, H)

    # precompose the (linear) NBeats chain: bc_final = bc0 @ P, fc_final = bc0 @ Q
    P = np.eye(L)
    Q = np.zeros((L, L))
    for blk in range(n_blocks):
        Fn = M_basic[blk] @ M_f[blk]
        Bn = M_basic[blk] @ M_b[blk]
        Q = Q + P @ Fn
        P = P @ (np.eye(L) - Bn)
    scale = 1.0 / (dup * n_blocks)                         # mean over dup, then /(stacks*blocks)

    # packed operator: [backcast_mean | forecast_mean | backcast_out | forecast_out | 0pad]
    OUT = 2 * D + 2 * L
    OUT_pad = _round_up(OUT, 128)                          # lane-dense output for any config
    W_big = np.zeros((L, OUT_pad), np.float64)
    W_big[:, 0:D]              = P @ G * scale
    W_big[:, D:2 * D]          = Q @ G * scale
    W_big[:, 2 * D:2 * D + L]  = np.eye(L) - P
    W_big[:, 2 * D + L:OUT]    = Q

    # ---- pack every constant operand into ONE lane-dense bf16 slab (single DMA).
    ctrl_Wk = [W0_folded] + ctrl_W64[1:]
    consts = []
    for li, (W, b) in enumerate(zip(ctrl_Wk, ctrl_b64)):
        consts.append((f"W{li}", W))
        consts.append((f"b{li}", b))
    consts.append(("GGT", GGT))
    consts.append(("WBIG", W_big))

    slab_cols = _round_up(max(m.shape[1] for _, m in consts), 128)
    slab_blocks, offs, row = [], {}, 0
    for name, m in consts:
        h, w = m.shape
        hp = _round_up(h, 8)                               # every chunk starts on a sublane tile
        blk = np.zeros((hp, slab_cols), np.float32)
        blk[:h, :w] = m
        slab_blocks.append(blk)
        offs[name] = (row, h, w)
        row += hp
    slab_np = np.concatenate(slab_blocks, axis=0)

    n_ctrl = len(dims)
    flops_per_row = 2 * (D * H + sum(ci * co for ci, co in dims[1:]) + L * L + L * OUT_pad)

    return dict(
        D=D, dup=dup, L=L, H=H, OUT=OUT, OUT_pad=OUT_pad, n_ctrl=n_ctrl,
        n_blocks=n_blocks, n_div=n_blocks, flops_per_row=flops_per_row,
        # f32->bf16 packed operand consumed by the Pallas kernel
        slab=jnp.asarray(slab_np, jnp.bfloat16), offs=offs,
        # originals for the pure-JAX (FFT-based) reference
        ctrl_W=[jnp.asarray(W, jnp.float32) for W in ctrl_W64],
        ctrl_b=[jnp.asarray(b, jnp.float32) for b in ctrl_b64],
        idx_basic=idx_basic, w_basic=[np.asarray(s, np.complex64) for s in w_basic],
        idx_f=idx_f, w_f=[np.asarray(s, np.complex64) for s in w_f],
        idx_b=idx_b, w_b=[np.asarray(s, np.complex64) for s in w_b],
    )
    # TODO(synk): pos embeddings / layer_1..layer_4 / SpectralConv1d.block are created in
    # __init__ but never affect forward outputs (dead code) -> intentionally not built.


# ------------------------------------ Pallas kernel ------------------------------------

def make_kernel(D, dup, n_ctrl, offs):
    wb_r0, _, wb_cols = offs["WBIG"]

    def kernel(x_ref, slab_ref, out_ref):
        def const(name):
            r0, h, w = offs[name]
            return slab_ref[r0:r0 + h, :w]                 # bf16, aligned static sub-window

        x = x_ref[...]                                     # (BT, D) f32

        # ---- Parallel_Controler (x.repeat(1,dup) folded into W0); bf16 MXU, f32 accum.
        h = jnp.dot(x.astype(jnp.bfloat16), const("W0"),
                    preferred_element_type=jnp.float32)
        h = h + const("b0").astype(jnp.float32)
        h = jnp.maximum(h, 0.0)
        for li in range(1, n_ctrl):
            h = jnp.dot(h.astype(jnp.bfloat16), const(f"W{li}"),
                        preferred_element_type=jnp.float32)
            h = h + const(f"b{li}").astype(jnp.float32)
            if li < n_ctrl - 1:
                h = jnp.maximum(h, 0.0)

        # softmax over each group of `dup` adjacent flat channels (view(B,-1,dup), dim=2).
        # Row-max shift (shared by all group members -> softmax-invariant); group sums
        # via one 0/1 GGT matmul; exact divide with a floor so a fully-underflowed group
        # yields 0 instead of NaN/inf from an approximate reciprocal.
        h = h - jnp.max(h, axis=1, keepdims=True)
        e = jnp.exp(h)
        denom = jnp.dot(e.astype(jnp.bfloat16), const("GGT"),
                        preferred_element_type=jnp.float32)
        mw = e / jnp.maximum(denom, 1e-20)                 # model_weights, flat (BT, L)

        # ---- packed output = (x.repeat(1,dup) * mw) @ W_big, without the lane concat:
        # the m-th D-wide chunk of xr is exactly x, so accumulate over dup chunks.
        # columns = [backcast_mean | forecast_mean | backcast_out | forecast_out | pad]
        acc = None
        for m in range(dup):
            lhs = (x * mw[:, m * D:(m + 1) * D]).astype(jnp.bfloat16)
            rhs = slab_ref[wb_r0 + m * D: wb_r0 + (m + 1) * D, :wb_cols]
            t = jnp.dot(lhs, rhs, preferred_element_type=jnp.float32)
            acc = t if acc is None else acc + t
        out_ref[...] = acc

    return kernel


def make_forward(p, BT=512):
    D, dup, L = p["D"], p["dup"], p["L"]
    OUT_pad = p["OUT_pad"]
    slab, offs = p["slab"], p["offs"]
    kernel = make_kernel(D, dup, p["n_ctrl"], offs)

    @jax.jit
    def forward(x):
        B = x.shape[0]
        # pad the batch so no trailing rows are silently dropped
        n_tiles = pl.cdiv(B, BT)
        B_pad = n_tiles * BT
        xp = x if B_pad == B else jnp.pad(x, ((0, B_pad - B), (0, 0)))

        cost = pl.CostEstimate(
            flops=B_pad * p["flops_per_row"],
            transcendentals=B_pad * L,
            bytes_accessed=B_pad * D * 4 + B_pad * OUT_pad * 4 + slab.size * 2)

        out = pl.pallas_call(
            kernel,
            out_shape=jax.ShapeDtypeStruct((B_pad, OUT_pad), jnp.float32),
            grid_spec=pltpu.PrefetchScalarGridSpec(
                num_scalar_prefetch=0,
                grid=(n_tiles,),
                in_specs=[pl.BlockSpec((BT, D), lambda i: (i, 0)),
                          # constant index_map -> fetched once; double-buffer overhead is
                          # ~0.5 MB at L=128 (add pl.Buffered(1) only when L scales).
                          pl.BlockSpec(tuple(slab.shape), lambda i: (0, 0))],
                out_specs=pl.BlockSpec((BT, OUT_pad), lambda i: (i, 0))),
            compiler_params=pltpu.CompilerParams(
                dimension_semantics=("parallel",),
                vmem_limit_bytes=32 * 1024 * 1024),
            cost_estimate=cost,
        )(xp, slab)

        out = out[:B]
        bmean = out[:, :D]
        fmean = out[:, D:2 * D]
        bflat = out[:, 2 * D:2 * D + L]
        fflat = out[:, 2 * D + L:2 * D + 2 * L]
        # glue reshapes matching torch's .view(B, -1, duplicate); kept under the same jit
        # as the pallas_call so XLA fuses the split of the packed slab.
        return bmean, fmean, bflat.reshape(B, D, dup), fflat.reshape(B, D, dup)

    return forward


# --------------------------- pure-JAX reference (for validation) ------------------------

def reference_forward(x, p):
    B, D = x.shape
    dup, L = p['dup'], p['L']
    xr = jnp.tile(x, (1, dup))
    h = xr
    n_ctrl = len(p['ctrl_W'])
    for li in range(n_ctrl):
        h = h @ p['ctrl_W'][li] + p['ctrl_b'][li]
        if li < n_ctrl - 1:
            h = jax.nn.relu(h)
    w = jax.nn.softmax(h.reshape(B, D, dup), axis=2).reshape(B, L)
    bc0 = xr * w

    def spectral(xL, index, w_sum):
        X = jnp.fft.rfft(xL, axis=-1)
        sel = X[:, jnp.asarray(index)] * jnp.asarray(w_sum)
        out_ft = jnp.zeros((B, L // 2 + 1), dtype=sel.dtype)
        out_ft = out_ft.at[:, :len(index)].set(sel)
        return jnp.fft.irfft(out_ft, n=L, axis=-1)

    bc, fc = bc0, jnp.zeros_like(bc0)
    for blk in range(p['n_blocks']):
        x1 = spectral(bc, p['idx_basic'][blk], p['w_basic'][blk])
        f = spectral(x1, p['idx_f'][blk], p['w_f'][blk])
        bb = spectral(x1, p['idx_b'][blk], p['w_b'][blk])
        bc = bc - bb
        fc = fc + f
    nd = p['n_div']
    bmean = jnp.mean(bc.reshape(B, D, dup), axis=2) / nd
    fmean = jnp.mean(fc.reshape(B, D, dup), axis=2) / nd
    return bmean, fmean, (bc0 - bc).reshape(B, D, dup), fc.reshape(B, D, dup)


# ------------------------------------------ main ----------------------------------------

if __name__ == "__main__":
    # inner_size == backcast_length keeps the SpectralConv1d mode indices in-bounds
    # (the repo defaults would raise IndexError inside torch as well).
    B, BT = 1024, 512                # 2 grid steps of 512 rows (bigger tiles, >= 2 steps)
    backcast_length = 64             # D  -> L = 128 (lane-dense spectral operators)
    inner_size = 64
    duplicate = 2
    depth = 3
    stacks, blocks_per_stack = 2, 2

    params = build_params(backcast_length, inner_size, duplicate, depth,
                          stacks, blocks_per_stack, seed=0)
    forward = make_forward(params, BT=BT)

    key = jax.random.PRNGKey(0)
    x = jax.random.normal(key, (B, backcast_length), dtype=jnp.float32)

    outs = jax.block_until_ready(forward(x))
    refs = jax.block_until_ready(reference_forward(x, params))
    # tolerances account for bf16 matmul operands (f32 accumulation) in the kernel vs the
    # all-f32 FFT-based reference.
    for o, r in zip(outs, refs):
        np.testing.assert_allclose(np.asarray(o), np.asarray(r), rtol=5e-2, atol=5e-3)

    print("KERNEL_OK")
</pallas_src>

<mosaic_0001>
module attributes {stable_mosaic.version = 11 : i64} {
  func.func @kernel(%arg0: i32, %arg1: memref<512x64xf32, #tpu.memory_space<vmem>>, %arg2: memref<736x384xbf16, #tpu.memory_space<vmem>>, %arg3: memref<512x384xf32, #tpu.memory_space<vmem>>) attributes {dimension_semantics = [#tpu.dimension_semantics<parallel>], iteration_bounds = array<i64: 2>, scalar_prefetch = 0 : i64, scratch_operands = 0 : i64, tpu.core_type = #tpu.core_type<tc>, window_params = [{transform_indices = @transform_0, window_bounds = array<i64: 512, 64>}, {pipeline_mode = #tpu.pipeline_mode<synchronous>, transform_indices = @transform_1, window_bounds = array<i64: 736, 384>}, {transform_indices = @transform_2, window_bounds = array<i64: 512, 384>}]} {
    %c0 = arith.constant 0 : index
    %c0_0 = arith.constant 0 : index
    %0 = vector.load %arg1[%c0, %c0_0] : memref<512x64xf32, #tpu.memory_space<vmem>>, vector<512x64xf32>
    %1 = arith.truncf %0 : vector<512x64xf32> to vector<512x64xbf16>
    %c0_1 = arith.constant 0 : index
    %c0_2 = arith.constant 0 : index
    %2 = vector.load %arg2[%c0_1, %c0_2] : memref<736x384xbf16, #tpu.memory_space<vmem>>, vector<64x128xbf16>
    %cst = arith.constant dense<0.000000e+00> : vector<512x128xf32>
    %3 = tpu.matmul %1, %2, %cst {dimension_numbers = #tpu.dot_dimension_numbers<[1], [0], [0], [1], [0, 0, 1, 1], [], []>} : vector<512x64xbf16>, vector<64x128xbf16>, vector<512x128xf32> -> vector<512x128xf32>
    %c64 = arith.constant 64 : index
    %c0_3 = arith.constant 0 : index
    %4 = vector.load %arg2[%c64, %c0_3] : memref<736x384xbf16, #tpu.memory_space<vmem>>, vector<1x128xbf16>
    %5 = arith.extf %4 : vector<1x128xbf16> to vector<1x128xf32>
    %6 = vector.broadcast %5 : vector<1x128xf32> to vector<512x128xf32>
    %7 = arith.addf %3, %6 : vector<512x128xf32>
    %cst_4 = arith.constant 0.000000e+00 : f32
    %8 = vector.broadcast %cst_4 : f32 to vector<512x128xf32>
    %9 = arith.maximumf %7, %8 : vector<512x128xf32>
    %10 = arith.truncf %9 : vector<512x128xf32> to vector<512x128xbf16>
    %c72 = arith.constant 72 : index
    %c0_5 = arith.constant 0 : index
    %11 = vector.load %arg2[%c72, %c0_5] : memref<736x384xbf16, #tpu.memory_space<vmem>>, vector<128x128xbf16>
    %cst_6 = arith.constant dense<0.000000e+00> : vector<512x128xf32>
    %12 = tpu.matmul %10, %11, %cst_6 {dimension_numbers = #tpu.dot_dimension_numbers<[1], [0], [0], [1], [0, 0, 1, 1], [], []>} : vector<512x128xbf16>, vector<128x128xbf16>, vector<512x128xf32> -> vector<512x128xf32>
    %c200 = arith.constant 200 : index
    %c0_7 = arith.constant 0 : index
    %13 = vector.load %arg2[%c200, %c0_7] : memref<736x384xbf16, #tpu.memory_space<vmem>>, vector<1x128xbf16>
    %14 = arith.extf %13 : vector<1x128xbf16> to vector<1x128xf32>
    %15 = vector.broadcast %14 : vector<1x128xf32> to vector<512x128xf32>
    %16 = arith.addf %12, %15 : vector<512x128xf32>
    %cst_8 = arith.constant 0.000000e+00 : f32
    %17 = vector.broadcast %cst_8 : f32 to vector<512x128xf32>
    %18 = arith.maximumf %16, %17 : vector<512x128xf32>
    %19 = arith.truncf %18 : vector<512x128xf32> to vector<512x128xbf16>
    %c208 = arith.constant 208 : index
    %c0_9 = arith.constant 0 : index
    %20 = vector.load %arg2[%c208, %c0_9] : memref<736x384xbf16, #tpu.memory_space<vmem>>, vector<128x128xbf16>
    %cst_10 = arith.constant dense<0.000000e+00> : vector<512x128xf32>
    %21 = tpu.matmul %19, %20, %cst_10 {dimension_numbers = #tpu.dot_dimension_numbers<[1], [0], [0], [1], [0, 0, 1, 1], [], []>} : vector<512x128xbf16>, vector<128x128xbf16>, vector<512x128xf32> -> vector<512x128xf32>
    %c336 = arith.constant 336 : index
    %c0_11 = arith.constant 0 : index
    %22 = vector.load %arg2[%c336, %c0_11] : memref<736x384xbf16, #tpu.memory_space<vmem>>, vector<1x128xbf16>
    %23 = arith.extf %22 : vector<1x128xbf16> to vector<1x128xf32>
    %24 = vector.broadcast %23 : vector<1x128xf32> to vector<512x128xf32>
    %25 = arith.addf %21, %24 : vector<512x128xf32>
    %cst_12 = arith.constant 0.000000e+00 : f32
    %26 = vector.broadcast %cst_12 : f32 to vector<512x128xf32>
    %27 = arith.maximumf %25, %26 : vector<512x128xf32>
    %28 = arith.truncf %27 : vector<512x128xf32> to vector<512x128xbf16>
    %c344 = arith.constant 344 : index
    %c0_13 = arith.constant 0 : index
    %29 = vector.load %arg2[%c344, %c0_13] : memref<736x384xbf16, #tpu.memory_space<vmem>>, vector<128x128xbf16>
    %cst_14 = arith.constant dense<0.000000e+00> : vector<512x128xf32>
    %30 = tpu.matmul %28, %29, %cst_14 {dimension_numbers = #tpu.dot_dimension_numbers<[1], [0], [0], [1], [0, 0, 1, 1], [], []>} : vector<512x128xbf16>, vector<128x128xbf16>, vector<512x128xf32> -> vector<512x128xf32>
    %c472 = arith.constant 472 : index
    %c0_15 = arith.constant 0 : index
    %31 = vector.load %arg2[%c472, %c0_15] : memref<736x384xbf16, #tpu.memory_space<vmem>>, vector<1x128xbf16>
    %32 = arith.extf %31 : vector<1x128xbf16> to vector<1x128xf32>
    %33 = vector.broadcast %32 : vector<1x128xf32> to vector<512x128xf32>
    %34 = arith.addf %30, %33 : vector<512x128xf32>
    %cst_16 = arith.constant dense<0xFF800000> : vector<512xf32>
    %35 = vector.multi_reduction <maximumf>, %34, %cst_16 [1] : vector<512x128xf32> to vector<512xf32>
    %36 = vector.shape_cast %35 : vector<512xf32> to vector<512x1xf32>
    %37 = vector.broadcast %36 : vector<512x1xf32> to vector<512x128xf32>
    %38 = arith.subf %34, %37 : vector<512x128xf32>
    %39 = math.exp %38 : vector<512x128xf32>
    %40 = arith.truncf %39 : vector<512x128xf32> to vector<512x128xbf16>
    %c480 = arith.constant 480 : index
    %c0_17 = arith.constant 0 : index
    %41 = vector.load %arg2[%c480, %c0_17] : memref<736x384xbf16, #tpu.memory_space<vmem>>, vector<128x128xbf16>
    %cst_18 = arith.constant dense<0.000000e+00> : vector<512x128xf32>
    %42 = tpu.matmul %40, %41, %cst_18 {dimension_numbers = #tpu.dot_dimension_numbers<[1], [0], [0], [1], [0, 0, 1, 1], [], []>} : vector<512x128xbf16>, vector<128x128xbf16>, vector<512x128xf32> -> vector<512x128xf32>
    %cst_19 = arith.constant 9.99999968E-21 : f32
    %43 = vector.broadcast %cst_19 : f32 to vector<512x128xf32>
    %44 = arith.maximumf %42, %43 : vector<512x128xf32>
    %45 = arith.divf %39, %44 : vector<512x128xf32>
    %46 = vector.extract_strided_slice %45 {offsets = [0, 0], sizes = [512, 64], strides = [1, 1]} : vector<512x128xf32> to vector<512x64xf32>
    %47 = arith.mulf %0, %46 : vector<512x64xf32>
    %48 = arith.truncf %47 : vector<512x64xf32> to vector<512x64xbf16>
    %c608 = arith.constant 608 : index
    %c0_20 = arith.constant 0 : index
    %49 = vector.load %arg2[%c608, %c0_20] : memref<736x384xbf16, #tpu.memory_space<vmem>>, vector<64x384xbf16>
    %cst_21 = arith.constant dense<0.000000e+00> : vector<512x384xf32>
    %50 = tpu.matmul %48, %49, %cst_21 {dimension_numbers = #tpu.dot_dimension_numbers<[1], [0], [0], [1], [0, 0, 1, 1], [], []>} : vector<512x64xbf16>, vector<64x384xbf16>, vector<512x384xf32> -> vector<512x384xf32>
    %51 = vector.extract_strided_slice %45 {offsets = [0, 64], sizes = [512, 64], strides = [1, 1]} : vector<512x128xf32> to vector<512x64xf32>
    %52 = arith.mulf %0, %51 : vector<512x64xf32>
    %53 = arith.truncf %52 : vector<512x64xf32> to vector<512x64xbf16>
    %c672 = arith.constant 672 : index
    %c0_22 = arith.constant 0 : index
    %54 = vector.load %arg2[%c672, %c0_22] : memref<736x384xbf16, #tpu.memory_space<vmem>>, vector<64x384xbf16>
    %cst_23 = arith.constant dense<0.000000e+00> : vector<512x384xf32>
    %55 = tpu.matmul %53, %54, %cst_23 {dimension_numbers = #tpu.dot_dimension_numbers<[1], [0], [0], [1], [0, 0, 1, 1], [], []>} : vector<512x64xbf16>, vector<64x384xbf16>, vector<512x384xf32> -> vector<512x384xf32>
    %56 = arith.addf %50, %55 : vector<512x384xf32>
    %c0_24 = arith.constant 0 : index
    %c0_25 = arith.constant 0 : index
    %57 = vector.load %arg3[%c0_24, %c0_25] : memref<512x384xf32, #tpu.memory_space<vmem>>, vector<512x384xf32>
    tpu.vector_store %arg3[%c0_24, %c0_25], %56 {strides = array<i32>} : memref<512x384xf32, #tpu.memory_space<vmem>>, vector<512x384xf32>,
    return
  }
  func.func @transform_0(%arg0: i32) -> (i32, i32) {
    %c0_i32 = arith.constant 0 : i32
    %c0_i32_0 = arith.constant 0 : i32
    return %arg0, %c0_i32 : i32, i32
  }
  func.func @transform_1(%arg0: i32) -> (i32, i32) {
    %c0_i32 = arith.constant 0 : i32
    %c0_i32_0 = arith.constant 0 : i32
    %c0_i32_1 = arith.constant 0 : i32
    return %c0_i32, %c0_i32_0 : i32, i32
  }
  func.func @transform_2(%arg0: i32) -> (i32, i32) {
    %c0_i32 = arith.constant 0 : i32
    %c0_i32_0 = arith.constant 0 : i32
    return %arg0, %c0_i32 : i32, i32
  }
}

</mosaic_0001>

<bundles_post_ra>
// kernel: forward.1
= control target key start
LH: loop header
LB: loop body
LE: loop exit
PB: predicated region body
PF: predicated region fallthrough
CT: control target
= control target key end

     0   :  { %7 = vsyncpa [#allocation3], 0  ;;  %s6236_s9 = smov 0   ;;  %s9654_s0 = inlined_call_operand.vmem [shape: f32[1024,64], index: 0, kind: input, shape index: {}]   ;;  %s9655_s1 = inlined_call_operand.hbm [shape: bf16[736,384], index: 1, kind: input, shape index: {}]   ;;  %s9656_s2 = inlined_call_operand.vmem [shape: f32[1024,384], index: 2, kind: output, shape index: {}]  }
   0x1 LB: > { %s102_s12 = sshll.u32 %s9655_s1, 4  ;;  %s5245_s13 = sadd.s32 4294967295, %s6215_s9   ;;  %s6215_s9 = sphi %s6236_s9, %s13_s9   ;;  %s103_s12 = int_to_ptr.hbm [resolvable:$true] %s102_s12 }
   0x2   : > { %p5247_p0 = scmp.ge.s32.totalorder %s6215_s9, 1  ;;  %p91_p1 = scmp.lt.s32.totalorder %s6215_s9, 3 }
   0x3   : > { %p5811_p2 = scmp.eq.s32.totalorder %s5245_s13, 0  ;;  %s6217_s14 = smov [#allocation2]  }
   0x4   : > { %p92_p3 = pnand %p5247_p0, %p91_p1  ;;  %s104_s15 = sshll.u32 %s6217_s14, 4  ;;  %s105_s15 = int_to_ptr.vmem [resolvable:$true] %s104_s15 }
   0x5   : > { %s6218_s16 = smov 192   ;;  %s6219_s17 = smov 12  }
   0x6   : > { %p5807_p4 = pneg %p92_p3  ;;  %129 = sbr.rel (%p92_p3) target bundleno = 2818 (0xb02), region = 28 }
   0x8   : > { %p5808_p5 = pnand %p5811_p2, %p5807_p4 }
   0xa   : > { %5810 = dma.hbm_to_vmem [thread:$0]  (!%p5808_p5), %s103_s12, 17664, %s105_s15, [#allocation3], %s6218_s16, %s6218_s16, %s6219_s17  }
   0xb   : > { %6210 = dma.done.wait (%p5811_p2), [#allocation3], 17664  }
   0xc   : > { %6212 = vsyncadd (%p5811_p2), [#allocation3], 4294949632  ;;  %s5252_s18 = sshll.u32 %s5245_s13, 6  ;;  %v5270_v0 = vld [vmem:[#allocation2 + $0x48] sm:$0xf]  ;;  %vm298_vm0 = vcmask 523264  }
   0xd   : > { %p154_p6 = scmp.lt.s32.totalorder %s5252_s18, 127  ;;  %v5725_v1 = vld [vmem:[#allocation2 + $0x50] sm:$0xf0]  ;;  %v5266_v2 = vld [vmem:[#allocation2 + $0x30] sm:$0xf]  ;;  %s6220_s23 = smov 64  }
   0xe   : > { %v5271_v3 = vor.u32 %v5725_v1, %v5270_v0  ;;  %v5724_v4 = vld [vmem:[#allocation2 + $0x38] sm:$0xf0]  ;;  %v5262_v6 = vld [vmem:[#allocation2 + $0x18] sm:$0xf]  ;;  %v5723_v7 = vld [vmem:[#allocation2 + $0x20] sm:$0xf0] }
   0xf   : > { %s10161_s18 = smov (!%p154_p6, %s5252_s18), 127  ;;  %v5267_v5 = vor.u32 %v5724_v4, %v5266_v2  ;;  %v5263_v8 = vor.u32 %v5723_v7, %v5262_v6  ;;  %v5258_v9 = vld [vmem:[#allocation2] sm:$0xf]  ;;  %v5722_v10 = vld [vmem:[#allocation2 + $0x8] sm:$0xf0] }
  0x10   : > { %399 = vmatpush.bf16.msra.mxu0 %v5271_v3  ;;  %5782 = vmatpush.bf16.msra.mxu3 %v5271_v3  ;;  %s5253_s19 = sshll.u32 %s10161_s18, 3  ;;  %v5259_v11 = vor.u32 %v5722_v10, %v5258_v9  ;;  %v5334_v27 = vld [vmem:[#allocation2 + $0x114] sm:$0xf]  ;;  %v5733_v28 = vld [vmem:[#allocation2 + $0x11c] sm:$0xf0]  ;;  %s5802_s24 = smul.u32 24, %s10161_s18 }
  0x11   : > { %s6253_s22 = scalar_lea.vmem %s9654_s0, %s5253_s19  ;;  %v5335_v29 = vor.u32 %v5733_v28, %v5334_v27  ;;  %v5330_v33 = vld [vmem:[#allocation2 + $0xfc] sm:$0xf]  ;;  %v5732_v34 = vld [vmem:[#allocation2 + $0x104] sm:$0xf0]  ;;  %v5326_v36 = vld [vmem:[#allocation2 + $0xe4] sm:$0xf] }
  0x12   : > { %v167_v12 = vld [vmem:[%s6253_s22] sm:$0xff]  ;;  %v168_v13 = vld [vmem:[%s6253_s22 + $0x8] sm:$0xff]  ;;  %v169_v15 = vld [vmem:[%s6253_s22 + $0x10] sm:$0xff]  ;;  %v5331_v35 = vor.u32 %v5732_v34, %v5330_v33  ;;  %s8841_s27 = scalar_lea.vmem %s9656_s2, %s5802_s24 }
  0x13   : > { %v231_v14 = vpack.c.bf16 %v168_v13, %v167_v12  ;;  %v170_v16 = vld [vmem:[%s6253_s22 + $0x18] sm:$0xff]  ;;  %v171_v18 = vld [vmem:[%s6253_s22 + $0x20] sm:$0xff]  ;;  %v172_v19 = vld [vmem:[%s6253_s22 + $0x28] sm:$0xff]  ;;  %727 = vmatpush.bf16.msra.mxu1 %v5335_v29 }
  0x14   : > { %400 = vmatpush.bf16.msra.mxu0 %v5267_v5  ;;  %5783 = vmatpush.bf16.msra.mxu3 %v5267_v5  ;;  %v232_v17 = vpack.c.bf16 %v170_v16, %v169_v15  ;;  %v233_v20 = vpack.c.bf16 %v172_v19, %v171_v18  ;;  %v173_v21 = vld [vmem:[%s6253_s22 + $0x30] sm:$0xff]  ;;  %v174_v22 = vld [vmem:[%s6253_s22 + $0x38] sm:$0xff]  ;;  %v175_v24 = vld [vmem:[%s6253_s22 + $0x40] sm:$0xff] }
  0x15   : > { %v234_v23 = vpack.c.bf16 %v174_v22, %v173_v21  ;;  %v176_v25 = vld [vmem:[%s6253_s22 + $0x48] sm:$0xff]  ;;  %v177_v30 = vld [vmem:[%s6253_s22 + $0x50] sm:$0xff]  ;;  %v178_v31 = vld [vmem:[%s6253_s22 + $0x58] sm:$0xff] }
  0x16   : > { %v235_v26 = vpack.c.bf16 %v176_v25, %v175_v24  ;;  %v236_v32 = vpack.c.bf16 %v178_v31, %v177_v30  ;;  %v5731_v37 = vld [vmem:[#allocation2 + $0xec] sm:$0xf0]  ;;  %v5322_v39 = vld [vmem:[#allocation2 + $0xcc] sm:$0xf]  ;;  %v5730_v40 = vld [vmem:[#allocation2 + $0xd4] sm:$0xf0] }
  0x17   : > { %728 = vmatpush.bf16.msra.mxu1 %v5331_v35  ;;  %v5327_v38 = vor.u32 %v5731_v37, %v5326_v36  ;;  %v5323_v41 = vor.u32 %v5730_v40, %v5322_v39  ;;  %v179_v42 = vld [vmem:[%s6253_s22 + $0x60] sm:$0xff]  ;;  %v180_v43 = vld [vmem:[%s6253_s22 + $0x68] sm:$0xff]  ;;  %v5318_v44 = vld [vmem:[#allocation2 + $0xb4] sm:$0xf] }
  0x18   : > { %401 = vmatpush.bf16.msra.mxu0 %v5263_v8  ;;  %5784 = vmatpush.bf16.msra.mxu3 %v5263_v8  ;;  %v5729_v45 = vld [vmem:[#allocation2 + $0xbc] sm:$0xf0]  ;;  %v237_v47 = vpack.c.bf16 %v180_v43, %v179_v42  ;;  %v5314_v48 = vld [vmem:[#allocation2 + $0x9c] sm:$0xf]  ;;  %v5728_v49 = vld [vmem:[#allocation2 + $0xa4] sm:$0xf0] }
  0x19   : > { %v5319_v46 = vor.u32 %v5729_v45, %v5318_v44  ;;  %v5315_v50 = vor.u32 %v5728_v49, %v5314_v48  ;;  %v5310_v51 = vld [vmem:[#allocation2 + $0x84] sm:$0xf]  ;;  %v5727_v52 = vld [vmem:[#allocation2 + $0x8c] sm:$0xf0]  ;;  %v5306_v54 = vld [vmem:[#allocation2 + $0x6c] sm:$0xf] }
  0x1a   : > { %v5311_v53 = vor.u32 %v5727_v52, %v5310_v51  ;;  %v5726_v55 = vld [vmem:[#allocation2 + $0x74] sm:$0xf0]  ;;  %v181_v57 = vld [vmem:[%s6253_s22 + $0x70] sm:$0xff]  ;;  %v271_v60 = vld [vmem:[#allocation2 + $0x60] sm:$0x1] }
  0x1b   : > { %729 = vmatpush.bf16.msra.mxu1 %v5327_v38  ;;  %v5307_v56 = vor.u32 %v5726_v55, %v5306_v54  ;;  %v182_v58 = vld [vmem:[%s6253_s22 + $0x78] sm:$0xff]  ;;  %v183_v61 = vld [vmem:[%s6253_s22 + $0x80] sm:$0xff]  ;;  %v184_v62 = vld [vmem:[%s6253_s22 + $0x88] sm:$0xff]  ;;  %v272_v63 = vunpack.c.l.bf16 %v271_v60 }
  0x1c   : > { %402 = vmatpush.bf16.msra.mxu0 %v5259_v11  ;;  %5785 = vmatpush.bf16.msra.mxu3 %v5259_v11  ;;  %v238_v59 = vpack.c.bf16 %v182_v58, %v181_v57  ;;  %v239_v0 = vpack.c.bf16 %v184_v62, %v183_v61  ;;  %v185_v8 = vld [vmem:[%s6253_s22 + $0x90] sm:$0xff]  ;;  %v186_v9 = vld [vmem:[%s6253_s22 + $0x98] sm:$0xff]  ;;  %v187_v18 = vld [vmem:[%s6253_s22 + $0xa0] sm:$0xff] }
  0x1d   : > { %v6281_v2 = vperm.slane %v272_v63, 0  ;;  %v240_v11 = vpack.c.bf16 %v186_v9, %v185_v8  ;;  %v188_v19 = vld [vmem:[%s6253_s22 + $0xa8] sm:$0xff]  ;;  %v189_v28 = vld [vmem:[%s6253_s22 + $0xb0] sm:$0xff]  ;;  %v194_v49 = vld [vmem:[%s6253_s22 + $0xd8] sm:$0xff] }
  0x1e   : > { %v241_v21 = vpack.c.bf16 %v188_v19, %v187_v18  ;;  %v192_v39 = vld [vmem:[%s6253_s22 + $0xc8] sm:$0xff]  ;;  %v193_v48 = vld [vmem:[%s6253_s22 + $0xd0] sm:$0xff]  ;;  %v195_v61 = vld [vmem:[%s6253_s22 + $0xe0] sm:$0xff] }
  0x1f   : > { %5272 = vmatmul.msk.bf16.vlgmr.msra.gmra.mxu0 %vm298_vm0, %v231_v14  ;;  %730 = vmatpush.bf16.msra.mxu1 %v5323_v41  ;;  %v244_v51 = vpack.c.bf16 %v194_v49, %v193_v48  ;;  %v5741_v57 = vld [vmem:[#allocation2 + $0x1e8] sm:$0xf0]  ;;  %v5354_v9 = vld [vmem:[#allocation2 + $0x198] sm:$0xf] }
  0x20   : > { %5786 = vmatpush.bf16.msrb.mxu3 %v5335_v29  ;;  %v190_v29 = vld [vmem:[%s6253_s22 + $0xb8] sm:$0xff]  ;;  %v196_v62 = vld [vmem:[%s6253_s22 + $0xe8] sm:$0xff] }
  0x21   : > { %v242_v31 = vpack.c.bf16 %v190_v29, %v189_v28  ;;  %v5342_v28 = vld [vmem:[#allocation2 + $0x150] sm:$0xf]  ;;  %v5735_v29 = vld [vmem:[#allocation2 + $0x158] sm:$0xf0] }
  0x23   : > { %731 = vmatpush.bf16.msra.mxu1 %v5319_v46 }
  0x24   : > { %5787 = vmatpush.bf16.msrb.mxu3 %v5331_v35 }
  0x27   : > { %732 = vmatpush.bf16.msra.mxu1 %v5315_v50 }
  0x28   : > { %5788 = vmatpush.bf16.msrb.mxu3 %v5327_v38  ;;  %v191_v38 = vld [vmem:[%s6253_s22 + $0xc0] sm:$0xff] }
  0x2b   : > { %733 = vmatpush.bf16.msra.mxu1 %v5311_v53 }
  0x2c   : > { %5789 = vmatpush.bf16.msrb.mxu3 %v5323_v41  ;;  %v243_v41 = vpack.c.bf16 %v192_v39, %v191_v38  ;;  %v199_v39 = vld [vmem:[%s6253_s22 + $0x100] sm:$0xff] }
  0x2f   : > { %5273 = vmatmul.msk.bf16.gmra.mxu0 %vm298_vm0, %v232_v17  ;;  %734 = vmatpush.bf16.msra.mxu1 %v5307_v56 }
  0x30   : > { %5790 = vmatpush.bf16.msrb.mxu3 %v5319_v46 }
  0x34   : > { %5791 = vmatpush.bf16.msrb.mxu3 %v5315_v50 }
  0x38   : > { %5792 = vmatpush.bf16.msrb.mxu3 %v5311_v53 }
  0x3c   : > { %5793 = vmatpush.bf16.msrb.mxu3 %v5307_v56  ;;  %v5366_v56 = vld [vmem:[#allocation2 + $0x1e0] sm:$0xf] }
  0x3d   : > { %v6311_v58 = vor.u32 %v5741_v57, %v5366_v56 }
  0x3f   : > { %5274 = vmatmul.msk.bf16.gmra.mxu0 %vm298_vm0, %v233_v20  ;;  %1059 = vmatpush.bf16.msra.mxu2 %v6311_v58 }
  0x4f   : > { %5275 = vmatmul.msk.bf16.gmra.mxu0 %vm298_vm0, %v234_v23 }
  0x5f   : > { %5276 = vmatmul.msk.bf16.gmra.mxu0 %vm298_vm0, %v235_v26 }
  0x6f   : > { %5277 = vmatmul.msk.bf16.gmra.mxu0 %vm298_vm0, %v236_v32 }
  0x7f   : > { %5278 = vmatmul.msk.bf16.gmra.mxu0 %vm298_vm0, %v237_v47 }
  0x8f   : > { %5279 = vmatmul.msk.bf16.gmra.mxu0 %vm298_vm0, %v238_v59 }
  0x9c   : > { %v404_v1 = vpop.f32.mrf.mxu0 }
  0x9d   : > { %v405_v3 = vadd.f32 %v404_v1, %v6281_v2  ;;  %v5740_v1 = vld [vmem:[#allocation2 + $0x1d0] sm:$0xf0] }
  0x9f   : > { %5280 = vmatmul.msk.bf16.gmra.mxu0 %vm298_vm0, %v239_v0  ;;  %v564_v6 = vmax.f32 %v405_v3, 0.0  ;;  %v5362_v0 = vld [vmem:[#allocation2 + $0x1c8] sm:$0xf] }
  0xa0   : > { %v6316_v3 = vor.u32 %v5740_v1, %v5362_v0 }
  0xa2   : > { %1060 = vmatpush.bf16.msra.mxu2 %v6316_v3 }
  0xa4   : > { %v406_v4 = vpop.f32.mrf.mxu0 }
  0xa5   : > { %v407_v5 = vadd.f32 %v406_v4, %v6281_v2  ;;  %v245_v4 = vpack.c.bf16 %v196_v62, %v195_v61 }
  0xa7   : > { %v565_v7 = vmax.f32 %v407_v5, 0.0 }
  0xa9   : > { %v628_v10 = vpack.c.bf16 %v565_v7, %v564_v6  ;;  %v5358_v6 = vld [vmem:[#allocation2 + $0x1b0] sm:$0xf]  ;;  %v5739_v7 = vld [vmem:[#allocation2 + $0x1b8] sm:$0xf0] }
  0xaa   : > { %v6319_v8 = vor.u32 %v5739_v7, %v5358_v6 }
  0xab   : > { %735 = vmatmul.bf16.vlgmr.msra.gmra.mxu1 %v628_v10  ;;  %v5738_v10 = vld [vmem:[#allocation2 + $0x1a0] sm:$0xf0] }
  0xac   : > { %v409_v12 = vpop.f32.mrf.mxu0  ;;  %1061 = vmatpush.bf16.msra.mxu2 %v6319_v8 }
  0xad   : > { %v410_v13 = vadd.f32 %v409_v12, %v6281_v2 }
  0xaf   : > { %5281 = vmatmul.msk.bf16.gmra.mxu0 %vm298_vm0, %v240_v11  ;;  %v566_v16 = vmax.f32 %v410_v13, 0.0  ;;  %v6323_v11 = vor.u32 %v5738_v10, %v5354_v9  ;;  %v203_v10 = vld [vmem:[%s6253_s22 + $0x120] sm:$0xff] }
  0xb1   : > { %1062 = vmatpush.bf16.msra.mxu2 %v6323_v11 }
  0xb4   : > { %v411_v14 = vpop.f32.mrf.mxu0 }
  0xb5   : > { %v412_v15 = vadd.f32 %v411_v14, %v6281_v2 }
  0xb7   : > { %v567_v17 = vmax.f32 %v412_v15, 0.0  ;;  %v5350_v15 = vld [vmem:[#allocation2 + $0x180] sm:$0xf] }
  0xb9   : > { %v629_v20 = vpack.c.bf16 %v567_v17, %v566_v16  ;;  %v5737_v16 = vld [vmem:[#allocation2 + $0x188] sm:$0xf0] }
  0xba   : > { %v6328_v17 = vor.u32 %v5737_v16, %v5350_v15 }
  0xbb   : > { %740 = vmatmul.bf16.gmra.mxu1 %v629_v20  ;;  %v197_v20 = vld [vmem:[%s6253_s22 + $0xf0] sm:$0xff] }
  0xbc   : > { %v414_v22 = vpop.f32.mrf.mxu0  ;;  %1063 = vmatpush.bf16.msra.mxu2 %v6328_v17 }
  0xbd   : > { %v415_v23 = vadd.f32 %v414_v22, %v6281_v2 }
  0xbf   : > { %5282 = vmatmul.msk.bf16.gmra.mxu0 %vm298_vm0, %v241_v21  ;;  %v568_v26 = vmax.f32 %v415_v23, 0.0  ;;  %v198_v21 = vld [vmem:[%s6253_s22 + $0xf8] sm:$0xff]  ;;  %v5346_v23 = vld [vmem:[#allocation2 + $0x168] sm:$0xf] }
  0xc4   : > { %v416_v24 = vpop.f32.mrf.mxu0 }
  0xc5   : > { %v417_v25 = vadd.f32 %v416_v24, %v6281_v2  ;;  %v5736_v24 = vld [vmem:[#allocation2 + $0x170] sm:$0xf0] }
  0xc7   : > { %v569_v27 = vmax.f32 %v417_v25, 0.0  ;;  %v6333_v25 = vor.u32 %v5736_v24, %v5346_v23 }
  0xc9   : > { %v630_v30 = vpack.c.bf16 %v569_v27, %v568_v26  ;;  %v246_v26 = vpack.c.bf16 %v198_v21, %v197_v20  ;;  %1064 = vmatpush.bf16.msra.mxu2 %v6333_v25 }
  0xcb   : > { %745 = vmatmul.bf16.gmra.mxu1 %v630_v30  ;;  %v6336_v30 = vor.u32 %v5735_v29, %v5342_v28 }
  0xcc   : > { %v419_v32 = vpop.f32.mrf.mxu0 }
  0xcd   : > { %v420_v33 = vadd.f32 %v419_v32, %v6281_v2  ;;  %1065 = vmatpush.bf16.msra.mxu2 %v6336_v30  ;;  %v5734_v32 = vld [vmem:[#allocation2 + $0x140] sm:$0xf0] }
  0xcf   : > { %5283 = vmatmul.msk.bf16.gmra.mxu0 %vm298_vm0, %v242_v31  ;;  %v570_v36 = vmax.f32 %v420_v33, 0.0  ;;  %v5338_v31 = vld [vmem:[#allocation2 + $0x138] sm:$0xf] }
  0xd0   : > { %v6340_v33 = vor.u32 %v5734_v32, %v5338_v31  ;;  %v205_v31 = vld [vmem:[%s6253_s22 + $0x130] sm:$0xff]  ;;  %v206_v32 = vld [vmem:[%s6253_s22 + $0x138] sm:$0xff] }
  0xd2   : > { %1066 = vmatpush.bf16.msra.mxu2 %v6340_v33 }
  0xd4   : > { %v421_v34 = vpop.f32.mrf.mxu0 }
  0xd5   : > { %v422_v35 = vadd.f32 %v421_v34, %v6281_v2 }
  0xd7   : > { %v571_v37 = vmax.f32 %v422_v35, 0.0 }
  0xd9   : > { %v631_v40 = vpack.c.bf16 %v571_v37, %v570_v36 }
  0xdb   : > { %750 = vmatmul.bf16.gmra.mxu1 %v631_v40  ;;  %v200_v40 = vld [vmem:[%s6253_s22 + $0x108] sm:$0xff] }
  0xdc   : > { %v424_v42 = vpop.f32.mrf.mxu0 }
  0xdd   : > { %v425_v43 = vadd.f32 %v424_v42, %v6281_v2  ;;  %v247_v42 = vpack.c.bf16 %v200_v40, %v199_v39 }
  0xdf   : > { %5284 = vmatmul.msk.bf16.gmra.mxu0 %vm298_vm0, %v243_v41  ;;  %v572_v46 = vmax.f32 %v425_v43, 0.0 }
  0xe4   : > { %v426_v44 = vpop.f32.mrf.mxu0 }
  0xe5   : > { %v427_v45 = vadd.f32 %v426_v44, %v6281_v2 }
  0xe7   : > { %v573_v47 = vmax.f32 %v427_v45, 0.0 }
  0xe9   : > { %v632_v50 = vpack.c.bf16 %v573_v47, %v572_v46  ;;  %v676_v46 = vld [vmem:[#allocation2 + $0x12c] sm:$0x1] }
  0xeb   : > { %755 = vmatmul.bf16.gmra.mxu1 %v632_v50  ;;  %v677_v50 = vunpack.c.l.bf16 %v676_v46 }
  0xec   : > { %v429_v52 = vpop.f32.mrf.mxu0 }
  0xed   : > { %v430_v53 = vadd.f32 %v429_v52, %v6281_v2  ;;  %v201_v52 = vld [vmem:[%s6253_s22 + $0x110] sm:$0xff] }
  0xef   : > { %5285 = vmatmul.msk.bf16.gmra.mxu0 %vm298_vm0, %v244_v51  ;;  %v574_v59 = vmax.f32 %v430_v53, 0.0  ;;  %v202_v53 = vld [vmem:[%s6253_s22 + $0x118] sm:$0xff] }
  0xf0   : > { %v248_v56 = vpack.c.bf16 %v202_v53, %v201_v52 }
  0xf4   : > { %v431_v54 = vpop.f32.mrf.mxu0 }
  0xf5   : > { %v432_v55 = vadd.f32 %v431_v54, %v6281_v2 }
  0xf7   : > { %v575_v60 = vmax.f32 %v432_v55, 0.0  ;;  %v6352_v55 = vperm.slane %v677_v50, 0  ;;  %v208_v50 = vld [vmem:[%s6253_s22 + $0x148] sm:$0xff] }
  0xf9   : > { %v633_v63 = vpack.c.bf16 %v575_v60, %v574_v59 }
  0xfb   : > { %760 = vmatmul.bf16.gmra.mxu1 %v633_v63 }
  0xfc   : > { %v434_v5 = vpop.f32.mrf.mxu0 }
  0xfd   : > { %v435_v12 = vadd.f32 %v434_v5, %v6281_v2 }
  0xff   : > { %5286 = vmatmul.msk.bf16.gmra.mxu0 %vm298_vm0, %v245_v4  ;;  %v576_v18 = vmax.f32 %v435_v12, 0.0  ;;  %v204_v12 = vld [vmem:[%s6253_s22 + $0x128] sm:$0xff] }
 0x104   : > { %v436_v13 = vpop.f32.mrf.mxu0 }
 0x105   : > { %v437_v14 = vadd.f32 %v436_v13, %v6281_v2 }
 0x107   : > { %v577_v19 = vmax.f32 %v437_v14, 0.0  ;;  %v249_v14 = vpack.c.bf16 %v204_v12, %v203_v10 }
 0x109   : > { %v634_v22 = vpack.c.bf16 %v577_v19, %v576_v18 }
 0x10b   : > { %765 = vmatmul.bf16.gmra.mxu1 %v634_v22 }
 0x10c   : > { %v439_v27 = vpop.f32.mrf.mxu0 }
 0x10d   : > { %v440_v34 = vadd.f32 %v439_v27, %v6281_v2 }
 0x10f   : > { %5287 = vmatmul.msk.bf16.gmra.mxu0 %vm298_vm0, %v246_v26  ;;  %v578_v37 = vmax.f32 %v440_v34, 0.0 }
 0x114   : > { %v441_v35 = vpop.f32.mrf.mxu0 }
 0x115   : > { %v442_v36 = vadd.f32 %v441_v35, %v6281_v2  ;;  %v250_v35 = vpack.c.bf16 %v206_v32, %v205_v31 }
 0x117   : > { %v579_v38 = vmax.f32 %v442_v36, 0.0 }
 0x119   : > { %v635_v41 = vpack.c.bf16 %v579_v38, %v578_v37 }
 0x11b   : > { %770 = vmatmul.bf16.gmra.mxu1 %v635_v41 }
 0x11c   : > { %v444_v43 = vpop.f32.mrf.mxu0 }
 0x11d   : > { %v445_v44 = vadd.f32 %v444_v43, %v6281_v2 }
 0x11f   : > { %5288 = vmatmul.msk.bf16.gmra.mxu0 %vm298_vm0, %v247_v42  ;;  %v580_v48 = vmax.f32 %v445_v44, 0.0 }
 0x124   : > { %v446_v45 = vpop.f32.mrf.mxu0 }
 0x125   : > { %v447_v47 = vadd.f32 %v446_v45, %v6281_v2 }
 0x127   : > { %v581_v49 = vmax.f32 %v447_v47, 0.0 }
 0x128   : > { %v736_v51 = vpop.f32.mrf.mxu1 }
 0x129   : > { %v636_v54 = vpack.c.bf16 %v581_v49, %v580_v48  ;;  %v737_v59 = vadd.f32 %v736_v51, %v6352_v55  ;;  %v207_v49 = vld [vmem:[%s6253_s22 + $0x140] sm:$0xff] }
 0x12a   : > { %v251_v52 = vpack.c.bf16 %v208_v50, %v207_v49  ;;  %v213_v49 = vld [vmem:[%s6253_s22 + $0x170] sm:$0xff]  ;;  %v214_v50 = vld [vmem:[%s6253_s22 + $0x178] sm:$0xff] }
 0x12b   : > { %775 = vmatmul.bf16.gmra.mxu1 %v636_v54  ;;  %v896_v62 = vmax.f32 %v737_v59, 0.0 }
 0x12c   : > { %v449_v57 = vpop.f32.mrf.mxu0 }
 0x12d   : > { %v450_v63 = vadd.f32 %v449_v57, %v6281_v2 }
 0x12f   : > { %5289 = vmatmul.msk.bf16.gmra.mxu0 %vm298_vm0, %v248_v56  ;;  %v582_v6 = vmax.f32 %v450_v63, 0.0 }
 0x130   : > { %v738_v60 = vpop.f32.mrf.mxu1 }
 0x131   : > { %v739_v61 = vadd.f32 %v738_v60, %v6352_v55 }
 0x133   : > { %v897_v0 = vmax.f32 %v739_v61, 0.0 }
 0x134   : > { %v451_v1 = vpop.f32.mrf.mxu0 }
 0x135   : > { %v452_v4 = vadd.f32 %v451_v1, %v6281_v2  ;;  %v960_v5 = vpack.c.bf16 %v897_v0, %v896_v62 }
 0x137   : > { %v583_v7 = vmax.f32 %v452_v4, 0.0  ;;  %1067 = vmatmul.bf16.vlgmr.msra.gmra.mxu2 %v960_v5 }
 0x138   : > { %v741_v9 = vpop.f32.mrf.mxu1 }
 0x139   : > { %v637_v13 = vpack.c.bf16 %v583_v7, %v582_v6  ;;  %v742_v16 = vadd.f32 %v741_v9, %v6352_v55  ;;  %v209_v6 = vld [vmem:[%s6253_s22 + $0x150] sm:$0xff]  ;;  %v210_v7 = vld [vmem:[%s6253_s22 + $0x158] sm:$0xff] }
 0x13a   : > { %v252_v10 = vpack.c.bf16 %v210_v7, %v209_v6  ;;  %v216_v6 = vld [vmem:[%s6253_s22 + $0x188] sm:$0xff] }
 0x13b   : > { %780 = vmatmul.bf16.gmra.mxu1 %v637_v13  ;;  %v898_v20 = vmax.f32 %v742_v16, 0.0 }
 0x13c   : > { %v454_v15 = vpop.f32.mrf.mxu0 }
 0x13d   : > { %v455_v21 = vadd.f32 %v454_v15, %v6281_v2 }
 0x13f   : > { %5290 = vmatmul.msk.bf16.gmra.mxu0 %vm298_vm0, %v249_v14  ;;  %v584_v27 = vmax.f32 %v455_v21, 0.0 }
 0x140   : > { %v743_v18 = vpop.f32.mrf.mxu1 }
 0x141   : > { %v744_v19 = vadd.f32 %v743_v18, %v6352_v55 }
 0x143   : > { %v899_v22 = vmax.f32 %v744_v19, 0.0 }
 0x144   : > { %v456_v23 = vpop.f32.mrf.mxu0 }
 0x145   : > { %v457_v24 = vadd.f32 %v456_v23, %v6281_v2  ;;  %v961_v26 = vpack.c.bf16 %v899_v22, %v898_v20 }
 0x147   : > { %v585_v28 = vmax.f32 %v457_v24, 0.0  ;;  %1072 = vmatmul.bf16.gmra.mxu2 %v961_v26 }
 0x148   : > { %v746_v29 = vpop.f32.mrf.mxu1 }
 0x149   : > { %v638_v34 = vpack.c.bf16 %v585_v28, %v584_v27  ;;  %v747_v37 = vadd.f32 %v746_v29, %v6352_v55  ;;  %v211_v27 = vld [vmem:[%s6253_s22 + $0x160] sm:$0xff]  ;;  %v212_v28 = vld [vmem:[%s6253_s22 + $0x168] sm:$0xff] }
 0x14a   : > { %v253_v31 = vpack.c.bf16 %v212_v28, %v211_v27  ;;  %v223_v27 = vld [vmem:[%s6253_s22 + $0x1c0] sm:$0xff]  ;;  %v224_v28 = vld [vmem:[%s6253_s22 + $0x1c8] sm:$0xff] }
 0x14b   : > { %785 = vmatmul.bf16.gmra.mxu1 %v638_v34  ;;  %v900_v40 = vmax.f32 %v747_v37, 0.0  ;;  %v217_v34 = vld [vmem:[%s6253_s22 + $0x190] sm:$0xff] }
 0x14c   : > { %v459_v36 = vpop.f32.mrf.mxu0 }
 0x14d   : > { %v460_v41 = vadd.f32 %v459_v36, %v6281_v2 }
 0x14f   : > { %5291 = vmatmul.msk.bf16.gmra.mxu0 %vm298_vm0, %v250_v35  ;;  %v586_v46 = vmax.f32 %v460_v41, 0.0  ;;  %v218_v35 = vld [vmem:[%s6253_s22 + $0x198] sm:$0xff] }
 0x150   : > { %v748_v38 = vpop.f32.mrf.mxu1  ;;  %v256_v37 = vpack.c.bf16 %v218_v35, %v217_v34 }
 0x151   : > { %v749_v39 = vadd.f32 %v748_v38, %v6352_v55 }
 0x152   : > { %5297 = vmatmul.msk.bf16.vlgmr.msra.gmra.mxu3 %vm298_vm0, %v256_v37 }
 0x153   : > { %v901_v42 = vmax.f32 %v749_v39, 0.0  ;;  %5794 = vmatpush.bf16.msra.mxu3 %v6311_v58  ;;  %v254_v58 = vpack.c.bf16 %v214_v50, %v213_v49  ;;  %v225_v50 = vld [vmem:[%s6253_s22 + $0x1d0] sm:$0xff] }
 0x154   : > { %v461_v43 = vpop.f32.mrf.mxu0 }
 0x155   : > { %v462_v44 = vadd.f32 %v461_v43, %v6281_v2  ;;  %v962_v45 = vpack.c.bf16 %v901_v42, %v900_v40 }
 0x157   : > { %v587_v47 = vmax.f32 %v462_v44, 0.0  ;;  %1077 = vmatmul.bf16.gmra.mxu2 %v962_v45  ;;  %5795 = vmatpush.bf16.msra.mxu3 %v6316_v3 }
 0x158   : > { %v751_v48 = vpop.f32.mrf.mxu1 }
 0x159   : > { %v639_v51 = vpack.c.bf16 %v587_v47, %v586_v46  ;;  %v752_v54 = vadd.f32 %v751_v48, %v6352_v55 }
 0x15b   : > { %790 = vmatmul.bf16.gmra.mxu1 %v639_v51  ;;  %v902_v59 = vmax.f32 %v752_v54, 0.0  ;;  %5796 = vmatpush.bf16.msra.mxu3 %v6319_v8  ;;  %v220_v54 = vld [vmem:[%s6253_s22 + $0x1a8] sm:$0xff] }
 0x15c   : > { %v464_v53 = vpop.f32.mrf.mxu0 }
 0x15d   : > { %v465_v60 = vadd.f32 %v464_v53, %v6281_v2  ;;  %v219_v53 = vld [vmem:[%s6253_s22 + $0x1a0] sm:$0xff] }
 0x15e   : > { %v257_v3 = vpack.c.bf16 %v220_v54, %v219_v53 }
 0x15f   : > { %5292 = vmatmul.msk.bf16.gmra.mxu0 %vm298_vm0, %v251_v52  ;;  %v588_v1 = vmax.f32 %v465_v60, 0.0  ;;  %5797 = vmatpush.bf16.msra.mxu3 %v6323_v11 }
 0x160   : > { %v753_v56 = vpop.f32.mrf.mxu1 }
 0x161   : > { %v754_v57 = vadd.f32 %v753_v56, %v6352_v55 }
 0x162   : > { %5298 = vmatmul.msk.bf16.gmra.mxu3 %vm298_vm0, %v257_v3 }
 0x163   : > { %v903_v61 = vmax.f32 %v754_v57, 0.0  ;;  %5798 = vmatpush.bf16.msra.mxu3 %v6328_v17 }
 0x164   : > { %v466_v62 = vpop.f32.mrf.mxu0 }
 0x165   : > { %v467_v63 = vadd.f32 %v466_v62, %v6281_v2  ;;  %v963_v0 = vpack.c.bf16 %v903_v61, %v902_v59 }
 0x167   : > { %v589_v4 = vmax.f32 %v467_v63, 0.0  ;;  %1082 = vmatmul.bf16.gmra.mxu2 %v963_v0  ;;  %5799 = vmatpush.bf16.msra.mxu3 %v6333_v25 }
 0x168   : > { %v756_v5 = vpop.f32.mrf.mxu1 }
 0x169   : > { %v640_v9 = vpack.c.bf16 %v589_v4, %v588_v1  ;;  %v757_v13 = vadd.f32 %v756_v5, %v6352_v55  ;;  %v215_v5 = vld [vmem:[%s6253_s22 + $0x180] sm:$0xff] }
 0x16a   : > { %v255_v17 = vpack.c.bf16 %v216_v6, %v215_v5 }
 0x16b   : > { %795 = vmatmul.bf16.gmra.mxu1 %v640_v9  ;;  %v904_v16 = vmax.f32 %v757_v13, 0.0  ;;  %5800 = vmatpush.bf16.msra.mxu3 %v6336_v30 }
 0x16c   : > { %v469_v12 = vpop.f32.mrf.mxu0 }
 0x16d   : > { %v470_v18 = vadd.f32 %v469_v12, %v6281_v2  ;;  %v222_v12 = vld [vmem:[%s6253_s22 + $0x1b8] sm:$0xff] }
 0x16f   : > { %5293 = vmatmul.msk.bf16.gmra.mxu0 %vm298_vm0, %v252_v10  ;;  %v590_v23 = vmax.f32 %v470_v18, 0.0  ;;  %v221_v10 = vld [vmem:[%s6253_s22 + $0x1b0] sm:$0xff]  ;;  %5801 = vmatpush.bf16.msra.mxu3 %v6340_v33 }
 0x170   : > { %v758_v14 = vpop.f32.mrf.mxu1  ;;  %v258_v25 = vpack.c.bf16 %v222_v12, %v221_v10  ;;  %v227_v10 = vld [vmem:[%s6253_s22 + $0x1e0] sm:$0xff]  ;;  %v228_v12 = vld [vmem:[%s6253_s22 + $0x1e8] sm:$0xff] }
 0x171   : > { %v759_v15 = vadd.f32 %v758_v14, %v6352_v55 }
 0x172   : > { %5299 = vmatmul.msk.bf16.gmra.mxu3 %vm298_vm0, %v258_v25  ;;  %v261_v25 = vpack.c.bf16 %v228_v12, %v227_v10 }
 0x173   : > { %v905_v19 = vmax.f32 %v759_v15, 0.0 }
 0x174   : > { %v471_v20 = vpop.f32.mrf.mxu0 }
 0x175   : > { %v472_v21 = vadd.f32 %v471_v20, %v6281_v2  ;;  %v964_v22 = vpack.c.bf16 %v905_v19, %v904_v16 }
 0x177   : > { %v591_v24 = vmax.f32 %v472_v21, 0.0  ;;  %1087 = vmatmul.bf16.gmra.mxu2 %v964_v22 }
 0x178   : > { %v761_v26 = vpop.f32.mrf.mxu1 }
 0x179   : > { %v641_v29 = vpack.c.bf16 %v591_v24, %v590_v23  ;;  %v762_v36 = vadd.f32 %v761_v26, %v6352_v55 }
 0x17b   : > { %800 = vmatmul.bf16.gmra.mxu1 %v641_v29  ;;  %v906_v40 = vmax.f32 %v762_v36, 0.0 }
 0x17c   : > { %v474_v32 = vpop.f32.mrf.mxu0 }
 0x17d   : > { %v475_v41 = vadd.f32 %v474_v32, %v6281_v2 }
 0x17f   : > { %5294 = vmatmul.msk.bf16.gmra.mxu0 %vm298_vm0, %v253_v31  ;;  %v592_v46 = vmax.f32 %v475_v41, 0.0  ;;  %v259_v31 = vpack.c.bf16 %v224_v28, %v223_v27  ;;  %v1008_v41 = vld [vmem:[#allocation2 + $0x1f8] sm:$0x1] }
 0x180   : > { %v763_v38 = vpop.f32.mrf.mxu1 }
 0x181   : > { %v764_v39 = vadd.f32 %v763_v38, %v6352_v55 }
 0x182   : > { %5300 = vmatmul.msk.bf16.gmra.mxu3 %vm298_vm0, %v259_v31 }
 0x183   : > { %v907_v42 = vmax.f32 %v764_v39, 0.0 }
 0x184   : > { %v476_v43 = vpop.f32.mrf.mxu0 }
 0x185   : > { %v477_v44 = vadd.f32 %v476_v43, %v6281_v2  ;;  %v965_v45 = vpack.c.bf16 %v907_v42, %v906_v40 }
 0x187   : > { %v593_v47 = vmax.f32 %v477_v44, 0.0  ;;  %1092 = vmatmul.bf16.gmra.mxu2 %v965_v45  ;;  %v1009_v45 = vunpack.c.l.bf16 %v1008_v41 }
 0x188   : > { %v766_v48 = vpop.f32.mrf.mxu1 }
 0x189   : > { %v642_v51 = vpack.c.bf16 %v593_v47, %v592_v46  ;;  %v767_v56 = vadd.f32 %v766_v48, %v6352_v55  ;;  %v6432_v49 = vperm.slane %v1009_v45, 0 }
 0x18b   : > { %805 = vmatmul.bf16.gmra.mxu1 %v642_v51  ;;  %v908_v8 = vmax.f32 %v767_v56, 0.0  ;;  %v226_v51 = vld [vmem:[%s6253_s22 + $0x1d8] sm:$0xff] }
 0x18c   : > { %v479_v52 = vpop.f32.mrf.mxu0 }
 0x18d   : > { %v480_v60 = vadd.f32 %v479_v52, %v6281_v2  ;;  %v260_v52 = vpack.c.bf16 %v226_v51, %v225_v50 }
 0x18f   : > { %5295 = vmatmul.msk.bf16.gmra.mxu0 %vm298_vm0, %v254_v58  ;;  %v594_v0 = vmax.f32 %v480_v60, 0.0 }
 0x190   : > { %v768_v57 = vpop.f32.mrf.mxu1 }
 0x191   : > { %v769_v59 = vadd.f32 %v768_v57, %v6352_v55 }
 0x192   : > { %5301 = vmatmul.msk.bf16.gmra.mxu3 %vm298_vm0, %v260_v52 }
 0x193   : > { %v909_v61 = vmax.f32 %v769_v59, 0.0 }
 0x194   : > { %v481_v11 = vpop.f32.mrf.mxu0 }
 0x195   : > { %v482_v62 = vadd.f32 %v481_v11, %v6281_v2  ;;  %v966_v63 = vpack.c.bf16 %v909_v61, %v908_v8 }
 0x197   : > { %v595_v1 = vmax.f32 %v482_v62, 0.0  ;;  %1097 = vmatmul.bf16.gmra.mxu2 %v966_v63 }
 0x198   : > { %v771_v4 = vpop.f32.mrf.mxu1 }
 0x199   : > { %v643_v7 = vpack.c.bf16 %v595_v1, %v594_v0  ;;  %v772_v13 = vadd.f32 %v771_v4, %v6352_v55 }
 0x19b   : > { %810 = vmatmul.bf16.gmra.mxu1 %v643_v7  ;;  %v910_v30 = vmax.f32 %v772_v13, 0.0 }
 0x19c   : > { %v484_v9 = vpop.f32.mrf.mxu0 }
 0x19d   : > { %v485_v16 = vadd.f32 %v484_v9, %v6281_v2 }
 0x19f   : > { %5296 = vmatmul.msk.bf16.gmra.mxu0 %vm298_vm0, %v255_v17  ;;  %v596_v21 = vmax.f32 %v485_v16, 0.0 }
 0x1a0   : > { %v773_v14 = vpop.f32.mrf.mxu1 }
 0x1a1   : > { %v774_v15 = vadd.f32 %v773_v14, %v6352_v55 }
 0x1a2   : > { %5302 = vmatmul.msk.bf16.gmra.mxu3 %vm298_vm0, %v261_v25 }
 0x1a3   : > { %v911_v18 = vmax.f32 %v774_v15, 0.0 }
 0x1a4   : > { %v486_v19 = vpop.f32.mrf.mxu0 }
 0x1a5   : > { %v487_v20 = vadd.f32 %v486_v19, %v6281_v2  ;;  %v967_v33 = vpack.c.bf16 %v911_v18, %v910_v30 }
 0x1a7   : > { %v597_v22 = vmax.f32 %v487_v20, 0.0  ;;  %1102 = vmatmul.bf16.gmra.mxu2 %v967_v33 }
 0x1a8   : > { %v776_v23 = vpop.f32.mrf.mxu1 }
 0x1a9   : > { %v644_v24 = vpack.c.bf16 %v597_v22, %v596_v21  ;;  %v777_v29 = vadd.f32 %v776_v23, %v6352_v55 }
 0x1ab   : > { %815 = vmatmul.bf16.gmra.mxu1 %v644_v24  ;;  %v912_v35 = vmax.f32 %v777_v29, 0.0 }
 0x1ac   : > { %v489_v26 = vpop.f32.mrf.mxu0 }
 0x1ad   : > { %v490_v36 = vadd.f32 %v489_v26, %v6281_v2 }
 0x1af   : > { %v598_v42 = vmax.f32 %v490_v36, 0.0  ;;  %v229_v36 = vld [vmem:[%s6253_s22 + $0x1f0] sm:$0xff] }
 0x1b0   : > { %v778_v32 = vpop.f32.mrf.mxu1 }
 0x1b1   : > { %v779_v34 = vadd.f32 %v778_v32, %v6352_v55 }
 0x1b3   : > { %v913_v37 = vmax.f32 %v779_v34, 0.0 }
 0x1b4   : > { %v491_v38 = vpop.f32.mrf.mxu0 }
 0x1b5   : > { %v492_v39 = vadd.f32 %v491_v38, %v6281_v2  ;;  %v968_v40 = vpack.c.bf16 %v913_v37, %v912_v35  ;;  %v230_v37 = vld [vmem:[%s6253_s22 + $0x1f8] sm:$0xff] }
 0x1b7   : > { %v599_v43 = vmax.f32 %v492_v39, 0.0  ;;  %1107 = vmatmul.bf16.gmra.mxu2 %v968_v40  ;;  %v262_v39 = vpack.c.bf16 %v230_v37, %v229_v36 }
 0x1b8   : > { %v781_v44 = vpop.f32.mrf.mxu1 }
 0x1b9   : > { %v645_v46 = vpack.c.bf16 %v599_v43, %v598_v42  ;;  %v782_v58 = vadd.f32 %v781_v44, %v6352_v55  ;;  %5303 = vmatmul.msk.bf16.gmra.mxu3 %vm298_vm0, %v262_v39 }
 0x1ba   : > { %v1068_v47 = vpop.f32.mrf.mxu2 }
 0x1bb   : > { %820 = vmatmul.bf16.gmra.mxu1 %v645_v46  ;;  %v1069_v54 = vadd.f32 %v1068_v47, %v6432_v49  ;;  %v914_v57 = vmax.f32 %v782_v58, 0.0 }
 0x1bc   : > { %v494_v48 = vpop.f32.mrf.mxu0 }
 0x1bd   : > { %v495_v59 = vadd.f32 %v494_v48, %v6281_v2  ;;  %v1228_v11 = vmax.f32 %v1069_v54, 0.0 }
 0x1bf   : > { %v600_v1 = vmax.f32 %v495_v59, 0.0 }
 0x1c0   : > { %v783_v53 = vpop.f32.mrf.mxu1 }
 0x1c1   : > { %v784_v56 = vadd.f32 %v783_v53, %v6352_v55 }
 0x1c2   : > { %v1070_v3 = vpop.f32.mrf.mxu2 }
 0x1c3   : > { %v915_v8 = vmax.f32 %v784_v56, 0.0  ;;  %v1071_v60 = vadd.f32 %v1070_v3, %v6432_v49 }
 0x1c4   : > { %v496_v61 = vpop.f32.mrf.mxu0 }
 0x1c5   : > { %v1229_v62 = vmax.f32 %v1071_v60, 0.0  ;;  %v497_v63 = vadd.f32 %v496_v61, %v6281_v2  ;;  %v969_v0 = vpack.c.bf16 %v915_v8, %v914_v57 }
 0x1c7   : > { %v6443_v4 = vpack.c.bf16 %v1229_v62, %v1228_v11  ;;  %v601_v5 = vmax.f32 %v497_v63, 0.0  ;;  %1112 = vmatmul.bf16.gmra.mxu2 %v969_v0 }
 0x1c8   : > { %v786_v6 = vpop.f32.mrf.mxu1 }
 0x1c9   : > { %v646_v7 = vpack.c.bf16 %v601_v5, %v600_v1  ;;  %v787_v13 = vadd.f32 %v786_v6, %v6352_v55 }
 0x1ca   : > { %v1073_v17 = vpop.f32.mrf.mxu2 }
 0x1cb   : > { %825 = vmatmul.bf16.gmra.mxu1 %v646_v7  ;;  %v1074_v15 = vadd.f32 %v1073_v17, %v6432_v49  ;;  %v916_v18 = vmax.f32 %v787_v13, 0.0 }
 0x1cc   : > { %v499_v9 = vpop.f32.mrf.mxu0 }
 0x1cd   : > { %v500_v19 = vadd.f32 %v499_v9, %v6281_v2  ;;  %v1230_v22 = vmax.f32 %v1074_v15, 0.0 }
 0x1cf   : > { %v602_v27 = vmax.f32 %v500_v19, 0.0 }
 0x1d0   : > { %v788_v14 = vpop.f32.mrf.mxu1 }
 0x1d1   : > { %v789_v30 = vadd.f32 %v788_v14, %v6352_v55 }
 0x1d2   : > { %v1075_v16 = vpop.f32.mrf.mxu2 }
 0x1d3   : > { %v917_v20 = vmax.f32 %v789_v30, 0.0  ;;  %v1076_v33 = vadd.f32 %v1075_v16, %v6432_v49 }
 0x1d4   : > { %v501_v21 = vpop.f32.mrf.mxu0 }
 0x1d5   : > { %v1231_v23 = vmax.f32 %v1076_v33, 0.0  ;;  %v502_v24 = vadd.f32 %v501_v21, %v6281_v2  ;;  %v970_v26 = vpack.c.bf16 %v917_v20, %v916_v18 }
 0x1d7   : > { %v603_v28 = vmax.f32 %v502_v24, 0.0  ;;  %1117 = vmatmul.bf16.gmra.mxu2 %v970_v26  ;;  %v6454_v29 = vpack.c.bf16 %v1231_v23, %v1230_v22 }
 0x1d8   : > { %v791_v31 = vpop.f32.mrf.mxu1 }
 0x1d9   : > { %v647_v32 = vpack.c.bf16 %v603_v28, %v602_v27  ;;  %v792_v38 = vadd.f32 %v791_v31, %v6352_v55 }
 0x1da   : > { %v1078_v34 = vpop.f32.mrf.mxu2 }
 0x1db   : > { %830 = vmatmul.bf16.gmra.mxu1 %v647_v32  ;;  %v1079_v41 = vadd.f32 %v1078_v34, %v6432_v49  ;;  %v918_v44 = vmax.f32 %v792_v38, 0.0 }
 0x1dc   : > { %v504_v35 = vpop.f32.mrf.mxu0 }
 0x1dd   : > { %v505_v45 = vadd.f32 %v504_v35, %v6281_v2  ;;  %v1232_v50 = vmax.f32 %v1079_v41, 0.0 }
 0x1df   : > { %v604_v53 = vmax.f32 %v505_v45, 0.0 }
 0x1e0   : > { %v793_v40 = vpop.f32.mrf.mxu1 }
 0x1e1   : > { %v794_v42 = vadd.f32 %v793_v40, %v6352_v55 }
 0x1e2   : > { %v1080_v43 = vpop.f32.mrf.mxu2 }
 0x1e3   : > { %v919_v46 = vmax.f32 %v794_v42, 0.0  ;;  %v1081_v47 = vadd.f32 %v1080_v43, %v6432_v49  ;;  %v529_v43 = vpop.f32.mrf.mxu3 }
 0x1e4   : > { %v506_v48 = vpop.f32.mrf.mxu0 }
 0x1e5   : > { %v1233_v51 = vmax.f32 %v1081_v47, 0.0  ;;  %v507_v58 = vadd.f32 %v506_v48, %v6281_v2  ;;  %v971_v52 = vpack.c.bf16 %v919_v46, %v918_v44 }
 0x1e7   : > { %v605_v54 = vmax.f32 %v507_v58, 0.0  ;;  %1122 = vmatmul.bf16.gmra.mxu2 %v971_v52  ;;  %v6465_v56 = vpack.c.bf16 %v1233_v51, %v1232_v50 }
 0x1e8   : > { %v796_v3 = vpop.f32.mrf.mxu1 }
 0x1e9   : > { %v648_v57 = vpack.c.bf16 %v605_v54, %v604_v53  ;;  %v797_v60 = vadd.f32 %v796_v3, %v6352_v55 }
 0x1ea   : > { %v1083_v59 = vpop.f32.mrf.mxu2 }
 0x1eb   : > { %835 = vmatmul.bf16.gmra.mxu1 %v648_v57  ;;  %v1084_v11 = vadd.f32 %v1083_v59, %v6432_v49  ;;  %v920_v0 = vmax.f32 %v797_v60, 0.0 }
 0x1ec   : > { %v509_v8 = vpop.f32.mrf.mxu0 }
 0x1ed   : > { %v510_v1 = vadd.f32 %v509_v8, %v6281_v2  ;;  %v1234_v17 = vmax.f32 %v1084_v11, 0.0  ;;  %v531_v8 = vpop.f32.mrf.mxu3 }
 0x1ef   : > { %v606_v13 = vmax.f32 %v510_v1, 0.0 }
 0x1f0   : > { %v798_v61 = vpop.f32.mrf.mxu1 }
 0x1f1   : > { %v799_v62 = vadd.f32 %v798_v61, %v6352_v55 }
 0x1f2   : > { %v1085_v63 = vpop.f32.mrf.mxu2 }
 0x1f3   : > { %v921_v5 = vmax.f32 %v799_v62, 0.0  ;;  %v1086_v6 = vadd.f32 %v1085_v63, %v6432_v49 }
 0x1f4   : > { %v511_v7 = vpop.f32.mrf.mxu0 }
 0x1f5   : > { %v1235_v9 = vmax.f32 %v1086_v6, 0.0  ;;  %v512_v10 = vadd.f32 %v511_v7, %v6281_v2  ;;  %v972_v12 = vpack.c.bf16 %v921_v5, %v920_v0  ;;  %v534_v7 = vpop.f32.mrf.mxu3 }
 0x1f7   : > { %v607_v25 = vmax.f32 %v512_v10, 0.0  ;;  %1127 = vmatmul.bf16.gmra.mxu2 %v972_v12  ;;  %v6473_v14 = vpack.c.bf16 %v1235_v9, %v1234_v17 }
 0x1f8   : > { %v801_v15 = vpop.f32.mrf.mxu1 }
 0x1f9   : > { %v649_v30 = vpack.c.bf16 %v607_v25, %v606_v13  ;;  %v802_v19 = vadd.f32 %v801_v15, %v6352_v55 }
 0x1fa   : > { %v1088_v16 = vpop.f32.mrf.mxu2 }
 0x1fb   : > { %840 = vmatmul.bf16.gmra.mxu1 %v649_v30  ;;  %v1089_v33 = vadd.f32 %v1088_v16, %v6432_v49  ;;  %v922_v23 = vmax.f32 %v802_v19, 0.0 }
 0x1fc   : > { %v514_v18 = vpop.f32.mrf.mxu0 }
 0x1fd   : > { %v515_v24 = vadd.f32 %v514_v18, %v6281_v2  ;;  %v1236_v31 = vmax.f32 %v1089_v33, 0.0 }
 0x1ff   : > { %v608_v36 = vmax.f32 %v515_v24, 0.0 }
 0x200   : > { %v803_v20 = vpop.f32.mrf.mxu1 }
 0x201   : > { %v804_v21 = vadd.f32 %v803_v20, %v6352_v55 }
 0x202   : > { %v1090_v22 = vpop.f32.mrf.mxu2 }
 0x203   : > { %v923_v26 = vmax.f32 %v804_v21, 0.0  ;;  %v1091_v27 = vadd.f32 %v1090_v22, %v6432_v49 }
 0x204   : > { %v516_v28 = vpop.f32.mrf.mxu0 }
 0x205   : > { %v1237_v32 = vmax.f32 %v1091_v27, 0.0  ;;  %v517_v34 = vadd.f32 %v516_v28, %v6281_v2  ;;  %v973_v35 = vpack.c.bf16 %v923_v26, %v922_v23  ;;  %v536_v27 = vpop.f32.mrf.mxu3 }
 0x207   : > { %v609_v37 = vmax.f32 %v517_v34, 0.0  ;;  %1132 = vmatmul.bf16.gmra.mxu2 %v973_v35  ;;  %v6481_v38 = vpack.c.bf16 %v1237_v32, %v1236_v31  ;;  %v530_v31 = vadd.f32 %v529_v43, %v6281_v2  ;;  %v532_v35 = vadd.f32 %v531_v8, %v6281_v2 }
 0x208   : > { %v806_v39 = vpop.f32.mrf.mxu1 }
 0x209   : > { %v650_v40 = vpack.c.bf16 %v609_v37, %v608_v36  ;;  %v807_v44 = vadd.f32 %v806_v39, %v6352_v55 }
 0x20a   : > { %v1093_v41 = vpop.f32.mrf.mxu2 }
 0x20b   : > { %845 = vmatmul.bf16.gmra.mxu1 %v650_v40  ;;  %v1094_v46 = vadd.f32 %v1093_v41, %v6432_v49  ;;  %v924_v50 = vmax.f32 %v807_v44, 0.0 }
 0x20c   : > { %v519_v42 = vpop.f32.mrf.mxu0 }
 0x20d   : > { %v520_v51 = vadd.f32 %v519_v42, %v6281_v2  ;;  %v1238_v54 = vmax.f32 %v1094_v46, 0.0  ;;  %v614_v42 = vmax.f32 %v530_v31, 0.0  ;;  %v539_v44 = vpop.f32.mrf.mxu3  ;;  %v615_v46 = vmax.f32 %v532_v35, 0.0 }
 0x20f   : > { %v610_v60 = vmax.f32 %v520_v51, 0.0  ;;  %v653_v51 = vpack.c.bf16 %v615_v46, %v614_v42 }
 0x210   : > { %v808_v45 = vpop.f32.mrf.mxu1 }
 0x211   : > { %v809_v47 = vadd.f32 %v808_v45, %v6352_v55 }
 0x212   : > { %v1095_v48 = vpop.f32.mrf.mxu2 }
 0x213   : > { %v925_v58 = vmax.f32 %v809_v47, 0.0  ;;  %v1096_v52 = vadd.f32 %v1095_v48, %v6432_v49 }
 0x214   : > { %v521_v53 = vpop.f32.mrf.mxu0 }
 0x215   : > { %v1239_v3 = vmax.f32 %v1096_v52, 0.0  ;;  %v522_v57 = vadd.f32 %v521_v53, %v6281_v2  ;;  %v974_v59 = vpack.c.bf16 %v925_v58, %v924_v50  ;;  %v541_v52 = vpop.f32.mrf.mxu3 }
 0x217   : > { %v611_v61 = vmax.f32 %v522_v57, 0.0  ;;  %1137 = vmatmul.bf16.gmra.mxu2 %v974_v59  ;;  %v6489_v11 = vpack.c.bf16 %v1239_v3, %v1238_v54  ;;  %v535_v54 = vadd.f32 %v534_v7, %v6281_v2  ;;  %v537_v59 = vadd.f32 %v536_v27, %v6281_v2 }
 0x218   : > { %v811_v62 = vpop.f32.mrf.mxu1 }
 0x219   : > { %v651_v63 = vpack.c.bf16 %v611_v61, %v610_v60  ;;  %v812_v5 = vadd.f32 %v811_v62, %v6352_v55 }
 0x21a   : > { %v1098_v0 = vpop.f32.mrf.mxu2 }
 0x21b   : > { %850 = vmatmul.bf16.gmra.mxu1 %v651_v63  ;;  %v1099_v17 = vadd.f32 %v1098_v0, %v6432_v49  ;;  %v926_v12 = vmax.f32 %v812_v5, 0.0  ;;  %v616_v0 = vmax.f32 %v535_v54, 0.0  ;;  %v617_v5 = vmax.f32 %v537_v59, 0.0 }
 0x21c   : > { %v524_v1 = vpop.f32.mrf.mxu0 }
 0x21d   : > { %v525_v13 = vadd.f32 %v524_v1, %v6281_v2  ;;  %v1240_v16 = vmax.f32 %v1099_v17, 0.0 }
 0x21f   : > { %v612_v33 = vmax.f32 %v525_v13, 0.0 }
 0x220   : > { %v813_v6 = vpop.f32.mrf.mxu1 }
 0x221   : > { %v814_v9 = vadd.f32 %v813_v6, %v6352_v55 }
 0x222   : > { %v1100_v10 = vpop.f32.mrf.mxu2 }
 0x223   : > { %v927_v25 = vmax.f32 %v814_v9, 0.0  ;;  %v1101_v15 = vadd.f32 %v1100_v10, %v6432_v49  ;;  %v544_v10 = vpop.f32.mrf.mxu3 }
 0x224   : > { %v526_v30 = vpop.f32.mrf.mxu0 }
 0x225   : > { %v1241_v18 = vmax.f32 %v1101_v15, 0.0  ;;  %v527_v19 = vadd.f32 %v526_v30, %v6281_v2  ;;  %v975_v20 = vpack.c.bf16 %v927_v25, %v926_v12  ;;  %v654_v12 = vpack.c.bf16 %v617_v5, %v616_v0 }
 0x226   : > { %v540_v15 = vadd.f32 %v539_v44, %v6281_v2 }
 0x227   : > { %v613_v21 = vmax.f32 %v527_v19, 0.0  ;;  %1142 = vmatmul.bf16.gmra.mxu2 %v975_v20  ;;  %v6497_v22 = vpack.c.bf16 %v1241_v18, %v1240_v16  ;;  %v542_v18 = vadd.f32 %v541_v52, %v6281_v2 }
 0x228   : > { %v816_v23 = vpop.f32.mrf.mxu1 }
 0x229   : > { %v652_v24 = vpack.c.bf16 %v613_v21, %v612_v33  ;;  %v817_v28 = vadd.f32 %v816_v23, %v6352_v55 }
 0x22a   : > { %v1103_v26 = vpop.f32.mrf.mxu2 }
 0x22b   : > { %855 = vmatmul.bf16.vlgmr.msrb.gmra.mxu3 %v652_v24  ;;  %v1104_v34 = vadd.f32 %v1103_v26, %v6432_v49  ;;  %v928_v39 = vmax.f32 %v817_v28, 0.0  ;;  %v546_v33 = vpop.f32.mrf.mxu3  ;;  %v618_v26 = vmax.f32 %v540_v15, 0.0  ;;  %v619_v28 = vmax.f32 %v542_v18, 0.0 }
 0x22d   : > { %v1242_v45 = vmax.f32 %v1104_v34, 0.0 }
 0x230   : > { %v818_v32 = vpop.f32.mrf.mxu1 }
 0x231   : > { %v819_v36 = vadd.f32 %v818_v32, %v6352_v55 }
 0x232   : > { %v1105_v37 = vpop.f32.mrf.mxu2 }
 0x233   : > { %v929_v40 = vmax.f32 %v819_v36, 0.0  ;;  %v1106_v41 = vadd.f32 %v1105_v37, %v6432_v49  ;;  %v655_v36 = vpack.c.bf16 %v619_v28, %v618_v26 }
 0x235   : > { %v1243_v47 = vmax.f32 %v1106_v41, 0.0  ;;  %v976_v48 = vpack.c.bf16 %v929_v40, %v928_v39  ;;  %v549_v39 = vpop.f32.mrf.mxu3  ;;  %v545_v41 = vadd.f32 %v544_v10, %v6281_v2 }
 0x237   : > { %1147 = vmatmul.bf16.gmra.mxu2 %v976_v48  ;;  %v6505_v43 = vpack.c.bf16 %v1243_v47, %v1242_v45  ;;  %v547_v45 = vadd.f32 %v546_v33, %v6281_v2 }
 0x238   : > { %v821_v50 = vpop.f32.mrf.mxu1 }
 0x239   : > { %v822_v53 = vadd.f32 %v821_v50, %v6352_v55 }
 0x23a   : > { %v1108_v58 = vpop.f32.mrf.mxu2 }
 0x23b   : > { %860 = vmatmul.bf16.gmra.mxu3 %v653_v51  ;;  %v1109_v57 = vadd.f32 %v1108_v58, %v6432_v49  ;;  %v930_v61 = vmax.f32 %v822_v53, 0.0  ;;  %v620_v58 = vmax.f32 %v545_v41, 0.0  ;;  %v621_v53 = vmax.f32 %v547_v45, 0.0 }
 0x23d   : > { %v1244_v1 = vmax.f32 %v1109_v57, 0.0  ;;  %v551_v57 = vpop.f32.mrf.mxu3 }
 0x240   : > { %v823_v3 = vpop.f32.mrf.mxu1 }
 0x241   : > { %v824_v8 = vadd.f32 %v823_v3, %v6352_v55 }
 0x242   : > { %v1110_v60 = vpop.f32.mrf.mxu2 }
 0x243   : > { %v931_v62 = vmax.f32 %v824_v8, 0.0  ;;  %v1111_v63 = vadd.f32 %v1110_v60, %v6432_v49  ;;  %v656_v60 = vpack.c.bf16 %v621_v53, %v620_v58 }
 0x245   : > { %v1245_v6 = vmax.f32 %v1111_v63, 0.0  ;;  %v977_v17 = vpack.c.bf16 %v931_v62, %v930_v61  ;;  %v550_v63 = vadd.f32 %v549_v39, %v6281_v2 }
 0x247   : > { %1152 = vmatmul.bf16.gmra.mxu2 %v977_v17  ;;  %v6513_v9 = vpack.c.bf16 %v1245_v6, %v1244_v1  ;;  %v554_v1 = vpop.f32.mrf.mxu3  ;;  %v552_v6 = vadd.f32 %v551_v57, %v6281_v2  ;;  %v5398_v57 = vld [vmem:[#allocation2 + $0x2ac] sm:$0xf] }
 0x248   : > { %v826_v7 = vpop.f32.mrf.mxu1  ;;  %v555_v26 = vadd.f32 %v554_v1, %v6281_v2 }
 0x249   : > { %v827_v25 = vadd.f32 %v826_v7, %v6352_v55 }
 0x24a   : > { %v1113_v13 = vpop.f32.mrf.mxu2 }
 0x24b   : > { %865 = vmatmul.bf16.gmra.mxu3 %v654_v12  ;;  %v1114_v16 = vadd.f32 %v1113_v13, %v6432_v49  ;;  %v932_v21 = vmax.f32 %v827_v25, 0.0  ;;  %v622_v25 = vmax.f32 %v550_v63, 0.0  ;;  %v5430_v63 = vld [vmem:[#allocation2 + $0x378] sm:$0xf] }
 0x24d   : > { %v1246_v27 = vmax.f32 %v1114_v16, 0.0 }
 0x250   : > { %v828_v30 = vpop.f32.mrf.mxu1 }
 0x251   : > { %v829_v19 = vadd.f32 %v828_v30, %v6352_v55  ;;  %v623_v30 = vmax.f32 %v552_v6, 0.0 }
 0x252   : > { %v1115_v20 = vpop.f32.mrf.mxu2 }
 0x253   : > { %v933_v23 = vmax.f32 %v829_v19, 0.0  ;;  %v1116_v24 = vadd.f32 %v1115_v20, %v6432_v49  ;;  %v657_v33 = vpack.c.bf16 %v623_v30, %v622_v25 }
 0x255   : > { %v1247_v31 = vmax.f32 %v1116_v24, 0.0  ;;  %v978_v32 = vpack.c.bf16 %v933_v23, %v932_v21  ;;  %v556_v21 = vpop.f32.mrf.mxu3 }
 0x257   : > { %1157 = vmatmul.bf16.gmra.mxu2 %v978_v32  ;;  %v6521_v34 = vpack.c.bf16 %v1247_v31, %v1246_v27  ;;  %v557_v27 = vadd.f32 %v556_v21, %v6281_v2  ;;  %v5747_v21 = vld [vmem:[#allocation2 + $0x284] sm:$0xf0] }
 0x258   : > { %v831_v35 = vpop.f32.mrf.mxu1 }
 0x259   : > { %v832_v40 = vadd.f32 %v831_v35, %v6352_v55 }
 0x25a   : > { %v1118_v37 = vpop.f32.mrf.mxu2 }
 0x25b   : > { %870 = vmatmul.bf16.gmra.mxu3 %v655_v36  ;;  %v1119_v44 = vadd.f32 %v1118_v37, %v6432_v49  ;;  %v934_v48 = vmax.f32 %v832_v40, 0.0  ;;  %v624_v36 = vmax.f32 %v555_v26, 0.0  ;;  %v625_v37 = vmax.f32 %v557_v27, 0.0 }
 0x25d   : > { %v1248_v52 = vmax.f32 %v1119_v44, 0.0  ;;  %v559_v35 = vpop.f32.mrf.mxu3  ;;  %v658_v41 = vpack.c.bf16 %v625_v37, %v624_v36  ;;  %v5386_v36 = vld [vmem:[#allocation2 + $0x264] sm:$0xf]  ;;  %v5746_v37 = vld [vmem:[#allocation2 + $0x26c] sm:$0xf0] }
 0x260   : > { %v833_v42 = vpop.f32.mrf.mxu1 }
 0x261   : > { %v834_v46 = vadd.f32 %v833_v42, %v6352_v55 }
 0x262   : > { %v1120_v47 = vpop.f32.mrf.mxu2 }
 0x263   : > { %v935_v50 = vmax.f32 %v834_v46, 0.0  ;;  %v1121_v51 = vadd.f32 %v1120_v47, %v6432_v49  ;;  %v560_v46 = vadd.f32 %v559_v35, %v6281_v2 }
 0x265   : > { %v1249_v54 = vmax.f32 %v1121_v51, 0.0  ;;  %v979_v3 = vpack.c.bf16 %v935_v50, %v934_v48  ;;  %v561_v42 = vpop.f32.mrf.mxu3  ;;  %v626_v58 = vmax.f32 %v560_v46, 0.0 }
 0x266   : > { %v562_v47 = vadd.f32 %v561_v42, %v6281_v2  ;;  %v5756_v42 = vld [vmem:[#allocation2 + $0x368] sm:$0xf0] }
 0x267   : > { %1162 = vmatmul.bf16.gmra.mxu2 %v979_v3  ;;  %v6529_v59 = vpack.c.bf16 %v1249_v54, %v1248_v52 }
 0x268   : > { %v836_v8 = vpop.f32.mrf.mxu1  ;;  %v627_v52 = vmax.f32 %v562_v47, 0.0 }
 0x269   : > { %v837_v62 = vadd.f32 %v836_v8, %v6352_v55  ;;  %v5749_v8 = vld [vmem:[#allocation2 + $0x2b4] sm:$0xf0] }
 0x26a   : > { %v1123_v61 = vpop.f32.mrf.mxu2  ;;  %v659_v3 = vpack.c.bf16 %v627_v52, %v626_v58  ;;  %v5382_v58 = vld [vmem:[#allocation2 + $0x24c] sm:$0xf]  ;;  %v5745_v52 = vld [vmem:[#allocation2 + $0x254] sm:$0xf0] }
 0x26b   : > { %875 = vmatmul.bf16.gmra.mxu3 %v656_v60  ;;  %v1124_v5 = vadd.f32 %v1123_v61, %v6432_v49  ;;  %v936_v10 = vmax.f32 %v837_v62, 0.0  ;;  %v5399_v60 = vor.u32 %v5749_v8, %v5398_v57 }
 0x26d   : > { %v1250_v15 = vmax.f32 %v1124_v5, 0.0  ;;  %1391 = vmatpush.bf16.msrb.mxu3 %v5399_v60 }
 0x270   : > { %v838_v0 = vpop.f32.mrf.mxu1 }
 0x271   : > { %v839_v17 = vadd.f32 %v838_v0, %v6352_v55  ;;  %v5757_v0 = vld [vmem:[#allocation2 + $0x380] sm:$0xf0] }
 0x272   : > { %v1125_v7 = vpop.f32.mrf.mxu2  ;;  %v5431_v1 = vor.u32 %v5757_v0, %v5430_v63  ;;  %v5744_v63 = vld [vmem:[#allocation2 + $0x23c] sm:$0xf0] }
 0x273   : > { %v937_v12 = vmax.f32 %v839_v17, 0.0  ;;  %v1126_v13 = vadd.f32 %v1125_v7, %v6432_v49  ;;  %v5394_v7 = vld [vmem:[#allocation2 + $0x294] sm:$0xf] }
 0x274   : > { %1976 = vmatpush.bf16.msrb.mxu0 %v5431_v1 }
 0x275   : > { %v1251_v16 = vmax.f32 %v1126_v13, 0.0  ;;  %v980_v18 = vpack.c.bf16 %v937_v12, %v936_v10  ;;  %v5748_v10 = vld [vmem:[#allocation2 + $0x29c] sm:$0xf0] }
 0x276   : > { %v5395_v13 = vor.u32 %v5748_v10, %v5394_v7 }
 0x277   : > { %1167 = vmatmul.bf16.gmra.mxu2 %v980_v18  ;;  %v6537_v19 = vpack.c.bf16 %v1251_v16, %v1250_v15 }
 0x278   : > { %v841_v20 = vpop.f32.mrf.mxu1  ;;  %1392 = vmatpush.bf16.msrb.mxu3 %v5395_v13  ;;  %v5374_v13 = vld [vmem:[#allocation2 + $0x21c] sm:$0xf] }
 0x279   : > { %v842_v23 = vadd.f32 %v841_v20, %v6352_v55 }
 0x27b   : > { %880 = vmatmul.bf16.gmra.mxu3 %v657_v33  ;;  %v938_v31 = vmax.f32 %v842_v23, 0.0  ;;  %v5390_v33 = vld [vmem:[#allocation2 + $0x27c] sm:$0xf] }
 0x280   : > { %v843_v24 = vpop.f32.mrf.mxu1 }
 0x281   : > { %v844_v28 = vadd.f32 %v843_v24, %v6352_v55  ;;  %v5391_v24 = vor.u32 %v5747_v21, %v5390_v33 }
 0x283   : > { %v939_v32 = vmax.f32 %v844_v28, 0.0  ;;  %1393 = vmatpush.bf16.msrb.mxu3 %v5391_v24 }
 0x285   : > { %v981_v39 = vpack.c.bf16 %v939_v32, %v938_v31 }
 0x287   : > { %1172 = vmatmul.bf16.gmra.mxu2 %v981_v39 }
 0x288   : > { %v846_v40 = vpop.f32.mrf.mxu1 }
 0x289   : > { %v847_v44 = vadd.f32 %v846_v40, %v6352_v55  ;;  %v5387_v40 = vor.u32 %v5746_v37, %v5386_v36 }
 0x28b   : > { %885 = vmatmul.bf16.gmra.mxu3 %v658_v41  ;;  %v940_v50 = vmax.f32 %v847_v44, 0.0  ;;  %v5426_v41 = vld [vmem:[#allocation2 + $0x360] sm:$0xf] }
 0x28c   : > { %1394 = vmatpush.bf16.msrb.mxu3 %v5387_v40  ;;  %v5427_v44 = vor.u32 %v5756_v42, %v5426_v41 }
 0x28e   : > { %1977 = vmatpush.bf16.msrb.mxu0 %v5427_v44 }
 0x290   : > { %v848_v45 = vpop.f32.mrf.mxu1 }
 0x291   : > { %v849_v48 = vadd.f32 %v848_v45, %v6352_v55 }
 0x293   : > { %v941_v51 = vmax.f32 %v849_v48, 0.0 }
 0x295   : > { %v982_v53 = vpack.c.bf16 %v941_v51, %v940_v50 }
 0x297   : > { %1177 = vmatmul.bf16.gmra.mxu2 %v982_v53 }
 0x298   : > { %v851_v54 = vpop.f32.mrf.mxu1 }
 0x299   : > { %v852_v61 = vadd.f32 %v851_v54, %v6352_v55  ;;  %v5383_v54 = vor.u32 %v5745_v52, %v5382_v58  ;;  %v5418_v58 = vld [vmem:[#allocation2 + $0x330] sm:$0xf]  ;;  %v5754_v52 = vld [vmem:[#allocation2 + $0x338] sm:$0xf0] }
 0x29b   : > { %890 = vmatmul.bf16.gmra.mxu3 %v659_v3  ;;  %v942_v5 = vmax.f32 %v852_v61, 0.0 }
 0x29c   : > { %1395 = vmatpush.bf16.msrb.mxu3 %v5383_v54 }
 0x2a0   : > { %v853_v62 = vpop.f32.mrf.mxu1 }
 0x2a1   : > { %v854_v2 = vadd.f32 %v853_v62, %v6352_v55 }
 0x2a3   : > { %v943_v6 = vmax.f32 %v854_v2, 0.0  ;;  %v5378_v2 = vld [vmem:[#allocation2 + $0x234] sm:$0xf] }
 0x2a4   : > { %v5379_v1 = vor.u32 %v5744_v63, %v5378_v2 }
 0x2a5   : > { %v983_v17 = vpack.c.bf16 %v943_v6, %v942_v5 }
 0x2a6   : > { %1396 = vmatpush.bf16.msrb.mxu3 %v5379_v1 }
 0x2a7   : > { %1182 = vmatmul.bf16.gmra.mxu2 %v983_v17 }
 0x2ae   : > { %v856_v12 = vpop.f32.mrf.mxu3 }
 0x2af   : > { %v857_v25 = vadd.f32 %v856_v12, %v6352_v55 }
 0x2b1   : > { %v944_v16 = vmax.f32 %v857_v25, 0.0  ;;  %v5743_v25 = vld [vmem:[#allocation2 + $0x224] sm:$0xf0] }
 0x2b6   : > { %v858_v15 = vpop.f32.mrf.mxu3 }
 0x2b7   : > { %v859_v30 = vadd.f32 %v858_v15, %v6352_v55 }
 0x2b9   : > { %v945_v18 = vmax.f32 %v859_v30, 0.0  ;;  %v5375_v30 = vor.u32 %v5743_v25, %v5374_v13 }
 0x2bb   : > { %v984_v20 = vpack.c.bf16 %v945_v18, %v944_v16  ;;  %1397 = vmatpush.bf16.msrb.mxu3 %v5375_v30  ;;  %v5422_v18 = vld [vmem:[#allocation2 + $0x348] sm:$0xf] }
 0x2bd   : > { %1187 = vmatmul.bf16.vlgmr.msra.gmra.mxu3 %v984_v20  ;;  %v5755_v20 = vld [vmem:[#allocation2 + $0x350] sm:$0xf0] }
 0x2be   : > { %v861_v23 = vpop.f32.mrf.mxu3  ;;  %v5423_v21 = vor.u32 %v5755_v20, %v5422_v18 }
 0x2bf   : > { %v862_v26 = vadd.f32 %v861_v23, %v6352_v55 }
 0x2c0   : > { %1978 = vmatpush.bf16.msrb.mxu0 %v5423_v21 }
 0x2c1   : > { %v946_v31 = vmax.f32 %v862_v26, 0.0 }
 0x2c6   : > { %v863_v27 = vpop.f32.mrf.mxu3 }
 0x2c7   : > { %v864_v28 = vadd.f32 %v863_v27, %v6352_v55 }
 0x2c9   : > { %v947_v32 = vmax.f32 %v864_v28, 0.0  ;;  %v5370_v28 = vld [vmem:[#allocation2 + $0x204] sm:$0xf] }
 0x2cb   : > { %v985_v35 = vpack.c.bf16 %v947_v32, %v946_v31  ;;  %v5742_v31 = vld [vmem:[#allocation2 + $0x20c] sm:$0xf0] }
 0x2cd   : > { %1192 = vmatmul.bf16.gmra.mxu3 %v985_v35  ;;  %v5371_v35 = vor.u32 %v5742_v31, %v5370_v28 }
 0x2ce   : > { %v866_v39 = vpop.f32.mrf.mxu3 }
 0x2cf   : > { %v867_v45 = vadd.f32 %v866_v39, %v6352_v55  ;;  %1398 = vmatpush.bf16.msrb.mxu3 %v5371_v35 }
 0x2d1   : > { %v948_v48 = vmax.f32 %v867_v45, 0.0 }
 0x2d6   : > { %v868_v46 = vpop.f32.mrf.mxu3 }
 0x2d7   : > { %v869_v47 = vadd.f32 %v868_v46, %v6352_v55 }
 0x2d9   : > { %v949_v50 = vmax.f32 %v869_v47, 0.0 }
 0x2db   : > { %v986_v51 = vpack.c.bf16 %v949_v50, %v948_v48 }
 0x2dd   : > { %1197 = vmatmul.bf16.gmra.mxu3 %v986_v51 }
 0x2de   : > { %v871_v53 = vpop.f32.mrf.mxu3 }
 0x2df   : > { %v872_v3 = vadd.f32 %v871_v53, %v6352_v55  ;;  %v5419_v53 = vor.u32 %v5754_v52, %v5418_v58 }
 0x2e1   : > { %v950_v60 = vmax.f32 %v872_v3, 0.0  ;;  %1979 = vmatpush.bf16.msrb.mxu0 %v5419_v53  ;;  %v1340_v53 = vld [vmem:[#allocation2 + $0x2c4] sm:$0x1] }
 0x2e6   : > { %v873_v57 = vpop.f32.mrf.mxu3 }
 0x2e7   : > { %v874_v8 = vadd.f32 %v873_v57, %v6352_v55 }
 0x2e9   : > { %v951_v61 = vmax.f32 %v874_v8, 0.0 }
 0x2eb   : > { %v987_v62 = vpack.c.bf16 %v951_v61, %v950_v60 }
 0x2ed   : > { %1202 = vmatmul.bf16.gmra.mxu3 %v987_v62 }
 0x2ee   : > { %v876_v0 = vpop.f32.mrf.mxu3 }
 0x2ef   : > { %v877_v5 = vadd.f32 %v876_v0, %v6352_v55 }
 0x2f1   : > { %v952_v7 = vmax.f32 %v877_v5, 0.0 }
 0x2f6   : > { %v878_v6 = vpop.f32.mrf.mxu3 }
 0x2f7   : > { %v879_v17 = vadd.f32 %v878_v6, %v6352_v55 }
 0x2f9   : > { %v953_v10 = vmax.f32 %v879_v17, 0.0  ;;  %v5414_v17 = vld [vmem:[#allocation2 + $0x318] sm:$0xf] }
 0x2fb   : > { %v988_v12 = vpack.c.bf16 %v953_v10, %v952_v7  ;;  %v5753_v7 = vld [vmem:[#allocation2 + $0x320] sm:$0xf0] }
 0x2fc   : > { %v5415_v10 = vor.u32 %v5753_v7, %v5414_v17 }
 0x2fd   : > { %1207 = vmatmul.bf16.gmra.mxu3 %v988_v12 }
 0x2fe   : > { %v881_v15 = vpop.f32.mrf.mxu3  ;;  %1980 = vmatpush.bf16.msrb.mxu0 %v5415_v10 }
 0x2ff   : > { %v882_v16 = vadd.f32 %v881_v15, %v6352_v55 }
 0x301   : > { %v954_v24 = vmax.f32 %v882_v16, 0.0 }
 0x306   : > { %v883_v33 = vpop.f32.mrf.mxu3 }
 0x307   : > { %v884_v23 = vadd.f32 %v883_v33, %v6352_v55 }
 0x309   : > { %v955_v26 = vmax.f32 %v884_v23, 0.0 }
 0x30b   : > { %v989_v27 = vpack.c.bf16 %v955_v26, %v954_v24 }
 0x30d   : > { %1212 = vmatmul.bf16.gmra.mxu3 %v989_v27 }
 0x30e   : > { %v886_v32 = vpop.f32.mrf.mxu3 }
 0x30f   : > { %v887_v36 = vadd.f32 %v886_v32, %v6352_v55 }
 0x311   : > { %v956_v40 = vmax.f32 %v887_v36, 0.0 }
 0x316   : > { %v888_v37 = vpop.f32.mrf.mxu3 }
 0x317   : > { %v889_v39 = vadd.f32 %v888_v37, %v6352_v55 }
 0x319   : > { %v957_v41 = vmax.f32 %v889_v39, 0.0 }
 0x31b   : > { %v990_v42 = vpack.c.bf16 %v957_v41, %v956_v40  ;;  %v5410_v41 = vld [vmem:[#allocation2 + $0x300] sm:$0xf] }
 0x31d   : > { %1217 = vmatmul.bf16.gmra.mxu3 %v990_v42  ;;  %v5752_v42 = vld [vmem:[#allocation2 + $0x308] sm:$0xf0] }
 0x31e   : > { %v891_v44 = vpop.f32.mrf.mxu3 }
 0x31f   : > { %v892_v45 = vadd.f32 %v891_v44, %v6352_v55  ;;  %v5411_v44 = vor.u32 %v5752_v42, %v5410_v41 }
 0x321   : > { %v958_v48 = vmax.f32 %v892_v45, 0.0  ;;  %1981 = vmatpush.bf16.msrb.mxu0 %v5411_v44 }
 0x326   : > { %v893_v46 = vpop.f32.mrf.mxu3 }
 0x327   : > { %v894_v47 = vadd.f32 %v893_v46, %v6352_v55 }
 0x329   : > { %v959_v50 = vmax.f32 %v894_v47, 0.0 }
 0x32b   : > { %v991_v51 = vpack.c.bf16 %v959_v50, %v958_v48 }
 0x32d   : > { %1222 = vmatmul.bf16.gmra.mxu3 %v991_v51 }
 0x33d   : > { %1399 = vmatmul.bf16.vlgmr.msrb.gmra.mxu3 %v6443_v4 }
 0x340   : > { %v1188_v54 = vpop.f32.mrf.mxu3 }
 0x341   : > { %v1189_v3 = vadd.f32 %v1188_v54, %v6432_v49 }
 0x343   : > { %v1276_v60 = vmax.f32 %v1189_v3, 0.0 }
 0x348   : > { %v1190_v57 = vpop.f32.mrf.mxu3 }
 0x349   : > { %v1191_v8 = vadd.f32 %v1190_v57, %v6432_v49  ;;  %v1341_v57 = vunpack.c.l.bf16 %v1340_v53 }
 0x34b   : > { %v1277_v61 = vmax.f32 %v1191_v8, 0.0  ;;  %v1128_v8 = vpop.f32.mrf.mxu2 }
 0x34d   : > { %1404 = vmatmul.bf16.gmra.mxu3 %v6454_v29  ;;  %v6569_v55 = vpack.c.bf16 %v1277_v61, %v1276_v60 }
 0x350   : > { %v1193_v62 = vpop.f32.mrf.mxu3 }
 0x351   : > { %v1194_v2 = vadd.f32 %v1193_v62, %v6432_v49  ;;  %v6604_v62 = vperm.slane %v1341_v57, 0 }
 0x353   : > { %v1278_v1 = vmax.f32 %v1194_v2, 0.0 }
 0x358   : > { %v1195_v63 = vpop.f32.mrf.mxu3 }
 0x359   : > { %v1196_v0 = vadd.f32 %v1195_v63, %v6432_v49 }
 0x35b   : > { %v1279_v4 = vmax.f32 %v1196_v0, 0.0  ;;  %v1130_v0 = vpop.f32.mrf.mxu2 }
 0x35d   : > { %1409 = vmatmul.bf16.gmra.mxu3 %v6465_v56  ;;  %v6574_v5 = vpack.c.bf16 %v1279_v4, %v1278_v1  ;;  %v5406_v4 = vld [vmem:[#allocation2 + $0x2e8] sm:$0xf] }
 0x360   : > { %v1198_v6 = vpop.f32.mrf.mxu3 }
 0x361   : > { %v1199_v29 = vadd.f32 %v1198_v6, %v6432_v49  ;;  %v5751_v6 = vld [vmem:[#allocation2 + $0x2f0] sm:$0xf0] }
 0x362   : > { %v5407_v7 = vor.u32 %v5751_v6, %v5406_v4 }
 0x363   : > { %v1280_v25 = vmax.f32 %v1199_v29, 0.0 }
 0x364   : > { %1982 = vmatpush.bf16.msrb.mxu0 %v5407_v7 }
 0x368   : > { %v1200_v12 = vpop.f32.mrf.mxu3 }
 0x369   : > { %v1201_v13 = vadd.f32 %v1200_v12, %v6432_v49 }
 0x36b   : > { %v1281_v15 = vmax.f32 %v1201_v13, 0.0 }
 0x36d   : > { %1414 = vmatmul.bf16.gmra.mxu3 %v6473_v14  ;;  %v6579_v30 = vpack.c.bf16 %v1281_v15, %v1280_v25 }
 0x370   : > { %v1203_v16 = vpop.f32.mrf.mxu3 }
 0x371   : > { %v1204_v56 = vadd.f32 %v1203_v16, %v6432_v49 }
 0x373   : > { %v1282_v33 = vmax.f32 %v1204_v56, 0.0 }
 0x378   : > { %v1205_v18 = vpop.f32.mrf.mxu3 }
 0x379   : > { %v1206_v20 = vadd.f32 %v1205_v18, %v6432_v49 }
 0x37b   : > { %v1283_v21 = vmax.f32 %v1206_v20, 0.0 }
 0x37d   : > { %1419 = vmatmul.bf16.gmra.mxu3 %v6481_v38  ;;  %v6584_v23 = vpack.c.bf16 %v1283_v21, %v1282_v33 }
 0x380   : > { %v1208_v24 = vpop.f32.mrf.mxu3 }
 0x381   : > { %v1209_v26 = vadd.f32 %v1208_v24, %v6432_v49  ;;  %v1129_v24 = vadd.f32 %v1128_v8, %v6432_v49 }
 0x383   : > { %v1284_v28 = vmax.f32 %v1209_v26, 0.0 }
 0x388   : > { %v1210_v27 = vpop.f32.mrf.mxu3 }
 0x389   : > { %v1211_v14 = vadd.f32 %v1210_v27, %v6432_v49 }
 0x38b   : > { %v1285_v31 = vmax.f32 %v1211_v14, 0.0 }
 0x38d   : > { %1424 = vmatmul.bf16.gmra.mxu3 %v6489_v11  ;;  %v6589_v32 = vpack.c.bf16 %v1285_v31, %v1284_v28  ;;  %v1252_v28 = vmax.f32 %v1129_v24, 0.0 }
 0x390   : > { %v1213_v35 = vpop.f32.mrf.mxu3 }
 0x391   : > { %v1214_v36 = vadd.f32 %v1213_v35, %v6432_v49  ;;  %v5402_v35 = vld [vmem:[#allocation2 + $0x2d0] sm:$0xf] }
 0x393   : > { %v1286_v39 = vmax.f32 %v1214_v36, 0.0  ;;  %v5750_v36 = vld [vmem:[#allocation2 + $0x2d8] sm:$0xf0] }
 0x398   : > { %v1215_v37 = vpop.f32.mrf.mxu3 }
 0x399   : > { %v1216_v38 = vadd.f32 %v1215_v37, %v6432_v49  ;;  %v5403_v37 = vor.u32 %v5750_v36, %v5402_v35 }
 0x39b   : > { %v1287_v40 = vmax.f32 %v1216_v38, 0.0  ;;  %1983 = vmatpush.bf16.msrb.mxu0 %v5403_v37 }
 0x39d   : > { %1429 = vmatmul.bf16.gmra.mxu3 %v6497_v22  ;;  %v6594_v45 = vpack.c.bf16 %v1287_v40, %v1286_v39 }
 0x3a0   : > { %v1218_v46 = vpop.f32.mrf.mxu3 }
 0x3a1   : > { %v1219_v11 = vadd.f32 %v1218_v46, %v6432_v49 }
 0x3a3   : > { %v1288_v50 = vmax.f32 %v1219_v11, 0.0 }
 0x3a8   : > { %v1220_v47 = vpop.f32.mrf.mxu3 }
 0x3a9   : > { %v1221_v48 = vadd.f32 %v1220_v47, %v6432_v49 }
 0x3ab   : > { %v1289_v51 = vmax.f32 %v1221_v48, 0.0 }
 0x3ad   : > { %1434 = vmatmul.bf16.gmra.mxu3 %v6505_v43  ;;  %v6599_v58 = vpack.c.bf16 %v1289_v51, %v1288_v50 }
 0x3b0   : > { %v1223_v52 = vpop.f32.mrf.mxu3 }
 0x3b1   : > { %v1224_v54 = vadd.f32 %v1223_v52, %v6432_v49 }
 0x3b3   : > { %v1290_v60 = vmax.f32 %v1224_v54, 0.0 }
 0x3b8   : > { %v1225_v22 = vpop.f32.mrf.mxu3 }
 0x3b9   : > { %v1226_v3 = vadd.f32 %v1225_v22, %v6432_v49 }
 0x3bb   : > { %v1291_v61 = vmax.f32 %v1226_v3, 0.0 }
 0x3bd   : > { %1439 = vmatmul.bf16.gmra.mxu3 %v6513_v9  ;;  %v6606_v2 = vpack.c.bf16 %v1291_v61, %v1290_v60  ;;  %v1133_v9 = vpop.f32.mrf.mxu2 }
 0x3be   : > { %v1134_v42 = vadd.f32 %v1133_v9, %v6432_v49 }
 0x3c0   : > { %v1400_v43 = vpop.f32.mrf.mxu3  ;;  %v1254_v11 = vmax.f32 %v1134_v42, 0.0 }
 0x3c1   : > { %v6609_v63 = vadd.f32 %v1400_v43, %v6604_v62 }
 0x3c3   : > { %1560 = vmax.xlane.f32.xlu0 %v6609_v63 }
 0x3c5   : > { %v1135_v12 = vpop.f32.mrf.mxu2 }
 0x3c6   : > { %v1136_v41 = vadd.f32 %v1135_v12, %v6432_v49 }
 0x3c8   : > { %v1402_v1 = vpop.f32.mrf.mxu3  ;;  %v1255_v44 = vmax.f32 %v1136_v41, 0.0 }
 0x3c9   : > { %v6613_v17 = vadd.f32 %v1402_v1, %v6604_v62 }
 0x3ca   : > { %v1305_v50 = vpack.c.bf16 %v1255_v44, %v1254_v11 }
 0x3cb   : > { %1562 = vmax.xlane.f32.xlu0 %v6613_v17 }
 0x3cd   : > { %1444 = vmatmul.bf16.gmra.mxu3 %v6521_v34  ;;  %v1138_v34 = vpop.f32.mrf.mxu2 }
 0x3ce   : > { %v1139_v22 = vadd.f32 %v1138_v34, %v6432_v49 }
 0x3d0   : > { %v1405_v10 = vpop.f32.mrf.mxu3  ;;  %v1256_v8 = vmax.f32 %v1139_v22, 0.0 }
 0x3d1   : > { %v6618_v29 = vadd.f32 %v1405_v10, %v6604_v62 }
 0x3d3   : > { %1564 = vmax.xlane.f32.xlu1 %v6618_v29 }
 0x3d5   : > { %v1140_v20 = vpop.f32.mrf.mxu2 }
 0x3d6   : > { %v1141_v53 = vadd.f32 %v1140_v20, %v6432_v49 }
 0x3d8   : > { %v1407_v13 = vpop.f32.mrf.mxu3  ;;  %v1257_v3 = vmax.f32 %v1141_v53, 0.0 }
 0x3d9   : > { %v6622_v25 = vadd.f32 %v1407_v13, %v6604_v62 }
 0x3da   : > { %v1306_v61 = vpack.c.bf16 %v1257_v3, %v1256_v8 }
 0x3db   : > { %1566 = vmax.xlane.f32.xlu1 %v6622_v25 }
 0x3dd   : > { %1449 = vmatmul.bf16.gmra.mxu3 %v6529_v59  ;;  %v1131_v59 = vadd.f32 %v1130_v0, %v6432_v49  ;;  %v1143_v26 = vpop.f32.mrf.mxu2 }
 0x3de   : > { %v1144_v6 = vadd.f32 %v1143_v26, %v6432_v49 }
 0x3df   : > { %v1253_v27 = vmax.f32 %v1131_v59, 0.0 }
 0x3e0   : > { %v1410_v15 = vpop.f32.mrf.mxu3  ;;  %v1258_v12 = vmax.f32 %v1144_v6, 0.0 }
 0x3e1   : > { %v6627_v16 = vadd.f32 %v1410_v15, %v6604_v62 }
 0x3e3   : > { %1568 = vmax.xlane.f32.xlu2 %v6627_v16 }
 0x3e5   : > { %v1145_v38 = vpop.f32.mrf.mxu2 }
 0x3e6   : > { %v1146_v4 = vadd.f32 %v1145_v38, %v6432_v49 }
 0x3e8   : > { %v1412_v56 = vpop.f32.mrf.mxu3  ;;  %v1259_v7 = vmax.f32 %v1146_v4, 0.0 }
 0x3e9   : > { %v6631_v18 = vadd.f32 %v1412_v56, %v6604_v62 }
 0x3ea   : > { %v1307_v15 = vpack.c.bf16 %v1259_v7, %v1258_v12 }
 0x3eb   : > { %1570 = vmax.xlane.f32.xlu2 %v6631_v18 }
 0x3ed   : > { %1454 = vmatmul.bf16.gmra.mxu3 %v6537_v19  ;;  %v1304_v19 = vpack.c.bf16 %v1253_v27, %v1252_v28  ;;  %v1148_v48 = vpop.f32.mrf.mxu2 }
 0x3ee   : > { %v1149_v59 = vadd.f32 %v1148_v48, %v6432_v49 }
 0x3f0   : > { %v1415_v33 = vpop.f32.mrf.mxu3 }
 0x3f1   : > { %v6636_v21 = vadd.f32 %v1415_v33, %v6604_v62 }
 0x3f3   : > { %1572 = vmax.xlane.f32.xlu0 %v6636_v21 }
 0x3f5   : > { %v1150_v54 = vpop.f32.mrf.mxu2 }
 0x3f6   : > { %v1151_v33 = vadd.f32 %v1150_v54, %v6432_v49 }
 0x3f8   : > { %v1417_v14 = vpop.f32.mrf.mxu3  ;;  %v1261_v26 = vmax.f32 %v1151_v33, 0.0 }
 0x3f9   : > { %v6642_v31 = vadd.f32 %v1417_v14, %v6604_v62  ;;  %v1260_v14 = vmax.f32 %v1149_v59, 0.0 }
 0x3fb   : > { %1574 = vmax.xlane.f32.xlu1 %v6642_v31  ;;  %v1308_v35 = vpack.c.bf16 %v1261_v26, %v1260_v14 }
 0x3fd   : > { %1459 = vmatmul.bf16.gmra.mxu3 %v1304_v19  ;;  %v1153_v43 = vpop.f32.mrf.mxu2 }
 0x400   : > { %v1420_v39 = vpop.f32.mrf.mxu3 }
 0x401   : > { %v6646_v40 = vadd.f32 %v1420_v39, %v6604_v62 }
 0x403   : > { %1576 = vmax.xlane.f32.xlu2 %v6646_v40 }
 0x405   : > { %v1155_v9 = vpop.f32.mrf.mxu2 }
 0x408   : > { %v1422_v46 = vpop.f32.mrf.mxu3 }
 0x409   : > { %v6652_v47 = vadd.f32 %v1422_v46, %v6604_v62  ;;  %v1156_v46 = vadd.f32 %v1155_v9, %v6432_v49 }
 0x40b   : > { %1578 = vmax.xlane.f32.xlu0 %v6652_v47 }
 0x40d   : > { %1464 = vmatmul.bf16.gmra.mxu3 %v1305_v50  ;;  %v1158_v20 = vpop.f32.mrf.mxu2  ;;  %v1263_v50 = vmax.f32 %v1156_v46, 0.0 }
 0x410   : > { %v1425_v51 = vpop.f32.mrf.mxu3 }
 0x411   : > { %v6656_v52 = vadd.f32 %v1425_v51, %v6604_v62 }
 0x413   : > { %1580 = vmax.xlane.f32.xlu1 %v6656_v52 }
 0x415   : > { %v1160_v36 = vpop.f32.mrf.mxu2 }
 0x418   : > { %v1427_v57 = vpop.f32.mrf.mxu3 }
 0x419   : > { %v6662_v60 = vadd.f32 %v1427_v57, %v6604_v62 }
 0x41b   : > { %1582 = vmax.xlane.f32.xlu2 %v6662_v60 }
 0x41d   : > { %1469 = vmatmul.bf16.gmra.mxu3 %v1306_v61  ;;  %v1163_v11 = vpop.f32.mrf.mxu2 }
 0x420   : > { %v1430_v0 = vpop.f32.mrf.mxu3 }
 0x421   : > { %v6666_v1 = vadd.f32 %v1430_v0, %v6604_v62 }
 0x423   : > { %1584 = vmax.xlane.f32.xlu0 %v6666_v1 }
 0x425   : > { %v1165_v4 = vpop.f32.mrf.mxu2 }
 0x428   : > { %v1432_v10 = vpop.f32.mrf.mxu3 }
 0x429   : > { %v6672_v13 = vadd.f32 %v1432_v10, %v6604_v62  ;;  %v1159_v10 = vadd.f32 %v1158_v20, %v6432_v49 }
 0x42b   : > { %1586 = vmax.xlane.f32.xlu1 %v6672_v13  ;;  %v1264_v59 = vmax.f32 %v1159_v10, 0.0 }
 0x42d   : > { %1474 = vmatmul.bf16.gmra.mxu3 %v1307_v15  ;;  %v1168_v26 = vpop.f32.mrf.mxu2 }
 0x430   : > { %v1435_v34 = vpop.f32.mrf.mxu3 }
 0x431   : > { %v6676_v56 = vadd.f32 %v1435_v34, %v6604_v62 }
 0x433   : > { %1588 = vmax.xlane.f32.xlu2 %v6676_v56 }
 0x436   : > { %v1561_v24 = vpop.xlane.xlu0 %1560 }
 0x437   : > { %v1688_v19 = vsub.f32 %v6609_v63, %v1561_v24  ;;  %v1154_v63 = vadd.f32 %v1153_v43, %v6432_v49 }
 0x438   : > { %v1437_v27 = vpop.f32.mrf.mxu3 }
 0x439   : > { %v6682_v28 = vadd.f32 %v1437_v27, %v6604_v62  ;;  %v1752_v37 = vmul.f32 1.442695, %v1688_v19  ;;  %v1262_v54 = vmax.f32 %v1154_v63, 0.0 }
 0x43b   : > { %1590 = vmax.xlane.f32.xlu0 %v6682_v28  ;;  %5825 = vpow2.f32 %v1752_v37  ;;  %v1309_v8 = vpack.c.bf16 %v1263_v50, %v1262_v54 }
 0x43d   : > { %1479 = vmatmul.bf16.gmra.mxu3 %v1308_v35 }
 0x43e   : > { %v1563_v38 = vpop.xlane.xlu0 %1562 }
 0x43f   : > { %v1689_v39 = vsub.f32 %v6613_v17, %v1563_v38 }
 0x440   : > { %v1440_v41 = vpop.f32.mrf.mxu3 }
 0x441   : > { %v1754_v42 = vmul.f32 1.442695, %v1689_v39  ;;  %v6688_v44 = vadd.f32 %v1440_v41, %v6604_v62  ;;  %v6693_v51 = vpop.eup %5825  ;;  %v1170_v41 = vpop.f32.mrf.mxu2 }
 0x443   : > { %5827 = vpow2.f32 %v1754_v42  ;;  %1592 = vmax.xlane.f32.xlu1 %v6688_v44  ;;  %v1164_v42 = vadd.f32 %v1163_v11, %v6432_v49 }
 0x446   : > { %v1565_v48 = vpop.xlane.xlu1 %1564 }
 0x447   : > { %v1690_v3 = vsub.f32 %v6618_v29, %v1565_v48  ;;  %v1161_v29 = vadd.f32 %v1160_v36, %v6432_v49 }
 0x448   : > { %v1442_v53 = vpop.f32.mrf.mxu3 }
 0x449   : > { %v6695_v17 = vpop.eup %5827  ;;  %v6698_v22 = vadd.f32 %v1442_v53, %v6604_v62  ;;  %v1756_v61 = vmul.f32 1.442695, %v1690_v3  ;;  %v1265_v15 = vmax.f32 %v1161_v29, 0.0  ;;  %v1266_v53 = vmax.f32 %v1164_v42, 0.0  ;;  %v1173_v11 = vpop.f32.mrf.mxu2 }
 0x44a   : > { %v1880_v57 = vpack.c.bf16 %v6695_v17, %v6693_v51  ;;  %v1169_v29 = vadd.f32 %v1168_v26, %v6432_v49 }
 0x44b   : > { %1594 = vmax.xlane.f32.xlu2 %v6698_v22  ;;  %5829 = vpow2.f32 %v1756_v61  ;;  %v1310_v20 = vpack.c.bf16 %v1265_v15, %v1264_v59 }
 0x44c   : > { %1984 = vmatmul.bf16.vlgmr.msrb.gmra.mxu0 %v1880_v57 }
 0x44d   : > { %1484 = vmatmul.bf16.gmra.mxu3 %v1309_v8 }
 0x44e   : > { %v1567_v43 = vpop.xlane.xlu1 %1566 }
 0x44f   : > { %v1691_v0 = vsub.f32 %v6622_v25, %v1567_v43 }
 0x450   : > { %v1445_v6 = vpop.f32.mrf.mxu3 }
 0x451   : > { %v1758_v7 = vmul.f32 1.442695, %v1691_v0  ;;  %v6706_v9 = vadd.f32 %v1445_v6, %v6604_v62  ;;  %v6711_v34 = vpop.eup %5829 }
 0x453   : > { %5831 = vpow2.f32 %v1758_v7  ;;  %1596 = vmax.xlane.f32.xlu0 %v6706_v9 }
 0x456   : > { %v1569_v12 = vpop.xlane.xlu2 %1568 }
 0x457   : > { %v1692_v27 = vsub.f32 %v6627_v16, %v1569_v12  ;;  %v1166_v16 = vadd.f32 %v1165_v4, %v6432_v49 }
 0x458   : > { %v1447_v33 = vpop.f32.mrf.mxu3 }
 0x459   : > { %v6713_v25 = vpop.eup %5831  ;;  %v6716_v24 = vadd.f32 %v1447_v33, %v6604_v62  ;;  %v1760_v19 = vmul.f32 1.442695, %v1692_v27  ;;  %v1267_v46 = vmax.f32 %v1166_v16, 0.0  ;;  %v1175_v33 = vpop.f32.mrf.mxu2  ;;  %v1268_v27 = vmax.f32 %v1169_v29, 0.0 }
 0x45a   : > { %v1881_v14 = vpack.c.bf16 %v6713_v25, %v6711_v34 }
 0x45b   : > { %1598 = vmax.xlane.f32.xlu1 %v6716_v24  ;;  %5833 = vpow2.f32 %v1760_v19  ;;  %v1311_v8 = vpack.c.bf16 %v1267_v46, %v1266_v53  ;;  %v1174_v46 = vadd.f32 %v1173_v11, %v6432_v49 }
 0x45c   : > { %1989 = vmatmul.bf16.gmra.mxu0 %v1881_v14 }
 0x45d   : > { %1489 = vmatmul.bf16.gmra.mxu3 %v1310_v20 }
 0x45e   : > { %v1571_v35 = vpop.xlane.xlu2 %1570 }
 0x45f   : > { %v1693_v36 = vsub.f32 %v6631_v18, %v1571_v35 }
 0x460   : > { %v1450_v37 = vpop.f32.mrf.mxu3 }
 0x461   : > { %v1762_v38 = vmul.f32 1.442695, %v1693_v36  ;;  %v6724_v39 = vadd.f32 %v1450_v37, %v6604_v62  ;;  %v6729_v48 = vpop.eup %5833  ;;  %v1178_v42 = vpop.f32.mrf.mxu2 }
 0x463   : > { %5835 = vpow2.f32 %v1762_v38  ;;  %1600 = vmax.xlane.f32.xlu2 %v6724_v39 }
 0x466   : > { %v1573_v63 = vpop.xlane.xlu0 %1572 }
 0x467   : > { %v1694_v3 = vsub.f32 %v6636_v21, %v1573_v63  ;;  %v1171_v21 = vadd.f32 %v1170_v41, %v6432_v49 }
 0x468   : > { %v1452_v50 = vpop.f32.mrf.mxu3 }
 0x469   : > { %v6731_v18 = vpop.eup %5835  ;;  %v6734_v54 = vadd.f32 %v1452_v50, %v6604_v62  ;;  %v1764_v61 = vmul.f32 1.442695, %v1694_v3  ;;  %v1269_v10 = vmax.f32 %v1171_v21, 0.0  ;;  %v1180_v11 = vpop.f32.mrf.mxu2 }
 0x46a   : > { %v1882_v57 = vpack.c.bf16 %v6731_v18, %v6729_v48 }
 0x46b   : > { %1602 = vmax.xlane.f32.xlu0 %v6734_v54  ;;  %5837 = vpow2.f32 %v1764_v61  ;;  %v1312_v26 = vpack.c.bf16 %v1269_v10, %v1268_v27 }
 0x46c   : > { %1994 = vmatmul.bf16.gmra.mxu0 %v1882_v57  ;;  %v1270_v57 = vmax.f32 %v1174_v46, 0.0 }
 0x46d   : > { %1494 = vmatmul.bf16.gmra.mxu3 %v1311_v8 }
 0x46e   : > { %v1575_v43 = vpop.xlane.xlu1 %1574 }
 0x46f   : > { %v1695_v0 = vsub.f32 %v6642_v31, %v1575_v43 }
 0x470   : > { %v1455_v4 = vpop.f32.mrf.mxu3 }
 0x471   : > { %v1766_v6 = vmul.f32 1.442695, %v1695_v0  ;;  %v6742_v7 = vadd.f32 %v1455_v4, %v6604_v62  ;;  %v6747_v15 = vpop.eup %5837 }
 0x473   : > { %5839 = vpow2.f32 %v1766_v6  ;;  %1604 = vmax.xlane.f32.xlu1 %v6742_v7 }
 0x476   : > { %v1577_v12 = vpop.xlane.xlu2 %1576 }
 0x477   : > { %v1696_v20 = vsub.f32 %v6646_v40, %v1577_v12  ;;  %v1176_v40 = vadd.f32 %v1175_v33, %v6432_v49  ;;  %v1179_v33 = vadd.f32 %v1178_v42, %v6432_v49 }
 0x478   : > { %v1457_v59 = vpop.f32.mrf.mxu3 }
 0x479   : > { %v6749_v31 = vpop.eup %5839  ;;  %v6752_v14 = vadd.f32 %v1457_v59, %v6604_v62  ;;  %v1768_v35 = vmul.f32 1.442695, %v1696_v20  ;;  %v1271_v63 = vmax.f32 %v1176_v40, 0.0  ;;  %v1183_v59 = vpop.f32.mrf.mxu2 }
 0x47a   : > { %v1883_v19 = vpack.c.bf16 %v6749_v31, %v6747_v15 }
 0x47b   : > { %1606 = vmax.xlane.f32.xlu2 %v6752_v14  ;;  %5841 = vpow2.f32 %v1768_v35  ;;  %v1313_v0 = vpack.c.bf16 %v1271_v63, %v1270_v57  ;;  %v1272_v35 = vmax.f32 %v1179_v33, 0.0 }
 0x47c   : > { %1999 = vmatmul.bf16.gmra.mxu0 %v1883_v19 }
 0x47d   : > { %1499 = vmatmul.bf16.gmra.mxu3 %v1312_v26 }
 0x47e   : > { %v1579_v36 = vpop.xlane.xlu0 %1578 }
 0x47f   : > { %v1697_v37 = vsub.f32 %v6652_v47, %v1579_v36 }
 0x480   : > { %v1460_v38 = vpop.f32.mrf.mxu3 }
 0x481   : > { %v1770_v16 = vmul.f32 1.442695, %v1697_v37  ;;  %v6760_v41 = vadd.f32 %v1460_v38, %v6604_v62  ;;  %v6765_v53 = vpop.eup %5841  ;;  %v1185_v63 = vpop.f32.mrf.mxu2 }
 0x483   : > { %5843 = vpow2.f32 %v1770_v16  ;;  %1608 = vmax.xlane.f32.xlu0 %v6760_v41 }
 0x486   : > { %v1581_v50 = vpop.xlane.xlu1 %1580 }
 0x487   : > { %v1698_v61 = vsub.f32 %v6656_v52, %v1581_v50  ;;  %v1181_v52 = vadd.f32 %v1180_v11, %v6432_v49 }
 0x488   : > { %v1462_v3 = vpop.f32.mrf.mxu3 }
 0x489   : > { %v6767_v47 = vpop.eup %5843  ;;  %v6770_v8 = vadd.f32 %v1462_v3, %v6604_v62  ;;  %v1772_v4 = vmul.f32 1.442695, %v1698_v61  ;;  %v1273_v27 = vmax.f32 %v1181_v52, 0.0  ;;  %v1184_v61 = vadd.f32 %v1183_v59, %v6432_v49 }
 0x48a   : > { %v1884_v43 = vpack.c.bf16 %v6767_v47, %v6765_v53 }
 0x48b   : > { %1610 = vmax.xlane.f32.xlu1 %v6770_v8  ;;  %5845 = vpow2.f32 %v1772_v4  ;;  %v1314_v16 = vpack.c.bf16 %v1273_v27, %v1272_v35 }
 0x48c   : > { %2004 = vmatmul.bf16.gmra.mxu0 %v1884_v43 }
 0x48d   : > { %1504 = vmatmul.bf16.gmra.mxu3 %v1313_v0 }
 0x48e   : > { %v1583_v6 = vpop.xlane.xlu2 %1582 }
 0x48f   : > { %v1699_v21 = vsub.f32 %v6662_v60, %v1583_v6  ;;  %v1274_v6 = vmax.f32 %v1184_v61, 0.0 }
 0x490   : > { %v1465_v29 = vpop.f32.mrf.mxu3 }
 0x491   : > { %v1774_v10 = vmul.f32 1.442695, %v1699_v21  ;;  %v6778_v12 = vadd.f32 %v1465_v29, %v6604_v62  ;;  %v6783_v19 = vpop.eup %5845 }
 0x493   : > { %5847 = vpow2.f32 %v1774_v10  ;;  %1612 = vmax.xlane.f32.xlu2 %v6778_v12 }
 0x496   : > { %v1585_v20 = vpop.xlane.xlu0 %1584 }
 0x497   : > { %v1700_v37 = vsub.f32 %v6666_v1, %v1585_v20  ;;  %v1186_v1 = vadd.f32 %v1185_v63, %v6432_v49 }
 0x498   : > { %v1467_v26 = vpop.f32.mrf.mxu3 }
 0x499   : > { %v6785_v60 = vpop.eup %5847  ;;  %v6788_v36 = vadd.f32 %v1467_v26, %v6604_v62  ;;  %v1776_v42 = vmul.f32 1.442695, %v1700_v37  ;;  %v1275_v43 = vmax.f32 %v1186_v1, 0.0 }
 0x49a   : > { %v1885_v38 = vpack.c.bf16 %v6785_v60, %v6783_v19 }
 0x49b   : > { %1614 = vmax.xlane.f32.xlu0 %v6788_v36  ;;  %5849 = vpow2.f32 %v1776_v42  ;;  %v1315_v52 = vpack.c.bf16 %v1275_v43, %v1274_v6 }
 0x49c   : > { %2009 = vmatmul.bf16.gmra.mxu0 %v1885_v38 }
 0x49d   : > { %1509 = vmatmul.bf16.gmra.mxu3 %v1314_v16 }
 0x49e   : > { %v1587_v40 = vpop.xlane.xlu1 %1586 }
 0x49f   : > { %v1701_v46 = vsub.f32 %v6672_v13, %v1587_v40 }
 0x4a0   : > { %v1470_v50 = vpop.f32.mrf.mxu3 }
 0x4a1   : > { %v1778_v3 = vmul.f32 1.442695, %v1701_v46  ;;  %v6796_v57 = vadd.f32 %v1470_v50, %v6604_v62  ;;  %v6801_v11 = vpop.eup %5849 }
 0x4a3   : > { %5851 = vpow2.f32 %v1778_v3  ;;  %1616 = vmax.xlane.f32.xlu0 %v6796_v57 }
 0x4a6   : > { %v1589_v0 = vpop.xlane.xlu2 %1588 }
 0x4a7   : > { %v1702_v29 = vsub.f32 %v6676_v56, %v1589_v0 }
 0x4a8   : > { %v1472_v4 = vpop.f32.mrf.mxu3 }
 0x4a9   : > { %v6803_v13 = vpop.eup %5851  ;;  %v6806_v21 = vadd.f32 %v1472_v4, %v6604_v62  ;;  %v1780_v49 = vmul.f32 1.442695, %v1702_v29 }
 0x4aa   : > { %v1886_v10 = vpack.c.bf16 %v6803_v13, %v6801_v11 }
 0x4ab   : > { %1618 = vmax.xlane.f32.xlu0 %v6806_v21  ;;  %5853 = vpow2.f32 %v1780_v49 }
 0x4ac   : > { %2014 = vmatmul.bf16.gmra.mxu0 %v1886_v10 }
 0x4ad   : > { %1514 = vmatmul.bf16.gmra.mxu3 %v1315_v52 }
 0x4ae   : > { %v1591_v33 = vpop.xlane.xlu0 %1590 }
 0x4af   : > { %v1703_v59 = vsub.f32 %v6682_v28, %v1591_v33 }
 0x4b0   : > { %v1475_v27 = vpop.f32.mrf.mxu3 }
 0x4b1   : > { %v1782_v20 = vmul.f32 1.442695, %v1703_v59  ;;  %v6814_v26 = vadd.f32 %v1475_v27, %v6604_v62  ;;  %v6817_v35 = vpop.eup %5853 }
 0x4b3   : > { %5855 = vpow2.f32 %v1782_v20  ;;  %1620 = vmax.xlane.f32.xlu1 %v6814_v26 }
 0x4b6   : > { %v1593_v56 = vpop.xlane.xlu1 %1592 }
 0x4b7   : > { %v1704_v28 = vsub.f32 %v6688_v44, %v1593_v56 }
 0x4b8   : > { %v1477_v37 = vpop.f32.mrf.mxu3 }
 0x4b9   : > { %v6819_v38 = vpop.eup %5855  ;;  %v6822_v16 = vadd.f32 %v1477_v37, %v6604_v62  ;;  %v1784_v40 = vmul.f32 1.442695, %v1704_v28 }
 0x4ba   : > { %v1887_v42 = vpack.c.bf16 %v6819_v38, %v6817_v35 }
 0x4bb   : > { %1622 = vmax.xlane.f32.xlu2 %v6822_v16  ;;  %5857 = vpow2.f32 %v1784_v40 }
 0x4bc   : > { %2019 = vmatmul.bf16.gmra.mxu0 %v1887_v42 }
 0x4bd   : > { %1519 = vmatmul.bf16.gmra.mxu3 %v6569_v55 }
 0x4be   : > { %v1595_v46 = vpop.xlane.xlu2 %1594 }
 0x4bf   : > { %v1705_v63 = vsub.f32 %v6698_v22, %v1595_v46 }
 0x4c0   : > { %v1480_v50 = vpop.f32.mrf.mxu3 }
 0x4c1   : > { %v1786_v3 = vmul.f32 1.442695, %v1705_v63  ;;  %v6831_v1 = vadd.f32 %v1480_v50, %v6604_v62  ;;  %v6834_v61 = vpop.eup %5857 }
 0x4c3   : > { %5859 = vpow2.f32 %v1786_v3  ;;  %1624 = vmax.xlane.f32.xlu0 %v6831_v1 }
 0x4c6   : > { %v1597_v44 = vpop.xlane.xlu0 %1596 }
 0x4c7   : > { %v1706_v22 = vsub.f32 %v6706_v9, %v1597_v44 }
 0x4c8   : > { %v1482_v43 = vpop.f32.mrf.mxu3 }
 0x4c9   : > { %v6836_v0 = vpop.eup %5859  ;;  %v1985_v55 = vpop.f32.mrf.mxu0  ;;  %v6839_v4 = vadd.f32 %v1482_v43, %v6604_v62  ;;  %v1788_v10 = vmul.f32 1.442695, %v1706_v22 }
 0x4ca   : > { %v2145_v6 = vmax.f32 %v1985_v55, 1e-20  ;;  %v1888_v29 = vpack.c.bf16 %v6836_v0, %v6834_v61 }
 0x4cb   : > { %1626 = vmax.xlane.f32.xlu1 %v6839_v4 }
 0x4cc   : > { %5861 = vrcp.f32 %v2145_v6  ;;  %2024 = vmatmul.bf16.gmra.mxu0 %v1888_v29  ;;  %v2220_v29 = vand.u32 2147483648, %v2145_v6  ;;  %vm2214_vm2 = vweird.f32 %v2145_v6 }
 0x4cd   : > { %1524 = vmatmul.bf16.gmra.mxu3 %v6574_v5  ;;  %5863 = vpow2.f32 %v1788_v10 }
 0x4ce   : > { %v1599_v52 = vpop.xlane.xlu1 %1598 }
 0x4cf   : > { %v1707_v49 = vsub.f32 %v6716_v24, %v1599_v52  ;;  %v2218_v52 = vand.u32 2147483647, %v2145_v6 }
 0x4d0   : > { %v1485_v33 = vpop.f32.mrf.mxu3 }
 0x4d1   : > { %v1790_v59 = vmul.f32 1.442695, %v1707_v49  ;;  %v6848_v27 = vadd.f32 %v1485_v33, %v6604_v62  ;;  %v1987_v9 = vpop.f32.mrf.mxu0  ;;  %vm2219_vm5 = vcmp.eq.f32.partialorder %v2218_v52, 8.507059e+37 }
 0x4d2   : > { %v5862_v20 = vpop.eup %5861  ;;  %v2146_v56 = vmax.f32 %v1987_v9, 1e-20 }
 0x4d3   : > { %v2210_v37 = vmul.f32 %v5862_v20, %v2145_v6  ;;  %5865 = vpow2.f32 %v1790_v59  ;;  %1628 = vmax.xlane.f32.xlu2 %v6848_v27  ;;  %v6851_v40 = vpop.eup %5863  ;;  %vm2215_vm1 = vweird.f32 %v5862_v20 }
 0x4d4   : > { %5867 = vrcp.f32 %v2146_v56  ;;  %vm2216_vm3 = vmor %vm2214_vm2, %vm2215_vm1  ;;  %v2233_v9 = vand.u32 2147483647, %v2146_v56  ;;  %vm2229_vm6 = vweird.f32 %v2146_v56 }
 0x4d5   : > { %v2211_v28 = vsub.f32 1.0, %v2210_v37  ;;  %v2235_v37 = vand.u32 2147483648, %v2146_v56 }
 0x4d6   : > { %v1601_v5 = vpop.xlane.xlu2 %1600  ;;  %vm2234_vm8 = vcmp.eq.f32.partialorder %v2233_v9, 8.507059e+37  ;;  %v6882_v9 = vld [vmem:[%s6253_s22] sm:$0xff] }
 0x4d7   : > { %v2212_v42 = vmul.f32 %v5862_v20, %v2211_v28  ;;  %v1708_v43 = vsub.f32 %v6724_v39, %v1601_v5  ;;  %v2221_v28 = vor.u32 1.1754944e-38, %v2220_v29 }
 0x4d8   : > { %v1487_v24 = vpop.f32.mrf.mxu3 }
 0x4d9   : > { %v6853_v46 = vpop.eup %5865  ;;  %v1990_v63 = vpop.f32.mrf.mxu0  ;;  %v6856_v50 = vadd.f32 %v1487_v24, %v6604_v62  ;;  %v2213_v3 = vadd.f32 %v5862_v20, %v2212_v42  ;;  %v1792_v39 = vmul.f32 1.442695, %v1708_v43 }
 0x4da   : > { %9728 = vst [vmem:[#allocation5_spill] sm:$0xff] %v6853_v46  ;;  %v5868_v44 = vpop.eup %5867  ;;  %v6859_v55 = vmax.f32 %v1990_v63, 1e-20  ;;  %v1889_v22 = vpack.c.bf16 %v6853_v46, %v6851_v40 }
 0x4db   : > { %v2225_v10 = vmul.f32 %v5868_v44, %v2146_v56  ;;  %1630 = vmax.xlane.f32.xlu1 %v6856_v50  ;;  %v2217_v33 = vsel %vm2216_vm3, %v5862_v20, %v2213_v3  ;;  %vm2230_vm4 = vweird.f32 %v5868_v44 }
 0x4dc   : > { %5869 = vrcp.f32 %v6859_v55  ;;  %2029 = vmatmul.bf16.gmra.mxu0 %v1889_v22  ;;  %v2222_v6 = vsel %vm2219_vm5, %v2221_v28, %v2217_v33  ;;  %vm2231_vm7 = vmor %vm2229_vm6, %vm2230_vm4  ;;  %vm2244_vm10 = vweird.f32 %v6859_v55 }
 0x4dd   : > { %v2226_v49 = vsub.f32 1.0, %v2225_v10  ;;  %1529 = vmatmul.bf16.gmra.mxu3 %v6579_v30  ;;  %5871 = vpow2.f32 %v1792_v39  ;;  %v2223_v29 = vmul.f32 %v6693_v51, %v2222_v6  ;;  %v6878_v39 = vld [vmem:[%s6253_s22 + $0x8] sm:$0xff] }
 0x4de   : > { %v1603_v59 = vpop.xlane.xlu0 %1602 }
 0x4df   : > { %v1709_v5 = vsub.f32 %v6734_v54, %v1603_v59  ;;  %v2227_v42 = vmul.f32 %v5868_v44, %v2226_v49  ;;  %v2236_v54 = vor.u32 1.1754944e-38, %v2235_v37  ;;  %v3169_v37 = vmul.f32 %v6882_v9, %v2223_v29 }
 0x4e0   : > { %v1490_v24 = vpop.f32.mrf.mxu3 }
 0x4e1   : > { %v1794_v63 = vmul.f32 1.442695, %v1709_v5  ;;  %v6868_v22 = vadd.f32 %v1490_v24, %v6604_v62  ;;  %v1992_v10 = vpop.f32.mrf.mxu0  ;;  %v2228_v46 = vadd.f32 %v5868_v44, %v2227_v42 }
 0x4e2   : > { %v5870_v30 = vpop.eup %5869  ;;  %v6870_v20 = vmax.f32 %v1992_v10, 1e-20 }
 0x4e3   : > { %v2240_v3 = vmul.f32 %v5870_v30, %v6859_v55  ;;  %5873 = vpow2.f32 %v1794_v63  ;;  %1632 = vmax.xlane.f32.xlu0 %v6868_v22  ;;  %v2232_v43 = vsel %vm2231_vm7, %v5868_v44, %v2228_v46  ;;  %v6885_v5 = vpop.eup %5871  ;;  %vm2245_vm9 = vweird.f32 %v5870_v30 }
 0x4e4   : > { %5875 = vrcp.f32 %v6870_v20  ;;  %v2237_v56 = vsel %vm2234_vm8, %v2236_v54, %v2232_v43  ;;  %vm6902_vm11 = vmor %vm2244_vm10, %vm2245_vm9  ;;  %vm2259_vm14 = vweird.f32 %v6870_v20 }
 0x4e5   : > { %v2241_v52 = vsub.f32 1.0, %v2240_v3  ;;  %v2238_v49 = vmul.f32 %v6695_v17, %v2237_v56  ;;  %v2250_v17 = vand.u32 2147483648, %v6859_v55  ;;  %v2248_v3 = vand.u32 2147483647, %v6859_v55 }
 0x4e6   : > { %v1605_v33 = vpop.xlane.xlu1 %1604  ;;  %v2263_v55 = vand.u32 2147483647, %v6870_v20 }
 0x4e7   : > { %v3170_v59 = vmul.f32 %v6878_v39, %v2238_v49  ;;  %v2242_v28 = vmul.f32 %v5870_v30, %v2241_v52  ;;  %v1710_v6 = vsub.f32 %v6742_v7, %v1605_v33  ;;  %v2251_v52 = vor.u32 1.1754944e-38, %v2250_v17  ;;  %v5779_v33 = vld [vmem:[#allocation2 + $0x43c] sm:$0xf] }
 0x4e8   : > { %vm2249_vm12 = vcmp.eq.f32.partialorder %v2248_v3, 8.507059e+37  ;;  %vm2264_vm1 = vcmp.eq.f32.partialorder %v2263_v55, 8.507059e+37  ;;  %v6930_v55 = vld [vmem:[%s6253_s22 + $0x18] sm:$0xff] }
 0x4e9   : > { %v6887_v46 = vpop.eup %5873  ;;  %v1995_v51 = vpop.f32.mrf.mxu0  ;;  %v6889_v44 = vpack.c.bf16 %v3170_v59, %v3169_v37  ;;  %v2243_v42 = vadd.f32 %v5870_v30, %v2242_v28  ;;  %v1796_v59 = vmul.f32 1.442695, %v1710_v6 }
 0x4ea   : > { %v5876_v24 = vpop.eup %5875  ;;  %v6893_v63 = vmax.f32 %v1995_v51, 1e-20  ;;  %v1890_v10 = vpack.c.bf16 %v6887_v46, %v6885_v5  ;;  %v2265_v51 = vand.u32 2147483648, %v6870_v20 }
 0x4eb   : > { %9729 = vst [vmem:[#allocation6_spill] sm:$0xff] %v6889_v44  ;;  %v2255_v54 = vmul.f32 %v5876_v24, %v6870_v20  ;;  %3347 = vrot.lane.b32.xlu2 %v2238_v49, %s6220_s23  ;;  %v2247_v56 = vsel %vm6902_vm11, %v5870_v30, %v2243_v42  ;;  %v5472_v49 = vld [vmem:[#allocation2 + $0x444] sm:$0xf0]  ;;  %vm2260_vm13 = vweird.f32 %v5876_v24 }
 0x4ec   : > { %5877 = vrcp.f32 %v6893_v63  ;;  %2034 = vmatmul.bf16.gmra.mxu0 %v1890_v10  ;;  %v5475_v28 = vor.u32 %v5779_v33, %v5472_v49  ;;  %vm2261_vm15 = vmor %vm2259_vm14, %vm2260_vm13  ;;  %v2266_v6 = vor.u32 1.1754944e-38, %v2265_v51  ;;  %v2278_v49 = vand.u32 2147483647, %v6893_v63 }
 0x4ed   : > { %v2256_v7 = vsub.f32 1.0, %v2255_v54  ;;  %1534 = vmatmul.bf16.gmra.mxu3 %v6584_v23  ;;  %v2252_v54 = vsel %vm2249_vm12, %v2251_v52, %v2247_v56  ;;  %5879 = vpow2.f32 %v1796_v59  ;;  %v5780_v56 = vld [vmem:[#allocation2 + $0x440] sm:$0xf0]  ;;  %v2280_v59 = vand.u32 2147483648, %v6893_v63 }
 0x4ee   : > { %v1607_v37 = vpop.xlane.xlu2 %1606  ;;  %3982 = vmatpush.bf16.msrb.mxu2 %v5475_v28  ;;  %vm2274_vm3 = vweird.f32 %v6893_v63  ;;  %vm2279_vm5 = vcmp.eq.f32.partialorder %v2278_v49, 8.507059e+37 }
 0x4ef   : > { %v1711_v10 = vsub.f32 %v6752_v14, %v1607_v37  ;;  %v2257_v44 = vmul.f32 %v5876_v24, %v2256_v7  ;;  %v2253_v14 = vmul.f32 %v6711_v34, %v2252_v54  ;;  %v5470_v7 = vld [vmem:[#allocation2 + $0x438] sm:$0xf]  ;;  %v6926_v34 = vld [vmem:[%s6253_s22 + $0x10] sm:$0xff]  ;;  %v1492_v54 = vpop.f32.mrf.mxu3 }
 0x4f0   : > { %v5471_v37 = vor.u32 %v5780_v56, %v5470_v7 }
 0x4f1   : > { %v1798_v23 = vmul.f32 1.442695, %v1711_v10  ;;  %v1997_v43 = vpop.f32.mrf.mxu0  ;;  %v2258_v30 = vadd.f32 %v5876_v24, %v2257_v44 }
 0x4f2   : > { %v5878_v42 = vpop.eup %5877  ;;  %v6913_v17 = vmax.f32 %v1997_v43, 1e-20  ;;  %3813 = vmatpush.bf16.msrb.mxu1 %v5471_v37 }
 0x4f3   : > { %v2270_v33 = vmul.f32 %v5878_v42, %v6893_v63  ;;  %5881 = vpow2.f32 %v1798_v23  ;;  %v2262_v3 = vsel %vm2261_vm15, %v5876_v24, %v2258_v30  ;;  %v3171_v24 = vmul.f32 %v6926_v34, %v2253_v14  ;;  %v6934_v51 = vpop.eup %5879 }
 0x4f4   : > { %5883 = vrcp.f32 %v6913_v17  ;;  %3345 = vrot.lane.b32.xlu1 %v2223_v29, %s6220_s23  ;;  %v2267_v20 = vsel %vm2264_vm1, %v2266_v6, %v2262_v3  ;;  %vm2275_vm2 = vweird.f32 %v5878_v42  ;;  %vm2289_vm7 = vweird.f32 %v6913_v17 }
 0x4f5   : > { %v2271_v44 = vsub.f32 1.0, %v2270_v33  ;;  %v6920_v52 = vmul.f32 %v6713_v25, %v2267_v20  ;;  %vm2276_vm4 = vmor %vm2274_vm3, %vm2275_vm2 }
 0x4f6   : > { %v1609_v28 = vpop.xlane.xlu0 %1608 }
 0x4f7   : > { %3349 = vrot.lane.b32.xlu0 %v2253_v14, %s6220_s23  ;;  %v2272_v29 = vmul.f32 %v5878_v42, %v2271_v44  ;;  %v3172_v25 = vmul.f32 %v6930_v55, %v6920_v52  ;;  %v1712_v6 = vsub.f32 %v6760_v41, %v1609_v28  ;;  %v2281_v14 = vor.u32 1.1754944e-38, %v2280_v59 }
 0x4f8   : > { %v2295_v41 = vand.u32 2147483648, %v6913_v17 }
 0x4f9   : > { %v6936_v10 = vpop.eup %5881  ;;  %v2273_v23 = vadd.f32 %v5878_v42, %v2272_v29  ;;  %v6939_v43 = vpack.c.bf16 %v3172_v25, %v3171_v24  ;;  %v1800_v56 = vmul.f32 1.442695, %v1712_v6 }
 0x4fa   : > { %v5884_v30 = vpop.eup %5883  ;;  %v1891_v33 = vpack.c.bf16 %v6936_v10, %v6934_v51 }
 0x4fb   : > { %9732 = vst [vmem:[#allocation7_spill] sm:$0xff] %v6939_v43  ;;  %v2285_v3 = vmul.f32 %v5884_v30, %v6913_v17  ;;  %v2277_v20 = vsel %vm2276_vm4, %v5878_v42, %v2273_v23  ;;  %vm2290_vm6 = vweird.f32 %v5884_v30  ;;  %v2293_v42 = vand.u32 2147483647, %v6913_v17  ;;  %v6956_v23 = vld [vmem:[%s6253_s22 + $0x20] sm:$0xff] }
 0x4fc   : > { %2039 = vmatmul.bf16.gmra.mxu0 %v1891_v33  ;;  %v2282_v44 = vsel %vm2279_vm5, %v2281_v14, %v2277_v20  ;;  %5885 = vpow2.f32 %v1800_v56  ;;  %vm2291_vm8 = vmor %vm2289_vm7, %vm2290_vm6  ;;  %v6960_v14 = vld [vmem:[%s6253_s22 + $0x28] sm:$0xff] }
 0x4fd   : > { %v2286_v7 = vsub.f32 1.0, %v2285_v3  ;;  %1539 = vmatmul.bf16.gmra.mxu3 %v6589_v32  ;;  %v2283_v63 = vmul.f32 %v6729_v48, %v2282_v44  ;;  %v2296_v32 = vor.u32 1.1754944e-38, %v2295_v41  ;;  %v1495_v48 = vpop.f32.mrf.mxu3  ;;  %vm2294_vm9 = vcmp.eq.f32.partialorder %v2293_v42, 8.507059e+37 }
 0x4fe   : > { %v1611_v37 = vpop.xlane.xlu1 %1610 }
 0x4ff   : > { %v1713_v28 = vsub.f32 %v6770_v8, %v1611_v37  ;;  %3353 = vrot.lane.b32.xlu0 %v2283_v63, %s6220_s23  ;;  %v2287_v59 = vmul.f32 %v5884_v30, %v2286_v7  ;;  %v3173_v6 = vmul.f32 %v6956_v23, %v2283_v63  ;;  %v6975_v63 = vpop.f32.mrf.mxu0 }
 0x501   : > { %v1802_v49 = vmul.f32 1.442695, %v1713_v28  ;;  %v2288_v24 = vadd.f32 %v5884_v30, %v2287_v59  ;;  %v6980_v59 = vadd.f32 %v1492_v54, %v6604_v62 }
 0x502   : > { %v6964_v3 = vpop.eup %5885 }
 0x503   : > { %5887 = vpow2.f32 %v1802_v49  ;;  %v2292_v29 = vsel %vm2291_vm8, %v5884_v30, %v2288_v24 }
 0x504   : > { %v2297_v8 = vsel %vm2294_vm9, %v2296_v32, %v2292_v29 }
 0x505   : > { %v6953_v25 = vmul.f32 %v6731_v18, %v2297_v8  ;;  %v6973_v7 = vpop.f32.mrf.mxu3  ;;  %v6991_v8 = vadd.f32 %v1495_v48, %v6604_v62 }
 0x506   : > { %v1613_v33 = vpop.xlane.xlu2 %1612 }
 0x507   : > { %v3174_v17 = vmul.f32 %v6960_v14, %v6953_v25  ;;  %v1714_v44 = vsub.f32 %v6778_v12, %v1613_v33  ;;  %v2002_v49 = vpop.f32.mrf.mxu0 }
 0x509   : > { %v6966_v20 = vpop.eup %5887  ;;  %v6968_v30 = vpack.c.bf16 %v3174_v17, %v3173_v6  ;;  %v1804_v56 = vmul.f32 1.442695, %v1714_v44 }
 0x50a   : > { %v1892_v18 = vpack.c.bf16 %v6966_v20, %v6964_v3 }
 0x50b   : > { %9733 = vst [vmem:[#allocation8_spill] sm:$0xff] %v6968_v30  ;;  %5889 = vpow2.f32 %v1804_v56 }
 0x50c   : > { %2044 = vmatmul.bf16.gmra.mxu0 %v1892_v18 }
 0x50d   : > { %1544 = vmatmul.bf16.gmra.mxu3 %v6594_v45  ;;  %v1500_v42 = vpop.f32.mrf.mxu3  ;;  %v2152_v45 = vmax.f32 %v2002_v49, 1e-20 }
 0x50e   : > { %v1615_v37 = vpop.xlane.xlu0 %1614  ;;  %v7001_v48 = vadd.f32 %v1500_v42, %v6604_v62 }
 0x50f   : > { %v1715_v41 = vsub.f32 %v6788_v36, %v1615_v37  ;;  %vm2319_vm11 = vweird.f32 %v2152_v45 }
 0x511   : > { %v1806_v28 = vmul.f32 1.442695, %v1715_v41  ;;  %v6983_v24 = vpop.eup %5889 }
 0x513   : > { %5891 = vpow2.f32 %v1806_v28 }
 0x514   : > { %1634 = vmax.xlane.f32.xlu2 %v6980_v59  ;;  %5893 = vrcp.f32 %v2152_v45 }
 0x515   : > { %v1502_v17 = vpop.f32.mrf.mxu3 }
 0x516   : > { %v1617_v12 = vpop.xlane.xlu0 %1616  ;;  %v6997_v18 = vadd.f32 %v1502_v17, %v6604_v62 }
 0x517   : > { %v1716_v29 = vsub.f32 %v6796_v57, %v1617_v12 }
 0x519   : > { %v6985_v32 = vpop.eup %5891  ;;  %v1808_v54 = vmul.f32 1.442695, %v1716_v29 }
 0x51a   : > { %v1893_v36 = vpack.c.bf16 %v6985_v32, %v6983_v24  ;;  %v5894_v57 = vpop.eup %5893 }
 0x51b   : > { %5895 = vpow2.f32 %v1808_v54  ;;  %vm2320_vm10 = vweird.f32 %v5894_v57 }
 0x51c   : > { %2049 = vmatmul.bf16.gmra.mxu0 %v1893_v36  ;;  %vm2321_vm12 = vmor %vm2319_vm11, %vm2320_vm10 }
 0x51d   : > { %1549 = vmatmul.bf16.gmra.mxu3 %v6599_v58  ;;  %v2315_v58 = vmul.f32 %v5894_v57, %v2152_v45 }
 0x51e   : > { %1636 = vmax.xlane.f32.xlu1 %v6991_v8  ;;  %v1619_v6 = vpop.xlane.xlu0 %1618 }
 0x51f   : > { %v1717_v33 = vsub.f32 %v6806_v21, %v1619_v6  ;;  %v2316_v12 = vsub.f32 1.0, %v2315_v58 }
 0x521   : > { %v1810_v44 = vmul.f32 1.442695, %v1717_v33  ;;  %v7003_v37 = vpop.eup %5895  ;;  %v2317_v36 = vmul.f32 %v5894_v57, %v2316_v12  ;;  %v2323_v33 = vand.u32 2147483647, %v2152_v45  ;;  %v5478_v12 = vld [vmem:[#allocation2 + $0x440] sm:$0xf] }
 0x523   : > { %5897 = vpow2.f32 %v1810_v44  ;;  %v2318_v6 = vadd.f32 %v5894_v57, %v2317_v36  ;;  %v7015_v44 = vpop.f32.mrf.mxu0  ;;  %vm2324_vm13 = vcmp.eq.f32.partialorder %v2323_v33, 8.507059e+37  ;;  %v5458_v36 = vld [vmem:[#allocation2 + $0x420] sm:$0xf]  ;;  %v5460_v33 = vld [vmem:[#allocation2 + $0x42c] sm:$0xf0] }
 0x526   : > { %1642 = vmax.xlane.f32.xlu1 %v6997_v18  ;;  %v1621_v56 = vpop.xlane.xlu1 %1620 }
 0x527   : > { %v1718_v21 = vsub.f32 %v6814_v26, %v1621_v56  ;;  %v2325_v26 = vand.u32 2147483648, %v2152_v45 }
 0x529   : > { %v7005_v41 = vpop.eup %5897  ;;  %1640 = vmax.xlane.f32.xlu0 %v7001_v48  ;;  %v1812_v42 = vmul.f32 1.442695, %v1718_v21 }
 0x52a   : > { %v1894_v28 = vpack.c.bf16 %v7005_v41, %v7003_v37 }
 0x52b   : > { %5899 = vpow2.f32 %v1812_v42  ;;  %v5781_v42 = vld [vmem:[#allocation2 + $0x448] sm:$0xf0] }
 0x52c   : > { %3351 = vrot.lane.b32.xlu2 %v6920_v52, %s6220_s23  ;;  %2054 = vmatmul.bf16.gmra.mxu0 %v1894_v28  ;;  %v2322_v52 = vsel %vm2321_vm12, %v5894_v57, %v2318_v6  ;;  %v5479_v45 = vor.u32 %v5781_v42, %v5478_v12  ;;  %v5448_v42 = vld [vmem:[#allocation2 + $0x414] sm:$0xf0] }
 0x52d   : > { %1554 = vmatmul.bf16.gmra.mxu3 %v6606_v2  ;;  %v2326_v2 = vor.u32 1.1754944e-38, %v2325_v26 }
 0x52e   : > { %v1623_v49 = vpop.xlane.xlu2 %1622  ;;  %4151 = vmatpush.bf16.msra.mxu3 %v5479_v45  ;;  %v5454_v45 = vld [vmem:[#allocation2 + $0x410] sm:$0xf] }
 0x52f   : > { %v1719_v29 = vsub.f32 %v6822_v16, %v1623_v49  ;;  %v2327_v28 = vsel %vm2324_vm13, %v2326_v2, %v2322_v52  ;;  %v5778_v52 = vld [vmem:[#allocation2 + $0x430] sm:$0xf0] }
 0x530   : > { %v7027_v57 = vmul.f32 %v6749_v31, %v2327_v28  ;;  %v5446_v31 = vld [vmem:[#allocation2 + $0x408] sm:$0xf]  ;;  %v5774_v28 = vld [vmem:[#allocation2 + $0x410] sm:$0xf0] }
 0x531   : > { %v1814_v54 = vmul.f32 1.442695, %v1719_v29  ;;  %v7017_v58 = vpop.eup %5899  ;;  %v5447_v12 = vor.u32 %v5774_v28, %v5446_v31 }
 0x532   : > { %9734 = vst [vmem:[#allocation9_spill] sm:$0xff] %v7017_v58 }
 0x533   : > { %5901 = vpow2.f32 %v1814_v54  ;;  %9736 = vst [vmem:[#allocation11_spill] sm:$0xff] %v7027_v57  ;;  %v5776_v54 = vld [vmem:[#allocation2 + $0x424] sm:$0xf] }
 0x534   : > { %v5463_v2 = vor.u32 %v5776_v54, %v5460_v33  ;;  %v5434_v54 = vld [vmem:[#allocation2 + $0x3f0] sm:$0xf]  ;;  %v5771_v33 = vld [vmem:[#allocation2 + $0x3f8] sm:$0xf0] }
 0x536   : > { %v1625_v17 = vpop.xlane.xlu0 %1624  ;;  %3983 = vmatpush.bf16.msrb.mxu2 %v5463_v2  ;;  %v5772_v2 = vld [vmem:[#allocation2 + $0x400] sm:$0xf0] }
 0x537   : > { %v1720_v16 = vsub.f32 %v6831_v1, %v1625_v17  ;;  %v5777_v1 = vld [vmem:[#allocation2 + $0x428] sm:$0xf0]  ;;  %v5466_v17 = vld [vmem:[#allocation2 + $0x428] sm:$0xf] }
 0x538   : > { %v5459_v26 = vor.u32 %v5777_v1, %v5458_v36  ;;  %v5775_v36 = vld [vmem:[#allocation2 + $0x418] sm:$0xf0] }
 0x539   : > { %v7019_v56 = vpop.eup %5901  ;;  %v1816_v49 = vmul.f32 1.442695, %v1720_v16  ;;  %v5467_v16 = vor.u32 %v5778_v52, %v5466_v17  ;;  %v5455_v1 = vor.u32 %v5775_v36, %v5454_v45  ;;  %v5770_v17 = vld [vmem:[#allocation2 + $0x3f4] sm:$0xf]  ;;  %v5442_v52 = vld [vmem:[#allocation2 + $0x3f8] sm:$0xf] }
 0x53a   : > { %9735 = vst [vmem:[#allocation10_spill] sm:$0xff] %v7019_v56  ;;  %v1895_v21 = vpack.c.bf16 %v7019_v56, %v7017_v58  ;;  %3814 = vmatpush.bf16.msrb.mxu1 %v5459_v26  ;;  %v5436_v26 = vld [vmem:[#allocation2 + $0x3fc] sm:$0xf0]  ;;  %v5443_v28 = vor.u32 %v5772_v2, %v5442_v52 }
 0x53b   : > { %5903 = vpow2.f32 %v1816_v49  ;;  %4152 = vmatpush.bf16.msra.mxu3 %v5467_v16  ;;  %v5435_v49 = vor.u32 %v5771_v33, %v5434_v54  ;;  %v5439_v31 = vor.u32 %v5770_v17, %v5436_v26 }
 0x53c   : > { %2059 = vmatmul.bf16.gmra.mxu0 %v1895_v21 }
 0x53d   : > { %3355 = vrot.lane.b32.xlu0 %v6953_v25, %s6220_s23  ;;  %v2007_v25 = vpop.f32.mrf.mxu0 }
 0x53e   : > { %v1627_v29 = vpop.xlane.xlu1 %1626  ;;  %3815 = vmatpush.bf16.msrb.mxu1 %v5447_v12 }
 0x53f   : > { %v1721_v6 = vsub.f32 %v6839_v4, %v1627_v29  ;;  %3359 = vrot.lane.b32.xlu1 %v7027_v57, %s6220_s23  ;;  %v5773_v4 = vld [vmem:[#allocation2 + $0x40c] sm:$0xf]  ;;  %4153 = vmatpush.bf16.msra.mxu3 %v5455_v1 }
 0x540   : > { %v5451_v29 = vor.u32 %v5773_v4, %v5448_v42 }
 0x541   : > { %v1818_v21 = vmul.f32 1.442695, %v1721_v6  ;;  %v7032_v16 = vpop.eup %5903 }
 0x542   : > { %3984 = vmatpush.bf16.msrb.mxu2 %v5451_v29  ;;  %3816 = vmatpush.bf16.msrb.mxu1 %v5435_v49  ;;  %v2153_v49 = vmax.f32 %v7015_v44, 1e-20 }
 0x543   : > { %5905 = vpow2.f32 %v1818_v21  ;;  %v2151_v21 = vmax.f32 %v6975_v63, 1e-20  ;;  %4154 = vmatpush.bf16.msra.mxu3 %v5443_v28  ;;  %v7041_v63 = vpop.f32.mrf.mxu3 }
 0x544   : > { %vm2334_vm4 = vweird.f32 %v2153_v49 }
 0x545   : > { %v2010_v45 = vpop.f32.mrf.mxu0  ;;  %5907 = vrcp.f32 %v2151_v21  ;;  %vm2304_vm15 = vweird.f32 %v2151_v21 }
 0x546   : > { %v1629_v6 = vpop.xlane.xlu2 %1628  ;;  %3985 = vmatpush.bf16.msrb.mxu2 %v5439_v31 }
 0x547   : > { %v1722_v12 = vsub.f32 %v6848_v27, %v1629_v6  ;;  %v7045_v27 = vadd.f32 %v6973_v7, %v6604_v62  ;;  %v7057_v7 = vmax.f32 %v2010_v45, 1e-20 }
 0x549   : > { %v7035_v4 = vpop.eup %5905  ;;  %v1820_v29 = vmul.f32 1.442695, %v1722_v12  ;;  %v7059_v12 = vmax.f32 %v2007_v25, 1e-20  ;;  %vm2364_vm9 = vweird.f32 %v7057_v7 }
 0x54a   : > { %v1896_v42 = vpack.c.bf16 %v7035_v4, %v7032_v16 }
 0x54b   : > { %v5908_v33 = vpop.eup %5907  ;;  %5909 = vpow2.f32 %v1820_v29  ;;  %v1507_v2 = vpop.f32.mrf.mxu3  ;;  %vm2349_vm11 = vweird.f32 %v7059_v12 }
 0x54c   : > { %2064 = vmatmul.bf16.gmra.mxu0 %v1896_v42  ;;  %v2300_v17 = vmul.f32 %v5908_v33, %v2151_v21  ;;  %vm2305_vm14 = vweird.f32 %v5908_v33  ;;  %v7066_v45 = vadd.f32 %v1507_v2, %v6604_v62 }
 0x54d   : > { %v7047_v6 = vpop.f32.mrf.mxu0  ;;  %vm2306_vm1 = vmor %vm2304_vm15, %vm2305_vm14 }
 0x54e   : > { %v1631_v36 = vpop.xlane.xlu1 %1630  ;;  %v2301_v52 = vsub.f32 1.0, %v2300_v17 }
 0x54f   : > { %v1723_v1 = vsub.f32 %v6856_v50, %v1631_v36  ;;  %v2308_v36 = vand.u32 2147483647, %v2151_v21 }
 0x550   : > { %v2302_v28 = vmul.f32 %v5908_v33, %v2301_v52 }
 0x551   : > { %v1822_v54 = vmul.f32 1.442695, %v1723_v1  ;;  %v7051_v26 = vpop.eup %5909  ;;  %v2310_v1 = vand.u32 2147483648, %v2151_v21  ;;  %vm2309_vm2 = vcmp.eq.f32.partialorder %v2308_v36, 8.507059e+37  ;;  %v2340_v36 = vand.u32 2147483648, %v2153_v49 }
 0x552   : > { %9737 = vst [vmem:[#allocation12_spill] sm:$0xff] %v7051_v26  ;;  %v2303_v44 = vadd.f32 %v5908_v33, %v2302_v28 }
 0x553   : > { %5911 = vpow2.f32 %v1822_v54  ;;  %v1510_v17 = vpop.f32.mrf.mxu3  ;;  %v2311_v57 = vor.u32 1.1754944e-38, %v2310_v1  ;;  %v2338_v1 = vand.u32 2147483647, %v2153_v49 }
 0x554   : > { %5913 = vrcp.f32 %v2153_v49  ;;  %v2307_v25 = vsel %vm2306_vm1, %v5908_v33, %v2303_v44  ;;  %v7069_v28 = vadd.f32 %v1510_v17, %v6604_v62 }
 0x555   : > { %1638 = vmax.xlane.f32.xlu2 %v7045_v27  ;;  %v7061_v42 = vpop.f32.mrf.mxu0  ;;  %5915 = vrcp.f32 %v7057_v7  ;;  %v2312_v58 = vsel %vm2309_vm2, %v2311_v57, %v2307_v25  ;;  %vm2339_vm6 = vcmp.eq.f32.partialorder %v2338_v1, 8.507059e+37 }
 0x556   : > { %5917 = vrcp.f32 %v7059_v12 }
 0x559   : > { %v7053_v50 = vpop.eup %5911 }
 0x55a   : > { %9738 = vst [vmem:[#allocation13_spill] sm:$0xff] %v7053_v50  ;;  %v1897_v31 = vpack.c.bf16 %v7053_v50, %v7051_v26  ;;  %v5914_v29 = vpop.eup %5913 }
 0x55b   : > { %v2330_v54 = vmul.f32 %v5914_v29, %v2153_v49  ;;  %v5916_v30 = vpop.eup %5915  ;;  %vm2335_vm3 = vweird.f32 %v5914_v29  ;;  %v2355_v49 = vand.u32 2147483648, %v7059_v12 }
 0x55c   : > { %2069 = vmatmul.bf16.gmra.mxu0 %v1897_v31  ;;  %v3348_v31 = vpop.permute.xlu2 %3347  ;;  %v5918_v21 = vpop.eup %5917  ;;  %v2360_v33 = vmul.f32 %v5916_v30, %v7057_v7  ;;  %vm2336_vm5 = vmor %vm2334_vm4, %vm2335_vm3  ;;  %vm2365_vm7 = vweird.f32 %v5916_v30 }
 0x55d   : > { %v2331_v43 = vsub.f32 1.0, %v2330_v54  ;;  %v3538_v50 = vmul.f32 %v6878_v39, %v3348_v31  ;;  %v7074_v26 = vpop.f32.mrf.mxu0  ;;  %v2345_v44 = vmul.f32 %v5918_v21, %v7059_v12  ;;  %v7082_v39 = vmul.f32 %v6747_v15, %v2312_v58  ;;  %vm2366_vm10 = vmor %vm2364_vm9, %vm2365_vm7 }
 0x55e   : > { %v2341_v15 = vor.u32 1.1754944e-38, %v2340_v36  ;;  %vm2350_vm8 = vweird.f32 %v5918_v21 }
 0x55f   : > { %9739 = vst [vmem:[#allocation14_spill] sm:$0xff] %v7082_v39  ;;  %v2346_v57 = vsub.f32 1.0, %v2345_v44  ;;  %vm2351_vm12 = vmor %vm2349_vm11, %vm2350_vm8 }
 0x561   : > { %v2347_v25 = vmul.f32 %v5918_v21, %v2346_v57 }
 0x565   : > { %v2020_v17 = vpop.f32.mrf.mxu0 }
 0x566   : > { %v3346_v52 = vpop.permute.xlu1 %3345 }
 0x567   : > { %v3537_v56 = vmul.f32 %v6882_v9, %v3346_v52  ;;  %1646 = vmax.xlane.f32.xlu0 %v7066_v45  ;;  %v2332_v9 = vmul.f32 %v5914_v29, %v2331_v43  ;;  %v2370_v52 = vand.u32 2147483648, %v7057_v7 }
 0x569   : > { %v3601_v2 = vpack.c.bf16 %v3538_v50, %v3537_v56  ;;  %1648 = vmax.xlane.f32.xlu1 %v7069_v28  ;;  %v2361_v56 = vsub.f32 1.0, %v2360_v33  ;;  %v2333_v50 = vadd.f32 %v5914_v29, %v2332_v9  ;;  %v2368_v33 = vand.u32 2147483647, %v7057_v7 }
 0x56a   : > { %v2356_v7 = vor.u32 1.1754944e-38, %v2355_v49 }
 0x56b   : > { %5480 = vmatmul.msk.bf16.vlgmr.msrb.gmra.mxu1 %vm298_vm0, %v3601_v2  ;;  %5512 = vmatmul.msk.bf16.vlgmr.msrb.gmra.mxu2 %vm298_vm0, %v3601_v2  ;;  %v2362_v54 = vmul.f32 %v5916_v30, %v2361_v56  ;;  %v2337_v31 = vsel %vm2336_vm5, %v5914_v29, %v2333_v50  ;;  %v2353_v29 = vand.u32 2147483647, %v7059_v12  ;;  %v2371_v56 = vor.u32 1.1754944e-38, %v2370_v52  ;;  %v7098_v50 = vpop.f32.mrf.mxu3 }
 0x56c   : > { %5544 = vmatmul.msk.bf16.vlgmr.msra.gmra.mxu3 %vm298_vm0, %v3601_v2  ;;  %v2342_v43 = vsel %vm2339_vm6, %v2341_v15, %v2337_v31  ;;  %v2348_v2 = vadd.f32 %v5918_v21, %v2347_v25  ;;  %vm2369_vm13 = vcmp.eq.f32.partialorder %v2368_v33, 8.507059e+37 }
 0x56d   : > { %3357 = vrot.lane.b32.xlu2 %v7082_v39, %s6220_s23  ;;  %v2363_v58 = vadd.f32 %v5916_v30, %v2362_v54  ;;  %v7092_v44 = vmul.f32 %v6765_v53, %v2342_v43  ;;  %v2022_v36 = vpop.f32.mrf.mxu0  ;;  %vm2354_vm14 = vcmp.eq.f32.partialorder %v2353_v29, 8.507059e+37  ;;  %v1633_v54 = vpop.xlane.xlu0 %1632 }
 0x56e   : > { %v2352_v57 = vsel %vm2351_vm12, %v5918_v21, %v2348_v2  ;;  %v1724_v12 = vsub.f32 %v6868_v22, %v1633_v54  ;;  %v2156_v2 = vmax.f32 %v7047_v6, 1e-20 }
 0x56f   : > { %9740 = vst [vmem:[#allocation15_spill] sm:$0xff] %v7092_v44  ;;  %v2367_v9 = vsel %vm2366_vm10, %v5916_v30, %v2363_v58  ;;  %v2357_v53 = vsel %vm2354_vm14, %v2356_v7, %v2352_v57  ;;  %v7129_v7 = vadd.f32 %v7041_v63, %v6604_v62 }
 0x570   : > { %v2372_v1 = vsel %vm2369_vm13, %v2371_v56, %v2367_v9  ;;  %v7104_v30 = vmul.f32 %v6767_v47, %v2357_v53  ;;  %v1824_v15 = vmul.f32 1.442695, %v1724_v12  ;;  %vm2379_vm1 = vweird.f32 %v2156_v2 }
 0x571   : > { %v7101_v31 = vmul.f32 %v6783_v19, %v2372_v1 }
 0x572   : > { %9742 = vst [vmem:[#allocation17_spill] sm:$0xff] %v7104_v30  ;;  %5919 = vpow2.f32 %v1824_v15 }
 0x573   : > { %9741 = vst [vmem:[#allocation16_spill] sm:$0xff] %v7101_v31  ;;  %v1515_v21 = vpop.f32.mrf.mxu3 }
 0x574   : > { %v7140_v53 = vadd.f32 %v1515_v21, %v6604_v62 }
 0x575   : > { %v7111_v25 = vpop.f32.mrf.mxu0  ;;  %v3350_v47 = vpop.permute.xlu0 %3349 }
 0x576   : > { %v3539_v22 = vmul.f32 %v6926_v34, %v3350_v47  ;;  %v7135_v34 = vmax.f32 %v2020_v17, 1e-20 }
 0x578   : > { %v7119_v29 = vpop.eup %5919  ;;  %vm2424_vm5 = vweird.f32 %v7135_v34 }
 0x57b   : > { %3361 = vrot.lane.b32.xlu0 %v7092_v44, %s6220_s23  ;;  %v7115_v33 = vpop.f32.mrf.mxu3  ;;  %v7179_v44 = vmax.f32 %v7111_v25, 1e-20 }
 0x57c   : > { %v7202_v25 = vadd.f32 %v7115_v33, %v6604_v62 }
 0x57d   : > { %v7121_v9 = vpop.f32.mrf.mxu0  ;;  %v3354_v54 = vpop.permute.xlu0 %3353 }
 0x582   : > { %3365 = vrot.lane.b32.xlu1 %v7101_v31, %s6220_s23 }
 0x583   : > { %3363 = vrot.lane.b32.xlu0 %v7104_v30, %s6220_s23  ;;  %v1520_v6 = vpop.f32.mrf.mxu3  ;;  %v3541_v30 = vmul.f32 %v6956_v23, %v3354_v54 }
 0x585   : > { %v7137_v1 = vpop.f32.mrf.mxu0 }
 0x587   : > { %v1635_v43 = vpop.xlane.xlu2 %1634 }
 0x588   : > { %v1725_v58 = vsub.f32 %v6980_v59, %v1635_v43  ;;  %v7147_v43 = vmax.f32 %v7061_v42, 1e-20  ;;  %v7161_v42 = vadd.f32 %v1520_v6, %v6604_v62 }
 0x58a   : > { %v1826_v19 = vmul.f32 1.442695, %v1725_v58  ;;  %vm2394_vm9 = vweird.f32 %v7147_v43 }
 0x58b   : > { %v7149_v17 = vpop.f32.mrf.mxu3 }
 0x58c   : > { %5921 = vpow2.f32 %v1826_v19 }
 0x58d   : > { %5923 = vrcp.f32 %v2156_v2  ;;  %v7151_v58 = vpop.f32.mrf.mxu0 }
 0x58e   : > { %5925 = vrcp.f32 %v7135_v34 }
 0x58f   : > { %v3352_v52 = vpop.permute.xlu2 %3351  ;;  %5927 = vrcp.f32 %v7147_v43 }
 0x590   : > { %v3540_v49 = vmul.f32 %v6930_v55, %v3352_v52  ;;  %v7158_v52 = vmax.f32 %v2022_v36, 1e-20  ;;  %v7170_v36 = vmax.f32 %v7074_v26, 1e-20 }
 0x592   : > { %v7123_v56 = vpop.eup %5921  ;;  %v3602_v59 = vpack.c.bf16 %v3540_v49, %v3539_v22  ;;  %5929 = vrcp.f32 %v7158_v52  ;;  %vm2439_vm12 = vweird.f32 %v7158_v52 }
 0x593   : > { %v1898_v57 = vpack.c.bf16 %v7123_v56, %v7119_v29  ;;  %v5924_v55 = vpop.eup %5923  ;;  %5931 = vrcp.f32 %v7170_v36 }
 0x594   : > { %5481 = vmatmul.msk.bf16.gmra.mxu1 %vm298_vm0, %v3602_v59  ;;  %5513 = vmatmul.msk.bf16.gmra.mxu2 %vm298_vm0, %v3602_v59  ;;  %v2375_v63 = vmul.f32 %v5924_v55, %v2156_v2  ;;  %v7144_v15 = vpop.eup %5925  ;;  %vm2380_vm15 = vweird.f32 %v5924_v55  ;;  %5933 = vrcp.f32 %v7179_v44 }
 0x595   : > { %5545 = vmatmul.msk.bf16.gmra.mxu3 %vm298_vm0, %v3602_v59  ;;  %2074 = vmatmul.bf16.gmra.mxu0 %v1898_v57  ;;  %v2420_v21 = vmul.f32 %v7144_v15, %v7135_v34  ;;  %v2385_v59 = vand.u32 2147483648, %v2156_v2  ;;  %v7165_v57 = vadd.f32 %v7098_v50, %v6604_v62  ;;  %vm2381_vm2 = vmor %vm2379_vm1, %vm2380_vm15  ;;  %v7173_v6 = vpop.eup %5927  ;;  %v7176_v31 = vpop.f32.mrf.mxu0  ;;  %vm2425_vm4 = vweird.f32 %v7144_v15 }
 0x596   : > { %1644 = vmax.xlane.f32.xlu2 %v7129_v7  ;;  %v2376_v12 = vsub.f32 1.0, %v2375_v63  ;;  %v2383_v63 = vand.u32 2147483647, %v2156_v2  ;;  %vm2426_vm6 = vmor %vm2424_vm5, %vm2425_vm4  ;;  %vm2395_vm8 = vweird.f32 %v7173_v6  ;;  %vm2454_vm5 = vweird.f32 %v7179_v44 }
 0x597   : > { %v2421_v49 = vsub.f32 1.0, %v2420_v21  ;;  %v2386_v21 = vor.u32 1.1754944e-38, %v2385_v59  ;;  %vm2396_vm10 = vmor %vm2394_vm9, %vm2395_vm8 }
 0x598   : > { %v2377_v19 = vmul.f32 %v5924_v55, %v2376_v12  ;;  %vm2384_vm3 = vcmp.eq.f32.partialorder %v2383_v63, 8.507059e+37 }
 0x599   : > { %v2422_v50 = vmul.f32 %v7144_v15, %v2421_v49 }
 0x59a   : > { %v2378_v22 = vadd.f32 %v5924_v55, %v2377_v19  ;;  %v1525_v19 = vpop.f32.mrf.mxu3 }
 0x59b   : > { %v7189_v49 = vadd.f32 %v1525_v19, %v6604_v62  ;;  %v2423_v63 = vadd.f32 %v7144_v15, %v2422_v50 }
 0x59c   : > { %v7155_v47 = vpop.xlane.xlu0 %1640  ;;  %v2382_v12 = vsel %vm2381_vm2, %v5924_v55, %v2378_v22  ;;  %v2390_v55 = vmul.f32 %v7173_v6, %v7147_v43  ;;  %v7186_v22 = vpop.eup %5929  ;;  %vm2409_vm2 = vweird.f32 %v7170_v36 }
 0x59d   : > { %v2387_v39 = vsel %vm2384_vm3, %v2386_v21, %v2382_v12  ;;  %v2427_v33 = vsel %vm2426_vm6, %v7144_v15, %v2423_v63  ;;  %v7214_v54 = vpop.eup %5931  ;;  %v7216_v19 = vpop.f32.mrf.mxu0  ;;  %vm2440_vm11 = vweird.f32 %v7186_v22 }
 0x59e   : > { %1652 = vmax.xlane.f32.xlu2 %v7140_v53  ;;  %v7194_v23 = vmul.f32 %v6785_v60, %v2387_v39  ;;  %v2435_v60 = vmul.f32 %v7186_v22, %v7158_v52  ;;  %v2391_v39 = vsub.f32 1.0, %v2390_v55  ;;  %v7218_v50 = vpop.eup %5933  ;;  %v1637_v55 = vpop.xlane.xlu1 %1636  ;;  %vm2441_vm14 = vmor %vm2439_vm12, %vm2440_vm11  ;;  %vm2410_vm15 = vweird.f32 %v7214_v54 }
 0x59f   : > { %v2450_v15 = vmul.f32 %v7218_v50, %v7179_v44  ;;  %vm7257_vm3 = vmor %vm2409_vm2, %vm2410_vm15  ;;  %vm2455_vm4 = vweird.f32 %v7218_v50 }
 0x5a0   : > { %9743 = vst [vmem:[#allocation18_spill] sm:$0xff] %v7194_v23 }
 0x5ac   : > { %1656 = vmax.xlane.f32.xlu1 %v7161_v42 }
 0x5ad   : > { %1650 = vmax.xlane.f32.xlu0 %v7165_v57 }
 0x5af   : > { %v3356_v2 = vpop.permute.xlu0 %3355 }
 0x5b0   : > { %v3542_v26 = vmul.f32 %v6960_v14, %v3356_v2  ;;  %v2430_v14 = vand.u32 2147483648, %v7135_v34  ;;  %v2405_v2 = vmul.f32 %v7214_v54, %v7170_v36 }
 0x5b2   : > { %v3603_v59 = vpack.c.bf16 %v3542_v26, %v3541_v30  ;;  %v2428_v30 = vand.u32 2147483647, %v7135_v34  ;;  %v2431_v12 = vor.u32 1.1754944e-38, %v2430_v14  ;;  %v2436_v34 = vsub.f32 1.0, %v2435_v60 }
 0x5b3   : > { %v2392_v26 = vmul.f32 %v7173_v6, %v2391_v39  ;;  %v2406_v14 = vsub.f32 1.0, %v2405_v2  ;;  %v2400_v60 = vand.u32 2147483648, %v7147_v43  ;;  %v2451_v39 = vsub.f32 1.0, %v2450_v15  ;;  %v7241_v2 = vpop.f32.mrf.mxu0 }
 0x5b4   : > { %1660 = vmax.xlane.f32.xlu1 %v7189_v49  ;;  %5482 = vmatmul.msk.bf16.gmra.mxu1 %vm298_vm0, %v3603_v59  ;;  %vm2429_vm7 = vcmp.eq.f32.partialorder %v2428_v30, 8.507059e+37  ;;  %v2437_v63 = vmul.f32 %v7186_v22, %v2436_v34  ;;  %v2445_v34 = vand.u32 2147483648, %v7158_v52 }
 0x5b5   : > { %5514 = vmatmul.msk.bf16.gmra.mxu2 %vm298_vm0, %v3603_v59  ;;  %5546 = vmatmul.msk.bf16.gmra.mxu3 %vm298_vm0, %v3603_v59  ;;  %v2432_v21 = vsel %vm2429_vm7, %v2431_v12, %v2427_v33  ;;  %v2393_v30 = vadd.f32 %v7173_v6, %v2392_v26  ;;  %v2401_v26 = vor.u32 1.1754944e-38, %v2400_v60  ;;  %v2415_v60 = vand.u32 2147483648, %v7170_v36  ;;  %vm2456_vm7 = vmor %vm2454_vm5, %vm2455_vm4 }
 0x5b6   : > { %1654 = vmax.xlane.f32.xlu0 %v7202_v25  ;;  %3367 = vrot.lane.b32.xlu2 %v7194_v23, %s6220_s23  ;;  %v7224_v59 = vmul.f32 %v6817_v35, %v2432_v21  ;;  %v2398_v35 = vand.u32 2147483647, %v7147_v43  ;;  %v2438_v33 = vadd.f32 %v7186_v22, %v2437_v63  ;;  %v2407_v21 = vmul.f32 %v7214_v54, %v2406_v14 }
 0x5b7   : > { %v2397_v12 = vsel %vm2396_vm10, %v7173_v6, %v2393_v30  ;;  %v1726_v43 = vsub.f32 %v6991_v8, %v1637_v55  ;;  %v2452_v6 = vmul.f32 %v7218_v50, %v2451_v39  ;;  %v1643_v30 = vpop.xlane.xlu1 %1642  ;;  %v2446_v23 = vor.u32 1.1754944e-38, %v2445_v34 }
 0x5b8   : > { %9744 = vst [vmem:[#allocation19_spill] sm:$0xff] %v7224_v59  ;;  %vm2399_vm13 = vcmp.eq.f32.partialorder %v2398_v35, 8.507059e+37  ;;  %v2442_v63 = vsel %vm2441_vm14, %v7186_v22, %v2438_v33  ;;  %v2408_v14 = vadd.f32 %v7214_v54, %v2407_v21  ;;  %v2413_v22 = vand.u32 2147483647, %v7170_v36 }
 0x5b9   : > { %v2402_v15 = vsel %vm2399_vm13, %v2401_v26, %v2397_v12  ;;  %v2453_v12 = vadd.f32 %v7218_v50, %v2452_v6  ;;  %v2460_v36 = vand.u32 2147483648, %v7179_v44  ;;  %v2458_v34 = vand.u32 2147483647, %v7179_v44  ;;  %v6087_v6 = vld [vmem:[%s6253_s22 + $0x38] sm:$0xff] }
 0x5ba   : > { %v7253_v55 = vmul.f32 %v6801_v11, %v2402_v15  ;;  %v2412_v11 = vsel %vm7257_vm3, %v7214_v54, %v2408_v14  ;;  %vm2414_vm6 = vcmp.eq.f32.partialorder %v2413_v22, 8.507059e+37  ;;  %v1729_v33 = vsub.f32 %v6997_v18, %v1643_v30 }
 0x5bb   : > { %v2042_v21 = vpop.f32.mrf.mxu0  ;;  %v2457_v26 = vsel %vm2456_vm7, %v7218_v50, %v2453_v12  ;;  %vm2459_vm8 = vcmp.eq.f32.partialorder %v2458_v34, 8.507059e+37  ;;  %v7309_v18 = vmax.f32 %v7241_v2, 1e-20  ;;  %v7323_v2 = vmax.f32 %v7121_v9, 1e-20 }
 0x5bc   : > { %9745 = vst [vmem:[#allocation20_spill] sm:$0xff] %v7253_v55 }
 0x5bd   : > { %vm2544_vm14 = vweird.f32 %v7309_v18  ;;  %vm2469_vm2 = vweird.f32 %v7323_v2 }
 0x5be   : > { %3373 = vrot.lane.b32.xlu2 %v7224_v59, %s6220_s23  ;;  %v2443_v59 = vand.u32 2147483647, %v7158_v52  ;;  %v1828_v52 = vmul.f32 1.442695, %v1726_v43 }
 0x5bf   : > { %v3360_v43 = vpop.permute.xlu1 %3359 }
 0x5c0   : > { %vm2444_vm1 = vcmp.eq.f32.partialorder %v2443_v59, 8.507059e+37  ;;  %5935 = vpow2.f32 %v1828_v52  ;;  %v3544_v14 = vmul.f32 %v6087_v6, %v3360_v43  ;;  %v7325_v43 = vmax.f32 %v2042_v21, 1e-20 }
 0x5c1   : > { %v2447_v35 = vsel %vm2444_vm1, %v2446_v23, %v2442_v63  ;;  %v2416_v23 = vor.u32 1.1754944e-38, %v2415_v60  ;;  %v6088_v60 = vld [vmem:[%s6253_s22 + $0x30] sm:$0xff] }
 0x5c3   : > { %v2417_v54 = vsel %vm2414_vm6, %v2416_v23, %v2412_v11  ;;  %v7301_v12 = vpop.f32.mrf.mxu0  ;;  %vm2559_vm6 = vweird.f32 %v7325_v43 }
 0x5c4   : > { %v7278_v63 = vmul.f32 %v6803_v13, %v2417_v54  ;;  %v1728_v13 = vsub.f32 %v7001_v48, %v7155_v47  ;;  %v2163_v48 = vmax.f32 %v7137_v1, 1e-20  ;;  %v1834_v47 = vmul.f32 1.442695, %v1729_v33 }
 0x5c6   : > { %9749 = vst [vmem:[#allocation22_spill] sm:$0xff] %v7278_v63  ;;  %v2490_v33 = vand.u32 2147483648, %v2163_v48  ;;  %vm2484_vm10 = vweird.f32 %v2163_v48 }
 0x5c8   : > { %v1639_v8 = vpop.xlane.xlu2 %1638 }
 0x5c9   : > { %v1727_v39 = vsub.f32 %v7045_v27, %v1639_v8  ;;  %v7270_v27 = vmul.f32 %v6819_v38, %v2447_v35  ;;  %v2461_v38 = vor.u32 1.1754944e-38, %v2460_v36  ;;  %v7282_v8 = vpop.eup %5935  ;;  %v1527_v36 = vpop.f32.mrf.mxu3 }
 0x5ca   : > { %3369 = vrot.lane.b32.xlu0 %v7253_v55, %s6220_s23  ;;  %v7318_v54 = vadd.f32 %v1527_v36, %v6604_v62  ;;  %v2488_v36 = vand.u32 2147483647, %v2163_v48 }
 0x5cb   : > { %v1830_v59 = vmul.f32 1.442695, %v1727_v39  ;;  %9748 = vst [vmem:[#allocation21_spill] sm:$0xff] %v7270_v27  ;;  %v2462_v44 = vsel %vm2459_vm8, %v2461_v38, %v2457_v26  ;;  %v7304_v11 = vpop.f32.mrf.mxu0 }
 0x5cc   : > { %v7289_v22 = vmul.f32 %v6834_v61, %v2462_v44  ;;  %v1832_v61 = vmul.f32 1.442695, %v1728_v13  ;;  %vm2489_vm12 = vcmp.eq.f32.partialorder %v2488_v36, 8.507059e+37 }
 0x5cd   : > { %5937 = vpow2.f32 %v1830_v59  ;;  %3375 = vrot.lane.b32.xlu1 %v7270_v27, %s6220_s23 }
 0x5ce   : > { %9750 = vst [vmem:[#allocation23_spill] sm:$0xff] %v7289_v22  ;;  %5939 = vpow2.f32 %v1832_v61 }
 0x5cf   : > { %5941 = vrcp.f32 %v2163_v48 }
 0x5d0   : > { %v3358_v15 = vpop.permute.xlu2 %3357  ;;  %5943 = vpow2.f32 %v1834_v47 }
 0x5d1   : > { %v3543_v52 = vmul.f32 %v6088_v60, %v3358_v15  ;;  %5945 = vrcp.f32 %v7309_v18  ;;  %v1530_v6 = vpop.f32.mrf.mxu3 }
 0x5d2   : > { %3371 = vrot.lane.b32.xlu0 %v7278_v63, %s6220_s23  ;;  %5947 = vrcp.f32 %v7323_v2 }
 0x5d3   : > { %v7286_v35 = vpop.eup %5937  ;;  %v3604_v50 = vpack.c.bf16 %v3544_v14, %v3543_v52  ;;  %v2050_v15 = vpop.f32.mrf.mxu0  ;;  %5949 = vrcp.f32 %v7325_v43 }
 0x5d4   : > { %v1899_v39 = vpack.c.bf16 %v7286_v35, %v7282_v8  ;;  %v7306_v23 = vpop.eup %5939  ;;  %v7333_v9 = vmax.f32 %v2050_v15, 1e-20  ;;  %v6090_v15 = vld [vmem:[%s6253_s22 + $0x48] sm:$0xff] }
 0x5d5   : > { %3377 = vrot.lane.b32.xlu1 %v7289_v22, %s6220_s23  ;;  %5483 = vmatmul.msk.bf16.gmra.mxu1 %vm298_vm0, %v3604_v50  ;;  %9751 = vst [vmem:[#allocation24_spill] sm:$0xff] %v7306_v23  ;;  %v5942_v30 = vpop.eup %5941 }
 0x5d6   : > { %5515 = vmatmul.msk.bf16.gmra.mxu2 %vm298_vm0, %v3604_v50  ;;  %5547 = vmatmul.msk.bf16.gmra.mxu3 %vm298_vm0, %v3604_v50  ;;  %v7311_v59 = vpop.eup %5943  ;;  %v2480_v26 = vmul.f32 %v5942_v30, %v2163_v48  ;;  %vm2485_vm9 = vweird.f32 %v5942_v30  ;;  %5951 = vrcp.f32 %v7333_v9  ;;  %v2491_v48 = vor.u32 1.1754944e-38, %v2490_v33 }
 0x5d7   : > { %2079 = vmatmul.bf16.gmra.mxu0 %v1899_v39  ;;  %9752 = vst [vmem:[#allocation25_spill] sm:$0xff] %v7311_v59  ;;  %v1900_v1 = vpack.c.bf16 %v7311_v59, %v7306_v23  ;;  %v7327_v44 = vpop.eup %5945  ;;  %vm2486_vm11 = vmor %vm2484_vm10, %vm2485_vm9 }
 0x5d8   : > { %v2481_v38 = vsub.f32 1.0, %v2480_v26  ;;  %v2540_v60 = vmul.f32 %v7327_v44, %v7309_v18  ;;  %v7335_v21 = vpop.eup %5947  ;;  %v6089_v26 = vld [vmem:[%s6253_s22 + $0x40] sm:$0xff]  ;;  %vm2545_vm13 = vweird.f32 %v7327_v44 }
 0x5d9   : > { %v7337_v39 = vpop.eup %5949  ;;  %vm7376_vm15 = vmor %vm2544_vm14, %vm2545_vm13  ;;  %vm2470_vm3 = vweird.f32 %v7335_v21 }
 0x5da   : > { %v7313_v34 = vpop.xlane.xlu0 %1646  ;;  %v2482_v52 = vmul.f32 %v5942_v30, %v2481_v38  ;;  %v2541_v50 = vsub.f32 1.0, %v2540_v60  ;;  %v7344_v60 = vpop.f32.mrf.mxu3  ;;  %vm2560_vm4 = vweird.f32 %v7337_v39  ;;  %vm7419_vm5 = vmor %vm2469_vm2, %vm2470_vm3 }
 0x5db   : > { %v2052_v61 = vpop.f32.mrf.mxu0  ;;  %vm7429_vm7 = vmor %vm2559_vm6, %vm2560_vm4 }
 0x5dc   : > { %v2483_v13 = vadd.f32 %v5942_v30, %v2482_v52  ;;  %v2555_v52 = vmul.f32 %v7337_v39, %v7325_v43  ;;  %v2542_v55 = vmul.f32 %v7327_v44, %v2541_v50  ;;  %v7349_v23 = vmax.f32 %v2052_v61, 1e-20  ;;  %v7363_v50 = vpop.eup %5951 }
 0x5dd   : > { %v7392_v61 = vmax.f32 %v7176_v31, 1e-20  ;;  %vm2605_vm10 = vweird.f32 %v7363_v50 }
 0x5de   : > { %v2487_v27 = vsel %vm2486_vm11, %v5942_v30, %v2483_v13  ;;  %v2556_v30 = vsub.f32 1.0, %v2555_v52  ;;  %v2550_v13 = vand.u32 2147483648, %v7309_v18  ;;  %5953 = vrcp.f32 %v7349_v23 }
 0x5df   : > { %vm2604_vm11 = vweird.f32 %v7333_v9 }
 0x5e2   : > { %v1535_v36 = vpop.f32.mrf.mxu3 }
 0x5e3   : > { %v2055_v33 = vpop.f32.mrf.mxu0 }
 0x5e4   : > { %v7402_v31 = vpop.eup %5953 }
 0x5e5   : > { %vm2620_vm14 = vweird.f32 %v7402_v31 }
 0x5e7   : > { %2084 = vmatmul.bf16.gmra.mxu0 %v1900_v1  ;;  %1662 = vmax.xlane.f32.xlu2 %v7318_v54  ;;  %v2465_v1 = vmul.f32 %v7335_v21, %v7323_v2 }
 0x5e9   : > { %v2466_v59 = vsub.f32 1.0, %v2465_v1  ;;  %v7395_v1 = vmax.f32 %v2055_v33, 1e-20 }
 0x5ed   : > { %v3362_v14 = vpop.permute.xlu0 %3361 }
 0x5ee   : > { %v3545_v38 = vmul.f32 %v6089_v26, %v3362_v14  ;;  %v7355_v14 = vadd.f32 %v7149_v17, %v6604_v62  ;;  %v7358_v26 = vmax.f32 %v7151_v58, 1e-20  ;;  %v7368_v17 = vadd.f32 %v1530_v6, %v6604_v62 }
 0x5ef   : > { %v2548_v58 = vand.u32 2147483647, %v7309_v18  ;;  %v2600_v6 = vmul.f32 %v7363_v50, %v7333_v9  ;;  %v2557_v18 = vmul.f32 %v7337_v39, %v2556_v30  ;;  %v2475_v30 = vand.u32 2147483648, %v7323_v2 }
 0x5f0   : > { %5955 = vrcp.f32 %v7358_v26  ;;  %vm2499_vm3 = vweird.f32 %v7358_v26 }
 0x5f1   : > { %vm2549_vm1 = vcmp.eq.f32.partialorder %v2548_v58, 8.507059e+37  ;;  %v2601_v52 = vsub.f32 1.0, %v2600_v6  ;;  %5957 = vrcp.f32 %v7392_v61  ;;  %v1731_v58 = vsub.f32 %v7066_v45, %v7313_v34 }
 0x5f2   : > { %v2563_v6 = vand.u32 2147483647, %v7325_v43  ;;  %5959 = vrcp.f32 %v7395_v1  ;;  %v7448_v45 = vmax.f32 %v7301_v12, 1e-20 }
 0x5f4   : > { %vm2564_vm9 = vcmp.eq.f32.partialorder %v2563_v6, 8.507059e+37 }
 0x5f5   : > { %v3364_v47 = vpop.permute.xlu0 %3363 }
 0x5f6   : > { %v3546_v22 = vmul.f32 %v6090_v15, %v3364_v47  ;;  %v2492_v47 = vsel %vm2489_vm12, %v2491_v48, %v2487_v27  ;;  %v2558_v48 = vadd.f32 %v7337_v39, %v2557_v18  ;;  %v1838_v18 = vmul.f32 1.442695, %v1731_v58  ;;  %vm2606_vm12 = vmor %vm2604_vm11, %vm2605_vm10 }
 0x5f7   : > { %v7371_v27 = vmul.f32 %v6851_v40, %v2492_v47  ;;  %v7406_v47 = vadd.f32 %v1535_v36, %v6604_v62  ;;  %vm2514_vm11 = vweird.f32 %v7392_v61 }
 0x5f8   : > { %v3605_v63 = vpack.c.bf16 %v3546_v22, %v3545_v38  ;;  %v2543_v22 = vadd.f32 %v7327_v44, %v2542_v55  ;;  %v2562_v34 = vsel %vm7429_vm7, %v7337_v39, %v2558_v48  ;;  %5961 = vpow2.f32 %v1838_v18 }
 0x5f9   : > { %9753 = vst [vmem:[#allocation26_spill] sm:$0xff] %v7371_v27 }
 0x5fa   : > { %5484 = vmatmul.msk.bf16.gmra.mxu1 %vm298_vm0, %v3605_v63  ;;  %5516 = vmatmul.msk.bf16.gmra.mxu2 %vm298_vm0, %v3605_v63  ;;  %v2547_v40 = vsel %vm7376_vm15, %v7327_v44, %v2543_v22  ;;  %v2473_v44 = vand.u32 2147483647, %v7323_v2  ;;  %v2565_v22 = vand.u32 2147483648, %v7325_v43  ;;  %v2602_v2 = vmul.f32 %v7363_v50, %v2601_v52 }
 0x5fb   : > { %5548 = vmatmul.msk.bf16.gmra.mxu3 %vm298_vm0, %v3605_v63  ;;  %v2467_v63 = vmul.f32 %v7335_v21, %v2466_v59  ;;  %v2551_v59 = vor.u32 1.1754944e-38, %v2550_v13  ;;  %v7410_v13 = vpop.eup %5955 }
 0x5fc   : > { %1658 = vmax.xlane.f32.xlu0 %v7355_v14  ;;  %v2495_v43 = vmul.f32 %v7410_v13, %v7358_v26  ;;  %vm2474_vm8 = vcmp.eq.f32.partialorder %v2473_v44, 8.507059e+37  ;;  %v7444_v36 = vpop.eup %5957  ;;  %v2603_v52 = vadd.f32 %v7363_v50, %v2602_v2  ;;  %v2610_v44 = vand.u32 2147483648, %v7333_v9 }
 0x5fd   : > { %v2552_v38 = vsel %vm2549_vm1, %v2551_v59, %v2547_v40  ;;  %v2468_v15 = vadd.f32 %v7335_v21, %v2467_v63  ;;  %v2566_v40 = vor.u32 1.1754944e-38, %v2565_v22  ;;  %v7452_v48 = vpop.eup %5959  ;;  %v2510_v12 = vmul.f32 %v7444_v36, %v7392_v61 }
 0x5fe   : > { %v7415_v55 = vmul.f32 %v6934_v51, %v2552_v38  ;;  %v2615_v51 = vmul.f32 %v7402_v31, %v7349_v23  ;;  %vm2500_vm15 = vweird.f32 %v7410_v13  ;;  %vm2619_vm1 = vweird.f32 %v7349_v23 }
 0x5ff   : > { %1664 = vmax.xlane.f32.xlu1 %v7368_v17  ;;  %3381 = vrot.lane.b32.xlu2 %v7371_v27, %s6220_s23  ;;  %v2472_v33 = vsel %vm7419_vm5, %v7335_v21, %v2468_v15  ;;  %v2476_v21 = vor.u32 1.1754944e-38, %v2475_v30  ;;  %v2567_v63 = vsel %vm2564_vm9, %v2566_v40, %v2562_v34  ;;  %v2496_v30 = vsub.f32 1.0, %v2495_v43  ;;  %v7480_v40 = vpop.eup %5961  ;;  %vm7499_vm2 = vmor %vm2619_vm1, %vm2620_vm14  ;;  %v5604_v27 = vld [vmem:[#allocation2 + $0x3cc] sm:$0xf0] }
 0x600   : > { %9756 = vst [vmem:[#allocation27_spill] sm:$0xff] %v7415_v55  ;;  %v2616_v39 = vsub.f32 1.0, %v2615_v51  ;;  %v7456_v58 = vmul.f32 %v6936_v10, %v2567_v63  ;;  %v7468_v51 = vpop.xlane.xlu1 %1648  ;;  %v2607_v10 = vsel %vm2606_vm12, %v7363_v50, %v2603_v52  ;;  %v2511_v18 = vsub.f32 1.0, %v2510_v12  ;;  %v7504_v12 = vpop.f32.mrf.mxu0  ;;  %vm7511_vm4 = vmor %vm2499_vm3, %vm2500_vm15 }
 0x601   : > { %v2477_v15 = vsel %vm2474_vm8, %v2476_v21, %v2472_v33  ;;  %v2630_v33 = vmul.f32 %v7452_v48, %v7395_v1  ;;  %v2497_v34 = vmul.f32 %v7410_v13, %v2496_v30  ;;  %v2503_v21 = vand.u32 2147483647, %v7358_v26 }
 0x602   : > { %9761 = vst [vmem:[#allocation28_spill] sm:$0xff] %v7456_v58  ;;  %v7463_v6 = vmul.f32 %v6836_v0, %v2477_v15  ;;  %v2611_v0 = vor.u32 1.1754944e-38, %v2610_v44  ;;  %v2625_v15 = vand.u32 2147483648, %v7349_v23  ;;  %v2623_v44 = vand.u32 2147483647, %v7349_v23 }
 0x603   : > { %v2498_v63 = vadd.f32 %v7410_v13, %v2497_v34  ;;  %vm2504_vm6 = vcmp.eq.f32.partialorder %v2503_v21, 8.507059e+37  ;;  %vm2515_vm7 = vweird.f32 %v7444_v36  ;;  %vm2635_vm8 = vweird.f32 %v7452_v48 }
 0x604   : > { %9762 = vst [vmem:[#allocation29_spill] sm:$0xff] %v7463_v6  ;;  %vm2624_vm5 = vcmp.eq.f32.partialorder %v2623_v44, 8.507059e+37  ;;  %vm2634_vm9 = vweird.f32 %v7395_v1  ;;  %v2638_v44 = vand.u32 2147483647, %v7395_v1  ;;  %vm2516_vm12 = vmor %vm2514_vm11, %vm2515_vm7  ;;  %vm2574_vm1 = vweird.f32 %v7448_v45 }
 0x605   : > { %v2502_v34 = vsel %vm7511_vm4, %v7410_v13, %v2498_v63  ;;  %v1732_v13 = vsub.f32 %v7069_v28, %v7468_v51  ;;  %v2640_v63 = vand.u32 2147483648, %v7395_v1  ;;  %vm7542_vm10 = vmor %vm2634_vm9, %vm2635_vm8 }
 0x607   : > { %1668 = vmax.xlane.f32.xlu1 %v7406_v47  ;;  %3389 = vrot.lane.b32.xlu2 %v7415_v55, %s6220_s23 }
 0x609   : > { %v1645_v59 = vpop.xlane.xlu2 %1644 }
 0x60a   : > { %v1730_v38 = vsub.f32 %v7129_v7, %v1645_v59  ;;  %v2608_v7 = vand.u32 2147483647, %v7333_v9  ;;  %v2617_v9 = vmul.f32 %v7402_v31, %v2616_v39  ;;  %v2631_v59 = vsub.f32 1.0, %v2630_v33  ;;  %v3366_v33 = vpop.permute.xlu1 %3365 }
 0x60b   : > { %v2505_v39 = vand.u32 2147483648, %v7358_v26  ;;  %v2512_v26 = vmul.f32 %v7444_v36, %v2511_v18 }
 0x60c   : > { %v1836_v22 = vmul.f32 1.442695, %v1730_v38  ;;  %vm2609_vm13 = vcmp.eq.f32.partialorder %v2608_v7, 8.507059e+37  ;;  %v2618_v50 = vadd.f32 %v7402_v31, %v2617_v9  ;;  %v6092_v7 = vld [vmem:[%s6253_s22 + $0x58] sm:$0xff] }
 0x60d   : > { %v2612_v43 = vsel %vm2609_vm13, %v2611_v0, %v2607_v10  ;;  %v2632_v10 = vmul.f32 %v7452_v48, %v2631_v59  ;;  %v2626_v0 = vor.u32 1.1754944e-38, %v2625_v15  ;;  %v2513_v15 = vadd.f32 %v7444_v36, %v2512_v26 }
 0x60e   : > { %5963 = vpow2.f32 %v1836_v22  ;;  %v7493_v30 = vmul.f32 %v6983_v24, %v2612_v43  ;;  %v2622_v24 = vsel %vm7499_vm2, %v7402_v31, %v2618_v50  ;;  %v2506_v31 = vor.u32 1.1754944e-38, %v2505_v39  ;;  %v6091_v50 = vld [vmem:[%s6253_s22 + $0x50] sm:$0xff] }
 0x60f   : > { %5965 = vrcp.f32 %v7448_v45  ;;  %3391 = vrot.lane.b32.xlu2 %v7456_v58, %s6220_s23  ;;  %v2627_v55 = vsel %vm2624_vm5, %v2626_v0, %v2622_v24  ;;  %v2633_v59 = vadd.f32 %v7452_v48, %v2632_v10  ;;  %v9769_v24 = vld [vmem:[#allocation5_spill] sm:$0xff]  ;;  %vm2639_vm13 = vcmp.eq.f32.partialorder %v2638_v44, 8.507059e+37 }
 0x610   : > { %3379 = vrot.lane.b32.xlu0 %v7463_v6, %s6220_s23  ;;  %9763 = vst [vmem:[#allocation30_spill] sm:$0xff] %v7493_v30  ;;  %v2507_v18 = vsel %vm2504_vm6, %v2506_v31, %v2502_v34  ;;  %v7532_v39 = vmul.f32 %v6985_v32, %v2627_v55  ;;  %v2518_v32 = vand.u32 2147483647, %v7392_v61  ;;  %v1840_v55 = vmul.f32 1.442695, %v1732_v13 }
 0x611   : > { %v7477_v2 = vpop.xlane.xlu2 %1652  ;;  %v7540_v10 = vmul.f32 %v9769_v24, %v2507_v18  ;;  %v2637_v1 = vsel %vm7542_vm10, %v7452_v48, %v2633_v59 }
 0x612   : > { %9768 = vst [vmem:[#allocation31_spill] sm:$0xff] %v7532_v39  ;;  %vm2519_vm14 = vcmp.eq.f32.partialorder %v2518_v32, 8.507059e+37  ;;  %5967 = vpow2.f32 %v1840_v55  ;;  %v1734_v44 = vsub.f32 %v7140_v53, %v7477_v2  ;;  %v7596_v32 = vmax.f32 %v7216_v19, 1e-20 }
 0x613   : > { %9770 = vst [vmem:[#allocation5_spill] sm:$0xff] %v7540_v10 }
 0x614   : > { %v7484_v38 = vpop.eup %5963  ;;  %v1844_v24 = vmul.f32 1.442695, %v1734_v44  ;;  %vm2529_vm5 = vweird.f32 %v7596_v32 }
 0x615   : > { %v7490_v52 = vpop.eup %5965  ;;  %v1901_v22 = vpack.c.bf16 %v7480_v40, %v7484_v38 }
 0x616   : > { %v2570_v9 = vmul.f32 %v7490_v52, %v7448_v45  ;;  %vm2575_vm15 = vweird.f32 %v7490_v52 }
 0x617   : > { %3397 = vrot.lane.b32.xlu2 %v7493_v30, %s6220_s23  ;;  %2089 = vmatmul.bf16.gmra.mxu0 %v1901_v22  ;;  %v3547_v22 = vmul.f32 %v6091_v50, %v3366_v33  ;;  %v2520_v33 = vand.u32 2147483648, %v7392_v61  ;;  %v2517_v61 = vsel %vm2516_vm12, %v7444_v36, %v2513_v15  ;;  %vm2576_vm2 = vmor %vm2574_vm1, %vm2575_vm15 }
 0x618   : > { %v2571_v23 = vsub.f32 1.0, %v2570_v9  ;;  %v7560_v9 = vpop.f32.mrf.mxu0  ;;  %v7579_v15 = vpop.eup %5967 }
 0x619   : > { %v3368_v43 = vpop.permute.xlu2 %3367  ;;  %v2521_v34 = vor.u32 1.1754944e-38, %v2520_v33 }
 0x61a   : > { %v3548_v30 = vmul.f32 %v6092_v7, %v3368_v43  ;;  %v2572_v26 = vmul.f32 %v7490_v52, %v2571_v23 }
 0x61b   : > { %v2522_v31 = vsel %vm2519_vm14, %v2521_v34, %v2517_v61  ;;  %v7616_v61 = vmax.f32 %v7304_v11, 1e-20 }
 0x61c   : > { %v3606_v21 = vpack.c.bf16 %v3548_v30, %v3547_v22  ;;  %v2641_v30 = vor.u32 1.1754944e-38, %v2640_v63  ;;  %v2573_v50 = vadd.f32 %v7490_v52, %v2572_v26  ;;  %v2580_v22 = vand.u32 2147483648, %v7448_v45  ;;  %v1537_v63 = vpop.f32.mrf.mxu3 }
 0x61d   : > { %v7570_v7 = vmul.f32 %v6885_v5, %v2522_v31  ;;  %vm2589_vm9 = vweird.f32 %v7616_v61 }
 0x61e   : > { %5485 = vmatmul.msk.bf16.gmra.mxu1 %vm298_vm0, %v3606_v21  ;;  %5517 = vmatmul.msk.bf16.gmra.mxu2 %vm298_vm0, %v3606_v21  ;;  %v2642_v48 = vsel %vm2639_vm13, %v2641_v30, %v2637_v1  ;;  %v2577_v18 = vsel %vm2576_vm2, %v7490_v52, %v2573_v50  ;;  %v2581_v59 = vor.u32 1.1754944e-38, %v2580_v22  ;;  %v7600_v1 = vadd.f32 %v7344_v60, %v6604_v62  ;;  %v6094_v50 = vld [vmem:[%s6253_s22 + $0x68] sm:$0xff] }
 0x61f   : > { %5549 = vmatmul.msk.bf16.gmra.mxu3 %vm298_vm0, %v3606_v21  ;;  %3399 = vrot.lane.b32.xlu2 %v7532_v39, %s6220_s23  ;;  %v7566_v36 = vmul.f32 %v7003_v37, %v2642_v48  ;;  %9774 = vst [vmem:[#allocation33_spill] sm:$0xff] %v7570_v7  ;;  %v7610_v19 = vpop.xlane.xlu1 %1656  ;;  %v7613_v60 = vadd.f32 %v1537_v63, %v6604_v62 }
 0x620   : > { %3383 = vrot.lane.b32.xlu1 %v7540_v10, %s6220_s23  ;;  %v1651_v51 = vpop.xlane.xlu0 %1650  ;;  %v7583_v23 = vpop.f32.mrf.mxu0 }
 0x621   : > { %v1733_v0 = vsub.f32 %v7165_v57, %v1651_v51  ;;  %9773 = vst [vmem:[#allocation32_spill] sm:$0xff] %v7566_v36  ;;  %v2578_v57 = vand.u32 2147483647, %v7448_v45 }
 0x623   : > { %v1842_v43 = vmul.f32 1.442695, %v1733_v0  ;;  %vm2579_vm3 = vcmp.eq.f32.partialorder %v2578_v57, 8.507059e+37 }
 0x624   : > { %v2582_v13 = vsel %vm2579_vm3, %v2581_v59, %v2577_v18 }
 0x625   : > { %5969 = vpow2.f32 %v1842_v43  ;;  %v7591_v52 = vmul.f32 %v6964_v3, %v2582_v13  ;;  %v6093_v43 = vld [vmem:[%s6253_s22 + $0x60] sm:$0xff] }
 0x627   : > { %3401 = vrot.lane.b32.xlu2 %v7566_v36, %s6220_s23  ;;  %9775 = vst [vmem:[#allocation34_spill] sm:$0xff] %v7591_v52  ;;  %v7629_v18 = vpop.xlane.xlu1 %1660 }
 0x628   : > { %3385 = vrot.lane.b32.xlu1 %v7570_v7, %s6220_s23  ;;  %v2065_v28 = vpop.f32.mrf.mxu0 }
 0x629   : > { %v1655_v37 = vpop.xlane.xlu0 %1654  ;;  %v7619_v0 = vmax.f32 %v2065_v28, 1e-20 }
 0x62a   : > { %v1735_v45 = vsub.f32 %v7202_v25, %v1655_v37  ;;  %v1540_v25 = vpop.f32.mrf.mxu3 }
 0x62b   : > { %v7581_v5 = vpop.eup %5969  ;;  %v7627_v11 = vadd.f32 %v1540_v25, %v6604_v62  ;;  %vm2694_vm12 = vweird.f32 %v7619_v0 }
 0x62c   : > { %v1902_v21 = vpack.c.bf16 %v7581_v5, %v7579_v15  ;;  %v1846_v33 = vmul.f32 1.442695, %v1735_v45 }
 0x62e   : > { %2094 = vmatmul.bf16.gmra.mxu0 %v1902_v21  ;;  %5971 = vpow2.f32 %v1846_v33 }
 0x62f   : > { %5973 = vpow2.f32 %v1844_v24  ;;  %v7646_v24 = vmax.f32 %v7504_v12, 1e-20  ;;  %v2535_v12 = vand.u32 2147483648, %v7596_v32 }
 0x630   : > { %3393 = vrot.lane.b32.xlu1 %v7591_v52, %s6220_s23  ;;  %5975 = vrcp.f32 %v7596_v32  ;;  %v2067_v51 = vpop.f32.mrf.mxu0 }
 0x631   : > { %5977 = vrcp.f32 %v7616_v61  ;;  %v7639_v21 = vmax.f32 %v2067_v51, 1e-20  ;;  %v2536_v39 = vor.u32 1.1754944e-38, %v2535_v12  ;;  %v2593_v12 = vand.u32 2147483647, %v7616_v61 }
 0x632   : > { %v1542_v30 = vpop.f32.mrf.mxu3  ;;  %5979 = vrcp.f32 %v7619_v0 }
 0x633   : > { %v7649_v28 = vadd.f32 %v1542_v30, %v6604_v62  ;;  %5981 = vrcp.f32 %v7639_v21  ;;  %vm2594_vm14 = vcmp.eq.f32.partialorder %v2593_v12, 8.507059e+37  ;;  %vm2709_vm2 = vweird.f32 %v7639_v21 }
 0x634   : > { %v7602_v53 = vpop.eup %5971  ;;  %5983 = vrcp.f32 %v7646_v24 }
 0x635   : > { %v7605_v3 = vpop.eup %5973 }
 0x636   : > { %v1903_v55 = vpack.c.bf16 %v7602_v53, %v7605_v3  ;;  %v5976_v26 = vpop.eup %5975 }
 0x637   : > { %v2525_v48 = vmul.f32 %v5976_v26, %v7596_v32  ;;  %v7635_v45 = vpop.eup %5977  ;;  %vm2530_vm4 = vweird.f32 %v5976_v26 }
 0x638   : > { %v2070_v59 = vpop.f32.mrf.mxu0  ;;  %v7641_v63 = vpop.eup %5979  ;;  %v2585_v33 = vmul.f32 %v7635_v45, %v7616_v61  ;;  %vm2531_vm6 = vmor %vm2529_vm5, %vm2530_vm4  ;;  %vm2590_vm8 = vweird.f32 %v7635_v45  ;;  %vm2649_vm5 = vweird.f32 %v7646_v24 }
 0x639   : > { %v2526_v37 = vsub.f32 1.0, %v2525_v48  ;;  %v2690_v25 = vmul.f32 %v7641_v63, %v7619_v0  ;;  %v7657_v48 = vmax.f32 %v2070_v59, 1e-20  ;;  %vm2695_vm10 = vweird.f32 %v7641_v63  ;;  %vm2591_vm11 = vmor %vm2589_vm9, %vm2590_vm8 }
 0x63a   : > { %1666 = vmax.xlane.f32.xlu0 %v7600_v1  ;;  %v7637_v13 = vpop.f32.mrf.mxu3  ;;  %v2586_v51 = vsub.f32 1.0, %v2585_v33  ;;  %vm2696_vm13 = vmor %vm2694_vm12, %vm2695_vm10 }
 0x63b   : > { %v2527_v44 = vmul.f32 %v5976_v26, %v2526_v37  ;;  %5985 = vrcp.f32 %v7657_v48  ;;  %vm2724_vm10 = vweird.f32 %v7657_v48 }
 0x63c   : > { %v3370_v2 = vpop.permute.xlu0 %3369  ;;  %v2587_v59 = vmul.f32 %v7635_v45, %v2586_v51 }
 0x63d   : > { %v3549_v31 = vmul.f32 %v6093_v43, %v3370_v2  ;;  %v6095_v43 = vld [vmem:[%s6253_s22 + $0x78] sm:$0xff] }
 0x63e   : > { %2099 = vmatmul.bf16.gmra.mxu0 %v1903_v55  ;;  %v2528_v55 = vadd.f32 %v5976_v26, %v2527_v44  ;;  %v6096_v44 = vld [vmem:[%s6253_s22 + $0x70] sm:$0xff] }
 0x63f   : > { %v3376_v2 = vpop.permute.xlu1 %3375 }
 0x640   : > { %v7659_v30 = vpop.f32.mrf.mxu0  ;;  %v2532_v36 = vsel %vm2531_vm6, %v5976_v26, %v2528_v55  ;;  %v2588_v55 = vadd.f32 %v7635_v45, %v2587_v59 }
 0x642   : > { %1670 = vmax.xlane.f32.xlu0 %v7613_v60  ;;  %v1547_v37 = vpop.f32.mrf.mxu3 }
 0x644   : > { %v3372_v34 = vpop.permute.xlu0 %3371 }
 0x645   : > { %v3550_v22 = vmul.f32 %v6094_v50, %v3372_v34  ;;  %v3374_v34 = vpop.permute.xlu2 %3373  ;;  %v2533_v50 = vand.u32 2147483647, %v7596_v32 }
 0x646   : > { %v3551_v33 = vmul.f32 %v6096_v44, %v3374_v34 }
 0x647   : > { %v3607_v57 = vpack.c.bf16 %v3550_v22, %v3549_v31  ;;  %v3552_v31 = vmul.f32 %v6095_v43, %v3376_v2  ;;  %v2691_v22 = vsub.f32 1.0, %v2690_v25  ;;  %vm2534_vm7 = vcmp.eq.f32.partialorder %v2533_v50, 8.507059e+37 }
 0x648   : > { %v7674_v25 = vadd.f32 %v1547_v37, %v6604_v62  ;;  %v2537_v43 = vsel %vm2534_vm7, %v2536_v39, %v2532_v36  ;;  %v7687_v39 = vpop.f32.mrf.mxu0  ;;  %v2698_v37 = vand.u32 2147483647, %v7619_v0 }
 0x649   : > { %5486 = vmatmul.msk.bf16.gmra.mxu1 %vm298_vm0, %v3607_v57  ;;  %5518 = vmatmul.msk.bf16.gmra.mxu2 %vm298_vm0, %v3607_v57  ;;  %v3608_v52 = vpack.c.bf16 %v3552_v31, %v3551_v33  ;;  %v2692_v58 = vmul.f32 %v7641_v63, %v2691_v22  ;;  %v7690_v36 = vmul.f32 %v6887_v46, %v2537_v43  ;;  %v2700_v22 = vand.u32 2147483648, %v7619_v0 }
 0x64a   : > { %5550 = vmatmul.msk.bf16.gmra.mxu3 %vm298_vm0, %v3607_v57  ;;  %1672 = vmax.xlane.f32.xlu0 %v7627_v11  ;;  %v7664_v57 = vpop.eup %5981  ;;  %v2592_v46 = vsel %vm2591_vm11, %v7635_v45, %v2588_v55  ;;  %vm2699_vm15 = vcmp.eq.f32.partialorder %v2698_v37, 8.507059e+37 }
 0x64b   : > { %v7669_v2 = vpop.eup %5983  ;;  %v2705_v32 = vmul.f32 %v7664_v57, %v7639_v21  ;;  %9776 = vst [vmem:[#allocation35_spill] sm:$0xff] %v7690_v36  ;;  %v2693_v31 = vadd.f32 %v7641_v63, %v2692_v58  ;;  %v2701_v43 = vor.u32 1.1754944e-38, %v2700_v22  ;;  %vm2710_vm1 = vweird.f32 %v7664_v57 }
 0x64c   : > { %v2645_v51 = vmul.f32 %v7669_v2, %v7646_v24  ;;  %v7697_v50 = vpop.eup %5985  ;;  %vm7727_vm3 = vmor %vm2709_vm2, %vm2710_vm1  ;;  %vm2650_vm4 = vweird.f32 %v7669_v2 }
 0x64d   : > { %v2706_v34 = vsub.f32 1.0, %v2705_v32  ;;  %v2720_v58 = vmul.f32 %v7697_v50, %v7657_v48  ;;  %v2697_v33 = vsel %vm2696_vm13, %v7641_v63, %v2693_v31  ;;  %v2715_v63 = vand.u32 2147483648, %v7639_v21  ;;  %v5769_v31 = vld [vmem:[#allocation2 + $0x3e8] sm:$0xf0]  ;;  %vm2651_vm7 = vmor %vm2649_vm5, %vm2650_vm4 }
 0x64e   : > { %v2646_v44 = vsub.f32 1.0, %v2645_v51  ;;  %v2702_v45 = vsel %vm2699_vm15, %v2701_v43, %v2697_v33  ;;  %v5768_v33 = vld [vmem:[#allocation2 + $0x3e0] sm:$0xf0]  ;;  %v2653_v43 = vand.u32 2147483647, %v7646_v24  ;;  %vm2725_vm8 = vweird.f32 %v7697_v50 }
 0x64f   : > { %v2707_v59 = vmul.f32 %v7664_v57, %v2706_v34  ;;  %v2721_v0 = vsub.f32 1.0, %v2720_v58  ;;  %v5622_v34 = vld [vmem:[#allocation2 + $0x3e0] sm:$0xf]  ;;  %v7723_v22 = vmul.f32 %v7032_v16, %v2702_v45  ;;  %v5614_v58 = vld [vmem:[#allocation2 + $0x3d8] sm:$0xf]  ;;  %vm2726_vm11 = vmor %vm2724_vm10, %vm2725_vm8 }
 0x650   : > { %1674 = vmax.xlane.f32.xlu2 %v7649_v28  ;;  %v2647_v55 = vmul.f32 %v7669_v2, %v2646_v44  ;;  %v7717_v12 = vpop.f32.mrf.mxu0  ;;  %v5615_v45 = vor.u32 %v5768_v33, %v5614_v58  ;;  %vm2654_vm9 = vcmp.eq.f32.partialorder %v2653_v43, 8.507059e+37 }
 0x651   : > { %9778 = vst [vmem:[#allocation37_spill] sm:$0xff] %v7723_v22 }
 0x652   : > { %v2648_v44 = vadd.f32 %v7669_v2, %v2647_v55  ;;  %v5616_v55 = vld [vmem:[#allocation2 + $0x3e4] sm:$0xf0]  ;;  %4480 = vmatpush.bf16.msra.mxu0 %v5615_v45 }
 0x659   : > { %5487 = vmatmul.msk.bf16.gmra.mxu1 %vm298_vm0, %v3608_v52  ;;  %5519 = vmatmul.msk.bf16.gmra.mxu2 %vm298_vm0, %v3608_v52 }
 0x65a   : > { %5551 = vmatmul.msk.bf16.gmra.mxu3 %vm298_vm0, %v3608_v52  ;;  %v7680_v26 = vpop.xlane.xlu2 %1662  ;;  %1678 = vmax.xlane.f32.xlu1 %v7674_v25  ;;  %v2595_v52 = vand.u32 2147483648, %v7616_v61 }
 0x65b   : > { %v1739_v45 = vsub.f32 %v7318_v54, %v7680_v26 }
 0x65c   : > { %v2596_v61 = vor.u32 1.1754944e-38, %v2595_v52  ;;  %v2708_v52 = vadd.f32 %v7664_v57, %v2707_v59  ;;  %v5767_v59 = vld [vmem:[#allocation2 + $0x3dc] sm:$0xf] }
 0x65e   : > { %3387 = vrot.lane.b32.xlu0 %v7690_v36, %s6220_s23  ;;  %v2597_v32 = vsel %vm2594_vm14, %v2596_v61, %v2592_v46  ;;  %v5623_v46 = vor.u32 %v5769_v31, %v5622_v34  ;;  %v2655_v61 = vand.u32 2147483648, %v7646_v24  ;;  %v2712_v16 = vsel %vm7727_vm3, %v7664_v57, %v2708_v52  ;;  %v7751_v24 = vpop.f32.mrf.mxu0 }
 0x65f   : > { %v7713_v51 = vmul.f32 %v6966_v20, %v2597_v32  ;;  %v2713_v20 = vand.u32 2147483647, %v7639_v21  ;;  %v2722_v21 = vmul.f32 %v7697_v50, %v2721_v0  ;;  %v2716_v32 = vor.u32 1.1754944e-38, %v2715_v63 }
 0x660   : > { %4818 = vmatpush.bf16.msra.mxu2 %v5623_v46  ;;  %v5619_v57 = vor.u32 %v5767_v59, %v5616_v55  ;;  %v1736_v0 = vsub.f32 %v7161_v42, %v7610_v19  ;;  %v2652_v31 = vsel %vm2651_vm7, %v7669_v2, %v2648_v44  ;;  %v2656_v63 = vor.u32 1.1754944e-38, %v2655_v61 }
 0x661   : > { %9777 = vst [vmem:[#allocation36_spill] sm:$0xff] %v7713_v51  ;;  %vm2714_vm6 = vcmp.eq.f32.partialorder %v2713_v20, 8.507059e+37  ;;  %v2723_v46 = vadd.f32 %v7697_v50, %v2722_v21  ;;  %v2730_v20 = vand.u32 2147483648, %v7657_v48  ;;  %v2728_v42 = vand.u32 2147483647, %v7657_v48 }
 0x662   : > { %v7709_v7 = vpop.permute.xlu2 %3381  ;;  %v2717_v52 = vsel %vm2714_vm6, %v2716_v32, %v2712_v16  ;;  %4649 = vmatpush.bf16.msra.mxu1 %v5619_v57  ;;  %v2657_v58 = vsel %vm2654_vm9, %v2656_v63, %v2652_v31  ;;  %v1848_v19 = vmul.f32 1.442695, %v1736_v0  ;;  %v1738_v0 = vsub.f32 %v7189_v49, %v7629_v18  ;;  %v7790_v31 = vpop.f32.mrf.mxu3  ;;  %v6097_v49 = vld [vmem:[%s6253_s22 + $0x80] sm:$0xff] }
 0x663   : > { %v7755_v37 = vmul.f32 %v7035_v4, %v2717_v52  ;;  %v2727_v61 = vsel %vm2726_vm11, %v7697_v50, %v2723_v46  ;;  %v7764_v16 = vmul.f32 %v7005_v41, %v2657_v58  ;;  %v2731_v4 = vor.u32 1.1754944e-38, %v2730_v20  ;;  %v3378_v50 = vpop.permute.xlu1 %3377 }
 0x664   : > { %vm2729_vm12 = vcmp.eq.f32.partialorder %v2728_v42, 8.507059e+37  ;;  %5987 = vpow2.f32 %v1848_v19  ;;  %v7788_v52 = vmax.f32 %v7560_v9, 1e-20  ;;  %v1854_v63 = vmul.f32 1.442695, %v1739_v45  ;;  %v6098_v42 = vld [vmem:[%s6253_s22 + $0xd0] sm:$0xff] }
 0x665   : > { %9781 = vst [vmem:[#allocation38_spill] sm:$0xff] %v7755_v37  ;;  %v2732_v48 = vsel %vm2729_vm12, %v2731_v4, %v2727_v61  ;;  %v1852_v46 = vmul.f32 1.442695, %v1738_v0  ;;  %v3553_v18 = vmul.f32 %v6097_v49, %v3378_v50  ;;  %v6099_v19 = vld [vmem:[%s6253_s22 + $0x88] sm:$0xff] }
 0x666   : > { %3395 = vrot.lane.b32.xlu0 %v7713_v51, %s6220_s23  ;;  %9782 = vst [vmem:[#allocation39_spill] sm:$0xff] %v7764_v16  ;;  %v7773_v32 = vpop.f32.mrf.mxu0  ;;  %vm2664_vm14 = vweird.f32 %v7788_v52 }
 0x668   : > { %3409 = vrot.lane.b32.xlu2 %v7723_v22, %s6220_s23 }
 0x66a   : > { %v7742_v34 = vpop.permute.xlu2 %3389  ;;  %v7777_v41 = vpop.eup %5987 }
 0x66b   : > { %v1552_v45 = vpop.f32.mrf.mxu3 }
 0x66e   : > { %v7795_v54 = vpop.f32.mrf.mxu0 }
 0x66f   : > { %v1659_v2 = vpop.xlane.xlu0 %1658 }
 0x670   : > { %v1737_v44 = vsub.f32 %v7355_v14, %v1659_v2  ;;  %3411 = vrot.lane.b32.xlu2 %v7755_v37, %s6220_s23  ;;  %v9783_v14 = vld [vmem:[#allocation12_spill] sm:$0xff] }
 0x671   : > { %v7771_v59 = vmul.f32 %v9783_v14, %v2732_v48 }
 0x672   : > { %v1850_v21 = vmul.f32 1.442695, %v1737_v44  ;;  %v7766_v33 = vpop.permute.xlu2 %3391  ;;  %v7792_v20 = vpop.xlane.xlu1 %1664  ;;  %v6100_v44 = vld [vmem:[%s6253_s22 + $0xd8] sm:$0xff] }
 0x673   : > { %3403 = vrot.lane.b32.xlu1 %v7764_v16, %s6220_s23  ;;  %9784 = vst [vmem:[#allocation12_spill] sm:$0xff] %v7771_v59  ;;  %v7825_v49 = vpop.f32.mrf.mxu3 }
 0x674   : > { %5989 = vpow2.f32 %v1850_v21 }
 0x675   : > { %5991 = vrcp.f32 %v7788_v52 }
 0x676   : > { %5993 = vpow2.f32 %v1854_v63  ;;  %v7815_v63 = vpop.f32.mrf.mxu0 }
 0x677   : > { %5995 = vpow2.f32 %v1852_v46  ;;  %v7819_v46 = vadd.f32 %v7637_v13, %v6604_v62 }
 0x678   : > { %3413 = vrot.lane.b32.xlu2 %v7771_v59, %s6220_s23  ;;  %v9786_v59 = vld [vmem:[#allocation9_spill] sm:$0xff] }
 0x67a   : > { %v7779_v43 = vpop.eup %5989  ;;  %v3398_v55 = vpop.permute.xlu2 %3397 }
 0x67b   : > { %v1904_v57 = vpack.c.bf16 %v7779_v43, %v7777_v41  ;;  %v3563_v9 = vmul.f32 %v6098_v42, %v3398_v55  ;;  %v5992_v48 = vpop.eup %5991  ;;  %v7810_v55 = vpop.xlane.xlu1 %1668  ;;  %v6101_v42 = vld [vmem:[%s6253_s22 + $0x90] sm:$0xff] }
 0x67c   : > { %v7805_v14 = vpop.eup %5993  ;;  %v2660_v0 = vmul.f32 %v5992_v48, %v7788_v52  ;;  %vm2665_vm13 = vweird.f32 %v5992_v48 }
 0x67d   : > { %2104 = vmatmul.bf16.gmra.mxu0 %v1904_v57  ;;  %v7808_v50 = vpop.eup %5995  ;;  %vm2666_vm15 = vmor %vm2664_vm14, %vm2665_vm13 }
 0x67e   : > { %v1905_v57 = vpack.c.bf16 %v7805_v14, %v7808_v50 }
 0x682   : > { %v3380_v26 = vpop.permute.xlu0 %3379  ;;  %v3400_v58 = vpop.permute.xlu2 %3399 }
 0x683   : > { %v3554_v2 = vmul.f32 %v6099_v19, %v3380_v26  ;;  %v3564_v61 = vmul.f32 %v6100_v44, %v3400_v58  ;;  %v2661_v26 = vsub.f32 1.0, %v2660_v0  ;;  %v7823_v58 = vmax.f32 %v7583_v23, 1e-20  ;;  %v6102_v19 = vld [vmem:[%s6253_s22 + $0x98] sm:$0xff] }
 0x684   : > { %v7840_v0 = vadd.f32 %v1552_v45, %v6604_v62 }
 0x685   : > { %v3609_v4 = vpack.c.bf16 %v3554_v2, %v3553_v18  ;;  %v7801_v21 = vpack.c.bf16 %v3564_v61, %v3563_v9  ;;  %v3555_v9 = vmul.f32 %v6101_v42, %v7709_v7  ;;  %v2662_v61 = vmul.f32 %v5992_v48, %v2661_v26  ;;  %v1557_v26 = vpop.f32.mrf.mxu3 }
 0x686   : > { %5997 = vrcp.f32 %v7823_v58  ;;  %v2668_v7 = vand.u32 2147483647, %v7788_v52  ;;  %vm2679_vm3 = vweird.f32 %v7823_v58 }
 0x687   : > { %5488 = vmatmul.msk.bf16.gmra.mxu1 %vm298_vm0, %v3609_v4  ;;  %5520 = vmatmul.msk.bf16.gmra.mxu2 %vm298_vm0, %v3609_v4  ;;  %v2663_v23 = vadd.f32 %v5992_v48, %v2662_v61  ;;  %v7844_v61 = vpop.f32.mrf.mxu1 }
 0x688   : > { %5552 = vmatmul.msk.bf16.gmra.mxu3 %vm298_vm0, %v3609_v4  ;;  %v2670_v4 = vand.u32 2147483648, %v7788_v52  ;;  %9785 = vst [vmem:[#allocation40_spill] sm:$0xff] %v7844_v61  ;;  %vm2669_vm1 = vcmp.eq.f32.partialorder %v2668_v7, 8.507059e+37  ;;  %v7847_v52 = vadd.f32 %v1557_v26, %v6604_v62  ;;  %v1740_v26 = vsub.f32 %v7368_v17, %v7792_v20 }
 0x689   : > { %v2667_v42 = vsel %vm2666_vm15, %v5992_v48, %v2663_v23  ;;  %v7853_v48 = vpop.f32.mrf.mxu2 }
 0x68a   : > { %9788 = vst [vmem:[#allocation41_spill] sm:$0xff] %v7853_v48  ;;  %v1856_v48 = vmul.f32 1.442695, %v1740_v26 }
 0x68d   : > { %2109 = vmatmul.bf16.gmra.mxu0 %v1905_v57  ;;  %v5998_v57 = vpop.eup %5997 }
 0x68e   : > { %vm2680_vm2 = vweird.f32 %v5998_v57 }
 0x68f   : > { %v7857_v7 = vpop.f32.mrf.mxu1  ;;  %vm2681_vm4 = vmor %vm2679_vm3, %vm2680_vm2 }
 0x690   : > { %1676 = vmax.xlane.f32.xlu0 %v7819_v46  ;;  %9789 = vst [vmem:[#allocation42_spill] sm:$0xff] %v7857_v7 }
 0x692   : > { %v3384_v18 = vpop.permute.xlu1 %3383 }
 0x693   : > { %v3556_v2 = vmul.f32 %v6102_v19, %v3384_v18  ;;  %v2671_v19 = vor.u32 1.1754944e-38, %v2670_v4 }
 0x694   : > { %v7830_v44 = vpop.f32.mrf.mxu0 }
 0x695   : > { %v3610_v13 = vpack.c.bf16 %v3556_v2, %v3555_v9  ;;  %v2675_v2 = vmul.f32 %v5998_v57, %v7823_v58 }
 0x697   : > { %5489 = vmatmul.msk.bf16.gmra.mxu1 %vm298_vm0, %v3610_v13  ;;  %5521 = vmatmul.msk.bf16.gmra.mxu2 %vm298_vm0, %v3610_v13  ;;  %v2676_v45 = vsub.f32 1.0, %v2675_v2  ;;  %v2683_v2 = vand.u32 2147483647, %v7823_v58 }
 0x698   : > { %5553 = vmatmul.msk.bf16.gmra.mxu3 %vm298_vm0, %v3610_v13  ;;  %v2672_v13 = vsel %vm2669_vm1, %v2671_v19, %v2667_v42 }
 0x699   : > { %v7851_v22 = vmul.f32 %v9786_v59, %v2672_v13  ;;  %v2685_v59 = vand.u32 2147483648, %v7823_v58  ;;  %v7864_v13 = vpop.f32.mrf.mxu2  ;;  %vm2684_vm7 = vcmp.eq.f32.partialorder %v2683_v2, 8.507059e+37  ;;  %v7893_v2 = vmax.f32 %v7659_v30, 1e-20 }
 0x69a   : > { %9790 = vst [vmem:[#allocation43_spill] sm:$0xff] %v7864_v13 }
 0x69b   : > { %9787 = vst [vmem:[#allocation9_spill] sm:$0xff] %v7851_v22  ;;  %v2686_v20 = vor.u32 1.1754944e-38, %v2685_v59  ;;  %v1742_v59 = vsub.f32 %v7406_v47, %v7810_v55  ;;  %v7905_v47 = vmax.f32 %v7717_v12, 1e-20  ;;  %vm2739_vm11 = vweird.f32 %v7893_v2 }
 0x69c   : > { %v2092_v18 = vpop.f32.mrf.mxu0 }
 0x69d   : > { %v2188_v9 = vmax.f32 %v2092_v18, 1e-20  ;;  %1682 = vmax.xlane.f32.xlu1 %v7840_v0  ;;  %v2677_v18 = vmul.f32 %v5998_v57, %v2676_v45  ;;  %vm2769_vm15 = vweird.f32 %v7905_v47 }
 0x69f   : > { %5999 = vrcp.f32 %v2188_v9  ;;  %v2678_v42 = vadd.f32 %v5998_v57, %v2677_v18  ;;  %v2865_v17 = vand.u32 2147483648, %v2188_v9  ;;  %vm2859_vm6 = vweird.f32 %v2188_v9  ;;  %v7867_v18 = vpop.f32.mrf.mxu1 }
 0x6a0   : > { %9791 = vst [vmem:[#allocation44_spill] sm:$0xff] %v7867_v18  ;;  %6001 = vpow2.f32 %v1856_v48  ;;  %v5764_v18 = vld [vmem:[#allocation2 + $0x3c4] sm:$0xf] }
 0x6a1   : > { %1686 = vmax.xlane.f32.xlu2 %v7847_v52  ;;  %v2682_v16 = vsel %vm2681_vm4, %v5998_v57, %v2678_v42  ;;  %v2866_v26 = vor.u32 1.1754944e-38, %v2865_v17  ;;  %v5607_v6 = vor.u32 %v5764_v18, %v5604_v27 }
 0x6a2   : > { %v2687_v58 = vsel %vm2684_vm7, %v2686_v20, %v2682_v16 }
 0x6a3   : > { %4650 = vmatpush.bf16.msra.mxu1 %v5607_v6 }
 0x6a4   : > { %3405 = vrot.lane.b32.xlu0 %v7851_v22, %s6220_s23 }
 0x6a5   : > { %v6000_v23 = vpop.eup %5999 }
 0x6a6   : > { %v2855_v4 = vmul.f32 %v6000_v23, %v2188_v9  ;;  %vm2860_vm5 = vweird.f32 %v6000_v23 }
 0x6a7   : > { %vm2861_vm8 = vmor %vm2859_vm6, %vm2860_vm5 }
 0x6a8   : > { %v2856_v37 = vsub.f32 1.0, %v2855_v4 }
 0x6aa   : > { %v2857_v19 = vmul.f32 %v6000_v23, %v2856_v37  ;;  %v2863_v37 = vand.u32 2147483647, %v2188_v9  ;;  %v7876_v9 = vpop.eup %6001 }
 0x6ac   : > { %v2858_v45 = vadd.f32 %v6000_v23, %v2857_v19  ;;  %vm2864_vm9 = vcmp.eq.f32.partialorder %v2863_v37, 8.507059e+37  ;;  %v9792_v19 = vld [vmem:[#allocation10_spill] sm:$0xff] }
 0x6ad   : > { %v1667_v22 = vpop.xlane.xlu0 %1666  ;;  %v7870_v36 = vmul.f32 %v9792_v19, %v2687_v58 }
 0x6ae   : > { %v1741_v4 = vsub.f32 %v7600_v1, %v1667_v22  ;;  %v2862_v13 = vsel %vm2861_vm8, %v6000_v23, %v2858_v45  ;;  %v7872_v22 = vpop.f32.mrf.mxu2  ;;  %v7888_v23 = vpop.f32.mrf.mxu1  ;;  %v1860_v45 = vmul.f32 1.442695, %v1742_v59  ;;  %v7927_v59 = vmax.f32 %v7751_v24, 1e-20 }
 0x6af   : > { %9793 = vst [vmem:[#allocation10_spill] sm:$0xff] %v7870_v36  ;;  %v2867_v1 = vsel %vm2864_vm9, %v2866_v26, %v2862_v13  ;;  %v7895_v13 = vpop.permute.xlu2 %3401 }
 0x6b0   : > { %v1858_v51 = vmul.f32 1.442695, %v1741_v4  ;;  %9794 = vst [vmem:[#allocation45_spill] sm:$0xff] %v7872_v22  ;;  %v7879_v42 = vmul.f32 %v7480_v40, %v2867_v1  ;;  %vm2784_vm5 = vweird.f32 %v7927_v59 }
 0x6b1   : > { %9796 = vst [vmem:[#allocation47_spill] sm:$0xff] %v7888_v23  ;;  %v5765_v23 = vld [vmem:[#allocation2 + $0x3c8] sm:$0xf0] }
 0x6b2   : > { %6003 = vpow2.f32 %v1858_v51  ;;  %9795 = vst [vmem:[#allocation46_spill] sm:$0xff] %v7879_v42 }
 0x6b3   : > { %6005 = vrcp.f32 %v7893_v2 }
 0x6b5   : > { %v1671_v57 = vpop.xlane.xlu0 %1670 }
 0x6b6   : > { %3407 = vrot.lane.b32.xlu1 %v7870_v36, %s6220_s23  ;;  %v1743_v51 = vsub.f32 %v7613_v60, %v1671_v57  ;;  %v7898_v60 = vpop.f32.mrf.mxu2  ;;  %v7900_v4 = vpop.f32.mrf.mxu1  ;;  %v7922_v57 = vadd.f32 %v7790_v31, %v6604_v62 }
 0x6b7   : > { %9797 = vst [vmem:[#allocation48_spill] sm:$0xff] %v7898_v60 }
 0x6b8   : > { %v7881_v16 = vpop.eup %6003  ;;  %v1862_v40 = vmul.f32 1.442695, %v1743_v51  ;;  %9798 = vst [vmem:[#allocation49_spill] sm:$0xff] %v7900_v4 }
 0x6b9   : > { %3431 = vrot.lane.b32.xlu2 %v7879_v42, %s6220_s23  ;;  %v1906_v48 = vpack.c.bf16 %v7881_v16, %v7876_v9  ;;  %v7902_v17 = vpop.eup %6005 }
 0x6ba   : > { %6007 = vpow2.f32 %v1862_v40  ;;  %v2735_v19 = vmul.f32 %v7902_v17, %v7893_v2  ;;  %v3386_v40 = vpop.permute.xlu1 %3385  ;;  %vm2740_vm10 = vweird.f32 %v7902_v17 }
 0x6bb   : > { %2114 = vmatmul.bf16.gmra.mxu0 %v1906_v48  ;;  %6009 = vpow2.f32 %v1860_v45  ;;  %vm7967_vm12 = vmor %vm2739_vm11, %vm2740_vm10 }
 0x6bc   : > { %6011 = vrcp.f32 %v7905_v47  ;;  %v2736_v48 = vsub.f32 1.0, %v2735_v19  ;;  %v6104_v19 = vld [vmem:[%s6253_s22 + $0xa8] sm:$0xff] }
 0x6bd   : > { %v1673_v37 = vpop.xlane.xlu0 %1672 }
 0x6be   : > { %v7909_v20 = vpop.f32.mrf.mxu2  ;;  %v1744_v12 = vsub.f32 %v7627_v11, %v1673_v37  ;;  %v7924_v51 = vpop.f32.mrf.mxu1  ;;  %v7933_v11 = vmax.f32 %v7687_v39, 1e-20 }
 0x6bf   : > { %9800 = vst [vmem:[#allocation51_spill] sm:$0xff] %v7909_v20  ;;  %v7935_v37 = vpop.f32.mrf.mxu0 }
 0x6c0   : > { %v7907_v55 = vpop.eup %6007  ;;  %9801 = vst [vmem:[#allocation52_spill] sm:$0xff] %v7924_v51  ;;  %v1864_v45 = vmul.f32 1.442695, %v1744_v12  ;;  %v2737_v12 = vmul.f32 %v7902_v17, %v2736_v48  ;;  %vm2754_vm7 = vweird.f32 %v7933_v11 }
 0x6c1   : > { %9799 = vst [vmem:[#allocation50_spill] sm:$0xff] %v7907_v55  ;;  %v7911_v58 = vpop.eup %6009 }
 0x6c2   : > { %v1907_v1 = vpack.c.bf16 %v7907_v55, %v7911_v58  ;;  %v2738_v48 = vadd.f32 %v7902_v17, %v2737_v12 }
 0x6c3   : > { %v1675_v30 = vpop.xlane.xlu2 %1674 }
 0x6c4   : > { %v1745_v26 = vsub.f32 %v7649_v28, %v1675_v30  ;;  %v7930_v30 = vpop.eup %6011 }
 0x6c5   : > { %v2765_v60 = vmul.f32 %v7930_v30, %v7905_v47  ;;  %vm2770_vm14 = vweird.f32 %v7930_v30 }
 0x6c6   : > { %v1866_v28 = vmul.f32 1.442695, %v1745_v26  ;;  %v6103_v26 = vld [vmem:[%s6253_s22 + $0xa0] sm:$0xff]  ;;  %v7946_v22 = vpop.f32.mrf.mxu1  ;;  %vm8024_vm1 = vmor %vm2769_vm15, %vm2770_vm14 }
 0x6c7   : > { %v3557_v24 = vmul.f32 %v6103_v26, %v3386_v40  ;;  %9803 = vst [vmem:[#allocation54_spill] sm:$0xff] %v7946_v22 }
 0x6c8   : > { %6013 = vpow2.f32 %v1866_v28  ;;  %v7948_v28 = vpop.f32.mrf.mxu3 }
 0x6c9   : > { %6015 = vrcp.f32 %v7927_v59  ;;  %9804 = vst [vmem:[#allocation55_spill] sm:$0xff] %v7948_v28  ;;  %v7983_v28 = vpop.f32.mrf.mxu0 }
 0x6ca   : > { %6017 = vpow2.f32 %v1864_v45  ;;  %v2766_v45 = vsub.f32 1.0, %v2765_v60 }
 0x6cb   : > { %2119 = vmatmul.bf16.gmra.mxu0 %v1907_v1  ;;  %v7937_v1 = vpop.f32.mrf.mxu2  ;;  %6019 = vrcp.f32 %v7933_v11 }
 0x6cc   : > { %9802 = vst [vmem:[#allocation53_spill] sm:$0xff] %v7937_v1  ;;  %v7951_v1 = vmax.f32 %v7773_v32, 1e-20  ;;  %v2743_v32 = vand.u32 2147483647, %v7893_v2  ;;  %v2767_v36 = vmul.f32 %v7930_v30, %v2766_v45 }
 0x6ce   : > { %1680 = vmax.xlane.f32.xlu0 %v7922_v57  ;;  %v7957_v40 = vpop.eup %6013  ;;  %6021 = vrcp.f32 %v7951_v1  ;;  %vm2744_vm13 = vcmp.eq.f32.partialorder %v2743_v32, 8.507059e+37  ;;  %v7998_v51 = vpop.f32.mrf.mxu1  ;;  %v2803_v7 = vand.u32 2147483647, %v7951_v1 }
 0x6cf   : > { %9805 = vst [vmem:[#allocation56_spill] sm:$0xff] %v7957_v40 }
 0x6d0   : > { %v3388_v31 = vpop.permute.xlu0 %3387  ;;  %9810 = vst [vmem:[#allocation59_spill] sm:$0xff] %v7998_v51  ;;  %v8004_v32 = vpop.f32.mrf.mxu3  ;;  %v8020_v51 = vmax.f32 %v7830_v44, 1e-20  ;;  %vm2804_vm14 = vcmp.eq.f32.partialorder %v2803_v7, 8.507059e+37 }
 0x6d1   : > { %v3558_v20 = vmul.f32 %v6104_v19, %v3388_v31  ;;  %v7961_v31 = vpop.eup %6015  ;;  %9811 = vst [vmem:[#allocation60_spill] sm:$0xff] %v8004_v32 }
 0x6d2   : > { %v7965_v26 = vpop.eup %6017  ;;  %vm2785_vm3 = vweird.f32 %v7961_v31 }
 0x6d3   : > { %v3611_v39 = vpack.c.bf16 %v3558_v20, %v3557_v24  ;;  %v2745_v20 = vand.u32 2147483648, %v7893_v2  ;;  %9806 = vst [vmem:[#allocation57_spill] sm:$0xff] %v7965_v26  ;;  %v7971_v19 = vpop.eup %6019  ;;  %v7973_v12 = vpop.f32.mrf.mxu2  ;;  %v1908_v60 = vpack.c.bf16 %v7957_v40, %v7965_v26  ;;  %v2780_v2 = vmul.f32 %v7961_v31, %v7927_v59  ;;  %vm8072_vm6 = vmor %vm2784_vm5, %vm2785_vm3  ;;  %v6108_v26 = vld [vmem:[%s6253_s22 + $0xc0] sm:$0xff] }
 0x6d4   : > { %9809 = vst [vmem:[#allocation58_spill] sm:$0xff] %v7973_v12  ;;  %v7987_v12 = vmax.f32 %v7795_v54, 1e-20  ;;  %v2750_v22 = vmul.f32 %v7971_v19, %v7933_v11  ;;  %v7992_v24 = vmax.f32 %v7815_v63, 1e-20  ;;  %v2768_v54 = vadd.f32 %v7930_v30, %v2767_v36  ;;  %v8002_v45 = vpop.eup %6021  ;;  %v6105_v63 = vld [vmem:[%s6253_s22 + $0xb8] sm:$0xff] }
 0x6d5   : > { %5490 = vmatmul.msk.bf16.gmra.mxu1 %vm298_vm0, %v3611_v39  ;;  %5522 = vmatmul.msk.bf16.gmra.mxu2 %vm298_vm0, %v3611_v39  ;;  %v2746_v42 = vor.u32 1.1754944e-38, %v2745_v20  ;;  %v2781_v20 = vsub.f32 1.0, %v2780_v2  ;;  %v2773_v36 = vand.u32 2147483647, %v7905_v47  ;;  %v6106_v2 = vld [vmem:[%s6253_s22 + $0xb0] sm:$0xff]  ;;  %vm2755_vm4 = vweird.f32 %v7971_v19 }
 0x6d6   : > { %5554 = vmatmul.msk.bf16.gmra.mxu3 %vm298_vm0, %v3611_v39  ;;  %v2742_v39 = vsel %vm7967_vm12, %v7902_v17, %v2738_v48  ;;  %v7996_v48 = vadd.f32 %v7825_v49, %v6604_v62  ;;  %6023 = vrcp.f32 %v7987_v12  ;;  %v2775_v49 = vand.u32 2147483648, %v7905_v47  ;;  %vm8094_vm8 = vmor %vm2754_vm7, %vm2755_vm4 }
 0x6d7   : > { %v2747_v17 = vsel %vm2744_vm13, %v2746_v42, %v2742_v39  ;;  %v3560_v42 = vmul.f32 %v6105_v63, %v7766_v33  ;;  %v2751_v39 = vsub.f32 1.0, %v2750_v22  ;;  %6025 = vrcp.f32 %v7992_v24 }
 0x6d8   : > { %v3559_v32 = vmul.f32 %v6106_v2, %v7742_v34  ;;  %v2795_v22 = vmul.f32 %v8002_v45, %v7951_v1  ;;  %v2772_v47 = vsel %vm8024_vm1, %v7930_v30, %v2768_v54  ;;  %v2782_v34 = vmul.f32 %v7961_v31, %v2781_v20 }
 0x6d9   : > { %v2776_v63 = vor.u32 1.1754944e-38, %v2775_v49  ;;  %vm2774_vm2 = vcmp.eq.f32.partialorder %v2773_v36, 8.507059e+37  ;;  %v2752_v2 = vmul.f32 %v7971_v19, %v2751_v39  ;;  %6027 = vrcp.f32 %v8020_v51  ;;  %v8054_v49 = vpop.f32.mrf.mxu3 }
 0x6da   : > { %v2796_v54 = vsub.f32 1.0, %v2795_v22  ;;  %9818 = vst [vmem:[#allocation63_spill] sm:$0xff] %v8054_v49  ;;  %v2758_v39 = vand.u32 2147483647, %v7933_v11  ;;  %v2788_v33 = vand.u32 2147483647, %v7927_v59  ;;  %vm2800_vm11 = vweird.f32 %v8002_v45 }
 0x6db   : > { %2124 = vmatmul.bf16.gmra.mxu0 %v1908_v60  ;;  %v9812_v60 = vld [vmem:[#allocation13_spill] sm:$0xff]  ;;  %v8036_v44 = vpop.f32.mrf.mxu2  ;;  %v2777_v30 = vsel %vm2774_vm2, %v2776_v63, %v2772_v47  ;;  %v8065_v22 = vadd.f32 %v7971_v19, %v2752_v2  ;;  %vm2799_vm12 = vweird.f32 %v7951_v1  ;;  %v2833_v7 = vand.u32 2147483647, %v7992_v24 }
 0x6dc   : > { %v8010_v62 = vmul.f32 %v9812_v60, %v2747_v17  ;;  %9816 = vst [vmem:[#allocation61_spill] sm:$0xff] %v8036_v44  ;;  %v3612_v17 = vpack.c.bf16 %v3560_v42, %v3559_v32  ;;  %v2100_v60 = vpop.f32.mrf.mxu0  ;;  %v8039_v4 = vpop.eup %6023  ;;  %v2783_v42 = vadd.f32 %v7961_v31, %v2782_v34  ;;  %v8060_v36 = vmul.f32 %v7123_v56, %v2777_v30  ;;  %vm8133_vm13 = vmor %vm2799_vm12, %vm2800_vm11 }
 0x6dd   : > { %v8047_v20 = vpop.eup %6025  ;;  %v8049_v32 = vpop.f32.mrf.mxu1  ;;  %v2810_v47 = vmul.f32 %v8039_v4, %v7987_v12  ;;  %v8077_v56 = vmax.f32 %v7983_v28, 1e-20  ;;  %v2797_v63 = vmul.f32 %v8002_v45, %v2796_v54  ;;  %v8090_v44 = vmax.f32 %v2100_v60, 1e-20 }
 0x6de   : > { %9813 = vst [vmem:[#allocation13_spill] sm:$0xff] %v8010_v62  ;;  %v2825_v34 = vmul.f32 %v8047_v20, %v7992_v24  ;;  %vm2789_vm9 = vcmp.eq.f32.partialorder %v2788_v33, 8.507059e+37  ;;  %vm8102_vm10 = vcmp.eq.f32.partialorder %v2758_v39, 8.507059e+37  ;;  %v2760_v60 = vand.u32 2147483648, %v7933_v11  ;;  %v5610_v39 = vld [vmem:[#allocation2 + $0x3c8] sm:$0xf] }
 0x6df   : > { %9817 = vst [vmem:[#allocation62_spill] sm:$0xff] %v8049_v32  ;;  %v8086_v2 = vpop.eup %6027  ;;  %v3394_v32 = vpop.permute.xlu1 %3393  ;;  %v5602_v11 = vld [vmem:[#allocation2 + $0x3c0] sm:$0xf]  ;;  %vm2815_vm15 = vweird.f32 %v8039_v4  ;;  %vm2830_vm1 = vweird.f32 %v8047_v20  ;;  %vm2814_vm2 = vweird.f32 %v7987_v12  ;;  %vm2829_vm4 = vweird.f32 %v7992_v24 }
 0x6e0   : > { %1684 = vmax.xlane.f32.xlu1 %v7996_v48  ;;  %9819 = vst [vmem:[#allocation64_spill] sm:$0xff] %v8060_v36  ;;  %v2840_v33 = vmul.f32 %v8086_v2, %v8020_v51  ;;  %v5603_v61 = vor.u32 %v5765_v23, %v5602_v11  ;;  %v3561_v55 = vmul.f32 %v6108_v26, %v3394_v32  ;;  %vm8182_vm3 = vmor %vm2814_vm2, %vm2815_vm15  ;;  %vm8204_vm7 = vcmp.eq.f32.partialorder %v2833_v7, 8.507059e+37 }
 0x6e1   : > { %v8124_v40 = vpop.f32.mrf.mxu3 }
 0x6e2   : > { %3415 = vrot.lane.b32.xlu0 %v8010_v62, %s6220_s23  ;;  %v8043_v62 = vmax.f32 %v7935_v37, 1e-20  ;;  %v2790_v37 = vand.u32 2147483648, %v7927_v59  ;;  %v2787_v59 = vsel %vm8072_vm6, %v7961_v31, %v2783_v42  ;;  %v2757_v31 = vsel %vm8094_vm8, %v7971_v19, %v8065_v22  ;;  %v5766_v22 = vld [vmem:[#allocation2 + $0x3d0] sm:$0xf0]  ;;  %9827 = vst [vmem:[#allocation66_spill] sm:$0xff] %v8124_v40  ;;  %4481 = vmatpush.bf16.msra.mxu0 %v5603_v61  ;;  %vm8200_vm6 = vmor %vm2829_vm4, %vm2830_vm1 }
 0x6e3   : > { %v8088_v30 = vpop.f32.mrf.mxu2  ;;  %v2811_v42 = vsub.f32 1.0, %v2810_v47  ;;  %v2798_v19 = vadd.f32 %v8002_v45, %v2797_v63  ;;  %v2841_v23 = vsub.f32 1.0, %v2840_v33  ;;  %v2820_v33 = vand.u32 2147483648, %v7987_v12 }
 0x6e4   : > { %6029 = vrcp.f32 %v8043_v62  ;;  %9822 = vst [vmem:[#allocation65_spill] sm:$0xff] %v8088_v30  ;;  %v2791_v49 = vor.u32 1.1754944e-38, %v2790_v37  ;;  %v2826_v37 = vsub.f32 1.0, %v2825_v34  ;;  %v2805_v30 = vand.u32 2147483648, %v7951_v1  ;;  %v2102_v28 = vpop.f32.mrf.mxu0 }
 0x6e5   : > { %5491 = vmatmul.msk.bf16.gmra.mxu1 %vm298_vm0, %v3612_v17  ;;  %5523 = vmatmul.msk.bf16.gmra.mxu2 %vm298_vm0, %v3612_v17  ;;  %6031 = vrcp.f32 %v8077_v56  ;;  %v8118_v10 = vpop.f32.mrf.mxu1  ;;  %v2802_v18 = vsel %vm8133_vm13, %v8002_v45, %v2798_v19  ;;  %v2835_v19 = vand.u32 2147483648, %v7992_v24  ;;  %vm2845_vm8 = vweird.f32 %v8086_v2 }
 0x6e6   : > { %5555 = vmatmul.msk.bf16.gmra.mxu3 %vm298_vm0, %v3612_v17  ;;  %v2792_v17 = vsel %vm2789_vm9, %v2791_v49, %v2787_v59  ;;  %6033 = vrcp.f32 %v8090_v44  ;;  %v6107_v49 = vld [vmem:[%s6253_s22 + $0xc8] sm:$0xff]  ;;  %v5611_v59 = vor.u32 %v5766_v22, %v5610_v39  ;;  %v2827_v1 = vmul.f32 %v8047_v20, %v2826_v37  ;;  %v9845_v39 = vld [vmem:[#allocation25_spill] sm:$0xff] }
 0x6e7   : > { %v8121_v63 = vmul.f32 %v7282_v8, %v2792_v17  ;;  %v2812_v8 = vmul.f32 %v8039_v4, %v2811_v42  ;;  %v2818_v17 = vand.u32 2147483647, %v7987_v12  ;;  %vm2844_vm9 = vweird.f32 %v8020_v51 }
 0x6e8   : > { %4819 = vmatpush.bf16.msra.mxu2 %v5611_v59  ;;  %v9843_v59 = vld [vmem:[#allocation24_spill] sm:$0xff]  ;;  %vm2874_vm13 = vweird.f32 %v8043_v62  ;;  %vm2889_vm1 = vweird.f32 %v8077_v56 }
 0x6e9   : > { %v2813_v61 = vadd.f32 %v8039_v4, %v2812_v8  ;;  %vm8194_vm5 = vcmp.eq.f32.partialorder %v2818_v17, 8.507059e+37 }
 0x6ea   : > { %3419 = vrot.lane.b32.xlu0 %v8060_v36, %s6220_s23  ;;  %v3396_v36 = vpop.permute.xlu0 %3395  ;;  %v8113_v47 = vpop.eup %6029 }
 0x6eb   : > { %v3562_v34 = vmul.f32 %v6107_v49, %v3396_v36  ;;  %v8127_v36 = vmax.f32 %v2102_v28, 1e-20  ;;  %v2761_v49 = vor.u32 1.1754944e-38, %v2760_v60  ;;  %v2870_v27 = vmul.f32 %v8113_v47, %v8043_v62  ;;  %v8148_v42 = vpop.eup %6031  ;;  %v8155_v45 = vpop.f32.mrf.mxu2 }
 0x6ec   : > { %v2806_v60 = vor.u32 1.1754944e-38, %v2805_v30  ;;  %v8153_v28 = vpop.eup %6033  ;;  %9830 = vst [vmem:[#allocation67_spill] sm:$0xff] %v8155_v45  ;;  %v2828_v30 = vadd.f32 %v8047_v20, %v2827_v1  ;;  %v2885_v54 = vmul.f32 %v8148_v42, %v8077_v56  ;;  %v2817_v12 = vsel %vm8182_vm3, %v8039_v4, %v2813_v61 }
 0x6ed   : > { %v3613_v26 = vpack.c.bf16 %v3562_v34, %v3561_v55  ;;  %v2762_v32 = vsel %vm8102_vm10, %v2761_v49, %v2757_v31  ;;  %6035 = vrcp.f32 %v8127_v36  ;;  %v2871_v55 = vsub.f32 1.0, %v2870_v27  ;;  %v8173_v22 = vpop.f32.mrf.mxu1  ;;  %vm8232_vm10 = vmor %vm2844_vm9, %vm2845_vm8 }
 0x6ee   : > { %v2807_v6 = vsel %vm2804_vm14, %v2806_v60, %v2802_v18  ;;  %v2842_v31 = vmul.f32 %v8086_v2, %v2841_v23  ;;  %v8169_v37 = vmul.f32 %v7119_v29, %v2762_v32  ;;  %v2900_v11 = vmul.f32 %v8153_v28, %v8090_v44  ;;  %v8187_v29 = vpop.f32.mrf.mxu3 }
 0x6ef   : > { %v8178_v34 = vmul.f32 %v7286_v35, %v2807_v6  ;;  %9833 = vst [vmem:[#allocation68_spill] sm:$0xff] %v8187_v29  ;;  %v2821_v49 = vor.u32 1.1754944e-38, %v2820_v33  ;;  %v2832_v4 = vsel %vm8200_vm6, %v8047_v20, %v2828_v30  ;;  %v2872_v27 = vmul.f32 %v8113_v47, %v2871_v55  ;;  %v1679_v33 = vpop.xlane.xlu1 %1678 }
 0x6f0   : > { %v2843_v23 = vadd.f32 %v8086_v2, %v2842_v31  ;;  %v2886_v1 = vsub.f32 1.0, %v2885_v54  ;;  %v2836_v32 = vor.u32 1.1754944e-38, %v2835_v19  ;;  %v2850_v60 = vand.u32 2147483648, %v8020_v51 }
 0x6f1   : > { %v2901_v17 = vsub.f32 1.0, %v2900_v11  ;;  %v2822_v6 = vsel %vm8194_vm5, %v2821_v49, %v2817_v12  ;;  %v2848_v20 = vand.u32 2147483647, %v8020_v51  ;;  %v2878_v30 = vand.u32 2147483647, %v8043_v62 }
 0x6f2   : > { %3421 = vrot.lane.b32.xlu0 %v8121_v63, %s6220_s23  ;;  %v2837_v7 = vsel %vm8204_vm7, %v2836_v32, %v2832_v4  ;;  %v2880_v31 = vand.u32 2147483648, %v8043_v62  ;;  %v2847_v54 = vsel %vm8232_vm10, %v8086_v2, %v2843_v23  ;;  %v2873_v19 = vadd.f32 %v8113_v47, %v2872_v27 }
 0x6f3   : > { %v8216_v18 = vpop.eup %6035  ;;  %v8225_v61 = vpop.f32.mrf.mxu2  ;;  %vm2875_vm11 = vweird.f32 %v8113_v47  ;;  %v1747_v11 = vsub.f32 %v7674_v25, %v1679_v33  ;;  %v8247_v12 = vmul.f32 %v9843_v59, %v2822_v6  ;;  %v2851_v35 = vor.u32 1.1754944e-38, %v2850_v60 }
 0x6f4   : > { %9840 = vst [vmem:[#allocation69_spill] sm:$0xff] %v8225_v61  ;;  %v2915_v51 = vmul.f32 %v8216_v18, %v8127_v36  ;;  %v2887_v49 = vmul.f32 %v8148_v42, %v2886_v1  ;;  %v8251_v24 = vmul.f32 %v9845_v39, %v2837_v7  ;;  %vm2849_vm12 = vcmp.eq.f32.partialorder %v2848_v20, 8.507059e+37  ;;  %vm8257_vm14 = vmor %vm2874_vm13, %vm2875_vm11 }
 0x6f5   : > { %5492 = vmatmul.msk.bf16.gmra.mxu1 %vm298_vm0, %v3613_v26  ;;  %5524 = vmatmul.msk.bf16.gmra.mxu2 %vm298_vm0, %v3613_v26  ;;  %9844 = vst [vmem:[#allocation24_spill] sm:$0xff] %v8247_v12  ;;  %v2902_v2 = vmul.f32 %v8153_v28, %v2901_v17  ;;  %vm8261_vm15 = vcmp.eq.f32.partialorder %v2878_v30, 8.507059e+37  ;;  %v2881_v23 = vor.u32 1.1754944e-38, %v2880_v31  ;;  %v8266_v27 = vpop.f32.mrf.mxu1  ;;  %v2877_v32 = vsel %vm8257_vm14, %v8113_v47, %v2873_v19 }
 0x6f6   : > { %5556 = vmatmul.msk.bf16.gmra.mxu3 %vm298_vm0, %v3613_v26  ;;  %9846 = vst [vmem:[#allocation25_spill] sm:$0xff] %v8251_v24  ;;  %v2916_v62 = vsub.f32 1.0, %v2915_v51  ;;  %v2893_v60 = vand.u32 2147483647, %v8077_v56  ;;  %v2895_v17 = vand.u32 2147483648, %v8077_v56  ;;  %v8277_v6 = vpop.f32.mrf.mxu3  ;;  %v2888_v30 = vadd.f32 %v8148_v42, %v2887_v49 }
 0x6f7   : > { %9851 = vst [vmem:[#allocation70_spill] sm:$0xff] %v8277_v6  ;;  %v1870_v20 = vmul.f32 1.442695, %v1747_v11  ;;  %vm2890_vm2 = vweird.f32 %v8148_v42  ;;  %v2903_v51 = vadd.f32 %v8153_v28, %v2902_v2  ;;  %vm2905_vm3 = vweird.f32 %v8153_v28  ;;  %v9892_v6 = vld [vmem:[#allocation57_spill] sm:$0xff] }
 0x6f8   : > { %v2908_v19 = vand.u32 2147483647, %v8090_v44  ;;  %v2910_v11 = vand.u32 2147483648, %v8090_v44  ;;  %vm8301_vm4 = vmor %vm2889_vm1, %vm2890_vm2  ;;  %vm2904_vm5 = vweird.f32 %v8090_v44  ;;  %v2917_v49 = vmul.f32 %v8216_v18, %v2916_v62 }
 0x6f9   : > { %3417 = vrot.lane.b32.xlu1 %v8169_v37, %s6220_s23  ;;  %v2896_v25 = vor.u32 1.1754944e-38, %v2895_v17  ;;  %vm8317_vm6 = vmor %vm2904_vm5, %vm2905_vm3  ;;  %vm2894_vm7 = vcmp.eq.f32.partialorder %v2893_v60, 8.507059e+37  ;;  %vm2920_vm9 = vweird.f32 %v8216_v18  ;;  %vm2919_vm11 = vweird.f32 %v8127_v36 }
 0x6fa   : > { %3423 = vrot.lane.b32.xlu0 %v8178_v34, %s6220_s23  ;;  %v2105_v8 = vpop.f32.mrf.mxu0  ;;  %vm2909_vm8 = vcmp.eq.f32.partialorder %v2908_v19, 8.507059e+37  ;;  %v2918_v62 = vadd.f32 %v8216_v18, %v2917_v49  ;;  %v2923_v19 = vand.u32 2147483647, %v8127_v36 }
 0x6fb   : > { %v8218_v26 = vmax.f32 %v2105_v8, 1e-20  ;;  %v2852_v8 = vsel %vm2849_vm12, %v2851_v35, %v2847_v54  ;;  %v2882_v54 = vsel %vm8261_vm15, %v2881_v23, %v2877_v32  ;;  %v8307_v39 = vpop.f32.mrf.mxu2  ;;  %vm8347_vm12 = vmor %vm2919_vm11, %vm2920_vm9 }
 0x6fc   : > { %9854 = vst [vmem:[#allocation71_spill] sm:$0xff] %v8307_v39  ;;  %v8310_v2 = vmul.f32 %v7484_v38, %v2852_v8  ;;  %v8322_v44 = vmul.f32 %v7579_v15, %v2882_v54  ;;  %v2907_v38 = vsel %vm8317_vm6, %v8153_v28, %v2903_v51  ;;  %vm2924_vm2 = vcmp.eq.f32.partialorder %v2923_v19, 8.507059e+37 }
 0x6fd   : > { %6037 = vrcp.f32 %v8218_v26  ;;  %v8331_v4 = vpop.f32.mrf.mxu1  ;;  %vm2934_vm13 = vweird.f32 %v8218_v26 }
 0x6fe   : > { %9855 = vst [vmem:[#allocation72_spill] sm:$0xff] %v8310_v2  ;;  %v8338_v32 = vpop.f32.mrf.mxu3 }
 0x6ff   : > { %9858 = vst [vmem:[#allocation73_spill] sm:$0xff] %v8322_v44 }
 0x700   : > { %9859 = vst [vmem:[#allocation74_spill] sm:$0xff] %v8338_v32 }
 0x701   : > { %3425 = vrot.lane.b32.xlu1 %v8247_v12, %s6220_s23 }
 0x702   : > { %3427 = vrot.lane.b32.xlu0 %v8251_v24, %s6220_s23  ;;  %v2107_v1 = vpop.f32.mrf.mxu0 }
 0x703   : > { %v8275_v33 = vpop.eup %6037  ;;  %v8279_v7 = vmax.f32 %v2107_v1, 1e-20  ;;  %v1677_v55 = vpop.xlane.xlu0 %1676 }
 0x704   : > { %v2930_v31 = vmul.f32 %v8275_v33, %v8218_v26  ;;  %v1746_v47 = vsub.f32 %v7819_v46, %v1677_v55  ;;  %vm2935_vm10 = vweird.f32 %v8275_v33  ;;  %v3404_v55 = vpop.permute.xlu1 %3403  ;;  %v8378_v49 = vpop.f32.mrf.mxu2 }
 0x705   : > { %6039 = vrcp.f32 %v8279_v7  ;;  %5493 = vmatmul.msk.bf16.gmra.mxu1 %vm298_vm0, %v7801_v21  ;;  %5525 = vmatmul.msk.bf16.gmra.mxu2 %vm298_vm0, %v7801_v21  ;;  %vm8363_vm14 = vmor %vm2934_vm13, %vm2935_vm10  ;;  %9866 = vst [vmem:[#allocation77_spill] sm:$0xff] %v8378_v49  ;;  %vm2949_vm3 = vweird.f32 %v8279_v7 }
 0x706   : > { %v2931_v46 = vsub.f32 1.0, %v2930_v31  ;;  %v1868_v59 = vmul.f32 1.442695, %v1746_v47  ;;  %5557 = vmatmul.msk.bf16.gmra.mxu3 %vm298_vm0, %v7801_v21  ;;  %6041 = vpow2.f32 %v1870_v20  ;;  %v2892_v21 = vsel %vm8301_vm4, %v8148_v42, %v2888_v30  ;;  %v8393_v31 = vpop.f32.mrf.mxu1  ;;  %v8397_v19 = vpop.f32.mrf.mxu3 }
 0x707   : > { %v2911_v42 = vor.u32 1.1754944e-38, %v2910_v11  ;;  %v2897_v23 = vsel %vm2894_vm7, %v2896_v25, %v2892_v21  ;;  %v2940_v20 = vand.u32 2147483648, %v8218_v26  ;;  %v2938_v47 = vand.u32 2147483647, %v8218_v26  ;;  %v6109_v21 = vld [vmem:[%s6253_s22 + $0xe8] sm:$0xff]  ;;  %9867 = vst [vmem:[#allocation78_spill] sm:$0xff] %v8397_v19 }
 0x708   : > { %6043 = vpow2.f32 %v1868_v59  ;;  %v2932_v8 = vmul.f32 %v8275_v33, %v2931_v46  ;;  %v8357_v54 = vmul.f32 %v7581_v5, %v2897_v23  ;;  %v2925_v11 = vand.u32 2147483648, %v8127_v36  ;;  %v8559_v19 = vld [vmem:[%s6253_s22 + $0x1b0] sm:$0xff] }
 0x709   : > { %3429 = vrot.lane.b32.xlu1 %v8310_v2, %s6220_s23  ;;  %v2912_v17 = vsel %vm2909_vm8, %v2911_v42, %v2907_v38  ;;  %v2922_v5 = vsel %vm8347_vm12, %v8216_v18, %v2918_v62  ;;  %v3566_v25 = vmul.f32 %v6109_v21, %v3404_v55  ;;  %v2941_v38 = vor.u32 1.1754944e-38, %v2940_v20  ;;  %v6110_v18 = vld [vmem:[%s6253_s22 + $0xe0] sm:$0xff]  ;;  %v8666_v2 = vld [vmem:[%s6253_s22 + $0x158] sm:$0xff] }
 0x70a   : > { %3433 = vrot.lane.b32.xlu0 %v8322_v44, %s6220_s23  ;;  %v2110_v15 = vpop.f32.mrf.mxu0  ;;  %v2933_v28 = vadd.f32 %v8275_v33, %v2932_v8  ;;  %9862 = vst [vmem:[#allocation75_spill] sm:$0xff] %v8357_v54  ;;  %v8370_v35 = vmul.f32 %v7605_v3, %v2912_v17  ;;  %v2955_v8 = vand.u32 2147483648, %v8279_v7  ;;  %vm2939_vm15 = vcmp.eq.f32.partialorder %v2938_v47, 8.507059e+37  ;;  %v8409_v21 = vld [vmem:[%s6253_s22 + $0x180] sm:$0xff] }
 0x70b   : > { %v6040_v1 = vpop.eup %6039  ;;  %v8340_v60 = vmax.f32 %v2110_v15, 1e-20  ;;  %v2953_v42 = vand.u32 2147483647, %v8279_v7  ;;  %v3565_v15 = vmul.f32 %v6110_v18, %v7895_v13  ;;  %v9914_v44 = vld [vmem:[#allocation11_spill] sm:$0xff] }
 0x70c   : > { %v2945_v30 = vmul.f32 %v6040_v1, %v8279_v7  ;;  %v8353_v51 = vpop.eup %6041  ;;  %9865 = vst [vmem:[#allocation76_spill] sm:$0xff] %v8370_v35  ;;  %v2937_v36 = vsel %vm8363_vm14, %v8275_v33, %v2933_v28  ;;  %vm2950_vm1 = vweird.f32 %v6040_v1  ;;  %v2926_v33 = vor.u32 1.1754944e-38, %v2925_v11 }
 0x70d   : > { %6045 = vrcp.f32 %v8340_v60  ;;  %v2942_v23 = vsel %vm2939_vm15, %v2941_v38, %v2937_v36  ;;  %v3615_v20 = vpack.c.bf16 %v3566_v25, %v3565_v15  ;;  %vm2951_vm4 = vmor %vm2949_vm3, %vm2950_vm1  ;;  %v2956_v13 = vor.u32 1.1754944e-38, %v2955_v8  ;;  %v8413_v38 = vld [vmem:[%s6253_s22 + $0x188] sm:$0xff] }
 0x70e   : > { %v8367_v59 = vpop.eup %6043  ;;  %v2946_v26 = vsub.f32 1.0, %v2945_v30  ;;  %v2927_v30 = vsel %vm2924_vm2, %v2926_v33, %v2922_v5  ;;  %v2943_v11 = vmul.f32 %v7777_v41, %v2942_v23  ;;  %vm2954_vm5 = vcmp.eq.f32.partialorder %v2953_v42, 8.507059e+37  ;;  %v8424_v33 = vpop.f32.mrf.mxu3 }
 0x70f   : > { %v1909_v56 = vpack.c.bf16 %v8353_v51, %v8367_v59  ;;  %v8404_v36 = vmul.f32 %v7602_v53, %v2927_v30  ;;  %v2968_v41 = vand.u32 2147483647, %v8340_v60  ;;  %vm2964_vm7 = vweird.f32 %v8340_v60  ;;  %9871 = vst [vmem:[#allocation82_spill] sm:$0xff] %v8424_v33 }
 0x710   : > { %v2947_v3 = vmul.f32 %v6040_v1, %v2946_v26  ;;  %v3217_v25 = vmul.f32 %v8409_v21, %v2943_v11 }
 0x711   : > { %2129 = vmatmul.bf16.gmra.mxu0 %v1909_v56  ;;  %3435 = vrot.lane.b32.xlu1 %v8357_v54, %s6220_s23  ;;  %9868 = vst [vmem:[#allocation79_spill] sm:$0xff] %v8404_v36  ;;  %vm2969_vm9 = vcmp.eq.f32.partialorder %v2968_v41, 8.507059e+37 }
 0x712   : > { %3437 = vrot.lane.b32.xlu0 %v8370_v35, %s6220_s23  ;;  %v2112_v62 = vpop.f32.mrf.mxu0  ;;  %v2948_v28 = vadd.f32 %v6040_v1, %v2947_v3  ;;  %v8416_v3 = vpop.f32.mrf.mxu2 }
 0x713   : > { %v6046_v17 = vpop.eup %6045  ;;  %v2196_v55 = vmax.f32 %v2112_v62, 1e-20  ;;  %9869 = vst [vmem:[#allocation80_spill] sm:$0xff] %v8416_v3 }
 0x714   : > { %v2960_v47 = vmul.f32 %v6046_v17, %v8340_v60  ;;  %v2952_v46 = vsel %vm2951_vm4, %v6040_v1, %v2948_v28  ;;  %v2970_v1 = vand.u32 2147483648, %v8340_v60  ;;  %vm2965_vm6 = vweird.f32 %v6046_v17  ;;  %v8426_v28 = vpop.f32.mrf.mxu1 }
 0x715   : > { %5494 = vmatmul.msk.bf16.gmra.mxu1 %vm298_vm0, %v3615_v20  ;;  %5526 = vmatmul.msk.bf16.gmra.mxu2 %vm298_vm0, %v3615_v20  ;;  %v2957_v7 = vsel %vm2954_vm5, %v2956_v13, %v2952_v46  ;;  %6047 = vrcp.f32 %v2196_v55  ;;  %vm2966_vm8 = vmor %vm2964_vm7, %vm2965_vm6  ;;  %v1683_v13 = vpop.xlane.xlu1 %1682  ;;  %v2985_v60 = vand.u32 2147483648, %v2196_v55  ;;  %vm2979_vm11 = vweird.f32 %v2196_v55 }
 0x716   : > { %v2961_v26 = vsub.f32 1.0, %v2960_v47  ;;  %5558 = vmatmul.msk.bf16.gmra.mxu3 %vm298_vm0, %v3615_v20  ;;  %v2958_v5 = vmul.f32 %v7779_v43, %v2957_v7  ;;  %v2971_v42 = vor.u32 1.1754944e-38, %v2970_v1  ;;  %v8433_v1 = vpop.f32.mrf.mxu3 }
 0x717   : > { %v2986_v7 = vor.u32 1.1754944e-38, %v2985_v60  ;;  %9873 = vst [vmem:[#allocation84_spill] sm:$0xff] %v8433_v1 }
 0x718   : > { %v2962_v56 = vmul.f32 %v6046_v17, %v2961_v26  ;;  %v3218_v8 = vmul.f32 %v8413_v38, %v2958_v5  ;;  %v3406_v26 = vpop.permute.xlu0 %3405 }
 0x719   : > { %3439 = vrot.lane.b32.xlu1 %v8404_v36, %s6220_s23  ;;  %v6134_v36 = vld [vmem:[%s6253_s22 + $0x38] sm:$0xff] }
 0x71a   : > { %3441 = vrot.lane.b32.xlu0 %v2943_v11, %s6220_s23  ;;  %v2963_v53 = vadd.f32 %v6046_v17, %v2962_v56  ;;  %v8422_v43 = vpack.c.bf16 %v3218_v8, %v3217_v25  ;;  %v8431_v11 = vpop.f32.mrf.mxu2  ;;  %v6113_v8 = vld [vmem:[%s6253_s22 + $0xf0] sm:$0xff]  ;;  %v3176_v54 = vmul.f32 %v6134_v36, %v9914_v44 }
 0x71b   : > { %v6048_v18 = vpop.eup %6047  ;;  %9872 = vst [vmem:[#allocation83_spill] sm:$0xff] %v8431_v11 }
 0x71c   : > { %9870 = vst [vmem:[#allocation81_spill] sm:$0xff] %v8422_v43  ;;  %v2967_v15 = vsel %vm2966_vm8, %v6046_v17, %v2963_v53  ;;  %v2975_v23 = vmul.f32 %v6048_v18, %v2196_v55  ;;  %vm2980_vm10 = vweird.f32 %v6048_v18  ;;  %v2983_v17 = vand.u32 2147483647, %v2196_v55  ;;  %v8436_v25 = vpop.f32.mrf.mxu1  ;;  %v8660_v43 = vld [vmem:[%s6253_s22 + $0x150] sm:$0xff] }
 0x71d   : > { %v2972_v62 = vsel %vm2969_vm9, %v2971_v42, %v2967_v15  ;;  %vm2981_vm12 = vmor %vm2979_vm11, %vm2980_vm10  ;;  %v3567_v53 = vmul.f32 %v6113_v8, %v3406_v26  ;;  %v8440_v42 = vld [vmem:[%s6253_s22 + $0x190] sm:$0xff]  ;;  %9913 = vst [vmem:[#allocation112_spill] sm:$0xff] %v8660_v43 }
 0x71e   : > { %v2973_v20 = vmul.f32 %v7808_v50, %v2972_v62  ;;  %v2976_v30 = vsub.f32 1.0, %v2975_v23  ;;  %vm2984_vm13 = vcmp.eq.f32.partialorder %v2983_v17, 8.507059e+37  ;;  %v6116_v23 = vld [vmem:[%s6253_s22 + $0xf8] sm:$0xff] }
 0x720   : > { %3445 = vrot.lane.b32.xlu2 %v2973_v20, %s6220_s23  ;;  %v2977_v47 = vmul.f32 %v6048_v18, %v2976_v30  ;;  %v3219_v55 = vmul.f32 %v8440_v42, %v2973_v20  ;;  %v8456_v20 = vpop.f32.mrf.mxu3 }
 0x721   : > { %3443 = vrot.lane.b32.xlu1 %v2958_v5, %s6220_s23  ;;  %9876 = vst [vmem:[#allocation87_spill] sm:$0xff] %v8456_v20 }
 0x722   : > { %v2978_v46 = vadd.f32 %v6048_v18, %v2977_v47  ;;  %v8451_v47 = vpop.f32.mrf.mxu2 }
 0x723   : > { %9875 = vst [vmem:[#allocation86_spill] sm:$0xff] %v8451_v47 }
 0x724   : > { %v2982_v50 = vsel %vm2981_vm12, %v6048_v18, %v2978_v46  ;;  %v8445_v18 = vld [vmem:[%s6253_s22 + $0x198] sm:$0xff]  ;;  %v8458_v17 = vpop.f32.mrf.mxu1 }
 0x725   : > { %v2987_v41 = vsel %vm2984_vm13, %v2986_v7, %v2982_v50  ;;  %v6117_v50 = vld [vmem:[%s6253_s22 + $0x108] sm:$0xff] }
 0x726   : > { %v2988_v5 = vmul.f32 %v7805_v14, %v2987_v41  ;;  %v3410_v14 = vpop.permute.xlu2 %3409 }
 0x728   : > { %v3408_v56 = vpop.permute.xlu1 %3407  ;;  %3447 = vrot.lane.b32.xlu0 %v2988_v5, %s6220_s23  ;;  %v3220_v15 = vmul.f32 %v8445_v18, %v2988_v5  ;;  %v8463_v5 = vpop.f32.mrf.mxu3 }
 0x729   : > { %v3568_v62 = vmul.f32 %v6116_v23, %v3408_v56  ;;  %9878 = vst [vmem:[#allocation89_spill] sm:$0xff] %v8463_v5  ;;  %v6118_v56 = vld [vmem:[%s6253_s22 + $0x100] sm:$0xff]  ;;  %v1749_v23 = vsub.f32 %v7840_v0, %v1683_v13 }
 0x72a   : > { %v8449_v60 = vpack.c.bf16 %v3220_v15, %v3219_v55  ;;  %v8460_v7 = vpop.f32.mrf.mxu2  ;;  %v3569_v8 = vmul.f32 %v6118_v56, %v3410_v14 }
 0x72b   : > { %v3616_v30 = vpack.c.bf16 %v3568_v62, %v3567_v53  ;;  %9877 = vst [vmem:[#allocation88_spill] sm:$0xff] %v8460_v7  ;;  %v1874_v14 = vmul.f32 1.442695, %v1749_v23 }
 0x72c   : > { %9874 = vst [vmem:[#allocation85_spill] sm:$0xff] %v8449_v60  ;;  %v8466_v55 = vpop.f32.mrf.mxu1 }
 0x72d   : > { %5495 = vmatmul.msk.bf16.gmra.mxu1 %vm298_vm0, %v3616_v30  ;;  %5527 = vmatmul.msk.bf16.gmra.mxu2 %vm298_vm0, %v3616_v30 }
 0x72e   : > { %5559 = vmatmul.msk.bf16.gmra.mxu3 %vm298_vm0, %v3616_v30  ;;  %v3412_v46 = vpop.permute.xlu2 %3411 }
 0x72f   : > { %v3570_v26 = vmul.f32 %v6117_v50, %v3412_v46 }
 0x730   : > { %v8474_v50 = vpop.f32.mrf.mxu3 }
 0x731   : > { %v3617_v15 = vpack.c.bf16 %v3570_v26, %v3569_v8  ;;  %9880 = vst [vmem:[#allocation91_spill] sm:$0xff] %v8474_v50 }
 0x732   : > { %v8472_v62 = vpop.f32.mrf.mxu2 }
 0x733   : > { %9879 = vst [vmem:[#allocation90_spill] sm:$0xff] %v8472_v62 }
 0x734   : > { %v8477_v13 = vpop.f32.mrf.mxu1 }
 0x736   : > { %v3414_v0 = vpop.permute.xlu2 %3413 }
 0x738   : > { %v2115_v41 = vpop.f32.mrf.mxu0 }
 0x739   : > { %v2197_v53 = vmax.f32 %v2115_v41, 1e-20 }
 0x73b   : > { %6049 = vrcp.f32 %v2197_v53  ;;  %v2998_v11 = vand.u32 2147483647, %v2197_v53  ;;  %vm2994_vm15 = vweird.f32 %v2197_v53 }
 0x73d   : > { %5496 = vmatmul.msk.bf16.gmra.mxu1 %vm298_vm0, %v3617_v15  ;;  %5528 = vmatmul.msk.bf16.gmra.mxu2 %vm298_vm0, %v3617_v15  ;;  %vm2999_vm2 = vcmp.eq.f32.partialorder %v2998_v11, 8.507059e+37 }
 0x73e   : > { %5560 = vmatmul.msk.bf16.gmra.mxu3 %vm298_vm0, %v3617_v15  ;;  %v3000_v15 = vand.u32 2147483648, %v2197_v53 }
 0x740   : > { %v2117_v30 = vpop.f32.mrf.mxu0 }
 0x741   : > { %v6050_v46 = vpop.eup %6049  ;;  %v2198_v41 = vmax.f32 %v2117_v30, 1e-20  ;;  %v1681_v56 = vpop.xlane.xlu0 %1680 }
 0x742   : > { %v2990_v7 = vmul.f32 %v6050_v46, %v2197_v53  ;;  %v1748_v26 = vsub.f32 %v7922_v57, %v1681_v56  ;;  %vm2995_vm14 = vweird.f32 %v6050_v46  ;;  %v8479_v30 = vpop.f32.mrf.mxu2  ;;  %v3001_v57 = vor.u32 1.1754944e-38, %v3000_v15 }
 0x743   : > { %6051 = vrcp.f32 %v2198_v41  ;;  %9881 = vst [vmem:[#allocation92_spill] sm:$0xff] %v8479_v30  ;;  %vm2996_vm1 = vmor %vm2994_vm15, %vm2995_vm14  ;;  %v3015_v11 = vand.u32 2147483648, %v2198_v41  ;;  %vm3009_vm4 = vweird.f32 %v2198_v41 }
 0x744   : > { %v2991_v8 = vsub.f32 1.0, %v2990_v7  ;;  %v1872_v47 = vmul.f32 1.442695, %v1748_v26  ;;  %6053 = vpow2.f32 %v1874_v14  ;;  %v8485_v14 = vpop.f32.mrf.mxu3  ;;  %v5590_v26 = vld [vmem:[#allocation2 + $0x3a8] sm:$0xf] }
 0x745   : > { %9882 = vst [vmem:[#allocation93_spill] sm:$0xff] %v8485_v14  ;;  %v5578_v14 = vld [vmem:[#allocation2 + $0x390] sm:$0xf]  ;;  %v3016_v61 = vor.u32 1.1754944e-38, %v3015_v11 }
 0x746   : > { %6055 = vpow2.f32 %v1872_v47  ;;  %v2992_v62 = vmul.f32 %v6050_v46, %v2991_v8  ;;  %v1687_v8 = vpop.xlane.xlu2 %1686 }
 0x748   : > { %v2120_v3 = vpop.f32.mrf.mxu0  ;;  %v2993_v50 = vadd.f32 %v6050_v46, %v2992_v62  ;;  %v5762_v62 = vld [vmem:[#allocation2 + $0x3b0] sm:$0xf0] }
 0x749   : > { %v6052_v23 = vpop.eup %6051  ;;  %v8481_v49 = vmax.f32 %v2120_v3, 1e-20  ;;  %v5591_v39 = vor.u32 %v5762_v62, %v5590_v26 }
 0x74a   : > { %v3005_v56 = vmul.f32 %v6052_v23, %v2198_v41  ;;  %v2997_v5 = vsel %vm2996_vm1, %v6050_v46, %v2993_v50  ;;  %v8483_v7 = vpop.eup %6053  ;;  %v8493_v50 = vpop.f32.mrf.mxu1  ;;  %vm3010_vm3 = vweird.f32 %v6052_v23 }
 0x74b   : > { %6057 = vrcp.f32 %v8481_v49  ;;  %v3002_v47 = vsel %vm2999_vm2, %v3001_v57, %v2997_v5  ;;  %v3013_v5 = vand.u32 2147483647, %v2198_v41  ;;  %4482 = vmatpush.bf16.msra.mxu0 %v5591_v39  ;;  %v1751_v57 = vsub.f32 %v7847_v52, %v1687_v8  ;;  %vm3011_vm5 = vmor %vm3009_vm4, %vm3010_vm3  ;;  %v8500_v39 = vpop.f32.mrf.mxu2 }
 0x74c   : > { %v8488_v53 = vpop.eup %6055  ;;  %v3006_v30 = vsub.f32 1.0, %v3005_v56  ;;  %v3003_v3 = vmul.f32 %v7876_v9, %v3002_v47  ;;  %v5759_v56 = vld [vmem:[#allocation2 + $0x398] sm:$0xf0]  ;;  %9883 = vst [vmem:[#allocation94_spill] sm:$0xff] %v8500_v39  ;;  %v3028_v39 = vand.u32 2147483647, %v8481_v49  ;;  %vm3024_vm8 = vweird.f32 %v8481_v49 }
 0x74d   : > { %v1910_v46 = vpack.c.bf16 %v8483_v7, %v8488_v53  ;;  %v5579_v47 = vor.u32 %v5759_v56, %v5578_v14  ;;  %vm3014_vm6 = vcmp.eq.f32.partialorder %v3013_v5, 8.507059e+37  ;;  %v1878_v52 = vmul.f32 1.442695, %v1751_v57  ;;  %v6119_v14 = vld [vmem:[%s6253_s22 + $0x110] sm:$0xff]  ;;  %v8509_v5 = vld [vmem:[%s6253_s22 + $0x1a0] sm:$0xff] }
 0x74e   : > { %3449 = vrot.lane.b32.xlu1 %v3003_v3, %s6220_s23  ;;  %v3007_v15 = vmul.f32 %v6052_v23, %v3006_v30  ;;  %v3221_v57 = vmul.f32 %v8509_v5, %v3003_v3  ;;  %vm3029_vm10 = vcmp.eq.f32.partialorder %v3028_v39, 8.507059e+37 }
 0x74f   : > { %2134 = vmatmul.bf16.gmra.mxu0 %v1910_v46 }
 0x750   : > { %v2122_v20 = vpop.f32.mrf.mxu0  ;;  %v3008_v9 = vadd.f32 %v6052_v23, %v3007_v15  ;;  %4483 = vmatpush.bf16.msra.mxu0 %v5579_v47 }
 0x751   : > { %v6058_v26 = vpop.eup %6057  ;;  %v8497_v62 = vmax.f32 %v2122_v20, 1e-20  ;;  %v3571_v20 = vmul.f32 %v6119_v14, %v3414_v0 }
 0x752   : > { %v3020_v30 = vmul.f32 %v6058_v26, %v8481_v49  ;;  %v3012_v1 = vsel %vm3011_vm5, %v6052_v23, %v3008_v9  ;;  %v8506_v23 = vpop.f32.mrf.mxu3  ;;  %v6121_v9 = vld [vmem:[%s6253_s22 + $0x118] sm:$0xff]  ;;  %vm3025_vm7 = vweird.f32 %v6058_v26 }
 0x753   : > { %6059 = vrcp.f32 %v8497_v62  ;;  %v1685_v8 = vpop.xlane.xlu1 %1684  ;;  %v3017_v41 = vsel %vm3014_vm6, %v3016_v61, %v3012_v1  ;;  %9884 = vst [vmem:[#allocation95_spill] sm:$0xff] %v8506_v23  ;;  %v3030_v61 = vand.u32 2147483648, %v8481_v49  ;;  %v8515_v1 = vpop.f32.mrf.mxu1  ;;  %vm3026_vm9 = vmor %vm3024_vm8, %vm3025_vm7  ;;  %vm3039_vm12 = vweird.f32 %v8497_v62 }
 0x754   : > { %v3021_v46 = vsub.f32 1.0, %v3020_v30  ;;  %v1750_v11 = vsub.f32 %v7996_v48, %v1685_v8  ;;  %v3416_v15 = vpop.permute.xlu0 %3415  ;;  %v3018_v56 = vmul.f32 %v7881_v16, %v3017_v41  ;;  %v8519_v48 = vld [vmem:[%s6253_s22 + $0x1a8] sm:$0xff]  ;;  %6061 = vpow2.f32 %v1878_v52 }
 0x755   : > { %v3572_v47 = vmul.f32 %v6121_v9, %v3416_v15 }
 0x756   : > { %v1876_v0 = vmul.f32 1.442695, %v1750_v11  ;;  %3451 = vrot.lane.b32.xlu2 %v3018_v56, %s6220_s23  ;;  %v3222_v16 = vmul.f32 %v8519_v48, %v3018_v56  ;;  %v3022_v30 = vmul.f32 %v6058_v26, %v3021_v46  ;;  %v3031_v11 = vor.u32 1.1754944e-38, %v3030_v61 }
 0x757   : > { %v3618_v8 = vpack.c.bf16 %v3572_v47, %v3571_v20 }
 0x758   : > { %6063 = vpow2.f32 %v1876_v0  ;;  %v2125_v3 = vpop.f32.mrf.mxu0  ;;  %v3023_v41 = vadd.f32 %v6058_v26, %v3022_v30  ;;  %v8523_v14 = vpack.c.bf16 %v3222_v16, %v3221_v57  ;;  %v8532_v49 = vpop.f32.mrf.mxu2  ;;  %v3045_v0 = vand.u32 2147483648, %v8497_v62 }
 0x759   : > { %v6060_v15 = vpop.eup %6059  ;;  %v8525_v9 = vmax.f32 %v2125_v3, 1e-20  ;;  %5497 = vmatmul.msk.bf16.gmra.mxu1 %vm298_vm0, %v3618_v8  ;;  %5529 = vmatmul.msk.bf16.gmra.mxu2 %vm298_vm0, %v3618_v8  ;;  %9886 = vst [vmem:[#allocation97_spill] sm:$0xff] %v8532_v49  ;;  %v5763_v49 = vld [vmem:[#allocation2 + $0x3b8] sm:$0xf0] }
 0x75a   : > { %9885 = vst [vmem:[#allocation96_spill] sm:$0xff] %v8523_v14  ;;  %v3035_v46 = vmul.f32 %v6060_v15, %v8497_v62  ;;  %5561 = vmatmul.msk.bf16.gmra.mxu3 %vm298_vm0, %v3618_v8  ;;  %v3027_v52 = vsel %vm3026_vm9, %v6058_v26, %v3023_v41  ;;  %v8535_v47 = vpop.eup %6061  ;;  %vm3040_vm11 = vweird.f32 %v6060_v15  ;;  %v3043_v26 = vand.u32 2147483647, %v8497_v62  ;;  %v8542_v39 = vpop.f32.mrf.mxu3  ;;  %v9888_v62 = vld [vmem:[#allocation50_spill] sm:$0xff] }
 0x75b   : > { %6065 = vrcp.f32 %v8525_v9  ;;  %v3032_v20 = vsel %vm3029_vm10, %v3031_v11, %v3027_v52  ;;  %9887 = vst [vmem:[#allocation98_spill] sm:$0xff] %v8542_v39  ;;  %v8546_v8 = vpop.f32.mrf.mxu1  ;;  %vm3041_vm13 = vmor %vm3039_vm12, %vm3040_vm11  ;;  %vm3054_vm1 = vweird.f32 %v8525_v9  ;;  %v3432_v14 = vpop.permute.xlu2 %3431 }
 0x75c   : > { %v3036_v56 = vsub.f32 1.0, %v3035_v46  ;;  %v3033_v57 = vmul.f32 %v7911_v58, %v3032_v20  ;;  %v3046_v46 = vor.u32 1.1754944e-38, %v3045_v0  ;;  %vm3044_vm14 = vcmp.eq.f32.partialorder %v3043_v26, 8.507059e+37  ;;  %v3420_v39 = vpop.permute.xlu0 %3419  ;;  %v8564_v26 = vld [vmem:[%s6253_s22 + $0x1b8] sm:$0xff] }
 0x75d   : > { %v3060_v0 = vand.u32 2147483648, %v8525_v9 }
 0x75e   : > { %v8538_v16 = vpop.eup %6063  ;;  %3453 = vrot.lane.b32.xlu0 %v3033_v57, %s6220_s23  ;;  %v3037_v61 = vmul.f32 %v6060_v15, %v3036_v56  ;;  %v5598_v56 = vld [vmem:[#allocation2 + $0x3b0] sm:$0xf] }
 0x75f   : > { %v1911_v30 = vpack.c.bf16 %v8535_v47, %v8538_v16 }
 0x760   : > { %v2127_v58 = vpop.f32.mrf.mxu0  ;;  %v3038_v3 = vadd.f32 %v6060_v15, %v3037_v61  ;;  %v8554_v33 = vpop.f32.mrf.mxu2 }
 0x761   : > { %v6066_v41 = vpop.eup %6065  ;;  %v8549_v11 = vmax.f32 %v2127_v58, 1e-20  ;;  %2139 = vmatmul.bf16.gmra.mxu0 %v1911_v30  ;;  %v5599_v58 = vor.u32 %v5763_v49, %v5598_v56  ;;  %9889 = vst [vmem:[#allocation50_spill] sm:$0xff] %v8554_v33  ;;  %v3058_v30 = vand.u32 2147483647, %v8525_v9 }
 0x762   : > { %v3050_v52 = vmul.f32 %v6066_v41, %v8525_v9  ;;  %v3042_v20 = vsel %vm3041_vm13, %v6060_v15, %v3038_v3  ;;  %v3223_v15 = vmul.f32 %v8559_v19, %v3033_v57  ;;  %vm3055_vm15 = vweird.f32 %v6066_v41  ;;  %v8567_v49 = vpop.f32.mrf.mxu3 }
 0x763   : > { %6067 = vrcp.f32 %v8549_v11  ;;  %v3047_v61 = vsel %vm3044_vm14, %v3046_v46, %v3042_v20  ;;  %4820 = vmatpush.bf16.msra.mxu2 %v5599_v58  ;;  %9890 = vst [vmem:[#allocation99_spill] sm:$0xff] %v8567_v49  ;;  %vm3056_vm2 = vmor %vm3054_vm1, %vm3055_vm15  ;;  %v3061_v57 = vor.u32 1.1754944e-38, %v3060_v0  ;;  %vm3059_vm3 = vcmp.eq.f32.partialorder %v3058_v30, 8.507059e+37  ;;  %v5592_v58 = vld [vmem:[#allocation2 + $0x3b4] sm:$0xf0] }
 0x764   : > { %v3051_v23 = vsub.f32 1.0, %v3050_v52  ;;  %v3048_v45 = vmul.f32 %v9888_v62, %v3047_v61  ;;  %v8573_v62 = vpop.f32.mrf.mxu1  ;;  %vm3069_vm5 = vweird.f32 %v8549_v11 }
 0x766   : > { %3455 = vrot.lane.b32.xlu1 %v3048_v45, %s6220_s23  ;;  %v3224_v3 = vmul.f32 %v8564_v26, %v3048_v45  ;;  %v3052_v46 = vmul.f32 %v6066_v41, %v3051_v23  ;;  %v5761_v23 = vld [vmem:[#allocation2 + $0x3ac] sm:$0xf] }
 0x767   : > { %v5595_v32 = vor.u32 %v5761_v23, %v5592_v58  ;;  %v9896_v58 = vld [vmem:[#allocation56_spill] sm:$0xff] }
 0x768   : > { %v3053_v52 = vadd.f32 %v6066_v41, %v3052_v46  ;;  %v8570_v20 = vpack.c.bf16 %v3224_v3, %v3223_v15  ;;  %v8576_v46 = vld [vmem:[%s6253_s22 + $0x128] sm:$0xff]  ;;  %v8580_v3 = vld [vmem:[%s6253_s22 + $0x120] sm:$0xff] }
 0x769   : > { %v6068_v56 = vpop.eup %6067  ;;  %v3574_v9 = vmul.f32 %v8576_v46, %v3420_v39  ;;  %4651 = vmatpush.bf16.msra.mxu1 %v5595_v32  ;;  %v8587_v39 = vpop.f32.mrf.mxu2  ;;  %v9894_v32 = vld [vmem:[#allocation6_spill] sm:$0xff] }
 0x76a   : > { %9891 = vst [vmem:[#allocation100_spill] sm:$0xff] %v8570_v20  ;;  %v3065_v61 = vmul.f32 %v6068_v56, %v8549_v11  ;;  %v3057_v45 = vsel %vm3056_vm2, %v6066_v41, %v3053_v52  ;;  %v3422_v20 = vpop.permute.xlu0 %3421  ;;  %v3075_v41 = vand.u32 2147483648, %v8549_v11  ;;  %vm3070_vm4 = vweird.f32 %v6068_v56 }
 0x76b   : > { %v3418_v33 = vpop.permute.xlu1 %3417  ;;  %v3062_v49 = vsel %vm3059_vm3, %v3061_v57, %v3057_v45  ;;  %v3073_v57 = vand.u32 2147483647, %v8549_v11  ;;  %9893 = vst [vmem:[#allocation57_spill] sm:$0xff] %v8587_v39  ;;  %vm3071_vm6 = vmor %vm3069_vm5, %vm3070_vm4 }
 0x76c   : > { %v3066_v15 = vsub.f32 1.0, %v3065_v61  ;;  %v3573_v0 = vmul.f32 %v8580_v3, %v3418_v33  ;;  %v3063_v29 = vmul.f32 %v9892_v6, %v3062_v49  ;;  %v3076_v33 = vor.u32 1.1754944e-38, %v3075_v41  ;;  %v8595_v49 = vpop.f32.mrf.mxu3  ;;  %v8597_v23 = vpop.f32.mrf.mxu1 }
 0x76d   : > { %9895 = vst [vmem:[#allocation6_spill] sm:$0xff] %v8595_v49  ;;  %vm3074_vm7 = vcmp.eq.f32.partialorder %v3073_v57, 8.507059e+37  ;;  %v8614_v57 = vld [vmem:[%s6253_s22 + $0x138] sm:$0xff] }
 0x76e   : > { %v3619_v30 = vpack.c.bf16 %v3574_v9, %v3573_v0  ;;  %3457 = vrot.lane.b32.xlu2 %v3063_v29, %s6220_s23  ;;  %v3067_v52 = vmul.f32 %v6068_v56, %v3066_v15  ;;  %v8601_v15 = vld [vmem:[%s6253_s22 + $0x1c0] sm:$0xff]  ;;  %v8606_v0 = vld [vmem:[%s6253_s22 + $0x1c8] sm:$0xff] }
 0x76f   : > { %v3225_v11 = vmul.f32 %v8601_v15, %v3063_v29  ;;  %v8620_v29 = vld [vmem:[%s6253_s22 + $0x130] sm:$0xff] }
 0x770   : > { %5498 = vmatmul.msk.bf16.gmra.mxu1 %vm298_vm0, %v3619_v30  ;;  %5530 = vmatmul.msk.bf16.gmra.mxu2 %vm298_vm0, %v3619_v30  ;;  %v3068_v6 = vadd.f32 %v6068_v56, %v3067_v52 }
 0x771   : > { %5562 = vmatmul.msk.bf16.gmra.mxu3 %vm298_vm0, %v3619_v30  ;;  %5624 = vmatmul.msk.bf16.vlgmr.msra.gmra.mxu0 %vm298_vm0, %v9894_v32 }
 0x772   : > { %v3072_v61 = vsel %vm3071_vm6, %v6068_v56, %v3068_v6  ;;  %v3424_v30 = vpop.permute.xlu0 %3423  ;;  %v8611_v56 = vpop.f32.mrf.mxu2 }
 0x773   : > { %v3077_v45 = vsel %vm3074_vm7, %v3076_v33, %v3072_v61  ;;  %9898 = vst [vmem:[#allocation101_spill] sm:$0xff] %v8611_v56  ;;  %v3576_v6 = vmul.f32 %v8614_v57, %v3424_v30  ;;  %v3575_v61 = vmul.f32 %v8620_v29, %v3422_v20  ;;  %v3426_v30 = vpop.permute.xlu1 %3425  ;;  %v8637_v20 = vld [vmem:[%s6253_s22 + $0x140] sm:$0xff] }
 0x774   : > { %v3078_v9 = vmul.f32 %v9896_v58, %v3077_v45  ;;  %v8617_v33 = vpop.f32.mrf.mxu3  ;;  %v8623_v58 = vpop.f32.mrf.mxu1  ;;  %9905 = vst [vmem:[#allocation106_spill] sm:$0xff] %v8637_v20 }
 0x775   : > { %9899 = vst [vmem:[#allocation102_spill] sm:$0xff] %v8617_v33  ;;  %v3620_v45 = vpack.c.bf16 %v3576_v6, %v3575_v61  ;;  %v3577_v6 = vmul.f32 %v8637_v20, %v3426_v30  ;;  %v8641_v61 = vld [vmem:[%s6253_s22 + $0x148] sm:$0xff]  ;;  %v9916_v20 = vld [vmem:[#allocation14_spill] sm:$0xff] }
 0x776   : > { %3459 = vrot.lane.b32.xlu0 %v3078_v9, %s6220_s23  ;;  %v3226_v41 = vmul.f32 %v8606_v0, %v3078_v9  ;;  %9900 = vst [vmem:[#allocation103_spill] sm:$0xff] %v8623_v58  ;;  %v9901_v9 = vld [vmem:[#allocation7_spill] sm:$0xff]  ;;  %v9909_v30 = vld [vmem:[#allocation8_spill] sm:$0xff] }
 0x777   : > { %9906 = vst [vmem:[#allocation107_spill] sm:$0xff] %v8641_v61 }
 0x778   : > { %v8609_v52 = vpack.c.bf16 %v3226_v41, %v3225_v11 }
 0x77a   : > { %9897 = vst [vmem:[#allocation56_spill] sm:$0xff] %v8609_v52  ;;  %v8630_v11 = vpop.f32.mrf.mxu2  ;;  %v3428_v56 = vpop.permute.xlu0 %3427 }
 0x77b   : > { %9902 = vst [vmem:[#allocation7_spill] sm:$0xff] %v8630_v11  ;;  %v3578_v33 = vmul.f32 %v8641_v61, %v3428_v56 }
 0x77c   : > { %v8632_v41 = vpop.f32.mrf.mxu3  ;;  %v8634_v39 = vpop.f32.mrf.mxu1 }
 0x77d   : > { %9903 = vst [vmem:[#allocation104_spill] sm:$0xff] %v8632_v41  ;;  %v3621_v49 = vpack.c.bf16 %v3578_v33, %v3577_v6 }
 0x77e   : > { %9904 = vst [vmem:[#allocation105_spill] sm:$0xff] %v8634_v39 }
 0x780   : > { %5499 = vmatmul.msk.bf16.gmra.mxu1 %vm298_vm0, %v3620_v45  ;;  %5531 = vmatmul.msk.bf16.gmra.mxu2 %vm298_vm0, %v3620_v45 }
 0x781   : > { %5563 = vmatmul.msk.bf16.gmra.mxu3 %vm298_vm0, %v3620_v45  ;;  %5625 = vmatmul.msk.bf16.gmra.mxu0 %vm298_vm0, %v9901_v9 }
 0x782   : > { %v8644_v45 = vpop.f32.mrf.mxu2 }
 0x783   : > { %9907 = vst [vmem:[#allocation108_spill] sm:$0xff] %v8644_v45  ;;  %v3430_v45 = vpop.permute.xlu1 %3429 }
 0x784   : > { %v8646_v40 = vpop.f32.mrf.mxu3  ;;  %v8653_v56 = vpop.f32.mrf.mxu1 }
 0x785   : > { %9908 = vst [vmem:[#allocation109_spill] sm:$0xff] %v8646_v40 }
 0x786   : > { %9910 = vst [vmem:[#allocation8_spill] sm:$0xff] %v8653_v56 }
 0x78a   : > { %v8655_v40 = vpop.f32.mrf.mxu2 }
 0x78b   : > { %9911 = vst [vmem:[#allocation110_spill] sm:$0xff] %v8655_v40  ;;  %v3580_v40 = vmul.f32 %v8666_v2, %v3432_v14 }
 0x78c   : > { %v8657_v60 = vpop.f32.mrf.mxu3 }
 0x78d   : > { %9912 = vst [vmem:[#allocation111_spill] sm:$0xff] %v8657_v60  ;;  %v6136_v60 = vld [vmem:[%s6253_s22 + $0x30] sm:$0xff] }
 0x78e   : > { %v2130_v52 = vpop.f32.mrf.mxu0  ;;  %v3175_v12 = vmul.f32 %v6136_v60, %v9916_v20 }
 0x78f   : > { %v2203_v11 = vmax.f32 %v2130_v52, 1e-20 }
 0x790   : > { %5500 = vmatmul.msk.bf16.gmra.mxu1 %vm298_vm0, %v3621_v49  ;;  %5532 = vmatmul.msk.bf16.gmra.mxu2 %vm298_vm0, %v3621_v49 }
 0x791   : > { %6069 = vrcp.f32 %v2203_v11  ;;  %5564 = vmatmul.msk.bf16.gmra.mxu3 %vm298_vm0, %v3621_v49  ;;  %5626 = vmatmul.msk.bf16.gmra.mxu0 %vm298_vm0, %v9909_v30  ;;  %v3579_v49 = vmul.f32 %v8660_v43, %v3430_v45  ;;  %v3090_v56 = vand.u32 2147483648, %v2203_v11  ;;  %v3088_v58 = vand.u32 2147483647, %v2203_v11 }
 0x792   : > { %vm3084_vm9 = vweird.f32 %v2203_v11  ;;  %v8673_v45 = vpack.c.bf16 %v3176_v54, %v3175_v12 }
 0x793   : > { %v3622_v61 = vpack.c.bf16 %v3580_v40, %v3579_v49  ;;  %v3091_v44 = vor.u32 1.1754944e-38, %v3090_v56  ;;  %vm3089_vm11 = vcmp.eq.f32.partialorder %v3088_v58, 8.507059e+37 }
 0x794   : > { %v8683_v54 = vpop.f32.mrf.mxu3 }
 0x795   : > { %9918 = vst [vmem:[#allocation113_spill] sm:$0xff] %v8683_v54  ;;  %v6146_v54 = vld [vmem:[%s6253_s22 + $0x50] sm:$0xff] }
 0x796   : > { %v2132_v33 = vpop.f32.mrf.mxu0 }
 0x797   : > { %v6070_v6 = vpop.eup %6069  ;;  %v2204_v52 = vmax.f32 %v2132_v33, 1e-20  ;;  %v8669_v33 = vpop.f32.mrf.mxu1 }
 0x798   : > { %v3080_v41 = vmul.f32 %v6070_v6, %v2203_v11  ;;  %9915 = vst [vmem:[#allocation11_spill] sm:$0xff] %v8669_v33  ;;  %vm3085_vm8 = vweird.f32 %v6070_v6 }
 0x799   : > { %6071 = vrcp.f32 %v2204_v52  ;;  %vm3086_vm10 = vmor %vm3084_vm9, %vm3085_vm8  ;;  %vm3099_vm13 = vweird.f32 %v2204_v52 }
 0x79a   : > { %v3081_v35 = vsub.f32 1.0, %v3080_v41 }
 0x79c   : > { %v3082_v39 = vmul.f32 %v6070_v6, %v3081_v35  ;;  %v8677_v35 = vpop.f32.mrf.mxu2 }
 0x79d   : > { %9917 = vst [vmem:[#allocation14_spill] sm:$0xff] %v8677_v35  ;;  %v8698_v35 = vld [vmem:[%s6253_s22 + $0x160] sm:$0xff] }
 0x79e   : > { %v3083_v24 = vadd.f32 %v6070_v6, %v3082_v39  ;;  %v3105_v39 = vand.u32 2147483648, %v2204_v52  ;;  %9923 = vst [vmem:[#allocation116_spill] sm:$0xff] %v8698_v35 }
 0x79f   : > { %v6072_v41 = vpop.eup %6071  ;;  %v8686_v58 = vpop.f32.mrf.mxu1 }
 0x7a0   : > { %v3095_v36 = vmul.f32 %v6072_v41, %v2204_v52  ;;  %5501 = vmatmul.msk.bf16.gmra.mxu1 %vm298_vm0, %v3622_v61  ;;  %5533 = vmatmul.msk.bf16.gmra.mxu2 %vm298_vm0, %v3622_v61  ;;  %v3087_v14 = vsel %vm3086_vm10, %v6070_v6, %v3083_v24  ;;  %vm3100_vm12 = vweird.f32 %v6072_v41  ;;  %v3103_v24 = vand.u32 2147483647, %v2204_v52  ;;  %9919 = vst [vmem:[#allocation114_spill] sm:$0xff] %v8686_v58  ;;  %v3434_v6 = vpop.permute.xlu0 %3433 }
 0x7a1   : > { %5565 = vmatmul.msk.bf16.gmra.mxu3 %vm298_vm0, %v3622_v61  ;;  %5627 = vmatmul.msk.bf16.gmra.mxu0 %vm298_vm0, %v8673_v45  ;;  %v3092_v40 = vsel %vm3089_vm11, %v3091_v44, %v3087_v14  ;;  %v3436_v61 = vpop.permute.xlu1 %3435  ;;  %vm3101_vm14 = vmor %vm3099_vm13, %vm3100_vm12  ;;  %v3106_v56 = vor.u32 1.1754944e-38, %v3105_v39  ;;  %v8689_v44 = vld [vmem:[%s6253_s22 + $0x168] sm:$0xff]  ;;  %v3581_v39 = vmul.f32 %v8698_v35, %v3434_v6  ;;  %v6150_v35 = vld [vmem:[%s6253_s22 + $0x70] sm:$0xff] }
 0x7a2   : > { %v3096_v60 = vsub.f32 1.0, %v3095_v36  ;;  %v3093_v12 = vmul.f32 %v8367_v59, %v3092_v40  ;;  %vm3104_vm15 = vcmp.eq.f32.partialorder %v3103_v24, 8.507059e+37  ;;  %9920 = vst [vmem:[#allocation115_spill] sm:$0xff] %v8689_v44  ;;  %v3582_v36 = vmul.f32 %v8689_v44, %v3436_v61  ;;  %v6138_v40 = vld [vmem:[%s6253_s22 + $0x48] sm:$0xff]  ;;  %v9951_v44 = vld [vmem:[#allocation19_spill] sm:$0xff] }
 0x7a4   : > { %3461 = vrot.lane.b32.xlu1 %v3093_v12, %s6220_s23  ;;  %v3097_v11 = vmul.f32 %v6072_v41, %v3096_v60  ;;  %v9921_v60 = vld [vmem:[#allocation17_spill] sm:$0xff]  ;;  %v8695_v52 = vpop.f32.mrf.mxu2 }
 0x7a5   : > { %9922 = vst [vmem:[#allocation17_spill] sm:$0xff] %v8695_v52 }
 0x7a6   : > { %v3098_v20 = vadd.f32 %v6072_v41, %v3097_v11  ;;  %v3178_v11 = vmul.f32 %v6138_v40, %v9921_v60  ;;  %v3623_v40 = vpack.c.bf16 %v3582_v36, %v3581_v39 }
 0x7a8   : > { %v3102_v59 = vsel %vm3101_vm14, %v6072_v41, %v3098_v20  ;;  %v8702_v41 = vld [vmem:[%s6253_s22 + $0x1d0] sm:$0xff]  ;;  %v8707_v20 = vld [vmem:[%s6253_s22 + $0x1d8] sm:$0xff] }
 0x7a9   : > { %v3107_v49 = vsel %vm3104_vm15, %v3106_v56, %v3102_v59  ;;  %v3227_v24 = vmul.f32 %v8702_v41, %v3093_v12  ;;  %v9924_v56 = vld [vmem:[#allocation15_spill] sm:$0xff]  ;;  %v8718_v12 = vpop.f32.mrf.mxu1  ;;  %v3440_v39 = vpop.permute.xlu1 %3439 }
 0x7aa   : > { %v3108_v14 = vmul.f32 %v8353_v51, %v3107_v49  ;;  %v6142_v51 = vld [vmem:[%s6253_s22 + $0x40] sm:$0xff]  ;;  %v8712_v49 = vpop.f32.mrf.mxu3  ;;  %9928 = vst [vmem:[#allocation119_spill] sm:$0xff] %v8718_v12 }
 0x7ab   : > { %v3177_v59 = vmul.f32 %v6142_v51, %v9924_v56  ;;  %9925 = vst [vmem:[#allocation15_spill] sm:$0xff] %v8712_v49  ;;  %v6144_v56 = vld [vmem:[%s6253_s22 + $0x58] sm:$0xff]  ;;  %v8738_v49 = vld [vmem:[%s6253_s22 + $0x170] sm:$0xff] }
 0x7ac   : > { %3463 = vrot.lane.b32.xlu2 %v3108_v14, %s6220_s23  ;;  %v3228_v61 = vmul.f32 %v8707_v20, %v3108_v14  ;;  %v8725_v14 = vpop.f32.mrf.mxu2 }
 0x7ad   : > { %v8716_v6 = vpack.c.bf16 %v3178_v11, %v3177_v59  ;;  %9929 = vst [vmem:[#allocation120_spill] sm:$0xff] %v8725_v14  ;;  %v3438_v11 = vpop.permute.xlu0 %3437  ;;  %v9933_v59 = vld [vmem:[#allocation18_spill] sm:$0xff]  ;;  %v9935_v14 = vld [vmem:[#allocation16_spill] sm:$0xff] }
 0x7ae   : > { %v8714_v60 = vpack.c.bf16 %v3228_v61, %v3227_v24  ;;  %v8732_v61 = vld [vmem:[%s6253_s22 + $0x178] sm:$0xff]  ;;  %v3180_v52 = vmul.f32 %v6144_v56, %v9933_v59  ;;  %9934 = vst [vmem:[#allocation18_spill] sm:$0xff] %v8738_v49 }
 0x7af   : > { %9927 = vst [vmem:[#allocation118_spill] sm:$0xff] %v8716_v6  ;;  %v3584_v51 = vmul.f32 %v8732_v61, %v3440_v39  ;;  %v9941_v56 = vld [vmem:[#allocation22_spill] sm:$0xff] }
 0x7b0   : > { %9926 = vst [vmem:[#allocation117_spill] sm:$0xff] %v8714_v60  ;;  %5502 = vmatmul.msk.bf16.gmra.mxu1 %vm298_vm0, %v3623_v40  ;;  %5534 = vmatmul.msk.bf16.gmra.mxu2 %vm298_vm0, %v3623_v40  ;;  %v3179_v60 = vmul.f32 %v6146_v54, %v9935_v14 }
 0x7b1   : > { %5566 = vmatmul.msk.bf16.gmra.mxu3 %vm298_vm0, %v3623_v40  ;;  %5628 = vmatmul.msk.bf16.gmra.mxu0 %vm298_vm0, %v8716_v6  ;;  %v8729_v24 = vpop.f32.mrf.mxu1  ;;  %9932 = vst [vmem:[#allocation123_spill] sm:$0xff] %v8732_v61  ;;  %v3583_v40 = vmul.f32 %v8738_v49, %v3438_v11  ;;  %v3444_v54 = vpop.permute.xlu1 %3443  ;;  %v6148_v49 = vld [vmem:[%s6253_s22 + $0x60] sm:$0xff]  ;;  %v9944_v61 = vld [vmem:[#allocation20_spill] sm:$0xff] }
 0x7b2   : > { %v8727_v36 = vpop.f32.mrf.mxu3  ;;  %9931 = vst [vmem:[#allocation122_spill] sm:$0xff] %v8729_v24  ;;  %v8745_v24 = vpack.c.bf16 %v3180_v52, %v3179_v60  ;;  %v3586_v52 = vmul.f32 %v8413_v38, %v3444_v54  ;;  %v6147_v60 = vld [vmem:[%s6253_s22 + $0x68] sm:$0xff] }
 0x7b3   : > { %9930 = vst [vmem:[#allocation121_spill] sm:$0xff] %v8727_v36  ;;  %v3624_v12 = vpack.c.bf16 %v3584_v51, %v3583_v40  ;;  %v3182_v59 = vmul.f32 %v6147_v60, %v9941_v56  ;;  %v3446_v60 = vpop.permute.xlu2 %3445 }
 0x7b4   : > { %v8743_v36 = vpop.f32.mrf.mxu2  ;;  %9937 = vst [vmem:[#allocation124_spill] sm:$0xff] %v8745_v24 }
 0x7b5   : > { %9936 = vst [vmem:[#allocation16_spill] sm:$0xff] %v8743_v36  ;;  %v3442_v51 = vpop.permute.xlu0 %3441 }
 0x7b6   : > { %v3585_v36 = vmul.f32 %v8409_v21, %v3442_v51 }
 0x7b8   : > { %v3625_v58 = vpack.c.bf16 %v3586_v52, %v3585_v36 }
 0x7b9   : > { %v8754_v11 = vpop.f32.mrf.mxu1 }
 0x7ba   : > { %v8749_v39 = vpop.f32.mrf.mxu3  ;;  %9939 = vst [vmem:[#allocation126_spill] sm:$0xff] %v8754_v11 }
 0x7bb   : > { %9938 = vst [vmem:[#allocation125_spill] sm:$0xff] %v8749_v39 }
 0x7bc   : > { %v8756_v14 = vpop.f32.mrf.mxu2 }
 0x7bd   : > { %9940 = vst [vmem:[#allocation127_spill] sm:$0xff] %v8756_v14  ;;  %v3448_v51 = vpop.permute.xlu0 %3447 }
 0x7c0   : > { %5503 = vmatmul.msk.bf16.gmra.mxu1 %vm298_vm0, %v3624_v12  ;;  %5535 = vmatmul.msk.bf16.gmra.mxu2 %vm298_vm0, %v3624_v12 }
 0x7c1   : > { %5567 = vmatmul.msk.bf16.gmra.mxu3 %vm298_vm0, %v3624_v12  ;;  %5629 = vmatmul.msk.bf16.gmra.mxu0 %vm298_vm0, %v8745_v24  ;;  %v8764_v39 = vpop.f32.mrf.mxu1  ;;  %v3181_v24 = vmul.f32 %v6148_v49, %v9944_v61 }
 0x7c2   : > { %v8761_v40 = vpop.f32.mrf.mxu3  ;;  %9943 = vst [vmem:[#allocation128_spill] sm:$0xff] %v8764_v39 }
 0x7c3   : > { %9942 = vst [vmem:[#allocation22_spill] sm:$0xff] %v8761_v40  ;;  %v8768_v14 = vpack.c.bf16 %v3182_v59, %v3181_v24  ;;  %v9949_v40 = vld [vmem:[#allocation21_spill] sm:$0xff] }
 0x7c4   : > { %v8772_v38 = vpop.f32.mrf.mxu2 }
 0x7c5   : > { %9945 = vst [vmem:[#allocation20_spill] sm:$0xff] %v8768_v14 }
 0x7c6   : > { %9946 = vst [vmem:[#allocation129_spill] sm:$0xff] %v8772_v38  ;;  %v6149_v38 = vld [vmem:[%s6253_s22 + $0x78] sm:$0xff] }
 0x7c7   : > { %v3184_v39 = vmul.f32 %v6149_v38, %v9949_v40 }
 0x7c9   : > { %v8779_v61 = vpop.f32.mrf.mxu1 }
 0x7ca   : > { %v8777_v49 = vpop.f32.mrf.mxu3  ;;  %9948 = vst [vmem:[#allocation131_spill] sm:$0xff] %v8779_v61 }
 0x7cb   : > { %9947 = vst [vmem:[#allocation130_spill] sm:$0xff] %v8777_v49 }
 0x7cc   : > { %v2135_v12 = vpop.f32.mrf.mxu0 }
 0x7cd   : > { %v2205_v11 = vmax.f32 %v2135_v12, 1e-20 }
 0x7cf   : > { %6073 = vrcp.f32 %v2205_v11  ;;  %v3120_v56 = vand.u32 2147483648, %v2205_v11  ;;  %v3118_v12 = vand.u32 2147483647, %v2205_v11  ;;  %vm3114_vm2 = vweird.f32 %v2205_v11 }
 0x7d0   : > { %5504 = vmatmul.msk.bf16.gmra.mxu1 %vm298_vm0, %v3625_v58  ;;  %5536 = vmatmul.msk.bf16.gmra.mxu2 %vm298_vm0, %v3625_v58 }
 0x7d1   : > { %5568 = vmatmul.msk.bf16.gmra.mxu3 %vm298_vm0, %v3625_v58  ;;  %5630 = vmatmul.msk.bf16.gmra.mxu0 %vm298_vm0, %v8768_v14  ;;  %v3588_v58 = vmul.f32 %v8445_v18, %v3448_v51  ;;  %v8784_v14 = vpop.f32.mrf.mxu2  ;;  %v3121_v33 = vor.u32 1.1754944e-38, %v3120_v56  ;;  %vm3119_vm4 = vcmp.eq.f32.partialorder %v3118_v12, 8.507059e+37  ;;  %v5760_v56 = vld [vmem:[#allocation2 + $0x3a0] sm:$0xf0] }
 0x7d2   : > { %9950 = vst [vmem:[#allocation21_spill] sm:$0xff] %v8784_v14  ;;  %v8791_v40 = vpop.f32.mrf.mxu3  ;;  %v6154_v14 = vld [vmem:[%s6253_s22 + $0x80] sm:$0xff] }
 0x7d3   : > { %9952 = vst [vmem:[#allocation19_spill] sm:$0xff] %v8791_v40 }
 0x7d4   : > { %v2137_v21 = vpop.f32.mrf.mxu0 }
 0x7d5   : > { %v6074_v54 = vpop.eup %6073  ;;  %v2206_v36 = vmax.f32 %v2137_v21, 1e-20  ;;  %v3587_v21 = vmul.f32 %v8440_v42, %v3446_v60 }
 0x7d6   : > { %v3110_v24 = vmul.f32 %v6074_v54, %v2205_v11  ;;  %vm3115_vm1 = vweird.f32 %v6074_v54  ;;  %v8789_v51 = vpop.f32.mrf.mxu1 }
 0x7d7   : > { %6075 = vrcp.f32 %v2206_v36  ;;  %vm3116_vm3 = vmor %vm3114_vm2, %vm3115_vm1  ;;  %v3626_v6 = vpack.c.bf16 %v3588_v58, %v3587_v21  ;;  %vm3129_vm6 = vweird.f32 %v2206_v36 }
 0x7d8   : > { %v3111_v52 = vsub.f32 1.0, %v3110_v24  ;;  %v3183_v24 = vmul.f32 %v6150_v35, %v9951_v44  ;;  %v3135_v44 = vand.u32 2147483648, %v2206_v36 }
 0x7da   : > { %v3112_v59 = vmul.f32 %v6074_v54, %v3111_v52  ;;  %v8795_v42 = vpack.c.bf16 %v3184_v39, %v3183_v24 }
 0x7dc   : > { %v3113_v49 = vadd.f32 %v6074_v54, %v3112_v59  ;;  %v3450_v59 = vpop.permute.xlu1 %3449 }
 0x7dd   : > { %v6076_v61 = vpop.eup %6075 }
 0x7de   : > { %v3125_v18 = vmul.f32 %v6076_v61, %v2206_v36  ;;  %v2140_v52 = vpop.f32.mrf.mxu0  ;;  %v3117_v43 = vsel %vm3116_vm3, %v6074_v54, %v3113_v49  ;;  %vm3130_vm5 = vweird.f32 %v6076_v61  ;;  %v5586_v49 = vld [vmem:[#allocation2 + $0x398] sm:$0xf] }
 0x7df   : > { %v8793_v38 = vmax.f32 %v2140_v52, 1e-20  ;;  %v3122_v11 = vsel %vm3119_vm4, %v3121_v33, %v3117_v43  ;;  %v3133_v43 = vand.u32 2147483647, %v2206_v36  ;;  %v8805_v33 = vpop.f32.mrf.mxu2  ;;  %vm3131_vm7 = vmor %vm3129_vm6, %vm3130_vm5  ;;  %v5587_v58 = vor.u32 %v5760_v56, %v5586_v49  ;;  %v3452_v52 = vpop.permute.xlu2 %3451  ;;  %v8819_v49 = vld [vmem:[%s6253_s22 + $0x1e0] sm:$0xff] }
 0x7e0   : > { %v3126_v60 = vsub.f32 1.0, %v3125_v18  ;;  %5505 = vmatmul.msk.bf16.gmra.mxu1 %vm298_vm0, %v3626_v6  ;;  %5537 = vmatmul.msk.bf16.gmra.mxu2 %vm298_vm0, %v3626_v6  ;;  %v3123_v35 = vmul.f32 %v8488_v53, %v3122_v11  ;;  %9953 = vst [vmem:[#allocation132_spill] sm:$0xff] %v8805_v33  ;;  %v3136_v53 = vor.u32 1.1754944e-38, %v3135_v44  ;;  %v8809_v11 = vpop.f32.mrf.mxu1  ;;  %v8813_v44 = vpop.f32.mrf.mxu3 }
 0x7e1   : > { %6077 = vrcp.f32 %v8793_v38  ;;  %5569 = vmatmul.msk.bf16.gmra.mxu3 %vm298_vm0, %v3626_v6  ;;  %5631 = vmatmul.msk.bf16.gmra.mxu0 %vm298_vm0, %v8795_v42  ;;  %vm3134_vm8 = vcmp.eq.f32.partialorder %v3133_v43, 8.507059e+37  ;;  %9954 = vst [vmem:[#allocation133_spill] sm:$0xff] %v8809_v11  ;;  %v5580_v43 = vld [vmem:[#allocation2 + $0x39c] sm:$0xf0]  ;;  %v3148_v33 = vand.u32 2147483647, %v8793_v38  ;;  %vm3144_vm10 = vweird.f32 %v8793_v38 }
 0x7e2   : > { %3465 = vrot.lane.b32.xlu0 %v3123_v35, %s6220_s23  ;;  %v3127_v39 = vmul.f32 %v6076_v61, %v3126_v60  ;;  %4821 = vmatpush.bf16.msra.mxu2 %v5587_v58  ;;  %9955 = vst [vmem:[#allocation134_spill] sm:$0xff] %v8813_v44  ;;  %v3229_v56 = vmul.f32 %v8819_v49, %v3123_v35  ;;  %v9957_v44 = vld [vmem:[#allocation23_spill] sm:$0xff] }
 0x7e3   : > { %v3185_v40 = vmul.f32 %v6154_v14, %v9957_v44  ;;  %vm3149_vm12 = vcmp.eq.f32.partialorder %v3148_v33, 8.507059e+37 }
 0x7e4   : > { %v3128_v54 = vadd.f32 %v6076_v61, %v3127_v39  ;;  %v5758_v39 = vld [vmem:[#allocation2 + $0x394] sm:$0xf] }
 0x7e5   : > { %v5583_v58 = vor.u32 %v5758_v39, %v5580_v43  ;;  %v9959_v43 = vld [vmem:[#allocation40_spill] sm:$0xff] }
 0x7e6   : > { %v2142_v6 = vpop.f32.mrf.mxu0  ;;  %v3132_v12 = vsel %vm3131_vm7, %v6076_v61, %v3128_v54  ;;  %v3589_v61 = vmul.f32 %v8509_v5, %v3450_v59  ;;  %v9956_v5 = vld [vmem:[#allocation29_spill] sm:$0xff] }
 0x7e7   : > { %v6078_v21 = vpop.eup %6077  ;;  %v8807_v24 = vmax.f32 %v2142_v6, 1e-20  ;;  %v3137_v18 = vsel %vm3134_vm8, %v3136_v53, %v3132_v12  ;;  %v8824_v53 = vld [vmem:[%s6253_s22 + $0x1e8] sm:$0xff]  ;;  %v3590_v12 = vmul.f32 %v8519_v48, %v3452_v52  ;;  %4652 = vmatpush.bf16.msra.mxu1 %v5583_v58  ;;  %v8836_v11 = vpop.f32.mrf.mxu2 }
 0x7e8   : > { %v3140_v36 = vmul.f32 %v6078_v21, %v8793_v38  ;;  %v3138_v60 = vmul.f32 %v8483_v7, %v3137_v18  ;;  %v6153_v6 = vld [vmem:[%s6253_s22 + $0x88] sm:$0xff]  ;;  %v3150_v18 = vand.u32 2147483648, %v8793_v38  ;;  %vm3145_vm9 = vweird.f32 %v6078_v21  ;;  %9958 = vst [vmem:[#allocation29_spill] sm:$0xff] %v8836_v11  ;;  %v8853_v58 = vpop.f32.mrf.mxu3 }
 0x7e9   : > { %6079 = vrcp.f32 %v8807_v24  ;;  %v3186_v59 = vmul.f32 %v6153_v6, %v9956_v5  ;;  %v3627_v48 = vpack.c.bf16 %v3590_v12, %v3589_v61  ;;  %vm3146_vm11 = vmor %vm3144_vm10, %vm3145_vm9  ;;  %9960 = vst [vmem:[#allocation23_spill] sm:$0xff] %v8853_v58  ;;  %v3165_v5 = vand.u32 2147483648, %v8807_v24 }
 0x7ea   : > { %v3141_v54 = vsub.f32 1.0, %v3140_v36  ;;  %3467 = vrot.lane.b32.xlu1 %v3138_v60, %s6220_s23  ;;  %v3230_v7 = vmul.f32 %v8824_v53, %v3138_v60  ;;  %v3151_v14 = vor.u32 1.1754944e-38, %v3150_v18  ;;  %v3163_v33 = vand.u32 2147483647, %v8807_v24 }
 0x7eb   : > { %vm3159_vm14 = vweird.f32 %v8807_v24 }
 0x7ec   : > { %v3142_v36 = vmul.f32 %v6078_v21, %v3141_v54  ;;  %v8832_v35 = vpack.c.bf16 %v3230_v7, %v3229_v56  ;;  %v8845_v56 = vpack.c.bf16 %v3186_v59, %v3185_v40  ;;  %vm3164_vm1 = vcmp.eq.f32.partialorder %v3163_v33, 8.507059e+37 }
 0x7ed   : > { %v8849_v7 = vpop.f32.mrf.mxu1 }
 0x7ee   : > { %v4485_v52 = vpop.f32.mrf.mxu0  ;;  %v3143_v60 = vadd.f32 %v6078_v21, %v3142_v36  ;;  %v3456_v36 = vpop.permute.xlu1 %3455 }
 0x7ef   : > { %v6080_v39 = vpop.eup %6079  ;;  %v4486_v54 = vadd.f32 %v4485_v52, %v9959_v43  ;;  %v3166_v52 = vor.u32 1.1754944e-38, %v3165_v5  ;;  %v3454_v43 = vpop.permute.xlu0 %3453 }
 0x7f0   : > { %v3155_v44 = vmul.f32 %v6080_v39, %v8807_v24  ;;  %5506 = vmatmul.msk.bf16.gmra.mxu1 %vm298_vm0, %v3627_v48  ;;  %5538 = vmatmul.msk.bf16.gmra.mxu2 %vm298_vm0, %v3627_v48  ;;  %v3147_v61 = vsel %vm3146_vm11, %v6078_v21, %v3143_v60  ;;  %vm3160_vm13 = vweird.f32 %v6080_v39  ;;  %v6155_v24 = vld [vmem:[%s6253_s22 + $0x98] sm:$0xff]  ;;  %v3591_v5 = vmul.f32 %v8559_v19, %v3454_v43 }
 0x7f1   : > { %4983 = vst [vmem:[%s8841_s27] sm:$0xff] %v4486_v54  ;;  %5570 = vmatmul.msk.bf16.gmra.mxu3 %vm298_vm0, %v3627_v48  ;;  %5632 = vmatmul.msk.bf16.gmra.mxu0 %vm298_vm0, %v8845_v56  ;;  %v3152_v40 = vsel %vm3149_vm12, %v3151_v14, %v3147_v61  ;;  %v9962_v48 = vld [vmem:[#allocation42_spill] sm:$0xff]  ;;  %vm3161_vm15 = vmor %vm3159_vm14, %vm3160_vm13  ;;  %v3592_v14 = vmul.f32 %v8564_v26, %v3456_v36 }
 0x7f2   : > { %v3156_v38 = vsub.f32 1.0, %v3155_v44  ;;  %v3153_v6 = vmul.f32 %v8538_v16, %v3152_v40  ;;  %v9963_v40 = vld [vmem:[#allocation5_spill] sm:$0xff] }
 0x7f3   : > { %v8863_v21 = vpop.f32.mrf.mxu2 }
 0x7f4   : > { %3469 = vrot.lane.b32.xlu2 %v3153_v6, %s6220_s23  ;;  %v3157_v59 = vmul.f32 %v6080_v39, %v3156_v38  ;;  %9961 = vst [vmem:[#allocation40_spill] sm:$0xff] %v8863_v21  ;;  %v3188_v38 = vmul.f32 %v6155_v24, %v9963_v40  ;;  %v9969_v40 = vld [vmem:[#allocation47_spill] sm:$0xff] }
 0x7f5   : > { %v8869_v44 = vpop.f32.mrf.mxu1 }
 0x7f6   : > { %v4487_v12 = vpop.f32.mrf.mxu0  ;;  %v3158_v18 = vadd.f32 %v6080_v39, %v3157_v59  ;;  %v8874_v59 = vpop.f32.mrf.mxu3 }
 0x7f7   : > { %v4488_v16 = vadd.f32 %v4487_v12, %v9962_v48  ;;  %9964 = vst [vmem:[#allocation42_spill] sm:$0xff] %v8874_v59  ;;  %v8883_v12 = vld [vmem:[%s6253_s22 + $0x1f8] sm:$0xff]  ;;  %v3628_v48 = vpack.c.bf16 %v3592_v14, %v3591_v5  ;;  %v3460_v24 = vpop.permute.xlu0 %3459  ;;  %v3458_v5 = vpop.permute.xlu2 %3457 }
 0x7f8   : > { %v3162_v60 = vsel %vm3161_vm15, %v6080_v39, %v3158_v18  ;;  %v8878_v39 = vld [vmem:[%s6253_s22 + $0x1f0] sm:$0xff] }
 0x7f9   : > { %4986 = vst [vmem:[%s8841_s27 + $0x18] sm:$0xff] %v4488_v16  ;;  %v3167_v54 = vsel %vm3164_vm1, %v3166_v52, %v3162_v60  ;;  %v3231_v33 = vmul.f32 %v8878_v39, %v3153_v6  ;;  %v6158_v18 = vld [vmem:[%s6253_s22 + $0x90] sm:$0xff]  ;;  %v9967_v60 = vld [vmem:[#allocation44_spill] sm:$0xff] }
 0x7fa   : > { %v3168_v61 = vmul.f32 %v8535_v47, %v3167_v54  ;;  %v9965_v47 = vld [vmem:[#allocation26_spill] sm:$0xff] }
 0x7fb   : > { %v3187_v36 = vmul.f32 %v6158_v18, %v9965_v47  ;;  %v8890_v19 = vpop.f32.mrf.mxu2  ;;  %v6159_v18 = vld [vmem:[%s6253_s22 + $0xa8] sm:$0xff]  ;;  %v9971_v47 = vld [vmem:[#allocation35_spill] sm:$0xff] }
 0x7fc   : > { %3471 = vrot.lane.b32.xlu0 %v3168_v61, %s6220_s23  ;;  %v3232_v26 = vmul.f32 %v8883_v12, %v3168_v61  ;;  %9966 = vst [vmem:[#allocation5_spill] sm:$0xff] %v8890_v19 }
 0x7fd   : > { %v8893_v6 = vpack.c.bf16 %v3188_v38, %v3187_v36  ;;  %v8901_v54 = vpop.f32.mrf.mxu1  ;;  %v3190_v36 = vmul.f32 %v6159_v18, %v9971_v47 }
 0x7fe   : > { %v4490_v16 = vpop.f32.mrf.mxu0  ;;  %v8888_v52 = vpack.c.bf16 %v3232_v26, %v3231_v33  ;;  %v8903_v14 = vpop.f32.mrf.mxu3  ;;  %v3594_v26 = vmul.f32 %v8606_v0, %v3460_v24 }
 0x7ff   : > { %v4491_v43 = vadd.f32 %v4490_v16, %v9967_v60  ;;  %9968 = vst [vmem:[#allocation26_spill] sm:$0xff] %v8903_v14  ;;  %v6160_v16 = vld [vmem:[%s6253_s22 + $0xa0] sm:$0xff]  ;;  %v9972_v60 = vld [vmem:[#allocation33_spill] sm:$0xff] }
 0x800   : > { %5507 = vmatmul.msk.bf16.gmra.mxu1 %vm298_vm0, %v3628_v48  ;;  %5539 = vmatmul.msk.bf16.gmra.mxu2 %vm298_vm0, %v3628_v48  ;;  %v9999_v14 = vld [vmem:[#allocation9_spill] sm:$0xff] }
 0x801   : > { %4989 = vst [vmem:[%s8841_s27 + $0x30] sm:$0xff] %v4491_v43  ;;  %5571 = vmatmul.msk.bf16.gmra.mxu3 %vm298_vm0, %v3628_v48  ;;  %5633 = vmatmul.msk.bf16.gmra.mxu0 %vm298_vm0, %v8893_v6  ;;  %v3593_v48 = vmul.f32 %v8601_v15, %v3458_v5  ;;  %v3189_v43 = vmul.f32 %v6160_v16, %v9972_v60  ;;  %v9977_v5 = vld [vmem:[#allocation52_spill] sm:$0xff]  ;;  %v6162_v60 = vld [vmem:[%s6253_s22 + $0xb0] sm:$0xff] }
 0x803   : > { %v8906_v33 = vpop.f32.mrf.mxu2  ;;  %v3629_v19 = vpack.c.bf16 %v3594_v26, %v3593_v48 }
 0x804   : > { %9970 = vst [vmem:[#allocation44_spill] sm:$0xff] %v8906_v33 }
 0x805   : > { %v8915_v21 = vpop.f32.mrf.mxu1 }
 0x806   : > { %v4492_v61 = vpop.f32.mrf.mxu0  ;;  %v3464_v47 = vpop.permute.xlu2 %3463 }
 0x807   : > { %v4493_v38 = vadd.f32 %v4492_v61, %v9969_v40  ;;  %v8917_v61 = vpop.f32.mrf.mxu3  ;;  %v9974_v40 = vld [vmem:[#allocation49_spill] sm:$0xff]  ;;  %v3596_v16 = vmul.f32 %v8707_v20, %v3464_v47  ;;  %v9984_v47 = vld [vmem:[#allocation59_spill] sm:$0xff] }
 0x808   : > { %9973 = vst [vmem:[#allocation47_spill] sm:$0xff] %v8917_v61 }
 0x809   : > { %4992 = vst [vmem:[%s8841_s27 + $0x48] sm:$0xff] %v4493_v38  ;;  %v8920_v38 = vpack.c.bf16 %v3190_v36, %v3189_v43  ;;  %v6161_v36 = vld [vmem:[%s6253_s22 + $0xb8] sm:$0xff]  ;;  %v9979_v43 = vld [vmem:[#allocation27_spill] sm:$0xff] }
 0x80b   : > { %v8928_v15 = vpop.f32.mrf.mxu2 }
 0x80c   : > { %9975 = vst [vmem:[#allocation35_spill] sm:$0xff] %v8928_v15 }
 0x80d   : > { %v8933_v18 = vpop.f32.mrf.mxu1 }
 0x80e   : > { %v4495_v11 = vpop.f32.mrf.mxu0 }
 0x80f   : > { %v4496_v33 = vadd.f32 %v4495_v11, %v9974_v40  ;;  %v8930_v24 = vpop.f32.mrf.mxu3  ;;  %v3191_v40 = vmul.f32 %v6162_v60, %v9979_v43  ;;  %v9986_v60 = vld [vmem:[#allocation34_spill] sm:$0xff] }
 0x810   : > { %5508 = vmatmul.msk.bf16.gmra.mxu1 %vm298_vm0, %v3629_v19  ;;  %5540 = vmatmul.msk.bf16.gmra.mxu2 %vm298_vm0, %v3629_v19  ;;  %9976 = vst [vmem:[#allocation33_spill] sm:$0xff] %v8930_v24  ;;  %v9981_v24 = vld [vmem:[#allocation54_spill] sm:$0xff] }
 0x811   : > { %4995 = vst [vmem:[%s8841_s27 + $0x60] sm:$0xff] %v4496_v33  ;;  %5572 = vmatmul.msk.bf16.gmra.mxu3 %vm298_vm0, %v3629_v19  ;;  %5634 = vmatmul.msk.bf16.gmra.mxu0 %vm298_vm0, %v8920_v38  ;;  %v9978_v19 = vld [vmem:[#allocation28_spill] sm:$0xff] }
 0x812   : > { %v3192_v48 = vmul.f32 %v6161_v36, %v9978_v19  ;;  %v6163_v36 = vld [vmem:[%s6253_s22 + $0xc8] sm:$0xff] }
 0x813   : > { %v8942_v15 = vpop.f32.mrf.mxu2  ;;  %v9985_v19 = vld [vmem:[#allocation36_spill] sm:$0xff] }
 0x814   : > { %9980 = vst [vmem:[#allocation49_spill] sm:$0xff] %v8942_v15 }
 0x815   : > { %v8955_v20 = vpop.f32.mrf.mxu1 }
 0x816   : > { %v4497_v0 = vpop.f32.mrf.mxu0  ;;  %v3462_v11 = vpop.permute.xlu1 %3461 }
 0x817   : > { %v4498_v26 = vadd.f32 %v4497_v0, %v9977_v5  ;;  %v3595_v33 = vmul.f32 %v8702_v41, %v3462_v11  ;;  %v8949_v41 = vpop.f32.mrf.mxu3 }
 0x818   : > { %9982 = vst [vmem:[#allocation52_spill] sm:$0xff] %v8949_v41 }
 0x819   : > { %4998 = vst [vmem:[%s8841_s27 + $0x78] sm:$0xff] %v4498_v26  ;;  %v3630_v0 = vpack.c.bf16 %v3596_v16, %v3595_v33  ;;  %v8945_v26 = vpack.c.bf16 %v3192_v48, %v3191_v40  ;;  %v3194_v48 = vmul.f32 %v6163_v36, %v9985_v19  ;;  %v6164_v16 = vld [vmem:[%s6253_s22 + $0xc0] sm:$0xff]  ;;  %v6165_v36 = vld [vmem:[%s6253_s22 + $0xd8] sm:$0xff] }
 0x81a   : > { %v3193_v43 = vmul.f32 %v6164_v16, %v9986_v60  ;;  %v9989_v19 = vld [vmem:[#allocation31_spill] sm:$0xff]  ;;  %v6166_v60 = vld [vmem:[%s6253_s22 + $0xd0] sm:$0xff] }
 0x81b   : > { %v3196_v16 = vmul.f32 %v6165_v36, %v9989_v19  ;;  %v6167_v19 = vld [vmem:[%s6253_s22 + $0xe8] sm:$0xff] }
 0x81c   : > { %v8968_v15 = vpack.c.bf16 %v3194_v48, %v3193_v43  ;;  %v9991_v43 = vld [vmem:[#allocation30_spill] sm:$0xff] }
 0x81e   : > { %v4500_v5 = vpop.f32.mrf.mxu0 }
 0x81f   : > { %v4501_v61 = vadd.f32 %v4500_v5, %v9981_v24  ;;  %v8957_v24 = vpop.f32.mrf.mxu2 }
 0x820   : > { %5509 = vmatmul.msk.bf16.gmra.mxu1 %vm298_vm0, %v3630_v0  ;;  %5541 = vmatmul.msk.bf16.gmra.mxu2 %vm298_vm0, %v3630_v0  ;;  %9983 = vst [vmem:[#allocation28_spill] sm:$0xff] %v8957_v24 }
 0x821   : > { %5001 = vst [vmem:[%s8841_s27 + $0x90] sm:$0xff] %v4501_v61  ;;  %5573 = vmatmul.msk.bf16.gmra.mxu3 %vm298_vm0, %v3630_v0  ;;  %5635 = vmatmul.msk.bf16.gmra.mxu0 %vm298_vm0, %v8945_v26  ;;  %v8963_v61 = vpop.f32.mrf.mxu1  ;;  %v9987_v0 = vld [vmem:[#allocation62_spill] sm:$0xff] }
 0x826   : > { %v4502_v11 = vpop.f32.mrf.mxu0 }
 0x827   : > { %v4503_v33 = vadd.f32 %v4502_v11, %v9984_v47  ;;  %v8970_v24 = vpop.f32.mrf.mxu2 }
 0x828   : > { %9988 = vst [vmem:[#allocation27_spill] sm:$0xff] %v8970_v24 }
 0x829   : > { %5004 = vst [vmem:[%s8841_s27 + $0xa8] sm:$0xff] %v4503_v33  ;;  %v8975_v11 = vpop.f32.mrf.mxu1 }
 0x82e   : > { %v4505_v40 = vpop.f32.mrf.mxu0 }
 0x82f   : > { %v4506_v5 = vadd.f32 %v4505_v40, %v9987_v0  ;;  %v8981_v48 = vpop.f32.mrf.mxu2  ;;  %v3195_v40 = vmul.f32 %v6166_v60, %v9991_v43  ;;  %v6168_v60 = vld [vmem:[%s6253_s22 + $0xe0] sm:$0xff]  ;;  %v9994_v43 = vld [vmem:[#allocation32_spill] sm:$0xff] }
 0x830   : > { %9990 = vst [vmem:[#allocation54_spill] sm:$0xff] %v8981_v48 }
 0x831   : > { %5007 = vst [vmem:[%s8841_s27 + $0xc0] sm:$0xff] %v4506_v5  ;;  %5636 = vmatmul.msk.bf16.gmra.mxu0 %vm298_vm0, %v8968_v15  ;;  %v8986_v24 = vpack.c.bf16 %v3196_v16, %v3195_v40  ;;  %v8988_v41 = vpop.f32.mrf.mxu1  ;;  %v3197_v40 = vmul.f32 %v6168_v60, %v9994_v43  ;;  %v9998_v43 = vld [vmem:[#allocation10_spill] sm:$0xff] }
 0x836   : > { %v4507_v47 = vpop.f32.mrf.mxu0 }
 0x837   : > { %v4508_v33 = vadd.f32 %v4507_v47, %v8118_v10  ;;  %v8993_v10 = vpop.f32.mrf.mxu2 }
 0x838   : > { %9992 = vst [vmem:[#allocation59_spill] sm:$0xff] %v8993_v10 }
 0x839   : > { %5010 = vst [vmem:[%s8841_s27 + $0xd8] sm:$0xff] %v4508_v33  ;;  %v8997_v36 = vpop.f32.mrf.mxu1 }
 0x83e   : > { %v4510_v0 = vpop.f32.mrf.mxu0 }
 0x83f   : > { %v4511_v5 = vadd.f32 %v4510_v0, %v8173_v22  ;;  %v9993_v22 = vld [vmem:[#allocation39_spill] sm:$0xff] }
 0x840   : > { %v3198_v16 = vmul.f32 %v6167_v19, %v9993_v22 }
 0x841   : > { %5013 = vst [vmem:[%s8841_s27 + $0xf0] sm:$0xff] %v4511_v5  ;;  %5637 = vmatmul.msk.bf16.gmra.mxu0 %vm298_vm0, %v8986_v24  ;;  %v9003_v5 = vpop.f32.mrf.mxu2 }
 0x842   : > { %9995 = vst [vmem:[#allocation36_spill] sm:$0xff] %v9003_v5  ;;  %v9006_v10 = vpack.c.bf16 %v3198_v16, %v3197_v40  ;;  %v6170_v5 = vld [vmem:[%s6253_s22 + $0xf0] sm:$0xff] }
 0x843   : > { %v3199_v59 = vmul.f32 %v6170_v5, %v9999_v14  ;;  %v6171_v5 = vld [vmem:[%s6253_s22 + $0x108] sm:$0xff] }
 0x846   : > { %v4512_v47 = vpop.f32.mrf.mxu0 }
 0x847   : > { %v4513_v33 = vadd.f32 %v4512_v47, %v8266_v27  ;;  %v9011_v27 = vpop.f32.mrf.mxu1  ;;  %v9013_v47 = vpop.f32.mrf.mxu3 }
 0x848   : > { %9996 = vst [vmem:[#allocation34_spill] sm:$0xff] %v9013_v47 }
 0x849   : > { %5016 = vst [vmem:[%s8841_s27 + $0x108] sm:$0xff] %v4513_v33  ;;  %v9016_v22 = vpop.f32.mrf.mxu2 }
 0x84a   : > { %9997 = vst [vmem:[#allocation62_spill] sm:$0xff] %v9016_v22 }
 0x84e   : > { %v4515_v0 = vpop.f32.mrf.mxu0 }
 0x84f   : > { %v4516_v48 = vadd.f32 %v4515_v0, %v8331_v4  ;;  %v6169_v4 = vld [vmem:[%s6253_s22 + $0xf8] sm:$0xff]  ;;  %v9025_v47 = vpop.f32.mrf.mxu1  ;;  %v9028_v22 = vpop.f32.mrf.mxu3 }
 0x850   : > { %v3200_v16 = vmul.f32 %v6169_v4, %v9998_v43  ;;  %v3470_v43 = vpop.permute.xlu2 %3469 }
 0x851   : > { %5019 = vst [vmem:[%s8841_s27 + $0x120] sm:$0xff] %v4516_v48  ;;  %5638 = vmatmul.msk.bf16.gmra.mxu0 %vm298_vm0, %v9006_v10 }
 0x852   : > { %v9030_v58 = vpack.c.bf16 %v3200_v16, %v3199_v59 }
 0x854   : > { %v3466_v60 = vpop.permute.xlu0 %3465 }
 0x855   : > { %v3597_v48 = vmul.f32 %v8819_v49, %v3466_v60  ;;  %v9038_v49 = vpop.f32.mrf.mxu2  ;;  %v10001_v60 = vld [vmem:[#allocation38_spill] sm:$0xff] }
 0x856   : > { %v4517_v33 = vpop.f32.mrf.mxu0  ;;  %10000 = vst [vmem:[#allocation31_spill] sm:$0xff] %v9038_v49  ;;  %v3202_v4 = vmul.f32 %v6171_v5, %v10001_v60 }
 0x857   : > { %v4518_v19 = vadd.f32 %v4517_v33, %v8393_v31  ;;  %v9041_v14 = vpop.f32.mrf.mxu1  ;;  %v9044_v59 = vpop.f32.mrf.mxu3 }
 0x859   : > { %5022 = vst [vmem:[%s8841_s27 + $0x138] sm:$0xff] %v4518_v19 }
 0x85c   : > { %v3468_v40 = vpop.permute.xlu1 %3467 }
 0x85d   : > { %v3598_v0 = vmul.f32 %v8824_v53, %v3468_v40  ;;  %v9048_v16 = vpop.f32.mrf.mxu2  ;;  %v6172_v40 = vld [vmem:[%s6253_s22 + $0x100] sm:$0xff] }
 0x85e   : > { %v4520_v31 = vpop.f32.mrf.mxu0  ;;  %10002 = vst [vmem:[#allocation30_spill] sm:$0xff] %v9048_v16 }
 0x85f   : > { %v3631_v33 = vpack.c.bf16 %v3598_v0, %v3597_v48  ;;  %v4521_v19 = vadd.f32 %v4520_v31, %v8426_v28  ;;  %v10003_v48 = vld [vmem:[#allocation37_spill] sm:$0xff]  ;;  %v9058_v60 = vpop.f32.mrf.mxu1 }
 0x860   : > { %v3201_v0 = vmul.f32 %v6172_v40, %v10003_v48  ;;  %v10006_v40 = vld [vmem:[#allocation13_spill] sm:$0xff] }
 0x861   : > { %5025 = vst [vmem:[%s8841_s27 + $0x150] sm:$0xff] %v4521_v19  ;;  %5510 = vmatmul.msk.bf16.gmra.mxu1 %vm298_vm0, %v3631_v33  ;;  %5542 = vmatmul.msk.bf16.gmra.mxu2 %vm298_vm0, %v3631_v33 }
 0x862   : > { %5574 = vmatmul.msk.bf16.gmra.mxu3 %vm298_vm0, %v3631_v33  ;;  %5639 = vmatmul.msk.bf16.gmra.mxu0 %vm298_vm0, %v9030_v58 }
 0x866   : > { %v4522_v53 = vpop.f32.mrf.mxu0 }
 0x867   : > { %v4523_v28 = vadd.f32 %v4522_v53, %v8436_v25  ;;  %v3599_v25 = vmul.f32 %v8878_v39, %v3470_v43  ;;  %v9064_v39 = vpop.f32.mrf.mxu3  ;;  %v6173_v43 = vld [vmem:[%s6253_s22 + $0x118] sm:$0xff] }
 0x868   : > { %10004 = vst [vmem:[#allocation39_spill] sm:$0xff] %v9064_v39  ;;  %v3204_v48 = vmul.f32 %v6173_v43, %v10006_v40 }
 0x869   : > { %5028 = vst [vmem:[%s8841_s27 + $0x168] sm:$0xff] %v4523_v28  ;;  %v9055_v28 = vpack.c.bf16 %v3202_v4, %v3201_v0  ;;  %v9068_v4 = vpop.f32.mrf.mxu2  ;;  %v9073_v0 = vpop.f32.mrf.mxu1 }
 0x86a   : > { %10005 = vst [vmem:[#allocation32_spill] sm:$0xff] %v9068_v4  ;;  %v10057_v4 = vld [vmem:[#allocation60_spill] sm:$0xff] }
 0x86e   : > { %v4525_v31 = vpop.f32.mrf.mxu0  ;;  %v3472_v33 = vpop.permute.xlu0 %3471 }
 0x86f   : > { %v4526_v19 = vadd.f32 %v4525_v31, %v8458_v17  ;;  %v3600_v53 = vmul.f32 %v8883_v12, %v3472_v33  ;;  %v6174_v31 = vld [vmem:[%s6253_s22 + $0x110] sm:$0xff]  ;;  %v10007_v33 = vld [vmem:[#allocation12_spill] sm:$0xff] }
 0x871   : > { %5031 = vst [vmem:[%s8841_s27 + $0x180] sm:$0xff] %v4526_v19  ;;  %v3632_v5 = vpack.c.bf16 %v3600_v53, %v3599_v25  ;;  %v3203_v25 = vmul.f32 %v6174_v31, %v10007_v33 }
 0x872   : > { %5640 = vmatmul.msk.bf16.gmra.mxu0 %vm298_vm0, %v9055_v28 }
 0x873   : > { %5511 = vmatmul.msk.bf16.gmra.mxu1 %vm298_vm0, %v3632_v5  ;;  %5543 = vmatmul.msk.bf16.gmra.mxu2 %vm298_vm0, %v3632_v5  ;;  %v9078_v16 = vpack.c.bf16 %v3204_v48, %v3203_v25  ;;  %v3205_v48 = vmul.f32 %v8580_v3, %v8169_v37  ;;  %v3208_v3 = vmul.f32 %v8614_v57, %v8178_v34  ;;  %v10014_v57 = vld [vmem:[#allocation25_spill] sm:$0xff] }
 0x874   : > { %5575 = vmatmul.msk.bf16.gmra.mxu3 %vm298_vm0, %v3632_v5  ;;  %v9089_v5 = vpop.f32.mrf.mxu1 }
 0x876   : > { %v4527_v17 = vpop.f32.mrf.mxu0 }
 0x877   : > { %v4528_v12 = vadd.f32 %v4527_v17, %v8466_v55  ;;  %v9081_v55 = vpop.f32.mrf.mxu2 }
 0x878   : > { %10008 = vst [vmem:[#allocation10_spill] sm:$0xff] %v9081_v55 }
 0x879   : > { %5034 = vst [vmem:[%s8841_s27 + $0x198] sm:$0xff] %v4528_v12  ;;  %v10009_v12 = vld [vmem:[#allocation64_spill] sm:$0xff] }
 0x87a   : > { %v3206_v43 = vmul.f32 %v8576_v46, %v10009_v12 }
 0x87c   : > { %v9100_v25 = vpop.f32.mrf.mxu1 }
 0x87e   : > { %v4530_v19 = vpop.f32.mrf.mxu0 }
 0x87f   : > { %v4531_v53 = vadd.f32 %v4530_v19, %v8477_v13  ;;  %v9095_v40 = vpop.f32.mrf.mxu2  ;;  %v3207_v19 = vmul.f32 %v8620_v29, %v8121_v63  ;;  %v10015_v29 = vld [vmem:[#allocation107_spill] sm:$0xff] }
 0x880   : > { %10010 = vst [vmem:[#allocation9_spill] sm:$0xff] %v9095_v40  ;;  %v3210_v12 = vmul.f32 %v10015_v29, %v10014_v57  ;;  %v10022_v29 = vld [vmem:[#allocation72_spill] sm:$0xff] }
 0x881   : > { %5037 = vst [vmem:[%s8841_s27 + $0x1b0] sm:$0xff] %v4531_v53 }
 0x882   : > { %5641 = vmatmul.msk.bf16.gmra.mxu0 %vm298_vm0, %v9078_v16 }
 0x883   : > { %5656 = vmatmul.msk.bf16.vlgmr.msra.gmra.mxu1 %vm298_vm0, %v9894_v32  ;;  %5688 = vmatmul.msk.bf16.vlgmr.msra.gmra.mxu2 %vm298_vm0, %v9894_v32  ;;  %v9102_v32 = vpack.c.bf16 %v3206_v43, %v3205_v48  ;;  %v10016_v43 = vld [vmem:[#allocation24_spill] sm:$0xff]  ;;  %v10017_v48 = vld [vmem:[#allocation106_spill] sm:$0xff] }
 0x884   : > { %v9115_v46 = vpop.f32.mrf.mxu1 }
 0x886   : > { %v4532_v17 = vpop.f32.mrf.mxu0 }
 0x887   : > { %v4533_v13 = vadd.f32 %v4532_v17, %v8493_v50  ;;  %v9111_v50 = vpop.f32.mrf.mxu2 }
 0x888   : > { %10011 = vst [vmem:[#allocation38_spill] sm:$0xff] %v9111_v50  ;;  %v10042_v50 = vld [vmem:[#allocation122_spill] sm:$0xff] }
 0x889   : > { %5040 = vst [vmem:[%s8841_s27 + $0x1c8] sm:$0xff] %v4533_v13 }
 0x88c   : > { %v9133_v34 = vpop.f32.mrf.mxu1 }
 0x88e   : > { %v4535_v31 = vpop.f32.mrf.mxu0 }
 0x88f   : > { %v4536_v33 = vadd.f32 %v4535_v31, %v8515_v1  ;;  %v9122_v13 = vpop.f32.mrf.mxu2  ;;  %v3209_v31 = vmul.f32 %v10017_v48, %v10016_v43 }
 0x890   : > { %10012 = vst [vmem:[#allocation37_spill] sm:$0xff] %v9122_v13 }
 0x891   : > { %5043 = vst [vmem:[%s8841_s27 + $0x1e0] sm:$0xff] %v4536_v33 }
 0x892   : > { %5642 = vmatmul.msk.bf16.gmra.mxu0 %vm298_vm0, %v9102_v32 }
 0x893   : > { %5657 = vmatmul.msk.bf16.gmra.mxu1 %vm298_vm0, %v9901_v9  ;;  %5689 = vmatmul.msk.bf16.gmra.mxu2 %vm298_vm0, %v9901_v9  ;;  %v9124_v9 = vpack.c.bf16 %v3208_v3, %v3207_v19  ;;  %v9146_v3 = vpack.c.bf16 %v3210_v12, %v3209_v31  ;;  %v10023_v12 = vld [vmem:[#allocation112_spill] sm:$0xff] }
 0x894   : > { %v9143_v33 = vpop.f32.mrf.mxu1  ;;  %v3211_v43 = vmul.f32 %v10023_v12, %v10022_v29  ;;  %v10030_v29 = vld [vmem:[#allocation115_spill] sm:$0xff] }
 0x896   : > { %v4537_v37 = vpop.f32.mrf.mxu0 }
 0x897   : > { %v4538_v1 = vadd.f32 %v4537_v37, %v8546_v8 }
 0x899   : > { %5046 = vst [vmem:[%s8841_s27 + $0x1f8] sm:$0xff] %v4538_v1  ;;  %v10018_v1 = vld [vmem:[#allocation103_spill] sm:$0xff] }
 0x89e   : > { %v4540_v53 = vpop.f32.mrf.mxu0 }
 0x89f   : > { %v4541_v17 = vadd.f32 %v4540_v53, %v8573_v62  ;;  %v9137_v62 = vpop.f32.mrf.mxu2  ;;  %v10020_v53 = vld [vmem:[#allocation105_spill] sm:$0xff] }
 0x8a0   : > { %10013 = vst [vmem:[#allocation13_spill] sm:$0xff] %v9137_v62 }
 0x8a1   : > { %5049 = vst [vmem:[%s8841_s27 + $0x210] sm:$0xff] %v4541_v17 }
 0x8a2   : > { %5643 = vmatmul.msk.bf16.gmra.mxu0 %vm298_vm0, %v9124_v9 }
 0x8a3   : > { %5658 = vmatmul.msk.bf16.gmra.mxu1 %vm298_vm0, %v9909_v30  ;;  %5690 = vmatmul.msk.bf16.gmra.mxu2 %vm298_vm0, %v9909_v30 }
 0x8a6   : > { %v4542_v63 = vpop.f32.mrf.mxu0 }
 0x8a7   : > { %v4543_v8 = vadd.f32 %v4542_v63, %v8597_v23  ;;  %v9155_v23 = vpop.f32.mrf.mxu2  ;;  %v9158_v63 = vpop.f32.mrf.mxu1 }
 0x8a8   : > { %10019 = vst [vmem:[#allocation12_spill] sm:$0xff] %v9155_v23  ;;  %v10033_v23 = vld [vmem:[#allocation114_spill] sm:$0xff] }
 0x8a9   : > { %5052 = vst [vmem:[%s8841_s27 + $0x228] sm:$0xff] %v4543_v8  ;;  %v10021_v8 = vld [vmem:[#allocation46_spill] sm:$0xff] }
 0x8aa   : > { %v3212_v57 = vmul.f32 %v8666_v2, %v10021_v8 }
 0x8ae   : > { %v4545_v37 = vpop.f32.mrf.mxu0 }
 0x8af   : > { %v4546_v30 = vadd.f32 %v4545_v37, %v10018_v1  ;;  %v9165_v48 = vpop.f32.mrf.mxu2  ;;  %v10025_v37 = vld [vmem:[#allocation8_spill] sm:$0xff]  ;;  %v9168_v1 = vpack.c.bf16 %v3212_v57, %v3211_v43  ;;  %v10029_v57 = vld [vmem:[#allocation75_spill] sm:$0xff] }
 0x8b0   : > { %10024 = vst [vmem:[#allocation64_spill] sm:$0xff] %v9165_v48  ;;  %v3214_v12 = vmul.f32 %v10030_v29, %v10029_v57  ;;  %v10036_v57 = vld [vmem:[#allocation119_spill] sm:$0xff] }
 0x8b1   : > { %5055 = vst [vmem:[%s8841_s27 + $0x240] sm:$0xff] %v4546_v30  ;;  %v9171_v30 = vpop.f32.mrf.mxu1 }
 0x8b2   : > { %5644 = vmatmul.msk.bf16.gmra.mxu0 %vm298_vm0, %v9146_v3 }
 0x8b3   : > { %5659 = vmatmul.msk.bf16.gmra.mxu1 %vm298_vm0, %v8673_v45  ;;  %5691 = vmatmul.msk.bf16.gmra.mxu2 %vm298_vm0, %v8673_v45 }
 0x8b6   : > { %v4547_v19 = vpop.f32.mrf.mxu0 }
 0x8b7   : > { %v4548_v17 = vadd.f32 %v4547_v19, %v10020_v53  ;;  %v10026_v19 = vld [vmem:[#allocation118_spill] sm:$0xff]  ;;  %v10027_v53 = vld [vmem:[#allocation11_spill] sm:$0xff]  ;;  %v9180_v8 = vpop.f32.mrf.mxu2 }
 0x8b8   : > { %10028 = vst [vmem:[#allocation25_spill] sm:$0xff] %v9180_v8 }
 0x8b9   : > { %5058 = vst [vmem:[%s8841_s27 + $0x258] sm:$0xff] %v4548_v17  ;;  %v9185_v43 = vpop.f32.mrf.mxu1 }
 0x8be   : > { %v4550_v31 = vpop.f32.mrf.mxu0 }
 0x8bf   : > { %v4551_v45 = vadd.f32 %v4550_v31, %v10025_v37  ;;  %v10031_v31 = vld [vmem:[#allocation73_spill] sm:$0xff]  ;;  %v10032_v37 = vld [vmem:[#allocation116_spill] sm:$0xff] }
 0x8c1   : > { %5061 = vst [vmem:[%s8841_s27 + $0x270] sm:$0xff] %v4551_v45  ;;  %v3213_v45 = vmul.f32 %v10032_v37, %v10031_v31  ;;  %v10040_v31 = vld [vmem:[#allocation76_spill] sm:$0xff]  ;;  %v10041_v37 = vld [vmem:[#allocation18_spill] sm:$0xff] }
 0x8c2   : > { %5645 = vmatmul.msk.bf16.gmra.mxu0 %vm298_vm0, %v9168_v1 }
 0x8c3   : > { %5660 = vmatmul.msk.bf16.gmra.mxu1 %vm298_vm0, %v10026_v19  ;;  %5692 = vmatmul.msk.bf16.gmra.mxu2 %vm298_vm0, %v10026_v19  ;;  %v9190_v13 = vpack.c.bf16 %v3214_v12, %v3213_v45  ;;  %v9193_v19 = vpop.f32.mrf.mxu2  ;;  %v3215_v45 = vmul.f32 %v10041_v37, %v10040_v31  ;;  %v10047_v31 = vld [vmem:[#allocation128_spill] sm:$0xff] }
 0x8c4   : > { %10034 = vst [vmem:[#allocation107_spill] sm:$0xff] %v9193_v19 }
 0x8c6   : > { %v4552_v2 = vpop.f32.mrf.mxu0 }
 0x8c7   : > { %v4553_v17 = vadd.f32 %v4552_v2, %v10027_v53  ;;  %v10035_v2 = vld [vmem:[#allocation124_spill] sm:$0xff]  ;;  %v9201_v53 = vpop.f32.mrf.mxu1 }
 0x8c9   : > { %5064 = vst [vmem:[%s8841_s27 + $0x288] sm:$0xff] %v4553_v17 }
 0x8cb   : > { %v9207_v12 = vpop.f32.mrf.mxu2 }
 0x8cc   : > { %10039 = vst [vmem:[#allocation24_spill] sm:$0xff] %v9207_v12  ;;  %v10052_v12 = vld [vmem:[#allocation41_spill] sm:$0xff] }
 0x8ce   : > { %v4555_v48 = vpop.f32.mrf.mxu0 }
 0x8cf   : > { %v4556_v62 = vadd.f32 %v4555_v48, %v10033_v23  ;;  %v10037_v48 = vld [vmem:[#allocation79_spill] sm:$0xff] }
 0x8d1   : > { %5067 = vst [vmem:[%s8841_s27 + $0x2a0] sm:$0xff] %v4556_v62  ;;  %v10038_v62 = vld [vmem:[#allocation123_spill] sm:$0xff] }
 0x8d2   : > { %5646 = vmatmul.msk.bf16.gmra.mxu0 %vm298_vm0, %v9190_v13  ;;  %v3216_v29 = vmul.f32 %v10038_v62, %v10037_v48  ;;  %v10045_v62 = vld [vmem:[#allocation126_spill] sm:$0xff] }
 0x8d3   : > { %5661 = vmatmul.msk.bf16.gmra.mxu1 %vm298_vm0, %v10035_v2  ;;  %5693 = vmatmul.msk.bf16.gmra.mxu2 %vm298_vm0, %v10035_v2 }
 0x8d4   : > { %v9214_v40 = vpack.c.bf16 %v3216_v29, %v3215_v45 }
 0x8d6   : > { %v4557_v17 = vpop.f32.mrf.mxu0 }
 0x8d7   : > { %v4558_v23 = vadd.f32 %v4557_v17, %v10036_v57  ;;  %v10043_v17 = vld [vmem:[#allocation20_spill] sm:$0xff] }
 0x8d9   : > { %5070 = vst [vmem:[%s8841_s27 + $0x2b8] sm:$0xff] %v4558_v23 }
 0x8de   : > { %v9211_v19 = vpop.f32.mrf.mxu1 }
 0x8df   : > { %v4560_v8 = vpop.f32.mrf.mxu0 }
 0x8e0   : > { %v4561_v2 = vadd.f32 %v4560_v8, %v10042_v50 }
 0x8e2   : > { %5073 = vst [vmem:[%s8841_s27 + $0x2d0] sm:$0xff] %v4561_v2  ;;  %5647 = vmatmul.msk.bf16.gmra.mxu0 %vm298_vm0, %v9214_v40  ;;  %v10048_v2 = vld [vmem:[#allocation81_spill] sm:$0xff] }
 0x8e3   : > { %5662 = vmatmul.msk.bf16.gmra.mxu1 %vm298_vm0, %v10043_v17  ;;  %5694 = vmatmul.msk.bf16.gmra.mxu2 %vm298_vm0, %v10043_v17 }
 0x8e4   : > { %v9223_v57 = vpop.f32.mrf.mxu2 }
 0x8e5   : > { %10044 = vst [vmem:[#allocation106_spill] sm:$0xff] %v9223_v57 }
 0x8e6   : > { %v9225_v48 = vpop.f32.mrf.mxu1 }
 0x8e7   : > { %v4562_v23 = vpop.f32.mrf.mxu0 }
 0x8e8   : > { %v4563_v50 = vadd.f32 %v4562_v23, %v10045_v62  ;;  %v10050_v62 = vld [vmem:[#allocation131_spill] sm:$0xff] }
 0x8ea   : > { %5076 = vst [vmem:[%s8841_s27 + $0x2e8] sm:$0xff] %v4563_v50 }
 0x8ec   : > { %v9229_v8 = vpop.f32.mrf.mxu2 }
 0x8ed   : > { %10046 = vst [vmem:[#allocation103_spill] sm:$0xff] %v9229_v8 }
 0x8ef   : > { %v4565_v29 = vpop.f32.mrf.mxu0 }
 0x8f0   : > { %v4566_v37 = vadd.f32 %v4565_v29, %v10047_v31  ;;  %v9232_v45 = vpop.f32.mrf.mxu1 }
 0x8f2   : > { %5079 = vst [vmem:[%s8841_s27 + $0x300] sm:$0xff] %v4566_v37  ;;  %5648 = vmatmul.msk.bf16.gmra.mxu0 %vm298_vm0, %v10048_v2 }
 0x8f3   : > { %5663 = vmatmul.msk.bf16.gmra.mxu1 %vm298_vm0, %v8795_v42  ;;  %5695 = vmatmul.msk.bf16.gmra.mxu2 %vm298_vm0, %v8795_v42  ;;  %v10053_v42 = vld [vmem:[#allocation85_spill] sm:$0xff] }
 0x8f6   : > { %v9241_v17 = vpop.f32.mrf.mxu2 }
 0x8f7   : > { %10049 = vst [vmem:[#allocation105_spill] sm:$0xff] %v9241_v17  ;;  %v4567_v23 = vpop.f32.mrf.mxu0 }
 0x8f8   : > { %v4568_v50 = vadd.f32 %v4567_v23, %v10050_v62  ;;  %v9244_v29 = vpop.f32.mrf.mxu1 }
 0x8fa   : > { %5082 = vst [vmem:[%s8841_s27 + $0x318] sm:$0xff] %v4568_v50 }
 0x8fe   : > { %v9247_v31 = vpop.f32.mrf.mxu2 }
 0x8ff   : > { %10051 = vst [vmem:[#allocation46_spill] sm:$0xff] %v9247_v31  ;;  %v4570_v37 = vpop.f32.mrf.mxu0 }
 0x900   : > { %v4571_v8 = vadd.f32 %v4570_v37, %v8789_v51  ;;  %v4654_v57 = vpop.f32.mrf.mxu1  ;;  %v10054_v51 = vld [vmem:[#allocation55_spill] sm:$0xff]  ;;  %v10055_v37 = vld [vmem:[#allocation133_spill] sm:$0xff] }
 0x901   : > { %v4655_v55 = vadd.f32 %v4654_v57, %v10052_v12 }
 0x902   : > { %5085 = vst [vmem:[%s8841_s27 + $0x330] sm:$0xff] %v4571_v8  ;;  %5649 = vmatmul.msk.bf16.gmra.mxu0 %vm298_vm0, %v10053_v42  ;;  %v10056_v8 = vld [vmem:[#allocation43_spill] sm:$0xff] }
 0x903   : > { %4984 = vst [vmem:[%s8841_s27 + $0x8] sm:$0xff] %v4655_v55  ;;  %5664 = vmatmul.msk.bf16.gmra.mxu1 %vm298_vm0, %v8845_v56  ;;  %5696 = vmatmul.msk.bf16.gmra.mxu2 %vm298_vm0, %v8845_v56 }
 0x906   : > { %v4823_v23 = vpop.f32.mrf.mxu2 }
 0x907   : > { %v4572_v62 = vpop.f32.mrf.mxu0  ;;  %v4824_v50 = vadd.f32 %v4823_v23, %v10054_v51  ;;  %v10058_v23 = vld [vmem:[#allocation45_spill] sm:$0xff] }
 0x908   : > { %v4573_v12 = vadd.f32 %v4572_v62, %v10055_v37  ;;  %v4656_v57 = vpop.f32.mrf.mxu1  ;;  %v10059_v62 = vld [vmem:[#allocation96_spill] sm:$0xff] }
 0x909   : > { %4985 = vst [vmem:[%s8841_s27 + $0x10] sm:$0xff] %v4824_v50  ;;  %v4657_v31 = vadd.f32 %v4656_v57, %v10056_v8  ;;  %v10061_v50 = vld [vmem:[#allocation48_spill] sm:$0xff]  ;;  %v10062_v8 = vld [vmem:[#allocation66_spill] sm:$0xff] }
 0x90a   : > { %5088 = vst [vmem:[%s8841_s27 + $0x348] sm:$0xff] %v4573_v12 }
 0x90b   : > { %4987 = vst [vmem:[%s8841_s27 + $0x20] sm:$0xff] %v4657_v31 }
 0x90e   : > { %v4825_v55 = vpop.f32.mrf.mxu2 }
 0x90f   : > { %v4575_v17 = vpop.f32.mrf.mxu0  ;;  %v4826_v49 = vadd.f32 %v4825_v55, %v10057_v4 }
 0x910   : > { %v4576_v56 = vadd.f32 %v4575_v17, %v8849_v7  ;;  %v4659_v39 = vpop.f32.mrf.mxu1  ;;  %v10060_v17 = vld [vmem:[#allocation63_spill] sm:$0xff] }
 0x911   : > { %4988 = vst [vmem:[%s8841_s27 + $0x28] sm:$0xff] %v4826_v49  ;;  %v4660_v51 = vadd.f32 %v4659_v39, %v10058_v23  ;;  %v10063_v23 = vld [vmem:[#allocation51_spill] sm:$0xff] }
 0x912   : > { %5091 = vst [vmem:[%s8841_s27 + $0x360] sm:$0xff] %v4576_v56  ;;  %5650 = vmatmul.msk.bf16.gmra.mxu0 %vm298_vm0, %v10059_v62 }
 0x913   : > { %4990 = vst [vmem:[%s8841_s27 + $0x38] sm:$0xff] %v4660_v51  ;;  %5665 = vmatmul.msk.bf16.gmra.mxu1 %vm298_vm0, %v8893_v6  ;;  %5697 = vmatmul.msk.bf16.gmra.mxu2 %vm298_vm0, %v8893_v6 }
 0x916   : > { %v4828_v4 = vpop.f32.mrf.mxu2 }
 0x917   : > { %v4577_v7 = vpop.f32.mrf.mxu0  ;;  %v4829_v31 = vadd.f32 %v4828_v4, %v10060_v17 }
 0x918   : > { %v4578_v49 = vadd.f32 %v4577_v7, %v8869_v44  ;;  %v4661_v39 = vpop.f32.mrf.mxu1  ;;  %v10064_v44 = vld [vmem:[#allocation100_spill] sm:$0xff] }
 0x919   : > { %4991 = vst [vmem:[%s8841_s27 + $0x40] sm:$0xff] %v4829_v31  ;;  %v4662_v37 = vadd.f32 %v4661_v39, %v10061_v50  ;;  %v10065_v7 = vld [vmem:[#allocation68_spill] sm:$0xff]  ;;  %v10066_v39 = vld [vmem:[#allocation53_spill] sm:$0xff] }
 0x91a   : > { %5094 = vst [vmem:[%s8841_s27 + $0x378] sm:$0xff] %v4578_v49 }
 0x91b   : > { %4993 = vst [vmem:[%s8841_s27 + $0x50] sm:$0xff] %v4662_v37 }
 0x91e   : > { %v4830_v12 = vpop.f32.mrf.mxu2 }
 0x91f   : > { %v4580_v57 = vpop.f32.mrf.mxu0  ;;  %v4831_v55 = vadd.f32 %v4830_v12, %v10062_v8 }
 0x920   : > { %v4581_v6 = vadd.f32 %v4580_v57, %v8901_v54  ;;  %v4664_v56 = vpop.f32.mrf.mxu1  ;;  %v10067_v57 = vld [vmem:[#allocation70_spill] sm:$0xff] }
 0x921   : > { %4994 = vst [vmem:[%s8841_s27 + $0x58] sm:$0xff] %v4831_v55  ;;  %v4665_v51 = vadd.f32 %v4664_v56, %v10063_v23 }
 0x922   : > { %5097 = vst [vmem:[%s8841_s27 + $0x390] sm:$0xff] %v4581_v6  ;;  %5651 = vmatmul.msk.bf16.gmra.mxu0 %vm298_vm0, %v10064_v44  ;;  %v10068_v6 = vld [vmem:[#allocation58_spill] sm:$0xff] }
 0x923   : > { %4996 = vst [vmem:[%s8841_s27 + $0x68] sm:$0xff] %v4665_v51  ;;  %5666 = vmatmul.msk.bf16.gmra.mxu1 %vm298_vm0, %v8920_v38  ;;  %5698 = vmatmul.msk.bf16.gmra.mxu2 %vm298_vm0, %v8920_v38  ;;  %v10070_v51 = vld [vmem:[#allocation74_spill] sm:$0xff] }
 0x926   : > { %v4833_v4 = vpop.f32.mrf.mxu2 }
 0x927   : > { %v4582_v54 = vpop.f32.mrf.mxu0  ;;  %v4834_v17 = vadd.f32 %v4833_v4, %v10065_v7 }
 0x928   : > { %v4583_v31 = vadd.f32 %v4582_v54, %v8915_v21  ;;  %v4666_v49 = vpop.f32.mrf.mxu1  ;;  %v10069_v21 = vld [vmem:[#allocation56_spill] sm:$0xff] }
 0x929   : > { %4997 = vst [vmem:[%s8841_s27 + $0x70] sm:$0xff] %v4834_v17  ;;  %v4667_v50 = vadd.f32 %v4666_v49, %v10066_v39  ;;  %v10071_v17 = vld [vmem:[#allocation61_spill] sm:$0xff] }
 0x92a   : > { %5100 = vst [vmem:[%s8841_s27 + $0x3a8] sm:$0xff] %v4583_v31 }
 0x92b   : > { %4999 = vst [vmem:[%s8841_s27 + $0x80] sm:$0xff] %v4667_v50  ;;  %v10072_v50 = vld [vmem:[#allocation78_spill] sm:$0xff] }
 0x92e   : > { %v4835_v37 = vpop.f32.mrf.mxu2 }
 0x92f   : > { %v4585_v12 = vpop.f32.mrf.mxu0  ;;  %v4836_v8 = vadd.f32 %v4835_v37, %v10067_v57  ;;  %v10073_v57 = vld [vmem:[#allocation65_spill] sm:$0xff] }
 0x930   : > { %v4586_v38 = vadd.f32 %v4585_v12, %v8933_v18  ;;  %v4669_v55 = vpop.f32.mrf.mxu1 }
 0x931   : > { %5000 = vst [vmem:[%s8841_s27 + $0x88] sm:$0xff] %v4836_v8  ;;  %v4670_v56 = vadd.f32 %v4669_v55, %v10068_v6  ;;  %v10075_v55 = vld [vmem:[#allocation82_spill] sm:$0xff] }
 0x932   : > { %5103 = vst [vmem:[%s8841_s27 + $0x3c0] sm:$0xff] %v4586_v38  ;;  %5652 = vmatmul.msk.bf16.gmra.mxu0 %vm298_vm0, %v10069_v21 }
 0x933   : > { %5002 = vst [vmem:[%s8841_s27 + $0x98] sm:$0xff] %v4670_v56  ;;  %5667 = vmatmul.msk.bf16.gmra.mxu1 %vm298_vm0, %v8945_v26  ;;  %5699 = vmatmul.msk.bf16.gmra.mxu2 %vm298_vm0, %v8945_v26 }
 0x936   : > { %v4838_v23 = vpop.f32.mrf.mxu2 }
 0x937   : > { %v4587_v18 = vpop.f32.mrf.mxu0  ;;  %v4839_v4 = vadd.f32 %v4838_v23, %v10070_v51 }
 0x938   : > { %v4588_v54 = vadd.f32 %v4587_v18, %v8955_v20  ;;  %v4671_v7 = vpop.f32.mrf.mxu1  ;;  %v10074_v20 = vld [vmem:[#allocation117_spill] sm:$0xff]  ;;  %v10076_v18 = vld [vmem:[#allocation67_spill] sm:$0xff] }
 0x939   : > { %5003 = vst [vmem:[%s8841_s27 + $0xa0] sm:$0xff] %v4839_v4  ;;  %v4672_v31 = vadd.f32 %v4671_v7, %v10071_v17  ;;  %v10077_v7 = vld [vmem:[#allocation84_spill] sm:$0xff] }
 0x93a   : > { %5106 = vst [vmem:[%s8841_s27 + $0x3d8] sm:$0xff] %v4588_v54 }
 0x93b   : > { %5005 = vst [vmem:[%s8841_s27 + $0xb0] sm:$0xff] %v4672_v31 }
 0x93e   : > { %v4840_v49 = vpop.f32.mrf.mxu2 }
 0x93f   : > { %v4590_v39 = vpop.f32.mrf.mxu0  ;;  %v4841_v37 = vadd.f32 %v4840_v49, %v10072_v50  ;;  %v10078_v49 = vld [vmem:[#allocation69_spill] sm:$0xff]  ;;  %v10079_v50 = vld [vmem:[#allocation87_spill] sm:$0xff] }
 0x940   : > { %v4591_v26 = vadd.f32 %v4590_v39, %v8963_v61  ;;  %v4674_v12 = vpop.f32.mrf.mxu1 }
 0x941   : > { %5006 = vst [vmem:[%s8841_s27 + $0xb8] sm:$0xff] %v4841_v37  ;;  %v4675_v8 = vadd.f32 %v4674_v12, %v10073_v57  ;;  %v10080_v57 = vld [vmem:[#allocation71_spill] sm:$0xff] }
 0x942   : > { %5109 = vst [vmem:[%s8841_s27 + $0x3f0] sm:$0xff] %v4591_v26  ;;  %5653 = vmatmul.msk.bf16.gmra.mxu0 %vm298_vm0, %v10074_v20 }
 0x943   : > { %5008 = vst [vmem:[%s8841_s27 + $0xc8] sm:$0xff] %v4675_v8  ;;  %5668 = vmatmul.msk.bf16.gmra.mxu1 %vm298_vm0, %v8968_v15  ;;  %5700 = vmatmul.msk.bf16.gmra.mxu2 %vm298_vm0, %v8968_v15 }
 0x946   : > { %v4843_v38 = vpop.f32.mrf.mxu2 }
 0x947   : > { %v4592_v61 = vpop.f32.mrf.mxu0  ;;  %v4844_v6 = vadd.f32 %v4843_v38, %v10075_v55  ;;  %v10081_v55 = vld [vmem:[#allocation89_spill] sm:$0xff] }
 0x948   : > { %v4593_v56 = vadd.f32 %v4592_v61, %v8975_v11  ;;  %v4676_v23 = vpop.f32.mrf.mxu1 }
 0x949   : > { %5009 = vst [vmem:[%s8841_s27 + $0xd0] sm:$0xff] %v4844_v6  ;;  %v4677_v51 = vadd.f32 %v4676_v23, %v10076_v18  ;;  %v10082_v23 = vld [vmem:[#allocation77_spill] sm:$0xff] }
 0x94a   : > { %5112 = vst [vmem:[%s8841_s27 + $0x408] sm:$0xff] %v4593_v56 }
 0x94b   : > { %5011 = vst [vmem:[%s8841_s27 + $0xe0] sm:$0xff] %v4677_v51  ;;  %v10083_v51 = vld [vmem:[#allocation91_spill] sm:$0xff] }
 0x94e   : > { %v4845_v4 = vpop.f32.mrf.mxu2 }
 0x94f   : > { %v4595_v54 = vpop.f32.mrf.mxu0  ;;  %v4846_v17 = vadd.f32 %v4845_v4, %v10077_v7 }
 0x950   : > { %v4596_v15 = vadd.f32 %v4595_v54, %v8988_v41  ;;  %v4679_v31 = vpop.f32.mrf.mxu1 }
 0x951   : > { %5012 = vst [vmem:[%s8841_s27 + $0xe8] sm:$0xff] %v4846_v17  ;;  %v4680_v39 = vadd.f32 %v4679_v31, %v10078_v49  ;;  %v10084_v17 = vld [vmem:[#allocation80_spill] sm:$0xff] }
 0x952   : > { %5115 = vst [vmem:[%s8841_s27 + $0x420] sm:$0xff] %v4596_v15  ;;  %5654 = vmatmul.msk.bf16.gmra.mxu0 %vm298_vm0, %v8832_v35 }
 0x953   : > { %5014 = vst [vmem:[%s8841_s27 + $0xf8] sm:$0xff] %v4680_v39  ;;  %5669 = vmatmul.msk.bf16.gmra.mxu1 %vm298_vm0, %v8986_v24  ;;  %5701 = vmatmul.msk.bf16.gmra.mxu2 %vm298_vm0, %v8986_v24  ;;  %v10085_v39 = vld [vmem:[#allocation93_spill] sm:$0xff] }
 0x956   : > { %v4848_v11 = vpop.f32.mrf.mxu2 }
 0x957   : > { %v4597_v41 = vpop.f32.mrf.mxu0  ;;  %v4849_v37 = vadd.f32 %v4848_v11, %v10079_v50  ;;  %v10086_v50 = vld [vmem:[#allocation83_spill] sm:$0xff] }
 0x958   : > { %v4598_v26 = vadd.f32 %v4597_v41, %v8997_v36  ;;  %v4681_v12 = vpop.f32.mrf.mxu1 }
 0x959   : > { %5015 = vst [vmem:[%s8841_s27 + $0x100] sm:$0xff] %v4849_v37  ;;  %v4682_v8 = vadd.f32 %v4681_v12, %v10080_v57  ;;  %v10087_v12 = vld [vmem:[#allocation95_spill] sm:$0xff] }
 0x95a   : > { %5118 = vst [vmem:[%s8841_s27 + $0x438] sm:$0xff] %v4598_v26 }
 0x95b   : > { %5017 = vst [vmem:[%s8841_s27 + $0x110] sm:$0xff] %v4682_v8 }
 0x95e   : > { %v4850_v38 = vpop.f32.mrf.mxu2 }
 0x95f   : > { %v4600_v61 = vpop.f32.mrf.mxu0  ;;  %v4851_v6 = vadd.f32 %v4850_v38, %v10081_v55  ;;  %v10088_v38 = vld [vmem:[#allocation86_spill] sm:$0xff] }
 0x960   : > { %v4601_v24 = vadd.f32 %v4600_v61, %v9011_v27  ;;  %v4684_v56 = vpop.f32.mrf.mxu1 }
 0x961   : > { %5018 = vst [vmem:[%s8841_s27 + $0x118] sm:$0xff] %v4851_v6  ;;  %v4685_v18 = vadd.f32 %v4684_v56, %v10082_v23 }
 0x962   : > { %5121 = vst [vmem:[%s8841_s27 + $0x450] sm:$0xff] %v4601_v24  ;;  %5655 = vmatmul.msk.bf16.gmra.mxu0 %vm298_vm0, %v8888_v52  ;;  %v10089_v24 = vld [vmem:[#allocation98_spill] sm:$0xff] }
 0x963   : > { %5020 = vst [vmem:[%s8841_s27 + $0x128] sm:$0xff] %v4685_v18  ;;  %5670 = vmatmul.msk.bf16.gmra.mxu1 %vm298_vm0, %v9006_v10  ;;  %5702 = vmatmul.msk.bf16.gmra.mxu2 %vm298_vm0, %v9006_v10  ;;  %v10090_v18 = vld [vmem:[#allocation88_spill] sm:$0xff] }
 0x966   : > { %v4853_v36 = vpop.f32.mrf.mxu2 }
 0x967   : > { %v4602_v27 = vpop.f32.mrf.mxu0  ;;  %v4854_v4 = vadd.f32 %v4853_v36, %v10083_v51  ;;  %v10091_v51 = vld [vmem:[#allocation99_spill] sm:$0xff] }
 0x968   : > { %v4603_v54 = vadd.f32 %v4602_v27, %v9025_v47  ;;  %v4686_v7 = vpop.f32.mrf.mxu1 }
 0x969   : > { %5021 = vst [vmem:[%s8841_s27 + $0x130] sm:$0xff] %v4854_v4  ;;  %v4687_v15 = vadd.f32 %v4686_v7, %v10084_v17  ;;  %v10092_v7 = vld [vmem:[#allocation90_spill] sm:$0xff] }
 0x96a   : > { %5124 = vst [vmem:[%s8841_s27 + $0x468] sm:$0xff] %v4603_v54 }
 0x96b   : > { %5023 = vst [vmem:[%s8841_s27 + $0x140] sm:$0xff] %v4687_v15 }
 0x96e   : > { %v4855_v31 = vpop.f32.mrf.mxu2 }
 0x96f   : > { %v4605_v49 = vpop.f32.mrf.mxu0  ;;  %v4856_v11 = vadd.f32 %v4855_v31, %v10085_v39 }
 0x970   : > { %v4606_v10 = vadd.f32 %v4605_v49, %v9041_v14  ;;  %v4689_v41 = vpop.f32.mrf.mxu1  ;;  %v10093_v49 = vld [vmem:[#allocation6_spill] sm:$0xff] }
 0x971   : > { %5024 = vst [vmem:[%s8841_s27 + $0x148] sm:$0xff] %v4856_v11  ;;  %v4690_v37 = vadd.f32 %v4689_v41, %v10086_v50 }
 0x972   : > { %5127 = vst [vmem:[%s8841_s27 + $0x480] sm:$0xff] %v4606_v10  ;;  %v10094_v10 = vld [vmem:[#allocation92_spill] sm:$0xff] }
 0x973   : > { %5026 = vst [vmem:[%s8841_s27 + $0x158] sm:$0xff] %v4690_v37  ;;  %5671 = vmatmul.msk.bf16.gmra.mxu1 %vm298_vm0, %v9030_v58  ;;  %5703 = vmatmul.msk.bf16.gmra.mxu2 %vm298_vm0, %v9030_v58  ;;  %v10095_v37 = vld [vmem:[#allocation102_spill] sm:$0xff] }
 0x976   : > { %v4858_v47 = vpop.f32.mrf.mxu2 }
 0x977   : > { %v4607_v26 = vpop.f32.mrf.mxu0  ;;  %v4859_v14 = vadd.f32 %v4858_v47, %v10087_v12  ;;  %v10096_v12 = vld [vmem:[#allocation94_spill] sm:$0xff] }
 0x978   : > { %v4608_v57 = vadd.f32 %v4607_v26, %v9058_v60  ;;  %v4691_v8 = vpop.f32.mrf.mxu1 }
 0x979   : > { %5027 = vst [vmem:[%s8841_s27 + $0x160] sm:$0xff] %v4859_v14  ;;  %v4692_v61 = vadd.f32 %v4691_v8, %v10088_v38  ;;  %v10097_v38 = vld [vmem:[#allocation104_spill] sm:$0xff] }
 0x97a   : > { %5130 = vst [vmem:[%s8841_s27 + $0x498] sm:$0xff] %v4608_v57 }
 0x97b   : > { %5029 = vst [vmem:[%s8841_s27 + $0x170] sm:$0xff] %v4692_v61 }
 0x97e   : > { %v4860_v55 = vpop.f32.mrf.mxu2 }
 0x97f   : > { %v4610_v6 = vpop.f32.mrf.mxu0  ;;  %v4861_v56 = vadd.f32 %v4860_v55, %v10089_v24 }
 0x980   : > { %v4611_v58 = vadd.f32 %v4610_v6, %v9073_v0  ;;  %v4694_v23 = vpop.f32.mrf.mxu1  ;;  %v10098_v6 = vld [vmem:[#allocation97_spill] sm:$0xff] }
 0x981   : > { %5030 = vst [vmem:[%s8841_s27 + $0x178] sm:$0xff] %v4861_v56  ;;  %v4695_v36 = vadd.f32 %v4694_v23, %v10090_v18 }
 0x982   : > { %5133 = vst [vmem:[%s8841_s27 + $0x4b0] sm:$0xff] %v4611_v58  ;;  %v10099_v58 = vld [vmem:[#allocation109_spill] sm:$0xff] }
 0x983   : > { %5032 = vst [vmem:[%s8841_s27 + $0x188] sm:$0xff] %v4695_v36  ;;  %5672 = vmatmul.msk.bf16.gmra.mxu1 %vm298_vm0, %v9055_v28  ;;  %5704 = vmatmul.msk.bf16.gmra.mxu2 %vm298_vm0, %v9055_v28  ;;  %v10100_v36 = vld [vmem:[#allocation50_spill] sm:$0xff] }
 0x986   : > { %v4863_v60 = vpop.f32.mrf.mxu2 }
 0x987   : > { %v4612_v27 = vpop.f32.mrf.mxu0  ;;  %v4864_v0 = vadd.f32 %v4863_v60, %v10091_v51 }
 0x988   : > { %v4613_v4 = vadd.f32 %v4612_v27, %v9089_v5  ;;  %v4696_v54 = vpop.f32.mrf.mxu1 }
 0x989   : > { %5033 = vst [vmem:[%s8841_s27 + $0x190] sm:$0xff] %v4864_v0  ;;  %v4697_v17 = vadd.f32 %v4696_v54, %v10092_v7  ;;  %v10101_v0 = vld [vmem:[#allocation111_spill] sm:$0xff]  ;;  %v10102_v7 = vld [vmem:[#allocation57_spill] sm:$0xff] }
 0x98a   : > { %5136 = vst [vmem:[%s8841_s27 + $0x4c8] sm:$0xff] %v4613_v4 }
 0x98b   : > { %5035 = vst [vmem:[%s8841_s27 + $0x1a0] sm:$0xff] %v4697_v17 }
 0x98e   : > { %v4865_v15 = vpop.f32.mrf.mxu2 }
 0x98f   : > { %v4615_v31 = vpop.f32.mrf.mxu0  ;;  %v4866_v39 = vadd.f32 %v4865_v15, %v10093_v49 }
 0x990   : > { %v4616_v28 = vadd.f32 %v4615_v31, %v9100_v25  ;;  %v4699_v11 = vpop.f32.mrf.mxu1  ;;  %v10103_v31 = vld [vmem:[#allocation113_spill] sm:$0xff] }
 0x991   : > { %5036 = vst [vmem:[%s8841_s27 + $0x1a8] sm:$0xff] %v4866_v39  ;;  %v4700_v41 = vadd.f32 %v4699_v11, %v10094_v10 }
 0x992   : > { %5139 = vst [vmem:[%s8841_s27 + $0x4e0] sm:$0xff] %v4616_v28  ;;  %v10104_v28 = vld [vmem:[#allocation101_spill] sm:$0xff] }
 0x993   : > { %5038 = vst [vmem:[%s8841_s27 + $0x1b8] sm:$0xff] %v4700_v41  ;;  %5673 = vmatmul.msk.bf16.gmra.mxu1 %vm298_vm0, %v9078_v16  ;;  %5705 = vmatmul.msk.bf16.gmra.mxu2 %vm298_vm0, %v9078_v16 }
 0x996   : > { %v4868_v5 = vpop.f32.mrf.mxu2 }
 0x997   : > { %v4617_v50 = vpop.f32.mrf.mxu0  ;;  %v4869_v25 = vadd.f32 %v4868_v5, %v10095_v37  ;;  %v10105_v5 = vld [vmem:[#allocation15_spill] sm:$0xff] }
 0x998   : > { %v4618_v47 = vadd.f32 %v4617_v50, %v9115_v46  ;;  %v4701_v26 = vpop.f32.mrf.mxu1 }
 0x999   : > { %5039 = vst [vmem:[%s8841_s27 + $0x1c0] sm:$0xff] %v4869_v25  ;;  %v4702_v14 = vadd.f32 %v4701_v26, %v10096_v12  ;;  %v10106_v25 = vld [vmem:[#allocation7_spill] sm:$0xff]  ;;  %v10107_v12 = vld [vmem:[#allocation121_spill] sm:$0xff] }
 0x99a   : > { %5142 = vst [vmem:[%s8841_s27 + $0x4f8] sm:$0xff] %v4618_v47 }
 0x99b   : > { %5041 = vst [vmem:[%s8841_s27 + $0x1d0] sm:$0xff] %v4702_v14 }
 0x99e   : > { %v4870_v57 = vpop.f32.mrf.mxu2 }
 0x99f   : > { %v4620_v8 = vpop.f32.mrf.mxu0  ;;  %v4871_v61 = vadd.f32 %v4870_v57, %v10097_v38 }
 0x9a0   : > { %v4621_v16 = vadd.f32 %v4620_v8, %v9133_v34  ;;  %v4704_v55 = vpop.f32.mrf.mxu1  ;;  %v10108_v8 = vld [vmem:[#allocation108_spill] sm:$0xff] }
 0x9a1   : > { %5042 = vst [vmem:[%s8841_s27 + $0x1d8] sm:$0xff] %v4871_v61  ;;  %v4705_v24 = vadd.f32 %v4704_v55, %v10098_v6  ;;  %v10109_v55 = vld [vmem:[#allocation125_spill] sm:$0xff] }
 0x9a2   : > { %5145 = vst [vmem:[%s8841_s27 + $0x510] sm:$0xff] %v4621_v16 }
 0x9a3   : > { %5044 = vst [vmem:[%s8841_s27 + $0x1e8] sm:$0xff] %v4705_v24  ;;  %5674 = vmatmul.msk.bf16.gmra.mxu1 %vm298_vm0, %v9102_v32  ;;  %5706 = vmatmul.msk.bf16.gmra.mxu2 %vm298_vm0, %v9102_v32 }
 0x9a6   : > { %v4873_v46 = vpop.f32.mrf.mxu2 }
 0x9a7   : > { %v4622_v56 = vpop.f32.mrf.mxu0  ;;  %v4874_v34 = vadd.f32 %v4873_v46, %v10099_v58  ;;  %v10110_v46 = vld [vmem:[#allocation110_spill] sm:$0xff] }
 0x9a8   : > { %v4623_v23 = vadd.f32 %v4622_v56, %v9143_v33  ;;  %v4706_v18 = vpop.f32.mrf.mxu1 }
 0x9a9   : > { %5045 = vst [vmem:[%s8841_s27 + $0x1f0] sm:$0xff] %v4874_v34  ;;  %v4707_v60 = vadd.f32 %v4706_v18, %v10100_v36  ;;  %v10111_v34 = vld [vmem:[#allocation22_spill] sm:$0xff] }
 0x9aa   : > { %5148 = vst [vmem:[%s8841_s27 + $0x528] sm:$0xff] %v4623_v23  ;;  %v10112_v36 = vld [vmem:[#allocation14_spill] sm:$0xff] }
 0x9ab   : > { %5047 = vst [vmem:[%s8841_s27 + $0x200] sm:$0xff] %v4707_v60 }
 0x9ae   : > { %v4875_v27 = vpop.f32.mrf.mxu2 }
 0x9af   : > { %v4625_v51 = vpop.f32.mrf.mxu0  ;;  %v4876_v4 = vadd.f32 %v4875_v27, %v10101_v0  ;;  %v10113_v0 = vld [vmem:[#allocation130_spill] sm:$0xff] }
 0x9b0   : > { %v4626_v32 = vadd.f32 %v4625_v51, %v9158_v63  ;;  %v4709_v54 = vpop.f32.mrf.mxu1 }
 0x9b1   : > { %5048 = vst [vmem:[%s8841_s27 + $0x208] sm:$0xff] %v4876_v4  ;;  %v4710_v17 = vadd.f32 %v4709_v54, %v10102_v7  ;;  %v10114_v54 = vld [vmem:[#allocation17_spill] sm:$0xff] }
 0x9b2   : > { %5151 = vst [vmem:[%s8841_s27 + $0x540] sm:$0xff] %v4626_v32 }
 0x9b3   : > { %5050 = vst [vmem:[%s8841_s27 + $0x218] sm:$0xff] %v4710_v17  ;;  %5675 = vmatmul.msk.bf16.gmra.mxu1 %vm298_vm0, %v9124_v9  ;;  %5707 = vmatmul.msk.bf16.gmra.mxu2 %vm298_vm0, %v9124_v9 }
 0x9b6   : > { %v4878_v33 = vpop.f32.mrf.mxu2 }
 0x9b7   : > { %v4627_v15 = vpop.f32.mrf.mxu0  ;;  %v4879_v63 = vadd.f32 %v4878_v33, %v10103_v31  ;;  %v10115_v33 = vld [vmem:[#allocation19_spill] sm:$0xff] }
 0x9b8   : > { %v4628_v49 = vadd.f32 %v4627_v15, %v9171_v30  ;;  %v4711_v39 = vpop.f32.mrf.mxu1 }
 0x9b9   : > { %5051 = vst [vmem:[%s8841_s27 + $0x220] sm:$0xff] %v4879_v63  ;;  %v4712_v11 = vadd.f32 %v4711_v39, %v10104_v28  ;;  %v10116_v63 = vld [vmem:[#allocation120_spill] sm:$0xff]  ;;  %v10117_v28 = vld [vmem:[#allocation134_spill] sm:$0xff] }
 0x9ba   : > { %5154 = vst [vmem:[%s8841_s27 + $0x558] sm:$0xff] %v4628_v49 }
 0x9bb   : > { %5053 = vst [vmem:[%s8841_s27 + $0x230] sm:$0xff] %v4712_v11 }
 0x9be   : > { %v4880_v10 = vpop.f32.mrf.mxu2 }
 0x9bf   : > { %v4630_v41 = vpop.f32.mrf.mxu0  ;;  %v4881_v50 = vadd.f32 %v4880_v10, %v10105_v5  ;;  %v10119_v5 = vld [vmem:[#allocation23_spill] sm:$0xff] }
 0x9c0   : > { %v4631_v9 = vadd.f32 %v4630_v41, %v9185_v43  ;;  %v4714_v37 = vpop.f32.mrf.mxu1 }
 0x9c1   : > { %5054 = vst [vmem:[%s8841_s27 + $0x238] sm:$0xff] %v4881_v50  ;;  %v4715_v47 = vadd.f32 %v4714_v37, %v10106_v25  ;;  %v10120_v37 = vld [vmem:[#allocation127_spill] sm:$0xff] }
 0x9c2   : > { %5157 = vst [vmem:[%s8841_s27 + $0x570] sm:$0xff] %v4631_v9 }
 0x9c3   : > { %5056 = vst [vmem:[%s8841_s27 + $0x248] sm:$0xff] %v4715_v47  ;;  %5676 = vmatmul.msk.bf16.gmra.mxu1 %vm298_vm0, %v9146_v3  ;;  %5708 = vmatmul.msk.bf16.gmra.mxu2 %vm298_vm0, %v9146_v3 }
 0x9c6   : > { %v4883_v30 = vpop.f32.mrf.mxu2 }
 0x9c7   : > { %v4632_v26 = vpop.f32.mrf.mxu0  ;;  %v4884_v43 = vadd.f32 %v4883_v30, %v10107_v12  ;;  %v10121_v30 = vld [vmem:[#allocation42_spill] sm:$0xff] }
 0x9c8   : > { %v4633_v14 = vadd.f32 %v4632_v26, %v9201_v53  ;;  %v4716_v57 = vpop.f32.mrf.mxu1 }
 0x9c9   : > { %5057 = vst [vmem:[%s8841_s27 + $0x250] sm:$0xff] %v4884_v43  ;;  %v4717_v38 = vadd.f32 %v4716_v57, %v10108_v8  ;;  %v10122_v43 = vld [vmem:[#allocation129_spill] sm:$0xff]  ;;  %v10123_v57 = vld [vmem:[#allocation26_spill] sm:$0xff] }
 0x9ca   : > { %5160 = vst [vmem:[%s8841_s27 + $0x588] sm:$0xff] %v4633_v14 }
 0x9cb   : > { %5059 = vst [vmem:[%s8841_s27 + $0x260] sm:$0xff] %v4717_v38 }
 0x9ce   : > { %v4885_v61 = vpop.f32.mrf.mxu2 }
 0x9cf   : > { %v4635_v16 = vpop.f32.mrf.mxu0  ;;  %v4886_v6 = vadd.f32 %v4885_v61, %v10109_v55  ;;  %v10124_v61 = vld [vmem:[#allocation21_spill] sm:$0xff] }
 0x9d0   : > { %v4636_v3 = vadd.f32 %v4635_v16, %v9211_v19  ;;  %v4719_v24 = vpop.f32.mrf.mxu1 }
 0x9d1   : > { %5060 = vst [vmem:[%s8841_s27 + $0x268] sm:$0xff] %v4886_v6  ;;  %v4720_v56 = vadd.f32 %v4719_v24, %v10110_v46  ;;  %v10125_v6 = vld [vmem:[#allocation47_spill] sm:$0xff]  ;;  %v10126_v46 = vld [vmem:[#allocation132_spill] sm:$0xff] }
 0x9d2   : > { %5163 = vst [vmem:[%s8841_s27 + $0x5a0] sm:$0xff] %v4636_v3 }
 0x9d3   : > { %5062 = vst [vmem:[%s8841_s27 + $0x278] sm:$0xff] %v4720_v56  ;;  %5677 = vmatmul.msk.bf16.gmra.mxu1 %vm298_vm0, %v9168_v1  ;;  %5709 = vmatmul.msk.bf16.gmra.mxu2 %vm298_vm0, %v9168_v1 }
 0x9d6   : > { %v4888_v53 = vpop.f32.mrf.mxu2 }
 0x9d7   : > { %v4637_v58 = vpop.f32.mrf.mxu0  ;;  %v4889_v19 = vadd.f32 %v4888_v53, %v10111_v34  ;;  %v10127_v53 = vld [vmem:[#allocation33_spill] sm:$0xff] }
 0x9d8   : > { %v4638_v23 = vadd.f32 %v4637_v58, %v9225_v48  ;;  %v4721_v18 = vpop.f32.mrf.mxu1 }
 0x9d9   : > { %5063 = vst [vmem:[%s8841_s27 + $0x280] sm:$0xff] %v4889_v19  ;;  %v4722_v60 = vadd.f32 %v4721_v18, %v10112_v36  ;;  %v10128_v19 = vld [vmem:[#allocation29_spill] sm:$0xff]  ;;  %v4256_v18 = vpop.f32.mrf.mxu3 }
 0x9da   : > { %5166 = vst [vmem:[%s8841_s27 + $0x5b8] sm:$0xff] %v4638_v23 }
 0x9db   : > { %5065 = vst [vmem:[%s8841_s27 + $0x290] sm:$0xff] %v4722_v60  ;;  %v10129_v60 = vld [vmem:[#allocation52_spill] sm:$0xff] }
 0x9de   : > { %v4890_v27 = vpop.f32.mrf.mxu2 }
 0x9df   : > { %v4640_v51 = vpop.f32.mrf.mxu0  ;;  %v4891_v4 = vadd.f32 %v4890_v27, %v10113_v0  ;;  %v10130_v0 = vld [vmem:[#allocation40_spill] sm:$0xff] }
 0x9e0   : > { %v4641_v1 = vadd.f32 %v4640_v51, %v9232_v45  ;;  %v4724_v32 = vpop.f32.mrf.mxu1 }
 0x9e1   : > { %5066 = vst [vmem:[%s8841_s27 + $0x298] sm:$0xff] %v4891_v4  ;;  %v4725_v7 = vadd.f32 %v4724_v32, %v10114_v54  ;;  %v10131_v32 = vld [vmem:[#allocation34_spill] sm:$0xff] }
 0x9e2   : > { %5169 = vst [vmem:[%s8841_s27 + $0x5d0] sm:$0xff] %v4641_v1 }
 0x9e3   : > { %5068 = vst [vmem:[%s8841_s27 + $0x2a8] sm:$0xff] %v4725_v7  ;;  %5678 = vmatmul.msk.bf16.gmra.mxu1 %vm298_vm0, %v9190_v13  ;;  %5710 = vmatmul.msk.bf16.gmra.mxu2 %vm298_vm0, %v9190_v13  ;;  %v10118_v13 = vld [vmem:[#allocation16_spill] sm:$0xff] }
 0x9e6   : > { %v4893_v48 = vpop.f32.mrf.mxu2 }
 0x9e7   : > { %v4642_v17 = vpop.f32.mrf.mxu0  ;;  %v4894_v15 = vadd.f32 %v4893_v48, %v10115_v33  ;;  %v10132_v48 = vld [vmem:[#allocation5_spill] sm:$0xff] }
 0x9e8   : > { %v4643_v45 = vadd.f32 %v4642_v17, %v9244_v29  ;;  %v4726_v31 = vpop.f32.mrf.mxu1 }
 0x9e9   : > { %5069 = vst [vmem:[%s8841_s27 + $0x2b0] sm:$0xff] %v4894_v15  ;;  %v4727_v49 = vadd.f32 %v4726_v31, %v10116_v63  ;;  %v10133_v63 = vld [vmem:[#allocation44_spill] sm:$0xff] }
 0x9ea   : > { %5172 = vst [vmem:[%s8841_s27 + $0x5e8] sm:$0xff] %v4643_v45 }
 0x9eb   : > { %5071 = vst [vmem:[%s8841_s27 + $0x2c0] sm:$0xff] %v4727_v49 }
 0x9ee   : > { %v4895_v39 = vpop.f32.mrf.mxu2 }
 0x9ef   : > { %v4896_v11 = vadd.f32 %v4895_v39, %v10117_v28 }
 0x9f0   : > { %v4729_v10 = vpop.f32.mrf.mxu1 }
 0x9f1   : > { %5072 = vst [vmem:[%s8841_s27 + $0x2c8] sm:$0xff] %v4896_v11  ;;  %v4730_v41 = vadd.f32 %v4729_v10, %v10118_v13 }
 0x9f3   : > { %5074 = vst [vmem:[%s8841_s27 + $0x2d8] sm:$0xff] %v4730_v41  ;;  %5679 = vmatmul.msk.bf16.gmra.mxu1 %vm298_vm0, %v9214_v40  ;;  %5711 = vmatmul.msk.bf16.gmra.mxu2 %vm298_vm0, %v9214_v40  ;;  %v10135_v41 = vld [vmem:[#allocation39_spill] sm:$0xff] }
 0x9f6   : > { %v4898_v29 = vpop.f32.mrf.mxu2 }
 0x9f7   : > { %v4899_v50 = vadd.f32 %v4898_v29, %v10119_v5 }
 0x9f8   : > { %v4731_v9 = vpop.f32.mrf.mxu1 }
 0x9f9   : > { %5075 = vst [vmem:[%s8841_s27 + $0x2e0] sm:$0xff] %v4899_v50  ;;  %v4732_v25 = vadd.f32 %v4731_v9, %v10120_v37  ;;  %v10136_v50 = vld [vmem:[#allocation49_spill] sm:$0xff] }
 0x9fb   : > { %5077 = vst [vmem:[%s8841_s27 + $0x2f0] sm:$0xff] %v4732_v25 }
 0x9fe   : > { %v4900_v47 = vpop.f32.mrf.mxu2 }
 0x9ff   : > { %v4901_v26 = vadd.f32 %v4900_v47, %v10121_v30  ;;  %v10137_v47 = vld [vmem:[#allocation28_spill] sm:$0xff] }
 0xa00   : > { %v4734_v12 = vpop.f32.mrf.mxu1 }
 0xa01   : > { %5078 = vst [vmem:[%s8841_s27 + $0x2f8] sm:$0xff] %v4901_v26  ;;  %v4735_v14 = vadd.f32 %v4734_v12, %v10122_v43 }
 0xa03   : > { %5080 = vst [vmem:[%s8841_s27 + $0x308] sm:$0xff] %v4735_v14  ;;  %5680 = vmatmul.msk.bf16.gmra.mxu1 %vm298_vm0, %v10048_v2  ;;  %5712 = vmatmul.msk.bf16.gmra.mxu2 %vm298_vm0, %v10048_v2 }
 0xa06   : > { %v4903_v40 = vpop.f32.mrf.mxu2 }
 0xa07   : > { %v4904_v8 = vadd.f32 %v4903_v40, %v10123_v57  ;;  %v10138_v40 = vld [vmem:[#allocation27_spill] sm:$0xff] }
 0xa08   : > { %v4736_v38 = vpop.f32.mrf.mxu1 }
 0xa09   : > { %5081 = vst [vmem:[%s8841_s27 + $0x310] sm:$0xff] %v4904_v8  ;;  %v4737_v16 = vadd.f32 %v4736_v38, %v10124_v61 }
 0xa0b   : > { %5083 = vst [vmem:[%s8841_s27 + $0x320] sm:$0xff] %v4737_v16  ;;  %v10139_v16 = vld [vmem:[#allocation54_spill] sm:$0xff] }
 0xa0e   : > { %v4905_v55 = vpop.f32.mrf.mxu2 }
 0xa0f   : > { %v4906_v3 = vadd.f32 %v4905_v55, %v10125_v6 }
 0xa10   : > { %v4739_v24 = vpop.f32.mrf.mxu1 }
 0xa11   : > { %5084 = vst [vmem:[%s8841_s27 + $0x328] sm:$0xff] %v4906_v3  ;;  %v4740_v56 = vadd.f32 %v4739_v24, %v10126_v46  ;;  %v10140_v46 = vld [vmem:[#allocation59_spill] sm:$0xff] }
 0xa13   : > { %5086 = vst [vmem:[%s8841_s27 + $0x338] sm:$0xff] %v4740_v56  ;;  %5681 = vmatmul.msk.bf16.gmra.mxu1 %vm298_vm0, %v10053_v42  ;;  %5713 = vmatmul.msk.bf16.gmra.mxu2 %vm298_vm0, %v10053_v42  ;;  %v4258_v42 = vpop.f32.mrf.mxu3 }
 0xa16   : > { %v4908_v2 = vpop.f32.mrf.mxu2 }
 0xa17   : > { %v4909_v58 = vadd.f32 %v4908_v2, %v10127_v53 }
 0xa18   : > { %v4741_v34 = vpop.f32.mrf.mxu1 }
 0xa19   : > { %5087 = vst [vmem:[%s8841_s27 + $0x340] sm:$0xff] %v4909_v58  ;;  %v4742_v23 = vadd.f32 %v4741_v34, %v10128_v19  ;;  %v10141_v34 = vld [vmem:[#allocation36_spill] sm:$0xff] }
 0xa1b   : > { %5089 = vst [vmem:[%s8841_s27 + $0x350] sm:$0xff] %v4742_v23  ;;  %v4261_v45 = vpop.f32.mrf.mxu3 }
 0xa1e   : > { %v4910_v36 = vpop.f32.mrf.mxu2 }
 0xa1f   : > { %v4911_v27 = vadd.f32 %v4910_v36, %v10129_v60 }
 0xa20   : > { %v4744_v51 = vpop.f32.mrf.mxu1 }
 0xa21   : > { %5090 = vst [vmem:[%s8841_s27 + $0x358] sm:$0xff] %v4911_v27  ;;  %v4745_v4 = vadd.f32 %v4744_v51, %v10130_v0  ;;  %v10142_v27 = vld [vmem:[#allocation62_spill] sm:$0xff] }
 0xa23   : > { %5092 = vst [vmem:[%s8841_s27 + $0x368] sm:$0xff] %v4745_v4  ;;  %5682 = vmatmul.msk.bf16.gmra.mxu1 %vm298_vm0, %v10059_v62  ;;  %5714 = vmatmul.msk.bf16.gmra.mxu2 %vm298_vm0, %v10059_v62  ;;  %v4263_v10 = vpop.f32.mrf.mxu3 }
 0xa26   : > { %v4913_v1 = vpop.f32.mrf.mxu2 }
 0xa27   : > { %v4914_v54 = vadd.f32 %v4913_v1, %v10131_v32  ;;  %v10143_v1 = vld [vmem:[#allocation31_spill] sm:$0xff] }
 0xa28   : > { %v4746_v7 = vpop.f32.mrf.mxu1 }
 0xa29   : > { %5093 = vst [vmem:[%s8841_s27 + $0x370] sm:$0xff] %v4914_v54  ;;  %v4747_v17 = vadd.f32 %v4746_v7, %v10132_v48 }
 0xa2b   : > { %5095 = vst [vmem:[%s8841_s27 + $0x380] sm:$0xff] %v4747_v17 }
 0xa2e   : > { %v4915_v33 = vpop.f32.mrf.mxu2 }
 0xa2f   : > { %v4916_v15 = vadd.f32 %v4915_v33, %v9028_v22  ;;  %v10134_v22 = vld [vmem:[#allocation35_spill] sm:$0xff]  ;;  %v10144_v33 = vld [vmem:[#allocation30_spill] sm:$0xff] }
 0xa30   : > { %v4749_v31 = vpop.f32.mrf.mxu1 }
 0xa31   : > { %5096 = vst [vmem:[%s8841_s27 + $0x388] sm:$0xff] %v4916_v15  ;;  %v4750_v62 = vadd.f32 %v4749_v31, %v10133_v63  ;;  %v10145_v63 = vld [vmem:[#allocation32_spill] sm:$0xff] }
 0xa33   : > { %5098 = vst [vmem:[%s8841_s27 + $0x398] sm:$0xff] %v4750_v62  ;;  %5683 = vmatmul.msk.bf16.gmra.mxu1 %vm298_vm0, %v10064_v44  ;;  %5715 = vmatmul.msk.bf16.gmra.mxu2 %vm298_vm0, %v10064_v44 }
 0xa36   : > { %v4918_v49 = vpop.f32.mrf.mxu2 }
 0xa37   : > { %v4919_v39 = vadd.f32 %v4918_v49, %v9044_v59  ;;  %v4266_v59 = vpop.f32.mrf.mxu3 }
 0xa38   : > { %v4751_v28 = vpop.f32.mrf.mxu1 }
 0xa39   : > { %5099 = vst [vmem:[%s8841_s27 + $0x3a0] sm:$0xff] %v4919_v39  ;;  %v4752_v11 = vadd.f32 %v4751_v28, %v10134_v22 }
 0xa3b   : > { %5101 = vst [vmem:[%s8841_s27 + $0x3b0] sm:$0xff] %v4752_v11  ;;  %v10146_v11 = vld [vmem:[#allocation10_spill] sm:$0xff] }
 0xa3e   : > { %v4920_v13 = vpop.f32.mrf.mxu2 }
 0xa3f   : > { %v4921_v29 = vadd.f32 %v4920_v13, %v10135_v41  ;;  %v4268_v26 = vpop.f32.mrf.mxu3 }
 0xa40   : > { %v4754_v5 = vpop.f32.mrf.mxu1 }
 0xa41   : > { %5102 = vst [vmem:[%s8841_s27 + $0x3b8] sm:$0xff] %v4921_v29  ;;  %v4755_v9 = vadd.f32 %v4754_v5, %v10136_v50  ;;  %v10147_v50 = vld [vmem:[#allocation9_spill] sm:$0xff] }
 0xa43   : > { %5104 = vst [vmem:[%s8841_s27 + $0x3c8] sm:$0xff] %v4755_v9  ;;  %5684 = vmatmul.msk.bf16.gmra.mxu1 %vm298_vm0, %v10069_v21  ;;  %5716 = vmatmul.msk.bf16.gmra.mxu2 %vm298_vm0, %v10069_v21 }
 0xa46   : > { %v4923_v44 = vpop.f32.mrf.mxu2 }
 0xa47   : > { %v4924_v37 = vadd.f32 %v4923_v44, %v4256_v18  ;;  %v4271_v38 = vpop.f32.mrf.mxu3 }
 0xa48   : > { %v4756_v25 = vpop.f32.mrf.mxu1 }
 0xa49   : > { %5105 = vst [vmem:[%s8841_s27 + $0x3d0] sm:$0xff] %v4924_v37  ;;  %v4757_v30 = vadd.f32 %v4756_v25, %v10137_v47  ;;  %v10148_v47 = vld [vmem:[#allocation38_spill] sm:$0xff] }
 0xa4b   : > { %5107 = vst [vmem:[%s8841_s27 + $0x3e0] sm:$0xff] %v4757_v30 }
 0xa4e   : > { %v4925_v12 = vpop.f32.mrf.mxu2 }
 0xa4f   : > { %v4926_v43 = vadd.f32 %v4925_v12, %v4258_v42  ;;  %v4273_v2 = vpop.f32.mrf.mxu3 }
 0xa50   : > { %v4759_v14 = vpop.f32.mrf.mxu1 }
 0xa51   : > { %5108 = vst [vmem:[%s8841_s27 + $0x3e8] sm:$0xff] %v4926_v43  ;;  %v4760_v57 = vadd.f32 %v4759_v14, %v10138_v40  ;;  %v10149_v40 = vld [vmem:[#allocation37_spill] sm:$0xff] }
 0xa53   : > { %5110 = vst [vmem:[%s8841_s27 + $0x3f8] sm:$0xff] %v4760_v57  ;;  %5685 = vmatmul.msk.bf16.gmra.mxu1 %vm298_vm0, %v10074_v20  ;;  %5717 = vmatmul.msk.bf16.gmra.mxu2 %vm298_vm0, %v10074_v20 }
 0xa56   : > { %v4928_v21 = vpop.f32.mrf.mxu2 }
 0xa57   : > { %v4929_v8 = vadd.f32 %v4928_v21, %v4261_v45  ;;  %v4276_v23 = vpop.f32.mrf.mxu3 }
 0xa58   : > { %v4761_v61 = vpop.f32.mrf.mxu1 }
 0xa59   : > { %5111 = vst [vmem:[%s8841_s27 + $0x400] sm:$0xff] %v4929_v8  ;;  %v4762_v55 = vadd.f32 %v4761_v61, %v10139_v16  ;;  %v10150_v61 = vld [vmem:[#allocation13_spill] sm:$0xff] }
 0xa5b   : > { %5113 = vst [vmem:[%s8841_s27 + $0x410] sm:$0xff] %v4762_v55 }
 0xa5e   : > { %v4930_v6 = vpop.f32.mrf.mxu2 }
 0xa5f   : > { %v4931_v3 = vadd.f32 %v4930_v6, %v4263_v10 }
 0xa60   : > { %v4764_v24 = vpop.f32.mrf.mxu1 }
 0xa61   : > { %5114 = vst [vmem:[%s8841_s27 + $0x418] sm:$0xff] %v4931_v3  ;;  %v4765_v56 = vadd.f32 %v4764_v24, %v10140_v46  ;;  %v10151_v46 = vld [vmem:[#allocation12_spill] sm:$0xff] }
 0xa63   : > { %5116 = vst [vmem:[%s8841_s27 + $0x428] sm:$0xff] %v4765_v56  ;;  %5686 = vmatmul.msk.bf16.gmra.mxu1 %vm298_vm0, %v8832_v35  ;;  %5718 = vmatmul.msk.bf16.gmra.mxu2 %vm298_vm0, %v8832_v35  ;;  %v4278_v35 = vpop.f32.mrf.mxu3 }
 0xa66   : > { %v4933_v20 = vpop.f32.mrf.mxu2 }
 0xa67   : > { %v4934_v53 = vadd.f32 %v4933_v20, %v4266_v59 }
 0xa68   : > { %v4766_v58 = vpop.f32.mrf.mxu1 }
 0xa69   : > { %5117 = vst [vmem:[%s8841_s27 + $0x430] sm:$0xff] %v4934_v53  ;;  %v4767_v19 = vadd.f32 %v4766_v58, %v10141_v34  ;;  %v10152_v34 = vld [vmem:[#allocation64_spill] sm:$0xff] }
 0xa6b   : > { %5119 = vst [vmem:[%s8841_s27 + $0x440] sm:$0xff] %v4767_v19  ;;  %v4281_v48 = vpop.f32.mrf.mxu3 }
 0xa6e   : > { %v4935_v18 = vpop.f32.mrf.mxu2 }
 0xa6f   : > { %v4936_v36 = vadd.f32 %v4935_v18, %v4268_v26 }
 0xa70   : > { %v4769_v60 = vpop.f32.mrf.mxu1 }
 0xa71   : > { %5120 = vst [vmem:[%s8841_s27 + $0x448] sm:$0xff] %v4936_v36  ;;  %v4770_v51 = vadd.f32 %v4769_v60, %v10142_v27  ;;  %v10153_v27 = vld [vmem:[#allocation25_spill] sm:$0xff] }
 0xa73   : > { %5122 = vst [vmem:[%s8841_s27 + $0x458] sm:$0xff] %v4770_v51  ;;  %5687 = vmatmul.msk.bf16.gmra.mxu1 %vm298_vm0, %v8888_v52  ;;  %5719 = vmatmul.msk.bf16.gmra.mxu2 %vm298_vm0, %v8888_v52  ;;  %v4283_v49 = vpop.f32.mrf.mxu3 }
 0xa76   : > { %v4938_v0 = vpop.f32.mrf.mxu2 }
 0xa77   : > { %v4939_v4 = vadd.f32 %v4938_v0, %v4271_v38 }
 0xa78   : > { %v4771_v42 = vpop.f32.mrf.mxu1 }
 0xa79   : > { %5123 = vst [vmem:[%s8841_s27 + $0x460] sm:$0xff] %v4939_v4  ;;  %v4772_v32 = vadd.f32 %v4771_v42, %v10143_v1  ;;  %v10154_v1 = vld [vmem:[#allocation107_spill] sm:$0xff] }
 0xa7b   : > { %5125 = vst [vmem:[%s8841_s27 + $0x470] sm:$0xff] %v4772_v32  ;;  %v4286_v13 = vpop.f32.mrf.mxu3 }
 0xa7e   : > { %v4940_v54 = vpop.f32.mrf.mxu2 }
 0xa7f   : > { %v4941_v7 = vadd.f32 %v4940_v54, %v4273_v2 }
 0xa80   : > { %v4774_v17 = vpop.f32.mrf.mxu1 }
 0xa81   : > { %5126 = vst [vmem:[%s8841_s27 + $0x478] sm:$0xff] %v4941_v7  ;;  %v4775_v15 = vadd.f32 %v4774_v17, %v10144_v33  ;;  %v10155_v17 = vld [vmem:[#allocation24_spill] sm:$0xff] }
 0xa83   : > { %5128 = vst [vmem:[%s8841_s27 + $0x488] sm:$0xff] %v4775_v15  ;;  %v4288_v59 = vpop.f32.mrf.mxu3 }
 0xa86   : > { %v4943_v52 = vpop.f32.mrf.mxu2 }
 0xa87   : > { %v4944_v45 = vadd.f32 %v4943_v52, %v4276_v23 }
 0xa88   : > { %v4776_v31 = vpop.f32.mrf.mxu1 }
 0xa89   : > { %5129 = vst [vmem:[%s8841_s27 + $0x490] sm:$0xff] %v4944_v45  ;;  %v4777_v62 = vadd.f32 %v4776_v31, %v10145_v63  ;;  %v10156_v63 = vld [vmem:[#allocation106_spill] sm:$0xff] }
 0xa8b   : > { %5131 = vst [vmem:[%s8841_s27 + $0x4a0] sm:$0xff] %v4777_v62  ;;  %v4291_v43 = vpop.f32.mrf.mxu3 }
 0xa8e   : > { %v4945_v39 = vpop.f32.mrf.mxu2 }
 0xa8f   : > { %v4946_v28 = vadd.f32 %v4945_v39, %v4278_v35 }
 0xa90   : > { %v4779_v22 = vpop.f32.mrf.mxu1 }
 0xa91   : > { %5132 = vst [vmem:[%s8841_s27 + $0x4a8] sm:$0xff] %v4946_v28  ;;  %v4780_v10 = vadd.f32 %v4779_v22, %v10146_v11  ;;  %v10157_v11 = vld [vmem:[#allocation103_spill] sm:$0xff] }
 0xa93   : > { %5134 = vst [vmem:[%s8841_s27 + $0x4b8] sm:$0xff] %v4780_v10  ;;  %v4293_v55 = vpop.f32.mrf.mxu3 }
 0xa96   : > { %v4948_v41 = vpop.f32.mrf.mxu2 }
 0xa97   : > { %v4949_v29 = vadd.f32 %v4948_v41, %v4281_v48 }
 0xa98   : > { %v4781_v5 = vpop.f32.mrf.mxu1 }
 0xa99   : > { %5135 = vst [vmem:[%s8841_s27 + $0x4c0] sm:$0xff] %v4949_v29  ;;  %v4782_v9 = vadd.f32 %v4781_v5, %v10147_v50  ;;  %v10158_v50 = vld [vmem:[#allocation105_spill] sm:$0xff] }
 0xa9b   : > { %5137 = vst [vmem:[%s8841_s27 + $0x4d0] sm:$0xff] %v4782_v9  ;;  %v4296_v2 = vpop.f32.mrf.mxu3 }
 0xa9e   : > { %v4950_v44 = vpop.f32.mrf.mxu2 }
 0xa9f   : > { %v4951_v37 = vadd.f32 %v4950_v44, %v4283_v49 }
 0xaa0   : > { %v4784_v25 = vpop.f32.mrf.mxu1 }
 0xaa1   : > { %5138 = vst [vmem:[%s8841_s27 + $0x4d8] sm:$0xff] %v4951_v37  ;;  %v4785_v30 = vadd.f32 %v4784_v25, %v10148_v47  ;;  %v10159_v47 = vld [vmem:[#allocation46_spill] sm:$0xff] }
 0xaa3   : > { %5140 = vst [vmem:[%s8841_s27 + $0x4e8] sm:$0xff] %v4785_v30  ;;  %v4298_v23 = vpop.f32.mrf.mxu3 }
 0xaa6   : > { %v4953_v26 = vpop.f32.mrf.mxu2 }
 0xaa7   : > { %v4954_v12 = vadd.f32 %v4953_v26, %v4286_v13 }
 0xaa8   : > { %v4786_v14 = vpop.f32.mrf.mxu1 }
 0xaa9   : > { %5141 = vst [vmem:[%s8841_s27 + $0x4f0] sm:$0xff] %v4954_v12  ;;  %v4787_v57 = vadd.f32 %v4786_v14, %v10149_v40 }
 0xaab   : > { %5143 = vst [vmem:[%s8841_s27 + $0x500] sm:$0xff] %v4787_v57  ;;  %v4301_v4 = vpop.f32.mrf.mxu3 }
 0xaae   : > { %v4955_v21 = vpop.f32.mrf.mxu2 }
 0xaaf   : > { %v4956_v8 = vadd.f32 %v4955_v21, %v4288_v59 }
 0xab0   : > { %v4789_v38 = vpop.f32.mrf.mxu1 }
 0xab1   : > { %5144 = vst [vmem:[%s8841_s27 + $0x508] sm:$0xff] %v4956_v8  ;;  %v4790_v16 = vadd.f32 %v4789_v38, %v10150_v61 }
 0xab3   : > { %5146 = vst [vmem:[%s8841_s27 + $0x518] sm:$0xff] %v4790_v16  ;;  %v4303_v15 = vpop.f32.mrf.mxu3 }
 0xab6   : > { %v4958_v6 = vpop.f32.mrf.mxu2 }
 0xab7   : > { %v4959_v3 = vadd.f32 %v4958_v6, %v4291_v43 }
 0xab8   : > { %v4791_v24 = vpop.f32.mrf.mxu1 }
 0xab9   : > { %5147 = vst [vmem:[%s8841_s27 + $0x520] sm:$0xff] %v4959_v3  ;;  %v4792_v56 = vadd.f32 %v4791_v24, %v10151_v46 }
 0xabb   : > { %5149 = vst [vmem:[%s8841_s27 + $0x530] sm:$0xff] %v4792_v56  ;;  %v4306_v49 = vpop.f32.mrf.mxu3 }
 0xabe   : > { %v4960_v20 = vpop.f32.mrf.mxu2 }
 0xabf   : > { %v4961_v53 = vadd.f32 %v4960_v20, %v4293_v55 }
 0xac0   : > { %v4794_v58 = vpop.f32.mrf.mxu1 }
 0xac1   : > { %5150 = vst [vmem:[%s8841_s27 + $0x538] sm:$0xff] %v4961_v53  ;;  %v4795_v19 = vadd.f32 %v4794_v58, %v10152_v34 }
 0xac3   : > { %5152 = vst [vmem:[%s8841_s27 + $0x548] sm:$0xff] %v4795_v19  ;;  %v4308_v13 = vpop.f32.mrf.mxu3 }
 0xac6   : > { %v4963_v18 = vpop.f32.mrf.mxu2 }
 0xac7   : > { %v4964_v36 = vadd.f32 %v4963_v18, %v4296_v2 }
 0xac8   : > { %v4796_v60 = vpop.f32.mrf.mxu1 }
 0xac9   : > { %5153 = vst [vmem:[%s8841_s27 + $0x550] sm:$0xff] %v4964_v36  ;;  %v4797_v51 = vadd.f32 %v4796_v60, %v10153_v27 }
 0xacb   : > { %5155 = vst [vmem:[%s8841_s27 + $0x560] sm:$0xff] %v4797_v51  ;;  %v4311_v59 = vpop.f32.mrf.mxu3 }
 0xace   : > { %v4965_v35 = vpop.f32.mrf.mxu2 }
 0xacf   : > { %v4966_v0 = vadd.f32 %v4965_v35, %v4298_v23 }
 0xad0   : > { %v4799_v42 = vpop.f32.mrf.mxu1 }
 0xad1   : > { %5156 = vst [vmem:[%s8841_s27 + $0x568] sm:$0xff] %v4966_v0  ;;  %v4800_v32 = vadd.f32 %v4799_v42, %v10154_v1 }
 0xad3   : > { %5158 = vst [vmem:[%s8841_s27 + $0x578] sm:$0xff] %v4800_v32  ;;  %v4313_v26 = vpop.f32.mrf.mxu3 }
 0xad6   : > { %v4968_v54 = vpop.f32.mrf.mxu2 }
 0xad7   : > { %v4969_v7 = vadd.f32 %v4968_v54, %v4301_v4 }
 0xad8   : > { %v4801_v48 = vpop.f32.mrf.mxu1 }
 0xad9   : > { %5159 = vst [vmem:[%s8841_s27 + $0x580] sm:$0xff] %v4969_v7  ;;  %v4802_v33 = vadd.f32 %v4801_v48, %v10155_v17 }
 0xadb   : > { %5161 = vst [vmem:[%s8841_s27 + $0x590] sm:$0xff] %v4802_v33 }
 0xade   : > { %v4970_v52 = vpop.f32.mrf.mxu2 }
 0xadf   : > { %v4971_v45 = vadd.f32 %v4970_v52, %v4303_v15 }
 0xae0   : > { %v4804_v31 = vpop.f32.mrf.mxu1 }
 0xae1   : > { %5162 = vst [vmem:[%s8841_s27 + $0x598] sm:$0xff] %v4971_v45  ;;  %v4805_v62 = vadd.f32 %v4804_v31, %v10156_v63 }
 0xae3   : > { %5164 = vst [vmem:[%s8841_s27 + $0x5a8] sm:$0xff] %v4805_v62 }
 0xae6   : > { %v4973_v39 = vpop.f32.mrf.mxu2 }
 0xae7   : > { %v4974_v28 = vadd.f32 %v4973_v39, %v4306_v49 }
 0xae8   : > { %v4806_v22 = vpop.f32.mrf.mxu1 }
 0xae9   : > { %5165 = vst [vmem:[%s8841_s27 + $0x5b0] sm:$0xff] %v4974_v28  ;;  %v4807_v10 = vadd.f32 %v4806_v22, %v10157_v11 }
 0xaeb   : > { %5167 = vst [vmem:[%s8841_s27 + $0x5c0] sm:$0xff] %v4807_v10 }
 0xaee   : > { %v4975_v41 = vpop.f32.mrf.mxu2 }
 0xaef   : > { %v4976_v29 = vadd.f32 %v4975_v41, %v4308_v13 }
 0xaf0   : > { %v4809_v5 = vpop.f32.mrf.mxu1 }
 0xaf1   : > { %5168 = vst [vmem:[%s8841_s27 + $0x5c8] sm:$0xff] %v4976_v29  ;;  %v4810_v9 = vadd.f32 %v4809_v5, %v10158_v50 }
 0xaf3   : > { %5170 = vst [vmem:[%s8841_s27 + $0x5d8] sm:$0xff] %v4810_v9 }
 0xaf6   : > { %v4978_v44 = vpop.f32.mrf.mxu2 }
 0xaf7   : > { %v4979_v37 = vadd.f32 %v4978_v44, %v4311_v59 }
 0xaf8   : > { %v4811_v25 = vpop.f32.mrf.mxu1 }
 0xaf9   : > { %5171 = vst [vmem:[%s8841_s27 + $0x5e0] sm:$0xff] %v4979_v37  ;;  %v4812_v30 = vadd.f32 %v4811_v25, %v10159_v47 }
 0xafb   : > { %5173 = vst [vmem:[%s8841_s27 + $0x5f0] sm:$0xff] %v4812_v30 }
 0xafe   : > { %v4980_v12 = vpop.f32.mrf.mxu2 }
 0xaff   : > { %v4981_v43 = vadd.f32 %v4980_v12, %v4313_v26 }
 0xb01   : > { %5174 = vst [vmem:[%s8841_s27 + $0x5f8] sm:$0xff] %v4981_v43 }
 0xb02 PF: > { %s13_s9 = sadd.s32 1, %s6215_s9  }
 0xb03   : > { %p10_p7 = scmp.ge.s32.totalorder %s13_s9, 4  }
 0xb05   :  { %12 = sbr.rel (!%p10_p7) target bundleno = 1 (0x1), region = 63 }
 0xb0a   :  { %5199 = vsyncpa [#allocation3], 1 }
 0xb0b   :  { %5201 = vsyncpa [#allocation3 + $0x1], 1 }

</bundles_post_ra>
